<compile_context>
chip_gen: v5e
topology: v5e:2x2
jax: 0.10.0
libtpu: 0.0.40
codegen_flags: <defaults>
</compile_context>

<pallas_src>
import functools
import math

import numpy as np

import jax
import jax.numpy as jnp
from jax.experimental import pallas as pl
from jax.experimental.pallas import tpu as pltpu

_NODE_TILE = 256   # node-row tile (M)
_K_TILE = 256      # neighbour column block (K of the aggregation matmul)


# ----------------------------------------------------------------------------
# Pallas kernel: one SAGEConv('mean') layer, block-sparse aggregation.
# Grid = (row tiles ["parallel"], neighbour-block slots ["arbitrary"]).
# ----------------------------------------------------------------------------
def _sage_conv_kernel(tbl_ref, cnt_ref,                       # scalar prefetch
                      adj_ref, hblk_ref, hrow_ref, w_ref, b_ref,   # inputs
                      out_ref,                                 # output
                      acc_ref, cat_ref,                        # VMEM scratch
                      *, f_in: int, apply_relu: bool):
    i = pl.program_id(0)          # node-row tile index
    k = pl.program_id(1)          # neighbour block slot
    nk = pl.num_programs(1)

    @pl.when(k == 0)
    def _init():
        acc_ref[...] = jnp.zeros_like(acc_ref)

    # Accumulate this neighbour block only if it is a real (non-padded) entry
    # of the block table.  A_norm rows are pre-scaled by 1/max(in_deg, 1), so
    # the accumulator directly holds the neighbour mean.
    @pl.when(k < cnt_ref[i])
    def _accumulate():
        acc_ref[...] += jax.lax.dot_general(
            adj_ref[...], hblk_ref[...], (((1,), (0,)), ((), ())),
            preferred_element_type=jnp.float32)

    @pl.when(k == nk - 1)
    def _finalize():
        # Fused projection: [h_self | mean_neigh] @ [W_self; W_neigh] + b.
        cat_ref[:, :f_in] = hrow_ref[...]
        cat_ref[:, f_in:] = acc_ref[...].astype(jnp.bfloat16)
        out = jax.lax.dot_general(
            cat_ref[...], w_ref[...], (((1,), (0,)), ((), ())),
            preferred_element_type=jnp.float32) + b_ref[...]
        if apply_relu:
            out = jnp.maximum(out, 0.0)
        out_ref[...] = out.astype(out_ref.dtype)


# ----------------------------------------------------------------------------
# Wrapper: one SAGEConv layer = one pallas_call
# ----------------------------------------------------------------------------
def sage_conv(adj_norm_bf16, block_table, block_count, h, w_stacked, bias,
              *, apply_relu, out_dtype,
              node_tile=_NODE_TILE, k_tile=_K_TILE):
    num_nodes = adj_norm_bf16.shape[0]
    f_in = h.shape[1]
    f_out = w_stacked.shape[1]
    assert num_nodes % node_tile == 0 and num_nodes % k_tile == 0, \
        "pad node count to a tile multiple (padded columns must be zero)"
    assert f_in % 128 == 0 and f_out % 128 == 0, "keep feature dims lane-dense"
    num_row_tiles = num_nodes // node_tile
    max_blocks = block_table.shape[1]

    h_bf = h if h.dtype == jnp.bfloat16 else h.astype(jnp.bfloat16)
    kernel = functools.partial(_sage_conv_kernel, f_in=f_in,
                               apply_relu=apply_relu)

    grid_spec = pltpu.PrefetchScalarGridSpec(
        num_scalar_prefetch=2,
        grid=(num_row_tiles, max_blocks),
        in_specs=[
            # normalised adjacency tile (row tile i, neighbour block tbl[i,k])
            pl.BlockSpec((node_tile, k_tile),
                         lambda i, k, tbl, cnt: (i, tbl[i, k])),
            # neighbour features for that block
            pl.BlockSpec((k_tile, f_in),
                         lambda i, k, tbl, cnt: (tbl[i, k], 0)),
            # this tile's own features (self term); constant across k
            pl.BlockSpec((node_tile, f_in),
                         lambda i, k, tbl, cnt: (i, 0)),
            # stacked [W_self; W_neigh] and bias: resident across grid steps
            pl.BlockSpec((2 * f_in, f_out), lambda i, k, tbl, cnt: (0, 0)),
            pl.BlockSpec((1, f_out), lambda i, k, tbl, cnt: (0, 0)),
        ],
        out_specs=pl.BlockSpec((node_tile, f_out),
                               lambda i, k, tbl, cnt: (i, 0)),
        scratch_shapes=[
            pltpu.VMEM((node_tile, f_in), jnp.float32),        # aggregation acc
            pltpu.VMEM((node_tile, 2 * f_in), jnp.bfloat16),   # fused-K operand
        ],
    )

    # Advisory cost (upper bound: counts all table slots incl. padding).
    n_blk = num_row_tiles * max_blocks
    flops = (2 * n_blk * node_tile * k_tile * f_in          # aggregation
             + 2 * num_nodes * (2 * f_in) * f_out)          # fused projection
    bytes_accessed = (n_blk * node_tile * k_tile * 2        # adjacency blocks
                      + n_blk * k_tile * f_in * 2           # neighbour features
                      + num_nodes * f_in * 2                # self features
                      + 2 * f_in * f_out * 2 + f_out * 4    # weights + bias
                      + num_nodes * f_out * jnp.dtype(out_dtype).itemsize)

    return pl.pallas_call(
        kernel,
        out_shape=jax.ShapeDtypeStruct((num_nodes, f_out), out_dtype),
        grid_spec=grid_spec,
        compiler_params=pltpu.CompilerParams(
            dimension_semantics=("parallel", "arbitrary"),
        ),
        cost_estimate=pl.CostEstimate(flops=flops, transcendentals=0,
                                      bytes_accessed=bytes_accessed),
    )(block_table, block_count, adj_norm_bf16, h_bf, h_bf, w_stacked, bias)


def graphsage_forward(adj_norm_bf16, block_table, block_count, features,
                      params):
    """GraphSAGE.forward: SAGEConv layers with ReLU between (not after last)."""
    h = features
    n_layers = len(params)
    for li, (w_self, w_neigh, bias) in enumerate(params):
        is_last = li == n_layers - 1
        w_stacked = jnp.concatenate([w_self, w_neigh], axis=0
                                    ).astype(jnp.bfloat16)
        b = bias.reshape(1, -1).astype(jnp.float32)
        h = sage_conv(adj_norm_bf16, block_table, block_count, h, w_stacked, b,
                      apply_relu=not is_last,
                      out_dtype=jnp.float32 if is_last else jnp.bfloat16)
    return h


# ----------------------------------------------------------------------------
# Host-side block-sparsity metadata (numpy; grid extents must be static)
# ----------------------------------------------------------------------------
def build_block_table(adj_np, node_tile=_NODE_TILE, k_tile=_K_TILE):
    n = adj_np.shape[0]
    nrt, ncb = n // node_tile, n // k_tile
    nz = adj_np.reshape(nrt, node_tile, ncb, k_tile).sum(axis=(1, 3)) > 0
    counts = nz.sum(axis=1).astype(np.int32)
    max_blocks = max(1, int(counts.max()))
    table = np.zeros((nrt, max_blocks), dtype=np.int32)
    for r in range(nrt):
        idx = np.flatnonzero(nz[r])
        table[r, :idx.size] = idx          # padded entries -> block 0 (skipped)
    return jnp.asarray(table), jnp.asarray(counts)


# ----------------------------------------------------------------------------
# Deterministic parameter init (PyTorch-Linear-like uniform)
# ----------------------------------------------------------------------------
def init_params(key, in_feats, hidden_feats, out_feats, num_layers):
    shapes = ([(in_feats, hidden_feats)]
              + [(hidden_feats, hidden_feats)] * (num_layers - 2)
              + [(hidden_feats, out_feats)])
    params = []
    for li, (fi, fo) in enumerate(shapes):
        k1, k2, k3 = jax.random.split(jax.random.fold_in(key, li), 3)
        bound = 1.0 / math.sqrt(fi)
        w_self = jax.random.uniform(k1, (fi, fo), jnp.float32, -bound, bound)
        w_neigh = jax.random.uniform(k2, (fi, fo), jnp.float32, -bound, bound)
        bias = jax.random.uniform(k3, (fo,), jnp.float32, -bound, bound)
        params.append((w_self, w_neigh, bias))
    return params


# ----------------------------------------------------------------------------
# Pure-JAX f32 reference (mirrors the PyTorch forward) for verification
# ----------------------------------------------------------------------------
def ref_graphsage(adj_f32, features, params):
    deg = jnp.sum(adj_f32, axis=1, keepdims=True)
    inv = 1.0 / jnp.maximum(deg, 1.0)
    h = features
    for li, (w_self, w_neigh, bias) in enumerate(params):
        neigh = (adj_f32 @ h) * inv
        h_new = h @ w_self + neigh @ w_neigh + bias[None, :]
        if li != len(params) - 1:
            h_new = jax.nn.relu(h_new)
        h = h_new
    return h


# ----------------------------------------------------------------------------
if __name__ == "__main__":
    NUM_NODES = 512                                   # 2 row tiles of 256
    IN_FEATS, HIDDEN_FEATS, OUT_FEATS = 128, 256, 128  # lane-dense (x128)
    NUM_LAYERS = 3

    key = jax.random.PRNGKey(0)
    k_feat, k_adj, k_par = jax.random.split(key, 3)

    features = jax.random.normal(k_feat, (NUM_NODES, IN_FEATS), jnp.float32)

    # Random directed graph, ~5% density; A[i, j] = 1 iff edge j -> i.
    adj = (jax.random.uniform(k_adj, (NUM_NODES, NUM_NODES)) < 0.05
           ).astype(jnp.float32)
    # Deterministically empty one 256x256 neighbour block so the block-sparse
    # skip path (padded table entries) is actually exercised.
    adj = adj.at[_NODE_TILE:, _K_TILE:].set(0.0)

    deg = jnp.sum(adj, axis=1, keepdims=True)
    invdeg = 1.0 / jnp.maximum(deg, 1.0)
    # Mean aggregation folded into the adjacency (no in-kernel invdeg input);
    # ~0.4% relative rounding from bf16 on 1/deg, validated below.
    adj_norm_bf16 = (adj * invdeg).astype(jnp.bfloat16)

    block_table, block_count = build_block_table(np.asarray(adj))

    params = init_params(k_par, IN_FEATS, HIDDEN_FEATS, OUT_FEATS, NUM_LAYERS)

    fwd = jax.jit(graphsage_forward)
    out = fwd(adj_norm_bf16, block_table, block_count, features, params)
    out = jax.block_until_ready(out)

    ref = ref_graphsage(adj, features, params)
    assert out.shape == (NUM_NODES, OUT_FEATS)
    assert bool(jnp.all(jnp.isfinite(out)))
    max_err = float(jnp.max(jnp.abs(out - ref)))
    # bf16 MXU operands / bf16 hidden activations with f32 accumulation.
    assert jnp.allclose(out, ref, atol=5e-2, rtol=5e-2), max_err

    print("KERNEL_OK")
</pallas_src>

<mosaic_0001>
module attributes {stable_mosaic.version = 11 : i64} {
  func.func @_sage_conv_kernel(%arg0: i32, %arg1: i32, %arg2: memref<2x2xi32, #tpu.memory_space<smem>>, %arg3: memref<2xi32, #tpu.memory_space<smem>>, %arg4: memref<256x256xbf16, #tpu.memory_space<vmem>>, %arg5: memref<256x128xbf16, #tpu.memory_space<vmem>>, %arg6: memref<256x128xbf16, #tpu.memory_space<vmem>>, %arg7: memref<256x256xbf16, #tpu.memory_space<vmem>>, %arg8: memref<1x256xf32, #tpu.memory_space<vmem>>, %arg9: memref<256x256xbf16, #tpu.memory_space<vmem>>, %arg10: memref<256x128xf32, #tpu.memory_space<vmem>>, %arg11: memref<256x256xbf16, #tpu.memory_space<vmem>>) attributes {dimension_semantics = [#tpu.dimension_semantics<parallel>, #tpu.dimension_semantics<arbitrary>], iteration_bounds = array<i64: 2, 2>, scalar_prefetch = 2 : i64, scratch_operands = 2 : i64, tpu.core_type = #tpu.core_type<tc>, window_params = [{transform_indices = @transform_0, window_bounds = array<i64: 256, 256>}, {transform_indices = @transform_1, window_bounds = array<i64: 256, 128>}, {transform_indices = @transform_2, window_bounds = array<i64: 256, 128>}, {pipeline_mode = #tpu.pipeline_mode<synchronous>, transform_indices = @transform_3, window_bounds = array<i64: 256, 256>}, {pipeline_mode = #tpu.pipeline_mode<synchronous>, transform_indices = @transform_4, window_bounds = array<i64: 1, 256>}, {transform_indices = @transform_5, window_bounds = array<i64: 256, 256>}]} {
    %c0_i32 = arith.constant 0 : i32
    %0 = arith.cmpi eq, %arg1, %c0_i32 : i32
    %1 = arith.extui %0 : i1 to i32
    %c0_i32_0 = arith.constant 0 : i32
    %2 = arith.cmpi ne, %1, %c0_i32_0 : i32
    scf.if %2 {
      %cst = arith.constant 0.000000e+00 : f32
      %11 = vector.broadcast %cst : f32 to vector<256x128xf32>
      %c0 = arith.constant 0 : index
      %c0_3 = arith.constant 0 : index
      %12 = vector.load %arg10[%c0, %c0_3] : memref<256x128xf32, #tpu.memory_space<vmem>>, vector<256x128xf32>
      tpu.vector_store %arg10[%c0, %c0_3], %11 {strides = array<i32>} : memref<256x128xf32, #tpu.memory_space<vmem>>, vector<256x128xf32>,
    } else {
    }
    %3 = arith.index_cast %arg0 : i32 to index
    %4 = memref.load %arg3[%3] : memref<2xi32, #tpu.memory_space<smem>>
    %5 = arith.cmpi slt, %arg1, %4 : i32
    %6 = arith.extui %5 : i1 to i32
    %c0_i32_1 = arith.constant 0 : i32
    %7 = arith.cmpi ne, %6, %c0_i32_1 : i32
    scf.if %7 {
      %c0 = arith.constant 0 : index
      %c0_3 = arith.constant 0 : index
      %11 = vector.load %arg10[%c0, %c0_3] : memref<256x128xf32, #tpu.memory_space<vmem>>, vector<256x128xf32>
      %c0_4 = arith.constant 0 : index
      %c0_5 = arith.constant 0 : index
      %12 = vector.load %arg4[%c0_4, %c0_5] : memref<256x256xbf16, #tpu.memory_space<vmem>>, vector<256x256xbf16>
      %c0_6 = arith.constant 0 : index
      %c0_7 = arith.constant 0 : index
      %13 = vector.load %arg5[%c0_6, %c0_7] : memref<256x128xbf16, #tpu.memory_space<vmem>>, vector<256x128xbf16>
      %cst = arith.constant dense<0.000000e+00> : vector<256x128xf32>
      %14 = tpu.matmul %12, %13, %cst {dimension_numbers = #tpu.dot_dimension_numbers<[1], [0], [0], [1], [0, 0, 1, 1], [], []>} : vector<256x256xbf16>, vector<256x128xbf16>, vector<256x128xf32> -> vector<256x128xf32>
      %15 = arith.addf %11, %14 : vector<256x128xf32>
      %c0_8 = arith.constant 0 : index
      %c0_9 = arith.constant 0 : index
      %16 = vector.load %arg10[%c0_8, %c0_9] : memref<256x128xf32, #tpu.memory_space<vmem>>, vector<256x128xf32>
      tpu.vector_store %arg10[%c0_8, %c0_9], %15 {strides = array<i32>} : memref<256x128xf32, #tpu.memory_space<vmem>>, vector<256x128xf32>,
    } else {
    }
    %c1_i32 = arith.constant 1 : i32
    %8 = arith.cmpi eq, %arg1, %c1_i32 : i32
    %9 = arith.extui %8 : i1 to i32
    %c0_i32_2 = arith.constant 0 : i32
    %10 = arith.cmpi ne, %9, %c0_i32_2 : i32
    scf.if %10 {
      %c0 = arith.constant 0 : index
      %c0_3 = arith.constant 0 : index
      %11 = vector.load %arg6[%c0, %c0_3] : memref<256x128xbf16, #tpu.memory_space<vmem>>, vector<256x128xbf16>
      %c0_4 = arith.constant 0 : index
      %c0_5 = arith.constant 0 : index
      %12 = vector.load %arg11[%c0_4, %c0_5] : memref<256x256xbf16, #tpu.memory_space<vmem>>, vector<256x128xbf16>
      tpu.vector_store %arg11[%c0_4, %c0_5], %11 {strides = array<i32>} : memref<256x256xbf16, #tpu.memory_space<vmem>>, vector<256x128xbf16>,
      %c0_6 = arith.constant 0 : index
      %c0_7 = arith.constant 0 : index
      %13 = vector.load %arg10[%c0_6, %c0_7] : memref<256x128xf32, #tpu.memory_space<vmem>>, vector<256x128xf32>
      %14 = arith.truncf %13 : vector<256x128xf32> to vector<256x128xbf16>
      %c0_8 = arith.constant 0 : index
      %c128 = arith.constant 128 : index
      %15 = vector.load %arg11[%c0_8, %c128] : memref<256x256xbf16, #tpu.memory_space<vmem>>, vector<256x128xbf16>
      tpu.vector_store %arg11[%c0_8, %c128], %14 {strides = array<i32>} : memref<256x256xbf16, #tpu.memory_space<vmem>>, vector<256x128xbf16>,
      %c0_9 = arith.constant 0 : index
      %c0_10 = arith.constant 0 : index
      %16 = vector.load %arg11[%c0_9, %c0_10] : memref<256x256xbf16, #tpu.memory_space<vmem>>, vector<256x256xbf16>
      %c0_11 = arith.constant 0 : index
      %c0_12 = arith.constant 0 : index
      %17 = vector.load %arg7[%c0_11, %c0_12] : memref<256x256xbf16, #tpu.memory_space<vmem>>, vector<256x256xbf16>
      %cst = arith.constant dense<0.000000e+00> : vector<256x256xf32>
      %18 = tpu.matmul %16, %17, %cst {dimension_numbers = #tpu.dot_dimension_numbers<[1], [0], [0], [1], [0, 0, 1, 1], [], []>} : vector<256x256xbf16>, vector<256x256xbf16>, vector<256x256xf32> -> vector<256x256xf32>
      %c0_13 = arith.constant 0 : index
      %c0_14 = arith.constant 0 : index
      %19 = vector.load %arg8[%c0_13, %c0_14] : memref<1x256xf32, #tpu.memory_space<vmem>>, vector<1x256xf32>
      %20 = vector.broadcast %19 : vector<1x256xf32> to vector<256x256xf32>
      %21 = arith.addf %18, %20 : vector<256x256xf32>
      %cst_15 = arith.constant 0.000000e+00 : f32
      %22 = vector.broadcast %cst_15 : f32 to vector<256x256xf32>
      %23 = arith.maximumf %21, %22 : vector<256x256xf32>
      %24 = arith.truncf %23 : vector<256x256xf32> to vector<256x256xbf16>
      %c0_16 = arith.constant 0 : index
      %c0_17 = arith.constant 0 : index
      %25 = vector.load %arg9[%c0_16, %c0_17] : memref<256x256xbf16, #tpu.memory_space<vmem>>, vector<256x256xbf16>
      tpu.vector_store %arg9[%c0_16, %c0_17], %24 {strides = array<i32>} : memref<256x256xbf16, #tpu.memory_space<vmem>>, vector<256x256xbf16>,
    } else {
    }
    return
  }
  func.func @transform_0(%arg0: i32, %arg1: i32, %arg2: memref<2x2xi32, #tpu.memory_space<smem>>, %arg3: memref<2xi32, #tpu.memory_space<smem>>) -> (i32, i32) {
    %0 = arith.index_cast %arg0 : i32 to index
    %1 = arith.index_cast %arg1 : i32 to index
    %2 = memref.load %arg2[%0, %1] : memref<2x2xi32, #tpu.memory_space<smem>>
    %c0_i32 = arith.constant 0 : i32
    return %arg0, %2 : i32, i32
  }
  func.func @transform_1(%arg0: i32, %arg1: i32, %arg2: memref<2x2xi32, #tpu.memory_space<smem>>, %arg3: memref<2xi32, #tpu.memory_space<smem>>) -> (i32, i32) {
    %0 = arith.index_cast %arg0 : i32 to index
    %1 = arith.index_cast %arg1 : i32 to index
    %2 = memref.load %arg2[%0, %1] : memref<2x2xi32, #tpu.memory_space<smem>>
    %c0_i32 = arith.constant 0 : i32
    %c0_i32_0 = arith.constant 0 : i32
    return %2, %c0_i32 : i32, i32
  }
  func.func @transform_2(%arg0: i32, %arg1: i32, %arg2: memref<2x2xi32, #tpu.memory_space<smem>>, %arg3: memref<2xi32, #tpu.memory_space<smem>>) -> (i32, i32) {
    %c0_i32 = arith.constant 0 : i32
    %c0_i32_0 = arith.constant 0 : i32
    return %arg0, %c0_i32 : i32, i32
  }
  func.func @transform_3(%arg0: i32, %arg1: i32, %arg2: memref<2x2xi32, #tpu.memory_space<smem>>, %arg3: memref<2xi32, #tpu.memory_space<smem>>) -> (i32, i32) {
    %c0_i32 = arith.constant 0 : i32
    %c0_i32_0 = arith.constant 0 : i32
    %c0_i32_1 = arith.constant 0 : i32
    return %c0_i32, %c0_i32_0 : i32, i32
  }
  func.func @transform_4(%arg0: i32, %arg1: i32, %arg2: memref<2x2xi32, #tpu.memory_space<smem>>, %arg3: memref<2xi32, #tpu.memory_space<smem>>) -> (i32, i32) {
    %c0_i32 = arith.constant 0 : i32
    %c0_i32_0 = arith.constant 0 : i32
    %c0_i32_1 = arith.constant 0 : i32
    return %c0_i32, %c0_i32_0 : i32, i32
  }
  func.func @transform_5(%arg0: i32, %arg1: i32, %arg2: memref<2x2xi32, #tpu.memory_space<smem>>, %arg3: memref<2xi32, #tpu.memory_space<smem>>) -> (i32, i32) {
    %c0_i32 = arith.constant 0 : i32
    %c0_i32_0 = arith.constant 0 : i32
    return %arg0, %c0_i32 : i32, i32
  }
}

module attributes {stable_mosaic.version = 11 : i64} {
  func.func @_sage_conv_kernel(%arg0: i32, %arg1: i32, %arg2: memref<2x2xi32, #tpu.memory_space<smem>>, %arg3: memref<2xi32, #tpu.memory_space<smem>>, %arg4: memref<256x256xbf16, #tpu.memory_space<vmem>>, %arg5: memref<256x256xbf16, #tpu.memory_space<vmem>>, %arg6: memref<256x256xbf16, #tpu.memory_space<vmem>>, %arg7: memref<512x256xbf16, #tpu.memory_space<vmem>>, %arg8: memref<1x256xf32, #tpu.memory_space<vmem>>, %arg9: memref<256x256xbf16, #tpu.memory_space<vmem>>, %arg10: memref<256x256xf32, #tpu.memory_space<vmem>>, %arg11: memref<256x512xbf16, #tpu.memory_space<vmem>>) attributes {dimension_semantics = [#tpu.dimension_semantics<parallel>, #tpu.dimension_semantics<arbitrary>], iteration_bounds = array<i64: 2, 2>, scalar_prefetch = 2 : i64, scratch_operands = 2 : i64, tpu.core_type = #tpu.core_type<tc>, window_params = [{transform_indices = @transform_0, window_bounds = array<i64: 256, 256>}, {transform_indices = @transform_1, window_bounds = array<i64: 256, 256>}, {transform_indices = @transform_2, window_bounds = array<i64: 256, 256>}, {pipeline_mode = #tpu.pipeline_mode<synchronous>, transform_indices = @transform_3, window_bounds = array<i64: 512, 256>}, {pipeline_mode = #tpu.pipeline_mode<synchronous>, transform_indices = @transform_4, window_bounds = array<i64: 1, 256>}, {transform_indices = @transform_5, window_bounds = array<i64: 256, 256>}]} {
    %c0_i32 = arith.constant 0 : i32
    %0 = arith.cmpi eq, %arg1, %c0_i32 : i32
    %1 = arith.extui %0 : i1 to i32
    %c0_i32_0 = arith.constant 0 : i32
    %2 = arith.cmpi ne, %1, %c0_i32_0 : i32
    scf.if %2 {
      %cst = arith.constant 0.000000e+00 : f32
      %11 = vector.broadcast %cst : f32 to vector<256x256xf32>
      %c0 = arith.constant 0 : index
      %c0_3 = arith.constant 0 : index
      %12 = vector.load %arg10[%c0, %c0_3] : memref<256x256xf32, #tpu.memory_space<vmem>>, vector<256x256xf32>
      tpu.vector_store %arg10[%c0, %c0_3], %11 {strides = array<i32>} : memref<256x256xf32, #tpu.memory_space<vmem>>, vector<256x256xf32>,
    } else {
    }
    %3 = arith.index_cast %arg0 : i32 to index
    %4 = memref.load %arg3[%3] : memref<2xi32, #tpu.memory_space<smem>>
    %5 = arith.cmpi slt, %arg1, %4 : i32
    %6 = arith.extui %5 : i1 to i32
    %c0_i32_1 = arith.constant 0 : i32
    %7 = arith.cmpi ne, %6, %c0_i32_1 : i32
    scf.if %7 {
      %c0 = arith.constant 0 : index
      %c0_3 = arith.constant 0 : index
      %11 = vector.load %arg10[%c0, %c0_3] : memref<256x256xf32, #tpu.memory_space<vmem>>, vector<256x256xf32>
      %c0_4 = arith.constant 0 : index
      %c0_5 = arith.constant 0 : index
      %12 = vector.load %arg4[%c0_4, %c0_5] : memref<256x256xbf16, #tpu.memory_space<vmem>>, vector<256x256xbf16>
      %c0_6 = arith.constant 0 : index
      %c0_7 = arith.constant 0 : index
      %13 = vector.load %arg5[%c0_6, %c0_7] : memref<256x256xbf16, #tpu.memory_space<vmem>>, vector<256x256xbf16>
      %cst = arith.constant dense<0.000000e+00> : vector<256x256xf32>
      %14 = tpu.matmul %12, %13, %cst {dimension_numbers = #tpu.dot_dimension_numbers<[1], [0], [0], [1], [0, 0, 1, 1], [], []>} : vector<256x256xbf16>, vector<256x256xbf16>, vector<256x256xf32> -> vector<256x256xf32>
      %15 = arith.addf %11, %14 : vector<256x256xf32>
      %c0_8 = arith.constant 0 : index
      %c0_9 = arith.constant 0 : index
      %16 = vector.load %arg10[%c0_8, %c0_9] : memref<256x256xf32, #tpu.memory_space<vmem>>, vector<256x256xf32>
      tpu.vector_store %arg10[%c0_8, %c0_9], %15 {strides = array<i32>} : memref<256x256xf32, #tpu.memory_space<vmem>>, vector<256x256xf32>,
    } else {
    }
    %c1_i32 = arith.constant 1 : i32
    %8 = arith.cmpi eq, %arg1, %c1_i32 : i32
    %9 = arith.extui %8 : i1 to i32
    %c0_i32_2 = arith.constant 0 : i32
    %10 = arith.cmpi ne, %9, %c0_i32_2 : i32
    scf.if %10 {
      %c0 = arith.constant 0 : index
      %c0_3 = arith.constant 0 : index
      %11 = vector.load %arg6[%c0, %c0_3] : memref<256x256xbf16, #tpu.memory_space<vmem>>, vector<256x256xbf16>
      %c0_4 = arith.constant 0 : index
      %c0_5 = arith.constant 0 : index
      %12 = vector.load %arg11[%c0_4, %c0_5] : memref<256x512xbf16, #tpu.memory_space<vmem>>, vector<256x256xbf16>
      tpu.vector_store %arg11[%c0_4, %c0_5], %11 {strides = array<i32>} : memref<256x512xbf16, #tpu.memory_space<vmem>>, vector<256x256xbf16>,
      %c0_6 = arith.constant 0 : index
      %c0_7 = arith.constant 0 : index
      %13 = vector.load %arg10[%c0_6, %c0_7] : memref<256x256xf32, #tpu.memory_space<vmem>>, vector<256x256xf32>
      %14 = arith.truncf %13 : vector<256x256xf32> to vector<256x256xbf16>
      %c0_8 = arith.constant 0 : index
      %c256 = arith.constant 256 : index
      %15 = vector.load %arg11[%c0_8, %c256] : memref<256x512xbf16, #tpu.memory_space<vmem>>, vector<256x256xbf16>
      tpu.vector_store %arg11[%c0_8, %c256], %14 {strides = array<i32>} : memref<256x512xbf16, #tpu.memory_space<vmem>>, vector<256x256xbf16>,
      %c0_9 = arith.constant 0 : index
      %c0_10 = arith.constant 0 : index
      %16 = vector.load %arg11[%c0_9, %c0_10] : memref<256x512xbf16, #tpu.memory_space<vmem>>, vector<256x512xbf16>
      %c0_11 = arith.constant 0 : index
      %c0_12 = arith.constant 0 : index
      %17 = vector.load %arg7[%c0_11, %c0_12] : memref<512x256xbf16, #tpu.memory_space<vmem>>, vector<512x256xbf16>
      %cst = arith.constant dense<0.000000e+00> : vector<256x256xf32>
      %18 = tpu.matmul %16, %17, %cst {dimension_numbers = #tpu.dot_dimension_numbers<[1], [0], [0], [1], [0, 0, 1, 1], [], []>} : vector<256x512xbf16>, vector<512x256xbf16>, vector<256x256xf32> -> vector<256x256xf32>
      %c0_13 = arith.constant 0 : index
      %c0_14 = arith.constant 0 : index
      %19 = vector.load %arg8[%c0_13, %c0_14] : memref<1x256xf32, #tpu.memory_space<vmem>>, vector<1x256xf32>
      %20 = vector.broadcast %19 : vector<1x256xf32> to vector<256x256xf32>
      %21 = arith.addf %18, %20 : vector<256x256xf32>
      %cst_15 = arith.constant 0.000000e+00 : f32
      %22 = vector.broadcast %cst_15 : f32 to vector<256x256xf32>
      %23 = arith.maximumf %21, %22 : vector<256x256xf32>
      %24 = arith.truncf %23 : vector<256x256xf32> to vector<256x256xbf16>
      %c0_16 = arith.constant 0 : index
      %c0_17 = arith.constant 0 : index
      %25 = vector.load %arg9[%c0_16, %c0_17] : memref<256x256xbf16, #tpu.memory_space<vmem>>, vector<256x256xbf16>
      tpu.vector_store %arg9[%c0_16, %c0_17], %24 {strides = array<i32>} : memref<256x256xbf16, #tpu.memory_space<vmem>>, vector<256x256xbf16>,
    } else {
    }
    return
  }
  func.func @transform_0(%arg0: i32, %arg1: i32, %arg2: memref<2x2xi32, #tpu.memory_space<smem>>, %arg3: memref<2xi32, #tpu.memory_space<smem>>) -> (i32, i32) {
    %0 = arith.index_cast %arg0 : i32 to index
    %1 = arith.index_cast %arg1 : i32 to index
    %2 = memref.load %arg2[%0, %1] : memref<2x2xi32, #tpu.memory_space<smem>>
    %c0_i32 = arith.constant 0 : i32
    return %arg0, %2 : i32, i32
  }
  func.func @transform_1(%arg0: i32, %arg1: i32, %arg2: memref<2x2xi32, #tpu.memory_space<smem>>, %arg3: memref<2xi32, #tpu.memory_space<smem>>) -> (i32, i32) {
    %0 = arith.index_cast %arg0 : i32 to index
    %1 = arith.index_cast %arg1 : i32 to index
    %2 = memref.load %arg2[%0, %1] : memref<2x2xi32, #tpu.memory_space<smem>>
    %c0_i32 = arith.constant 0 : i32
    %c0_i32_0 = arith.constant 0 : i32
    return %2, %c0_i32 : i32, i32
  }
  func.func @transform_2(%arg0: i32, %arg1: i32, %arg2: memref<2x2xi32, #tpu.memory_space<smem>>, %arg3: memref<2xi32, #tpu.memory_space<smem>>) -> (i32, i32) {
    %c0_i32 = arith.constant 0 : i32
    %c0_i32_0 = arith.constant 0 : i32
    return %arg0, %c0_i32 : i32, i32
  }
  func.func @transform_3(%arg0: i32, %arg1: i32, %arg2: memref<2x2xi32, #tpu.memory_space<smem>>, %arg3: memref<2xi32, #tpu.memory_space<smem>>) -> (i32, i32) {
    %c0_i32 = arith.constant 0 : i32
    %c0_i32_0 = arith.constant 0 : i32
    %c0_i32_1 = arith.constant 0 : i32
    return %c0_i32, %c0_i32_0 : i32, i32
  }
  func.func @transform_4(%arg0: i32, %arg1: i32, %arg2: memref<2x2xi32, #tpu.memory_space<smem>>, %arg3: memref<2xi32, #tpu.memory_space<smem>>) -> (i32, i32) {
    %c0_i32 = arith.constant 0 : i32
    %c0_i32_0 = arith.constant 0 : i32
    %c0_i32_1 = arith.constant 0 : i32
    return %c0_i32, %c0_i32_0 : i32, i32
  }
  func.func @transform_5(%arg0: i32, %arg1: i32, %arg2: memref<2x2xi32, #tpu.memory_space<smem>>, %arg3: memref<2xi32, #tpu.memory_space<smem>>) -> (i32, i32) {
    %c0_i32 = arith.constant 0 : i32
    %c0_i32_0 = arith.constant 0 : i32
    return %arg0, %c0_i32 : i32, i32
  }
}

module attributes {stable_mosaic.version = 11 : i64} {
  func.func @_sage_conv_kernel(%arg0: i32, %arg1: i32, %arg2: memref<2x2xi32, #tpu.memory_space<smem>>, %arg3: memref<2xi32, #tpu.memory_space<smem>>, %arg4: memref<256x256xbf16, #tpu.memory_space<vmem>>, %arg5: memref<256x256xbf16, #tpu.memory_space<vmem>>, %arg6: memref<256x256xbf16, #tpu.memory_space<vmem>>, %arg7: memref<512x128xbf16, #tpu.memory_space<vmem>>, %arg8: memref<1x128xf32, #tpu.memory_space<vmem>>, %arg9: memref<256x128xf32, #tpu.memory_space<vmem>>, %arg10: memref<256x256xf32, #tpu.memory_space<vmem>>, %arg11: memref<256x512xbf16, #tpu.memory_space<vmem>>) attributes {dimension_semantics = [#tpu.dimension_semantics<parallel>, #tpu.dimension_semantics<arbitrary>], iteration_bounds = array<i64: 2, 2>, scalar_prefetch = 2 : i64, scratch_operands = 2 : i64, tpu.core_type = #tpu.core_type<tc>, window_params = [{transform_indices = @transform_0, window_bounds = array<i64: 256, 256>}, {transform_indices = @transform_1, window_bounds = array<i64: 256, 256>}, {transform_indices = @transform_2, window_bounds = array<i64: 256, 256>}, {pipeline_mode = #tpu.pipeline_mode<synchronous>, transform_indices = @transform_3, window_bounds = array<i64: 512, 128>}, {pipeline_mode = #tpu.pipeline_mode<synchronous>, transform_indices = @transform_4, window_bounds = array<i64: 1, 128>}, {transform_indices = @transform_5, window_bounds = array<i64: 256, 128>}]} {
    %c0_i32 = arith.constant 0 : i32
    %0 = arith.cmpi eq, %arg1, %c0_i32 : i32
    %1 = arith.extui %0 : i1 to i32
    %c0_i32_0 = arith.constant 0 : i32
    %2 = arith.cmpi ne, %1, %c0_i32_0 : i32
    scf.if %2 {
      %cst = arith.constant 0.000000e+00 : f32
      %11 = vector.broadcast %cst : f32 to vector<256x256xf32>
      %c0 = arith.constant 0 : index
      %c0_3 = arith.constant 0 : index
      %12 = vector.load %arg10[%c0, %c0_3] : memref<256x256xf32, #tpu.memory_space<vmem>>, vector<256x256xf32>
      tpu.vector_store %arg10[%c0, %c0_3], %11 {strides = array<i32>} : memref<256x256xf32, #tpu.memory_space<vmem>>, vector<256x256xf32>,
    } else {
    }
    %3 = arith.index_cast %arg0 : i32 to index
    %4 = memref.load %arg3[%3] : memref<2xi32, #tpu.memory_space<smem>>
    %5 = arith.cmpi slt, %arg1, %4 : i32
    %6 = arith.extui %5 : i1 to i32
    %c0_i32_1 = arith.constant 0 : i32
    %7 = arith.cmpi ne, %6, %c0_i32_1 : i32
    scf.if %7 {
      %c0 = arith.constant 0 : index
      %c0_3 = arith.constant 0 : index
      %11 = vector.load %arg10[%c0, %c0_3] : memref<256x256xf32, #tpu.memory_space<vmem>>, vector<256x256xf32>
      %c0_4 = arith.constant 0 : index
      %c0_5 = arith.constant 0 : index
      %12 = vector.load %arg4[%c0_4, %c0_5] : memref<256x256xbf16, #tpu.memory_space<vmem>>, vector<256x256xbf16>
      %c0_6 = arith.constant 0 : index
      %c0_7 = arith.constant 0 : index
      %13 = vector.load %arg5[%c0_6, %c0_7] : memref<256x256xbf16, #tpu.memory_space<vmem>>, vector<256x256xbf16>
      %cst = arith.constant dense<0.000000e+00> : vector<256x256xf32>
      %14 = tpu.matmul %12, %13, %cst {dimension_numbers = #tpu.dot_dimension_numbers<[1], [0], [0], [1], [0, 0, 1, 1], [], []>} : vector<256x256xbf16>, vector<256x256xbf16>, vector<256x256xf32> -> vector<256x256xf32>
      %15 = arith.addf %11, %14 : vector<256x256xf32>
      %c0_8 = arith.constant 0 : index
      %c0_9 = arith.constant 0 : index
      %16 = vector.load %arg10[%c0_8, %c0_9] : memref<256x256xf32, #tpu.memory_space<vmem>>, vector<256x256xf32>
      tpu.vector_store %arg10[%c0_8, %c0_9], %15 {strides = array<i32>} : memref<256x256xf32, #tpu.memory_space<vmem>>, vector<256x256xf32>,
    } else {
    }
    %c1_i32 = arith.constant 1 : i32
    %8 = arith.cmpi eq, %arg1, %c1_i32 : i32
    %9 = arith.extui %8 : i1 to i32
    %c0_i32_2 = arith.constant 0 : i32
    %10 = arith.cmpi ne, %9, %c0_i32_2 : i32
    scf.if %10 {
      %c0 = arith.constant 0 : index
      %c0_3 = arith.constant 0 : index
      %11 = vector.load %arg6[%c0, %c0_3] : memref<256x256xbf16, #tpu.memory_space<vmem>>, vector<256x256xbf16>
      %c0_4 = arith.constant 0 : index
      %c0_5 = arith.constant 0 : index
      %12 = vector.load %arg11[%c0_4, %c0_5] : memref<256x512xbf16, #tpu.memory_space<vmem>>, vector<256x256xbf16>
      tpu.vector_store %arg11[%c0_4, %c0_5], %11 {strides = array<i32>} : memref<256x512xbf16, #tpu.memory_space<vmem>>, vector<256x256xbf16>,
      %c0_6 = arith.constant 0 : index
      %c0_7 = arith.constant 0 : index
      %13 = vector.load %arg10[%c0_6, %c0_7] : memref<256x256xf32, #tpu.memory_space<vmem>>, vector<256x256xf32>
      %14 = arith.truncf %13 : vector<256x256xf32> to vector<256x256xbf16>
      %c0_8 = arith.constant 0 : index
      %c256 = arith.constant 256 : index
      %15 = vector.load %arg11[%c0_8, %c256] : memref<256x512xbf16, #tpu.memory_space<vmem>>, vector<256x256xbf16>
      tpu.vector_store %arg11[%c0_8, %c256], %14 {strides = array<i32>} : memref<256x512xbf16, #tpu.memory_space<vmem>>, vector<256x256xbf16>,
      %c0_9 = arith.constant 0 : index
      %c0_10 = arith.constant 0 : index
      %16 = vector.load %arg11[%c0_9, %c0_10] : memref<256x512xbf16, #tpu.memory_space<vmem>>, vector<256x512xbf16>
      %c0_11 = arith.constant 0 : index
      %c0_12 = arith.constant 0 : index
      %17 = vector.load %arg7[%c0_11, %c0_12] : memref<512x128xbf16, #tpu.memory_space<vmem>>, vector<512x128xbf16>
      %cst = arith.constant dense<0.000000e+00> : vector<256x128xf32>
      %18 = tpu.matmul %16, %17, %cst {dimension_numbers = #tpu.dot_dimension_numbers<[1], [0], [0], [1], [0, 0, 1, 1], [], []>} : vector<256x512xbf16>, vector<512x128xbf16>, vector<256x128xf32> -> vector<256x128xf32>
      %c0_13 = arith.constant 0 : index
      %c0_14 = arith.constant 0 : index
      %19 = vector.load %arg8[%c0_13, %c0_14] : memref<1x128xf32, #tpu.memory_space<vmem>>, vector<1x128xf32>
      %20 = vector.broadcast %19 : vector<1x128xf32> to vector<256x128xf32>
      %21 = arith.addf %18, %20 : vector<256x128xf32>
      %c0_15 = arith.constant 0 : index
      %c0_16 = arith.constant 0 : index
      %22 = vector.load %arg9[%c0_15, %c0_16] : memref<256x128xf32, #tpu.memory_space<vmem>>, vector<256x128xf32>
      tpu.vector_store %arg9[%c0_15, %c0_16], %21 {strides = array<i32>} : memref<256x128xf32, #tpu.memory_space<vmem>>, vector<256x128xf32>,
    } else {
    }
    return
  }
  func.func @transform_0(%arg0: i32, %arg1: i32, %arg2: memref<2x2xi32, #tpu.memory_space<smem>>, %arg3: memref<2xi32, #tpu.memory_space<smem>>) -> (i32, i32) {
    %0 = arith.index_cast %arg0 : i32 to index
    %1 = arith.index_cast %arg1 : i32 to index
    %2 = memref.load %arg2[%0, %1] : memref<2x2xi32, #tpu.memory_space<smem>>
    %c0_i32 = arith.constant 0 : i32
    return %arg0, %2 : i32, i32
  }
  func.func @transform_1(%arg0: i32, %arg1: i32, %arg2: memref<2x2xi32, #tpu.memory_space<smem>>, %arg3: memref<2xi32, #tpu.memory_space<smem>>) -> (i32, i32) {
    %0 = arith.index_cast %arg0 : i32 to index
    %1 = arith.index_cast %arg1 : i32 to index
    %2 = memref.load %arg2[%0, %1] : memref<2x2xi32, #tpu.memory_space<smem>>
    %c0_i32 = arith.constant 0 : i32
    %c0_i32_0 = arith.constant 0 : i32
    return %2, %c0_i32 : i32, i32
  }
  func.func @transform_2(%arg0: i32, %arg1: i32, %arg2: memref<2x2xi32, #tpu.memory_space<smem>>, %arg3: memref<2xi32, #tpu.memory_space<smem>>) -> (i32, i32) {
    %c0_i32 = arith.constant 0 : i32
    %c0_i32_0 = arith.constant 0 : i32
    return %arg0, %c0_i32 : i32, i32
  }
  func.func @transform_3(%arg0: i32, %arg1: i32, %arg2: memref<2x2xi32, #tpu.memory_space<smem>>, %arg3: memref<2xi32, #tpu.memory_space<smem>>) -> (i32, i32) {
    %c0_i32 = arith.constant 0 : i32
    %c0_i32_0 = arith.constant 0 : i32
    %c0_i32_1 = arith.constant 0 : i32
    return %c0_i32, %c0_i32_0 : i32, i32
  }
  func.func @transform_4(%arg0: i32, %arg1: i32, %arg2: memref<2x2xi32, #tpu.memory_space<smem>>, %arg3: memref<2xi32, #tpu.memory_space<smem>>) -> (i32, i32) {
    %c0_i32 = arith.constant 0 : i32
    %c0_i32_0 = arith.constant 0 : i32
    %c0_i32_1 = arith.constant 0 : i32
    return %c0_i32, %c0_i32_0 : i32, i32
  }
  func.func @transform_5(%arg0: i32, %arg1: i32, %arg2: memref<2x2xi32, #tpu.memory_space<smem>>, %arg3: memref<2xi32, #tpu.memory_space<smem>>) -> (i32, i32) {
    %c0_i32 = arith.constant 0 : i32
    %c0_i32_0 = arith.constant 0 : i32
    return %arg0, %c0_i32 : i32, i32
  }
}

</mosaic_0001>

<bundles_post_ra>
// kernel: graphsage_forward.3
= control target key start
LH: loop header
LB: loop body
LE: loop exit
PB: predicated region body
PF: predicated region fallthrough
CT: control target
= control target key end

     0   :  { %s3078_s30 = smov [#allocation5]   ;;  %s3079_s8 = smov [#allocation6]   ;;  %s3714_s0 = inlined_call_operand.vmem [shape: s32[2,2], index: 0, kind: input, shape index: {}]   ;;  %s3715_s2 = inlined_call_operand.vmem [shape: bf16[512,512], index: 2, kind: input, shape index: {}]   ;;  %s3716_s3 = inlined_call_operand.vmem [shape: bf16[512,128], index: 3, kind: input, shape index: {}, may-alias: {3,4}]   ;;  %s3717_s4 = inlined_call_operand.vmem [shape: bf16[512,128], index: 4, kind: input, shape index: {}, may-alias: {3,4}]   ;;  %s3718_s5 = inlined_call_operand.vmem [shape: bf16[256,256], index: 5, kind: input, shape index: {}]   ;;  %s3719_s6 = inlined_call_operand.vmem [shape: f32[1,256], index: 6, kind: input, shape index: {}]   ;;  %s3720_s7 = inlined_call_operand.vmem [shape: bf16[512,256], index: 7, kind: output, shape index: {}]   ;;  %s3721_s1 = inlined_call_operand.vmem [shape: s32[2], index: 1, kind: input, shape index: {}]  }
   0x1   :  { %3722 = sst [smem:[#allocation9_spill]] %s3715_s2  ;;  %s13_s26 = sshll.u32 %s3714_s0, 4  ;;  %s14_s26 = int_to_ptr.vmem [resolvable:$true] %s13_s26 }
   0x2   :  { %s18_s29 = sshll.u32 %s3721_s1, 4  ;;  %s19_s29 = int_to_ptr.vmem [resolvable:$true] %s18_s29 }
   0x3   :  { %16 = dma.vmem_to_smem %s14_s26, 32, %s3078_s30, [#allocation4] }
   0x4   :  { %21 = dma.vmem_to_smem %s19_s29, 16, %s3079_s8, [#allocation4] }
   0x5   :  { %3048 = dma.done.wait [#allocation4], 48 }
   0x6   :  { %3049 = vsyncadd [#allocation4], 4294967248 }
   0x7   :  { %24 = sfence }
   0x8   :  { %s3127_s9 = smov 0   ;;  %s3129_s10 = smov 0  }
   0x9   :  { %s3131_s11 = smov 0   ;;  %s3133_s0 = smov 0  }
   0xa   :  { %s3135_s12 = smov 0   ;;  %s3137_s1 = smov 0  }
   0xb   :  { %s3139_s13 = smov 0  }
   0xc LB: > { %s39_s14 = sadd.s32 1, %s3068_s12  ;;  %s42_s15 = sadd.s32 1, %s3072_s1  ;;  %s3076_s13 = sphi %s3139_s13, %s30_s13   ;;  %s3072_s1 = sphi %s3137_s1, %s3729_s1   ;;  %s3068_s12 = sphi %s3135_s12, %s3728_s12   ;;  %s3064_s0 = sphi %s3133_s0, %s3727_s0   ;;  %s3060_s11 = sphi %s3131_s11, %s3726_s11   ;;  %s3056_s10 = sphi %s3129_s10, %s3725_s10   ;;  %s3052_s9 = sphi %s3127_s9, %s3724_s9  }
   0xd   : > { %p40_p0 = scmp.ge.s32.totalorder %s39_s14, 2  ;;  %s46_s16 = sshra.s32 %s3068_s12, 7 }
   0xe   : > { %s48_s17 = sadd.s32 %s3072_s1, %s46_s16  ;;  %s51_s18 = sand.u32 127, %s3068_s12 }
   0xf   : > { %s3731_s14 = smov (%p40_p0, %s39_s14), 0  ;;  %s3733_s15 = smov (!%p40_p0, %s42_s15), %s3072_s1 }
  0x10   : > { %s2332_s19 = sshll.u32 %s48_s17, 7  ;;  %p44_p1 = scmp.ge.s32.totalorder %s3733_s15, 2 }
  0x11   : > { %s52_s20 = sadd.s32 %s2332_s19, %s51_s18  ;;  %s54_s21 = sshra.s32 %s3731_s14, 7 }
  0x12   : > { %s3735_s15 = smov (%p44_p1, %s3733_s15), 0  ;;  %s59_s22 = sand.u32 127, %s3731_s14 }
  0x13   : > { %p74_p2 = scmp.ne.s32.totalorder %s3056_s10, %s3052_s9  ;;  %s53_s23 = sld [smem:[#allocation5 + %s52_s20]] }
  0x14   : > { %s56_s24 = sadd.s32 %s54_s21, %s3735_s15  ;;  %p75_p3 = scmp.eq.s32.totalorder %s3076_s13, 0 }
  0x15   : > { %s2333_s25 = sshll.u32 %s56_s24, 7  ;;  %s62_s28 = ssub.s32 %s3072_s1, %s3735_s15 }
  0x16   : > { %s60_s26 = sadd.s32 %s2333_s25, %s59_s22  ;;  %p76_p4 = por %p75_p3, %p74_p2 }
  0x17   : > { %s61_s27 = sld [smem:[#allocation5 + %s60_s26]]  ;;  %s67_s8 = sadd.s32 1, %s3056_s10 }
  0x18   : > { %p2337_p6 = scmp.ge.s32.totalorder %s3076_s13, 4 }
  0x1d   : > { %s63_s29 = ssub.s32 %s53_s23, %s61_s27  ;;  %242 = sbr.rel (%p2337_p6) target bundleno = 77 (0x4d), region = 24 }
  0x1e   : > { %s64_s30 = sor.u32 %s63_s29, %s62_s28 }
  0x1f   : > { %p65_p5 = scmp.eq.s32.totalorder %s64_s30, 0 }
  0x21   : > { %s3182_s16 = scalar_select %p65_p5, %s3056_s10, %s67_s8  }
  0x22   : > { %245 = sbr.rel (!%p76_p4) target bundleno = 77 (0x4d), region = 28  ;;  %s257_s17 = sld [smem:[#allocation5 + %s52_s20]] (%p76_p4) }
  0x23   : > { %s247_s18 = sand.u32 (%p76_p4), 1, %s3056_s10   ;;  %s2807_s19 = sshll.u32 (%p76_p4), %s3072_s1, 7 }
  0x24   : > { %s2338_s21 = sshll.u32 (%p76_p4), %s247_s18, 8  ;;  %s3723_s2 = sld [smem:[#allocation9_spill]] (%p76_p4) }
  0x25   : > { %s3195_s20 = scalar_lea.vmem (%p76_p4), [#allocation7], %s2338_s21 }
  0x28   : > { %s2341_s22 = sshll.u32 %s257_s17, 1 }
  0x29   : > { %s261_s24 = sadd.s32 %s2807_s19, %s2341_s22 }
  0x2a   : > { %s2343_s25 = sshll.u32 %s261_s24, 2 }
  0x2b   : > { %s3190_s27 = scalar_lea.vmem %s3723_s2, %s2343_s25 }
  0x2c   : > { %v354_v0 = vld [vmem:[%s3190_s27] sm:$0xff]  ;;  %v356_v1 = vld [vmem:[%s3190_s27 + $0x10] sm:$0xff] }
  0x2d   : > { %v358_v2 = vld [vmem:[%s3190_s27 + $0x20] sm:$0xff]  ;;  %355 = vst [vmem:[%s3195_s20] sm:$0xff] %v354_v0  ;;  %v360_v3 = vld [vmem:[%s3190_s27 + $0x30] sm:$0xff] }
  0x2e   : > { %357 = vst [vmem:[%s3195_s20 + $0x8] sm:$0xff] %v356_v1  ;;  %v362_v4 = vld [vmem:[%s3190_s27 + $0x40] sm:$0xff]  ;;  %v364_v5 = vld [vmem:[%s3190_s27 + $0x50] sm:$0xff] }
  0x2f   : > { %359 = vst [vmem:[%s3195_s20 + $0x10] sm:$0xff] %v358_v2  ;;  %v366_v6 = vld [vmem:[%s3190_s27 + $0x60] sm:$0xff]  ;;  %v368_v7 = vld [vmem:[%s3190_s27 + $0x70] sm:$0xff] }
  0x30   : > { %361 = vst [vmem:[%s3195_s20 + $0x18] sm:$0xff] %v360_v3  ;;  %v370_v8 = vld [vmem:[%s3190_s27 + $0x80] sm:$0xff]  ;;  %v372_v9 = vld [vmem:[%s3190_s27 + $0x90] sm:$0xff] }
  0x31   : > { %363 = vst [vmem:[%s3195_s20 + $0x20] sm:$0xff] %v362_v4  ;;  %v374_v10 = vld [vmem:[%s3190_s27 + $0xa0] sm:$0xff]  ;;  %v376_v11 = vld [vmem:[%s3190_s27 + $0xb0] sm:$0xff] }
  0x32   : > { %365 = vst [vmem:[%s3195_s20 + $0x28] sm:$0xff] %v364_v5  ;;  %v378_v12 = vld [vmem:[%s3190_s27 + $0xc0] sm:$0xff]  ;;  %v380_v13 = vld [vmem:[%s3190_s27 + $0xd0] sm:$0xff] }
  0x33   : > { %367 = vst [vmem:[%s3195_s20 + $0x30] sm:$0xff] %v366_v6  ;;  %v382_v14 = vld [vmem:[%s3190_s27 + $0xe0] sm:$0xff]  ;;  %v384_v15 = vld [vmem:[%s3190_s27 + $0xf0] sm:$0xff] }
  0x34   : > { %369 = vst [vmem:[%s3195_s20 + $0x38] sm:$0xff] %v368_v7  ;;  %v386_v16 = vld [vmem:[%s3190_s27 + $0x100] sm:$0xff]  ;;  %v388_v17 = vld [vmem:[%s3190_s27 + $0x110] sm:$0xff] }
  0x35   : > { %371 = vst [vmem:[%s3195_s20 + $0x40] sm:$0xff] %v370_v8  ;;  %v390_v18 = vld [vmem:[%s3190_s27 + $0x120] sm:$0xff]  ;;  %v392_v19 = vld [vmem:[%s3190_s27 + $0x130] sm:$0xff] }
  0x36   : > { %373 = vst [vmem:[%s3195_s20 + $0x48] sm:$0xff] %v372_v9  ;;  %v394_v20 = vld [vmem:[%s3190_s27 + $0x140] sm:$0xff]  ;;  %v396_v21 = vld [vmem:[%s3190_s27 + $0x150] sm:$0xff] }
  0x37   : > { %375 = vst [vmem:[%s3195_s20 + $0x50] sm:$0xff] %v374_v10  ;;  %v398_v22 = vld [vmem:[%s3190_s27 + $0x160] sm:$0xff]  ;;  %v400_v23 = vld [vmem:[%s3190_s27 + $0x170] sm:$0xff] }
  0x38   : > { %377 = vst [vmem:[%s3195_s20 + $0x58] sm:$0xff] %v376_v11  ;;  %v402_v24 = vld [vmem:[%s3190_s27 + $0x180] sm:$0xff]  ;;  %v404_v25 = vld [vmem:[%s3190_s27 + $0x190] sm:$0xff] }
  0x39   : > { %379 = vst [vmem:[%s3195_s20 + $0x60] sm:$0xff] %v378_v12  ;;  %v406_v26 = vld [vmem:[%s3190_s27 + $0x1a0] sm:$0xff]  ;;  %v408_v27 = vld [vmem:[%s3190_s27 + $0x1b0] sm:$0xff] }
  0x3a   : > { %381 = vst [vmem:[%s3195_s20 + $0x68] sm:$0xff] %v380_v13  ;;  %v410_v28 = vld [vmem:[%s3190_s27 + $0x1c0] sm:$0xff]  ;;  %v412_v29 = vld [vmem:[%s3190_s27 + $0x1d0] sm:$0xff] }
  0x3b   : > { %383 = vst [vmem:[%s3195_s20 + $0x70] sm:$0xff] %v382_v14  ;;  %v414_v30 = vld [vmem:[%s3190_s27 + $0x1e0] sm:$0xff]  ;;  %v416_v31 = vld [vmem:[%s3190_s27 + $0x1f0] sm:$0xff] }
  0x3c   : > { %385 = vst [vmem:[%s3195_s20 + $0x78] sm:$0xff] %v384_v15 }
  0x3d   : > { %387 = vst [vmem:[%s3195_s20 + $0x80] sm:$0xff] %v386_v16 }
  0x3e   : > { %389 = vst [vmem:[%s3195_s20 + $0x88] sm:$0xff] %v388_v17 }
  0x3f   : > { %391 = vst [vmem:[%s3195_s20 + $0x90] sm:$0xff] %v390_v18 }
  0x40   : > { %393 = vst [vmem:[%s3195_s20 + $0x98] sm:$0xff] %v392_v19 }
  0x41   : > { %395 = vst [vmem:[%s3195_s20 + $0xa0] sm:$0xff] %v394_v20 }
  0x42   : > { %397 = vst [vmem:[%s3195_s20 + $0xa8] sm:$0xff] %v396_v21 }
  0x43   : > { %399 = vst [vmem:[%s3195_s20 + $0xb0] sm:$0xff] %v398_v22 }
  0x44   : > { %401 = vst [vmem:[%s3195_s20 + $0xb8] sm:$0xff] %v400_v23 }
  0x45   : > { %403 = vst [vmem:[%s3195_s20 + $0xc0] sm:$0xff] %v402_v24 }
  0x46   : > { %405 = vst [vmem:[%s3195_s20 + $0xc8] sm:$0xff] %v404_v25 }
  0x47   : > { %407 = vst [vmem:[%s3195_s20 + $0xd0] sm:$0xff] %v406_v26 }
  0x48   : > { %409 = vst [vmem:[%s3195_s20 + $0xd8] sm:$0xff] %v408_v27 }
  0x49   : > { %411 = vst [vmem:[%s3195_s20 + $0xe0] sm:$0xff] %v410_v28 }
  0x4a   : > { %413 = vst [vmem:[%s3195_s20 + $0xe8] sm:$0xff] %v412_v29 }
  0x4b   : > { %415 = vst [vmem:[%s3195_s20 + $0xf0] sm:$0xff] %v414_v30 }
  0x4c   : > { %417 = vst [vmem:[%s3195_s20 + $0xf8] sm:$0xff] %v416_v31 }
  0x4d PF: > { %p2344_p7 = scmp.ge.s32.totalorder %s3076_s13, 1  ;;  %p456_p8 = scmp.lt.s32.totalorder %s3076_s13, 5 }
  0x4f   : > { %p457_p9 = pnand %p2344_p7, %p456_p8 }
  0x50   : > { %s463_s28 = sand.u32 (!%p457_p9), 1, %s3052_s9   ;;  %s519_s29 = sshra.s32 (!%p457_p9), %s3060_s11, 7 }
  0x51   : > { %460 = sbr.rel (%p457_p9) target bundleno = 864 (0x360), region = 74  ;;  %s2345_s30 = sshll.u32 (!%p457_p9), %s463_s28, 8 }
  0x52   : > { %s521_s8 = sadd.s32 (!%p457_p9), %s3064_s0, %s519_s29  ;;  %s524_s18 = sand.u32 (!%p457_p9), 127, %s3060_s11 }
  0x53   : > { %s2346_s17 = sshll.u32 (!%p457_p9), %s521_s8, 7  ;;  %s2349_s19 = sshll.u32 (!%p457_p9), %s3064_s0, 5 }
  0x54   : > { %s525_s21 = sadd.s32 (!%p457_p9), %s2346_s17, %s524_s18  ;;  %p542_p10 = scmp.lt.s32.totalorder (!%p457_p9), %s2349_s19, 63 }
  0x55   : > { %s526_s22 = sld [smem:[#allocation5 + %s525_s21]] (!%p457_p9)  ;;  %p2354_p12 = scmp.ne.s32.totalorder (!%p457_p9), %s3060_s11, 0 }
  0x56   : > { %s3737_s19 = smov (!%p542_p10, %s2349_s19), 63 }
  0x57   : > { %s2350_s24 = sshll.u32 %s3737_s19, 2  ;;  %s2808_s25 = sshll.u32 %s3737_s19, 3 }
  0x58   : > { %s3268_s27 = scalar_lea.vmem %s3717_s4, %s2350_s24  ;;  %s3273_s9 = scalar_lea.vmem %s3720_s7, %s2808_s25 }
  0x59   : > { %s3280_s19 = scalar_lea.vmem [#allocation7], %s2345_s30 }
  0x5b   : > { %s2347_s28 = sshll.u32 %s526_s22, 5 }
  0x5c   : > { %p528_p11 = scmp.lt.s32.totalorder %s2347_s28, 63  ;;  %557 = sbr.rel (%p2354_p12) target bundleno = 130 (0x82), region = 82 }
  0x5e   : > { %s3739_s28 = smov (!%p528_p11, %s2347_s28), 63 }
  0x5f   : > { %s2348_s29 = sshll.u32 %s3739_s28, 2 }
  0x60   : > { %s3278_s18 = scalar_lea.vmem %s3716_s3, %s2348_s29 }
  0x61   : > { %v3080_v32 = vmov 0.0  }
  0x62   : > { %558 = vst [vmem:[#allocation2 + $0xb0] sm:$0xff] %v3080_v32 }
  0x63   : > { %559 = vst [vmem:[#allocation2] sm:$0xff] %v3080_v32 }
  0x64   : > { %560 = vst [vmem:[#allocation2 + $0xd8] sm:$0xff] %v3080_v32 }
  0x65   : > { %561 = vst [vmem:[#allocation2 + $0x18] sm:$0xff] %v3080_v32 }
  0x66   : > { %562 = vst [vmem:[#allocation2 + $0x50] sm:$0xff] %v3080_v32 }
  0x67   : > { %563 = vst [vmem:[#allocation2 + $0x68] sm:$0xff] %v3080_v32 }
  0x68   : > { %564 = vst [vmem:[#allocation2 + $0x30] sm:$0xff] %v3080_v32 }
  0x69   : > { %565 = vst [vmem:[#allocation2 + $0x48] sm:$0xff] %v3080_v32 }
  0x6a   : > { %566 = vst [vmem:[#allocation2 + $0x80] sm:$0xff] %v3080_v32 }
  0x6b   : > { %567 = vst [vmem:[#allocation2 + $0x88] sm:$0xff] %v3080_v32 }
  0x6c   : > { %568 = vst [vmem:[#allocation2 + $0xe8] sm:$0xff] %v3080_v32 }
  0x6d   : > { %569 = vst [vmem:[#allocation2 + $0xb8] sm:$0xff] %v3080_v32 }
  0x6e   : > { %570 = vst [vmem:[#allocation2 + $0x60] sm:$0xff] %v3080_v32 }
  0x6f   : > { %571 = vst [vmem:[#allocation2 + $0xf0] sm:$0xff] %v3080_v32 }
  0x70   : > { %572 = vst [vmem:[#allocation2 + $0x8] sm:$0xff] %v3080_v32 }
  0x71   : > { %573 = vst [vmem:[#allocation2 + $0x78] sm:$0xff] %v3080_v32 }
  0x72   : > { %574 = vst [vmem:[#allocation2 + $0x38] sm:$0xff] %v3080_v32 }
  0x73   : > { %575 = vst [vmem:[#allocation2 + $0x58] sm:$0xff] %v3080_v32 }
  0x74   : > { %576 = vst [vmem:[#allocation2 + $0x40] sm:$0xff] %v3080_v32 }
  0x75   : > { %577 = vst [vmem:[#allocation2 + $0xc8] sm:$0xff] %v3080_v32 }
  0x76   : > { %578 = vst [vmem:[#allocation2 + $0xe0] sm:$0xff] %v3080_v32 }
  0x77   : > { %579 = vst [vmem:[#allocation2 + $0x90] sm:$0xff] %v3080_v32 }
  0x78   : > { %580 = vst [vmem:[#allocation2 + $0x70] sm:$0xff] %v3080_v32 }
  0x79   : > { %581 = vst [vmem:[#allocation2 + $0xc0] sm:$0xff] %v3080_v32 }
  0x7a   : > { %582 = vst [vmem:[#allocation2 + $0xa8] sm:$0xff] %v3080_v32 }
  0x7b   : > { %583 = vst [vmem:[#allocation2 + $0xd0] sm:$0xff] %v3080_v32 }
  0x7c   : > { %584 = vst [vmem:[#allocation2 + $0x10] sm:$0xff] %v3080_v32 }
  0x7d   : > { %585 = vst [vmem:[#allocation2 + $0x28] sm:$0xff] %v3080_v32 }
  0x7e   : > { %586 = vst [vmem:[#allocation2 + $0xa0] sm:$0xff] %v3080_v32 }
  0x7f   : > { %587 = vst [vmem:[#allocation2 + $0xf8] sm:$0xff] %v3080_v32 }
  0x80   : > { %588 = vst [vmem:[#allocation2 + $0x20] sm:$0xff] %v3080_v32 }
  0x81   : > { %589 = vst [vmem:[#allocation2 + $0x98] sm:$0xff] %v3080_v32 }
  0x82 PF: > { %s590_s2 = sld [smem:[#allocation6 + %s3064_s0]] }
  0x88   : > { %p2355_p13 = scmp.ge.s32.totalorder %s3060_s11, %s590_s2 }
  0x8a   : > { %594 = sbr.rel (%p2355_p13) target bundleno = 433 (0x1b1), region = 86 }
  0x8f   : > { %v2848_v33 = vld [vmem:[%s3278_s18 + $0x38] sm:$0xff]  ;;  %v2847_v35 = vld [vmem:[%s3278_s18 + $0x30] sm:$0xff]  ;;  %v2846_v37 = vld [vmem:[%s3278_s18 + $0x28] sm:$0xff] }
  0x90   : > { %v2856_v34 = vld [vmem:[%s3278_s18 + $0x78] sm:$0xff]  ;;  %947 = vmatpush.bf16.msra.mxu0 %v2848_v33  ;;  %2921 = vmatpush.bf16.msra.mxu2 %v2848_v33  ;;  %v2855_v36 = vld [vmem:[%s3278_s18 + $0x70] sm:$0xff]  ;;  %v2854_v38 = vld [vmem:[%s3278_s18 + $0x68] sm:$0xff] }
  0x91   : > { %1036 = vmatpush.bf16.msra.mxu1 %v2856_v34  ;;  %2929 = vmatpush.bf16.msra.mxu3 %v2856_v34  ;;  %v2845_v39 = vld [vmem:[%s3278_s18 + $0x20] sm:$0xff]  ;;  %v2844_v41 = vld [vmem:[%s3278_s18 + $0x18] sm:$0xff]  ;;  %v2843_v43 = vld [vmem:[%s3278_s18 + $0x10] sm:$0xff] }
  0x92   : > { %v2853_v40 = vld [vmem:[%s3278_s18 + $0x60] sm:$0xff]  ;;  %v2852_v42 = vld [vmem:[%s3278_s18 + $0x58] sm:$0xff]  ;;  %v2851_v44 = vld [vmem:[%s3278_s18 + $0x50] sm:$0xff] }
  0x93   : > { %v2842_v45 = vld [vmem:[%s3278_s18 + $0x8] sm:$0xff]  ;;  %v2841_v47 = vld [vmem:[%s3278_s18] sm:$0xff]  ;;  %v2366_v61 = vld [vmem:[%s3280_s19 + $0x10] sm:$0xf] }
  0x94   : > { %948 = vmatpush.bf16.msra.mxu0 %v2847_v35  ;;  %2922 = vmatpush.bf16.msra.mxu2 %v2847_v35  ;;  %v2850_v46 = vld [vmem:[%s3278_s18 + $0x48] sm:$0xff]  ;;  %v2849_v48 = vld [vmem:[%s3278_s18 + $0x40] sm:$0xff]  ;;  %v2812_v62 = vld [vmem:[%s3280_s19 + $0x14] sm:$0xf0] }
  0x95   : > { %1037 = vmatpush.bf16.msra.mxu1 %v2855_v36  ;;  %2930 = vmatpush.bf16.msra.mxu3 %v2855_v36  ;;  %v2358_v49 = vld [vmem:[%s3280_s19] sm:$0xf]  ;;  %v2810_v50 = vld [vmem:[%s3280_s19 + $0x4] sm:$0xf0]  ;;  %v2809_v53 = vld [vmem:[%s3280_s19 + $0x4] sm:$0xf]  ;;  %v2367_v5 = vor.u32 %v2812_v62, %v2366_v61 }
  0x96   : > { %v2422_v51 = vld [vmem:[%s3280_s19 + $0x80] sm:$0xf]  ;;  %v2826_v52 = vld [vmem:[%s3280_s19 + $0x84] sm:$0xf0]  ;;  %v2360_v54 = vld [vmem:[%s3280_s19 + $0x8] sm:$0xf0]  ;;  %v2359_v57 = vor.u32 %v2810_v50, %v2358_v49 }
  0x97   : > { %v2825_v55 = vld [vmem:[%s3280_s19 + $0x84] sm:$0xf]  ;;  %v2424_v56 = vld [vmem:[%s3280_s19 + $0x88] sm:$0xf0]  ;;  %v2423_v58 = vor.u32 %v2826_v52, %v2422_v51  ;;  %v2363_v59 = vor.u32 %v2809_v53, %v2360_v54  ;;  %v2430_v63 = vld [vmem:[%s3280_s19 + $0x90] sm:$0xf] }
  0x98   : > { %949 = vmatpush.bf16.msra.mxu0 %v2846_v37  ;;  %2923 = vmatpush.bf16.msra.mxu2 %v2846_v37  ;;  %v2427_v60 = vor.u32 %v2825_v55, %v2424_v56  ;;  %v2828_v0 = vld [vmem:[%s3280_s19 + $0x94] sm:$0xf0]  ;;  %v2811_v1 = vld [vmem:[%s3280_s19 + $0x14] sm:$0xf]  ;;  %v2368_v2 = vld [vmem:[%s3280_s19 + $0x18] sm:$0xf0] }
  0x99   : > { %1038 = vmatpush.bf16.msra.mxu1 %v2854_v38  ;;  %2931 = vmatpush.bf16.msra.mxu3 %v2854_v38  ;;  %v2827_v3 = vld [vmem:[%s3280_s19 + $0x94] sm:$0xf]  ;;  %v2432_v4 = vld [vmem:[%s3280_s19 + $0x98] sm:$0xf0]  ;;  %v2431_v6 = vor.u32 %v2828_v0, %v2430_v63  ;;  %v2371_v7 = vor.u32 %v2811_v1, %v2368_v2  ;;  %v2374_v9 = vld [vmem:[%s3280_s19 + $0x20] sm:$0xf] }
  0x9a   : > { %v2435_v8 = vor.u32 %v2827_v3, %v2432_v4  ;;  %v2814_v10 = vld [vmem:[%s3280_s19 + $0x24] sm:$0xf0]  ;;  %v2438_v11 = vld [vmem:[%s3280_s19 + $0xa0] sm:$0xf]  ;;  %v2813_v13 = vld [vmem:[%s3280_s19 + $0x24] sm:$0xf] }
  0x9b   : > { %v2830_v12 = vld [vmem:[%s3280_s19 + $0xa4] sm:$0xf0]  ;;  %v2376_v14 = vld [vmem:[%s3280_s19 + $0x28] sm:$0xf0]  ;;  %v2829_v15 = vld [vmem:[%s3280_s19 + $0xa4] sm:$0xf]  ;;  %v2375_v17 = vor.u32 %v2814_v10, %v2374_v9 }
  0x9c   : > { %950 = vmatpush.bf16.msra.mxu0 %v2845_v39  ;;  %2924 = vmatpush.bf16.msra.mxu2 %v2845_v39  ;;  %v2440_v16 = vld [vmem:[%s3280_s19 + $0xa8] sm:$0xf0]  ;;  %v2439_v18 = vor.u32 %v2830_v12, %v2438_v11  ;;  %v2379_v19 = vor.u32 %v2813_v13, %v2376_v14  ;;  %v2382_v21 = vld [vmem:[%s3280_s19 + $0x30] sm:$0xf]  ;;  %v2816_v22 = vld [vmem:[%s3280_s19 + $0x34] sm:$0xf0] }
  0x9d   : > { %1039 = vmatpush.bf16.msra.mxu1 %v2853_v40  ;;  %2932 = vmatpush.bf16.msra.mxu3 %v2853_v40  ;;  %v2443_v20 = vor.u32 %v2829_v15, %v2440_v16  ;;  %v2446_v23 = vld [vmem:[%s3280_s19 + $0xb0] sm:$0xf]  ;;  %v2832_v24 = vld [vmem:[%s3280_s19 + $0xb4] sm:$0xf0]  ;;  %v2815_v25 = vld [vmem:[%s3280_s19 + $0x34] sm:$0xf]  ;;  %v2383_v29 = vor.u32 %v2816_v22, %v2382_v21 }
  0x9e   : > { %v2384_v26 = vld [vmem:[%s3280_s19 + $0x38] sm:$0xf0]  ;;  %v2831_v27 = vld [vmem:[%s3280_s19 + $0xb4] sm:$0xf]  ;;  %v2447_v30 = vor.u32 %v2832_v24, %v2446_v23  ;;  %v2390_v33 = vld [vmem:[%s3280_s19 + $0x40] sm:$0xf] }
  0x9f   : > { %v2448_v28 = vld [vmem:[%s3280_s19 + $0xb8] sm:$0xf0]  ;;  %v2387_v31 = vor.u32 %v2815_v25, %v2384_v26  ;;  %v2818_v34 = vld [vmem:[%s3280_s19 + $0x44] sm:$0xf0]  ;;  %v2454_v35 = vld [vmem:[%s3280_s19 + $0xc0] sm:$0xf] }
  0xa0   : > { %951 = vmatpush.bf16.msra.mxu0 %v2844_v41  ;;  %2925 = vmatpush.bf16.msra.mxu2 %v2844_v41  ;;  %v2451_v32 = vor.u32 %v2831_v27, %v2448_v28  ;;  %v2834_v36 = vld [vmem:[%s3280_s19 + $0xc4] sm:$0xf0]  ;;  %v2817_v37 = vld [vmem:[%s3280_s19 + $0x44] sm:$0xf]  ;;  %v2392_v38 = vld [vmem:[%s3280_s19 + $0x48] sm:$0xf0]  ;;  %v2391_v41 = vor.u32 %v2818_v34, %v2390_v33 }
  0xa1   : > { %1040 = vmatpush.bf16.msra.mxu1 %v2852_v42  ;;  %2933 = vmatpush.bf16.msra.mxu3 %v2852_v42  ;;  %v2833_v39 = vld [vmem:[%s3280_s19 + $0xc4] sm:$0xf]  ;;  %v2456_v40 = vld [vmem:[%s3280_s19 + $0xc8] sm:$0xf0]  ;;  %v2455_v42 = vor.u32 %v2834_v36, %v2454_v35  ;;  %v2819_v49 = vld [vmem:[%s3280_s19 + $0x54] sm:$0xf] }
  0xa2   : > { %v2400_v50 = vld [vmem:[%s3280_s19 + $0x58] sm:$0xf0]  ;;  %v2835_v51 = vld [vmem:[%s3280_s19 + $0xd4] sm:$0xf]  ;;  %v2821_v61 = vld [vmem:[%s3280_s19 + $0x64] sm:$0xf] }
  0xa3   : > { %v2464_v52 = vld [vmem:[%s3280_s19 + $0xd8] sm:$0xf0]  ;;  %v2403_v55 = vor.u32 %v2819_v49, %v2400_v50  ;;  %v2408_v62 = vld [vmem:[%s3280_s19 + $0x68] sm:$0xf0]  ;;  %v2837_v63 = vld [vmem:[%s3280_s19 + $0xe4] sm:$0xf] }
  0xa4   : > { %952 = vmatpush.bf16.msra.mxu0 %v2843_v43  ;;  %2926 = vmatpush.bf16.msra.mxu2 %v2843_v43  ;;  %v2395_v43 = vor.u32 %v2817_v37, %v2392_v38  ;;  %v2467_v56 = vor.u32 %v2835_v51, %v2464_v52  ;;  %v2472_v0 = vld [vmem:[%s3280_s19 + $0xe8] sm:$0xf0]  ;;  %v2411_v3 = vor.u32 %v2821_v61, %v2408_v62  ;;  %v2823_v9 = vld [vmem:[%s3280_s19 + $0x74] sm:$0xf]  ;;  %v2416_v10 = vld [vmem:[%s3280_s19 + $0x78] sm:$0xf0] }
  0xa5   : > { %1041 = vmatpush.bf16.msra.mxu1 %v2851_v44  ;;  %2934 = vmatpush.bf16.msra.mxu3 %v2851_v44  ;;  %v2459_v44 = vor.u32 %v2833_v39, %v2456_v40  ;;  %v2475_v4 = vor.u32 %v2837_v63, %v2472_v0  ;;  %v2839_v11 = vld [vmem:[%s3280_s19 + $0xf4] sm:$0xf]  ;;  %v2480_v12 = vld [vmem:[%s3280_s19 + $0xf8] sm:$0xf0]  ;;  %v2419_v15 = vor.u32 %v2823_v9, %v2416_v10  ;;  %v596_v27 = vld [vmem:[#allocation2] sm:$0xff] }
  0xa6   : > { %v2483_v16 = vor.u32 %v2839_v11, %v2480_v12  ;;  %v611_v23 = vld [vmem:[#allocation2 + $0x38] sm:$0xff]  ;;  %v615_v63 = vld [vmem:[#allocation2 + $0xe0] sm:$0xff]  ;;  %v616_v9 = vld [vmem:[#allocation2 + $0x90] sm:$0xff] }
  0xa7   : > { %v612_v33 = vld [vmem:[#allocation2 + $0x58] sm:$0xff] }
  0xa8   : > { %953 = vmatpush.bf16.msra.mxu0 %v2842_v45  ;;  %2927 = vmatpush.bf16.msra.mxu2 %v2842_v45  ;;  %v2398_v45 = vld [vmem:[%s3280_s19 + $0x50] sm:$0xf]  ;;  %v597_v37 = vld [vmem:[#allocation2 + $0xd8] sm:$0xff] }
  0xa9   : > { %1042 = vmatpush.bf16.msra.mxu1 %v2850_v46  ;;  %2935 = vmatpush.bf16.msra.mxu3 %v2850_v46  ;;  %v2820_v46 = vld [vmem:[%s3280_s19 + $0x54] sm:$0xf0] }
  0xaa   : > { %v2399_v53 = vor.u32 %v2820_v46, %v2398_v45 }
  0xac   : > { %954 = vmatpush.bf16.msra.mxu0 %v2841_v47  ;;  %2928 = vmatpush.bf16.msra.mxu2 %v2841_v47  ;;  %v2462_v47 = vld [vmem:[%s3280_s19 + $0xd0] sm:$0xf] }
  0xad   : > { %1043 = vmatpush.bf16.msra.mxu1 %v2849_v48  ;;  %2936 = vmatpush.bf16.msra.mxu3 %v2849_v48  ;;  %v2836_v48 = vld [vmem:[%s3280_s19 + $0xd4] sm:$0xf0] }
  0xae   : > { %v2463_v54 = vor.u32 %v2836_v48, %v2462_v47  ;;  %v598_v47 = vld [vmem:[#allocation2 + $0x18] sm:$0xff] }
  0xaf   : > { %955 = vmatmul.bf16.vlgmr.msra.gmra.mxu0 %v2359_v57  ;;  %995 = vmatmul.bf16.vlgmr.msra.gmra.mxu2 %v2423_v58  ;;  %v2406_v57 = vld [vmem:[%s3280_s19 + $0x60] sm:$0xf]  ;;  %v2822_v58 = vld [vmem:[%s3280_s19 + $0x64] sm:$0xf0] }
  0xb0   : > { %1044 = vmatmul.bf16.vlgmr.msra.gmra.mxu1 %v2363_v59  ;;  %1084 = vmatmul.bf16.vlgmr.msra.gmra.mxu3 %v2427_v60  ;;  %v2470_v59 = vld [vmem:[%s3280_s19 + $0xe0] sm:$0xf]  ;;  %v2838_v60 = vld [vmem:[%s3280_s19 + $0xe4] sm:$0xf0]  ;;  %v2407_v1 = vor.u32 %v2822_v58, %v2406_v57  ;;  %v599_v57 = vld [vmem:[#allocation2 + $0x50] sm:$0xff] }
  0xb1   : > { %v2471_v2 = vor.u32 %v2838_v60, %v2470_v59 }
  0xbf   : > { %960 = vmatmul.bf16.gmra.mxu0 %v2367_v5  ;;  %1000 = vmatmul.bf16.gmra.mxu2 %v2431_v6  ;;  %v2414_v5 = vld [vmem:[%s3280_s19 + $0x70] sm:$0xf]  ;;  %v2824_v6 = vld [vmem:[%s3280_s19 + $0x74] sm:$0xf0] }
  0xc0   : > { %1049 = vmatmul.bf16.gmra.mxu1 %v2371_v7  ;;  %1089 = vmatmul.bf16.gmra.mxu3 %v2435_v8  ;;  %v2478_v7 = vld [vmem:[%s3280_s19 + $0xf0] sm:$0xf]  ;;  %v2840_v8 = vld [vmem:[%s3280_s19 + $0xf4] sm:$0xf0]  ;;  %v2415_v13 = vor.u32 %v2824_v6, %v2414_v5 }
  0xc1   : > { %v2479_v14 = vor.u32 %v2840_v8, %v2478_v7 }
  0xcf   : > { %965 = vmatmul.bf16.gmra.mxu0 %v2375_v17  ;;  %1005 = vmatmul.bf16.gmra.mxu2 %v2439_v18  ;;  %v595_v18 = vld [vmem:[#allocation2 + $0xb0] sm:$0xff] }
  0xd0   : > { %1054 = vmatmul.bf16.gmra.mxu1 %v2379_v19  ;;  %1094 = vmatmul.bf16.gmra.mxu3 %v2443_v20 }
  0xdf   : > { %970 = vmatmul.bf16.gmra.mxu0 %v2383_v29  ;;  %1010 = vmatmul.bf16.gmra.mxu2 %v2447_v30 }
  0xe0   : > { %1059 = vmatmul.bf16.gmra.mxu1 %v2387_v31  ;;  %1099 = vmatmul.bf16.gmra.mxu3 %v2451_v32 }
  0xef   : > { %975 = vmatmul.bf16.gmra.mxu0 %v2391_v41  ;;  %1015 = vmatmul.bf16.gmra.mxu2 %v2455_v42 }
  0xf0   : > { %1064 = vmatmul.bf16.gmra.mxu1 %v2395_v43  ;;  %1104 = vmatmul.bf16.gmra.mxu3 %v2459_v44  ;;  %v613_v43 = vld [vmem:[#allocation2 + $0x40] sm:$0xff] }
  0xff   : > { %980 = vmatmul.bf16.gmra.mxu0 %v2399_v53  ;;  %1020 = vmatmul.bf16.gmra.mxu2 %v2463_v54  ;;  %v614_v53 = vld [vmem:[#allocation2 + $0xc8] sm:$0xff] }
 0x100   : > { %1069 = vmatmul.bf16.gmra.mxu1 %v2403_v55  ;;  %1109 = vmatmul.bf16.gmra.mxu3 %v2467_v56 }
 0x10f   : > { %985 = vmatmul.bf16.gmra.mxu0 %v2407_v1  ;;  %1025 = vmatmul.bf16.gmra.mxu2 %v2471_v2 }
 0x110   : > { %1074 = vmatmul.bf16.gmra.mxu1 %v2411_v3  ;;  %1114 = vmatmul.bf16.gmra.mxu3 %v2475_v4  ;;  %v600_v3 = vld [vmem:[#allocation2 + $0x68] sm:$0xff] }
 0x11f   : > { %990 = vmatmul.bf16.gmra.mxu0 %v2415_v13  ;;  %1030 = vmatmul.bf16.gmra.mxu2 %v2479_v14  ;;  %v601_v13 = vld [vmem:[#allocation2 + $0x30] sm:$0xff] }
 0x120   : > { %1079 = vmatmul.bf16.gmra.mxu1 %v2419_v15  ;;  %1119 = vmatmul.bf16.gmra.mxu3 %v2483_v16 }
 0x12c   : > { %v956_v17 = vpop.f32.mrf.mxu0 }
 0x12d   : > { %v1045_v19 = vpop.f32.mrf.mxu1 }
 0x12e   : > { %v1046_v20 = vadd.f32 %v1045_v19, %v956_v17  ;;  %v617_v19 = vld [vmem:[#allocation2 + $0x70] sm:$0xff] }
 0x130   : > { %v1125_v21 = vadd.f32 %v1046_v20, %v595_v18 }
 0x132   : > { %1157 = vst [vmem:[#allocation2 + $0xb0] sm:$0xff] %v1125_v21  ;;  %v996_v22 = vpop.f32.mrf.mxu2 }
 0x133   : > { %v1085_v24 = vpop.f32.mrf.mxu3 }
 0x134   : > { %v1086_v25 = vadd.f32 %v1085_v24, %v996_v22  ;;  %v958_v26 = vpop.f32.mrf.mxu0 }
 0x135   : > { %v1047_v28 = vpop.f32.mrf.mxu1 }
 0x136   : > { %v1141_v29 = vadd.f32 %v1086_v25, %v611_v23  ;;  %v1048_v30 = vadd.f32 %v1047_v28, %v958_v26  ;;  %v602_v23 = vld [vmem:[#allocation2 + $0x48] sm:$0xff] }
 0x138   : > { %1173 = vst [vmem:[#allocation2 + $0x38] sm:$0xff] %v1141_v29  ;;  %v1126_v31 = vadd.f32 %v1048_v30, %v596_v27  ;;  %v618_v29 = vld [vmem:[#allocation2 + $0xc0] sm:$0xff] }
 0x13a   : > { %1158 = vst [vmem:[#allocation2] sm:$0xff] %v1126_v31  ;;  %v998_v32 = vpop.f32.mrf.mxu2 }
 0x13b   : > { %v1087_v34 = vpop.f32.mrf.mxu3 }
 0x13c   : > { %v1088_v35 = vadd.f32 %v1087_v34, %v998_v32  ;;  %v961_v36 = vpop.f32.mrf.mxu0 }
 0x13d   : > { %v1050_v38 = vpop.f32.mrf.mxu1 }
 0x13e   : > { %v1142_v39 = vadd.f32 %v1088_v35, %v612_v33  ;;  %v1051_v40 = vadd.f32 %v1050_v38, %v961_v36  ;;  %v603_v33 = vld [vmem:[#allocation2 + $0x80] sm:$0xff] }
 0x140   : > { %1174 = vst [vmem:[#allocation2 + $0x58] sm:$0xff] %v1142_v39  ;;  %v1127_v41 = vadd.f32 %v1051_v40, %v597_v37  ;;  %v619_v39 = vld [vmem:[#allocation2 + $0xa8] sm:$0xff] }
 0x142   : > { %1159 = vst [vmem:[#allocation2 + $0xd8] sm:$0xff] %v1127_v41  ;;  %v1001_v42 = vpop.f32.mrf.mxu2 }
 0x143   : > { %v1090_v44 = vpop.f32.mrf.mxu3 }
 0x144   : > { %v1091_v45 = vadd.f32 %v1090_v44, %v1001_v42  ;;  %v963_v46 = vpop.f32.mrf.mxu0 }
 0x145   : > { %v1052_v48 = vpop.f32.mrf.mxu1 }
 0x146   : > { %v1143_v49 = vadd.f32 %v1091_v45, %v613_v43  ;;  %v1053_v50 = vadd.f32 %v1052_v48, %v963_v46  ;;  %v604_v43 = vld [vmem:[#allocation2 + $0x88] sm:$0xff] }
 0x148   : > { %1175 = vst [vmem:[#allocation2 + $0x40] sm:$0xff] %v1143_v49  ;;  %v1128_v51 = vadd.f32 %v1053_v50, %v598_v47  ;;  %v620_v49 = vld [vmem:[#allocation2 + $0xd0] sm:$0xff] }
 0x14a   : > { %1160 = vst [vmem:[#allocation2 + $0x18] sm:$0xff] %v1128_v51  ;;  %v1003_v52 = vpop.f32.mrf.mxu2 }
 0x14b   : > { %v1092_v54 = vpop.f32.mrf.mxu3 }
 0x14c   : > { %v1093_v55 = vadd.f32 %v1092_v54, %v1003_v52  ;;  %v966_v56 = vpop.f32.mrf.mxu0 }
 0x14d   : > { %v1055_v58 = vpop.f32.mrf.mxu1 }
 0x14e   : > { %v1144_v59 = vadd.f32 %v1093_v55, %v614_v53  ;;  %v1056_v60 = vadd.f32 %v1055_v58, %v966_v56  ;;  %v605_v53 = vld [vmem:[#allocation2 + $0xe8] sm:$0xff] }
 0x150   : > { %1176 = vst [vmem:[#allocation2 + $0xc8] sm:$0xff] %v1144_v59  ;;  %v1129_v61 = vadd.f32 %v1056_v60, %v599_v57  ;;  %v621_v59 = vld [vmem:[#allocation2 + $0x10] sm:$0xff] }
 0x152   : > { %1161 = vst [vmem:[#allocation2 + $0x50] sm:$0xff] %v1129_v61  ;;  %v1006_v62 = vpop.f32.mrf.mxu2 }
 0x153   : > { %v1095_v0 = vpop.f32.mrf.mxu3 }
 0x154   : > { %v1096_v1 = vadd.f32 %v1095_v0, %v1006_v62  ;;  %v968_v2 = vpop.f32.mrf.mxu0 }
 0x155   : > { %v1057_v4 = vpop.f32.mrf.mxu1 }
 0x156   : > { %v1145_v5 = vadd.f32 %v1096_v1, %v615_v63  ;;  %v1058_v6 = vadd.f32 %v1057_v4, %v968_v2  ;;  %v606_v63 = vld [vmem:[#allocation2 + $0xb8] sm:$0xff] }
 0x158   : > { %1177 = vst [vmem:[#allocation2 + $0xe0] sm:$0xff] %v1145_v5  ;;  %v1130_v7 = vadd.f32 %v1058_v6, %v600_v3  ;;  %v622_v5 = vld [vmem:[#allocation2 + $0x28] sm:$0xff] }
 0x15a   : > { %1162 = vst [vmem:[#allocation2 + $0x68] sm:$0xff] %v1130_v7  ;;  %v1008_v8 = vpop.f32.mrf.mxu2 }
 0x15b   : > { %v1097_v10 = vpop.f32.mrf.mxu3 }
 0x15c   : > { %v1098_v11 = vadd.f32 %v1097_v10, %v1008_v8  ;;  %v971_v12 = vpop.f32.mrf.mxu0 }
 0x15d   : > { %v1060_v14 = vpop.f32.mrf.mxu1 }
 0x15e   : > { %v1146_v15 = vadd.f32 %v1098_v11, %v616_v9  ;;  %v1061_v16 = vadd.f32 %v1060_v14, %v971_v12  ;;  %v607_v9 = vld [vmem:[#allocation2 + $0x60] sm:$0xff] }
 0x160   : > { %1178 = vst [vmem:[#allocation2 + $0x90] sm:$0xff] %v1146_v15  ;;  %v1131_v17 = vadd.f32 %v1061_v16, %v601_v13  ;;  %v623_v15 = vld [vmem:[#allocation2 + $0xa0] sm:$0xff] }
 0x162   : > { %1163 = vst [vmem:[#allocation2 + $0x30] sm:$0xff] %v1131_v17  ;;  %v1011_v18 = vpop.f32.mrf.mxu2 }
 0x163   : > { %v1100_v20 = vpop.f32.mrf.mxu3 }
 0x164   : > { %v1101_v21 = vadd.f32 %v1100_v20, %v1011_v18  ;;  %v973_v22 = vpop.f32.mrf.mxu0 }
 0x165   : > { %v1062_v24 = vpop.f32.mrf.mxu1 }
 0x166   : > { %v1147_v25 = vadd.f32 %v1101_v21, %v617_v19  ;;  %v1063_v26 = vadd.f32 %v1062_v24, %v973_v22  ;;  %v608_v19 = vld [vmem:[#allocation2 + $0xf0] sm:$0xff] }
 0x168   : > { %1179 = vst [vmem:[#allocation2 + $0x70] sm:$0xff] %v1147_v25  ;;  %v1132_v27 = vadd.f32 %v1063_v26, %v602_v23  ;;  %v624_v25 = vld [vmem:[#allocation2 + $0xf8] sm:$0xff] }
 0x16a   : > { %1164 = vst [vmem:[#allocation2 + $0x48] sm:$0xff] %v1132_v27  ;;  %v1013_v28 = vpop.f32.mrf.mxu2 }
 0x16b   : > { %v1102_v30 = vpop.f32.mrf.mxu3 }
 0x16c   : > { %v1103_v31 = vadd.f32 %v1102_v30, %v1013_v28  ;;  %v976_v32 = vpop.f32.mrf.mxu0 }
 0x16d   : > { %v1065_v34 = vpop.f32.mrf.mxu1 }
 0x16e   : > { %v1148_v35 = vadd.f32 %v1103_v31, %v618_v29  ;;  %v1066_v36 = vadd.f32 %v1065_v34, %v976_v32  ;;  %v609_v29 = vld [vmem:[#allocation2 + $0x8] sm:$0xff] }
 0x170   : > { %1180 = vst [vmem:[#allocation2 + $0xc0] sm:$0xff] %v1148_v35  ;;  %v1133_v37 = vadd.f32 %v1066_v36, %v603_v33  ;;  %v625_v35 = vld [vmem:[#allocation2 + $0x20] sm:$0xff] }
 0x172   : > { %1165 = vst [vmem:[#allocation2 + $0x80] sm:$0xff] %v1133_v37  ;;  %v1016_v38 = vpop.f32.mrf.mxu2 }
 0x173   : > { %v1105_v40 = vpop.f32.mrf.mxu3 }
 0x174   : > { %v1106_v41 = vadd.f32 %v1105_v40, %v1016_v38  ;;  %v978_v42 = vpop.f32.mrf.mxu0 }
 0x175   : > { %v1067_v44 = vpop.f32.mrf.mxu1 }
 0x176   : > { %v1149_v45 = vadd.f32 %v1106_v41, %v619_v39  ;;  %v1068_v46 = vadd.f32 %v1067_v44, %v978_v42  ;;  %v610_v39 = vld [vmem:[#allocation2 + $0x78] sm:$0xff] }
 0x178   : > { %1181 = vst [vmem:[#allocation2 + $0xa8] sm:$0xff] %v1149_v45  ;;  %v1134_v47 = vadd.f32 %v1068_v46, %v604_v43  ;;  %v626_v45 = vld [vmem:[#allocation2 + $0x98] sm:$0xff] }
 0x17a   : > { %1166 = vst [vmem:[#allocation2 + $0x88] sm:$0xff] %v1134_v47  ;;  %v1018_v48 = vpop.f32.mrf.mxu2 }
 0x17b   : > { %v1107_v50 = vpop.f32.mrf.mxu3 }
 0x17c   : > { %v1108_v51 = vadd.f32 %v1107_v50, %v1018_v48  ;;  %v981_v52 = vpop.f32.mrf.mxu0 }
 0x17d   : > { %v1070_v54 = vpop.f32.mrf.mxu1 }
 0x17e   : > { %v1150_v55 = vadd.f32 %v1108_v51, %v620_v49  ;;  %v1071_v56 = vadd.f32 %v1070_v54, %v981_v52 }
 0x180   : > { %1182 = vst [vmem:[#allocation2 + $0xd0] sm:$0xff] %v1150_v55  ;;  %v1135_v57 = vadd.f32 %v1071_v56, %v605_v53 }
 0x182   : > { %1167 = vst [vmem:[#allocation2 + $0xe8] sm:$0xff] %v1135_v57  ;;  %v1021_v58 = vpop.f32.mrf.mxu2 }
 0x183   : > { %v1110_v60 = vpop.f32.mrf.mxu3 }
 0x184   : > { %v1111_v61 = vadd.f32 %v1110_v60, %v1021_v58  ;;  %v983_v62 = vpop.f32.mrf.mxu0 }
 0x185   : > { %v1072_v0 = vpop.f32.mrf.mxu1 }
 0x186   : > { %v1151_v1 = vadd.f32 %v1111_v61, %v621_v59  ;;  %v1073_v2 = vadd.f32 %v1072_v0, %v983_v62 }
 0x188   : > { %1183 = vst [vmem:[#allocation2 + $0x10] sm:$0xff] %v1151_v1  ;;  %v1136_v3 = vadd.f32 %v1073_v2, %v606_v63 }
 0x18a   : > { %1168 = vst [vmem:[#allocation2 + $0xb8] sm:$0xff] %v1136_v3  ;;  %v1023_v4 = vpop.f32.mrf.mxu2 }
 0x18b   : > { %v1112_v6 = vpop.f32.mrf.mxu3 }
 0x18c   : > { %v1113_v7 = vadd.f32 %v1112_v6, %v1023_v4  ;;  %v986_v8 = vpop.f32.mrf.mxu0 }
 0x18d   : > { %v1075_v10 = vpop.f32.mrf.mxu1 }
 0x18e   : > { %v1152_v11 = vadd.f32 %v1113_v7, %v622_v5  ;;  %v1076_v12 = vadd.f32 %v1075_v10, %v986_v8 }
 0x190   : > { %1184 = vst [vmem:[#allocation2 + $0x28] sm:$0xff] %v1152_v11  ;;  %v1137_v13 = vadd.f32 %v1076_v12, %v607_v9 }
 0x192   : > { %1169 = vst [vmem:[#allocation2 + $0x60] sm:$0xff] %v1137_v13  ;;  %v1026_v14 = vpop.f32.mrf.mxu2 }
 0x193   : > { %v1115_v16 = vpop.f32.mrf.mxu3 }
 0x194   : > { %v1116_v17 = vadd.f32 %v1115_v16, %v1026_v14  ;;  %v988_v18 = vpop.f32.mrf.mxu0 }
 0x195   : > { %v1077_v20 = vpop.f32.mrf.mxu1 }
 0x196   : > { %v1153_v21 = vadd.f32 %v1116_v17, %v623_v15  ;;  %v1078_v22 = vadd.f32 %v1077_v20, %v988_v18 }
 0x198   : > { %1185 = vst [vmem:[#allocation2 + $0xa0] sm:$0xff] %v1153_v21  ;;  %v1138_v23 = vadd.f32 %v1078_v22, %v608_v19 }
 0x19a   : > { %1170 = vst [vmem:[#allocation2 + $0xf0] sm:$0xff] %v1138_v23  ;;  %v1028_v24 = vpop.f32.mrf.mxu2 }
 0x19b   : > { %v1117_v26 = vpop.f32.mrf.mxu3 }
 0x19c   : > { %v1118_v27 = vadd.f32 %v1117_v26, %v1028_v24  ;;  %v991_v28 = vpop.f32.mrf.mxu0 }
 0x19d   : > { %v1080_v30 = vpop.f32.mrf.mxu1 }
 0x19e   : > { %v1154_v31 = vadd.f32 %v1118_v27, %v624_v25  ;;  %v1081_v32 = vadd.f32 %v1080_v30, %v991_v28 }
 0x1a0   : > { %1186 = vst [vmem:[#allocation2 + $0xf8] sm:$0xff] %v1154_v31  ;;  %v1139_v33 = vadd.f32 %v1081_v32, %v609_v29 }
 0x1a2   : > { %1171 = vst [vmem:[#allocation2 + $0x8] sm:$0xff] %v1139_v33  ;;  %v1031_v34 = vpop.f32.mrf.mxu2 }
 0x1a3   : > { %v1120_v36 = vpop.f32.mrf.mxu3 }
 0x1a4   : > { %v1121_v37 = vadd.f32 %v1120_v36, %v1031_v34  ;;  %v993_v38 = vpop.f32.mrf.mxu0 }
 0x1a5   : > { %v1082_v40 = vpop.f32.mrf.mxu1 }
 0x1a6   : > { %v1155_v41 = vadd.f32 %v1121_v37, %v625_v35  ;;  %v1083_v42 = vadd.f32 %v1082_v40, %v993_v38 }
 0x1a8   : > { %1187 = vst [vmem:[#allocation2 + $0x20] sm:$0xff] %v1155_v41  ;;  %v1140_v43 = vadd.f32 %v1083_v42, %v610_v39 }
 0x1aa   : > { %1172 = vst [vmem:[#allocation2 + $0x78] sm:$0xff] %v1140_v43  ;;  %v1033_v44 = vpop.f32.mrf.mxu2 }
 0x1ab   : > { %v1122_v46 = vpop.f32.mrf.mxu3 }
 0x1ac   : > { %v1123_v47 = vadd.f32 %v1122_v46, %v1033_v44 }
 0x1ae   : > { %v1156_v48 = vadd.f32 %v1123_v47, %v626_v45 }
 0x1b0   : > { %1188 = vst [vmem:[#allocation2 + $0x98] sm:$0xff] %v1156_v48 }
 0x1b1 PF: > { %p2548_p0 = scmp.ne.s32.totalorder %s3060_s11, 1 }
 0x1b3   : > { %1192 = sbr.rel (%p2548_p0) target bundleno = 864 (0x360), region = 90 }
 0x1b8   : > { %v2735_v49 = vld [vmem:[%s3718_s5 + $0x70] sm:$0xf]  ;;  %v2904_v50 = vld [vmem:[%s3718_s5 + $0x74] sm:$0xf0]  ;;  %v2903_v54 = vld [vmem:[%s3718_s5 + $0x74] sm:$0xf] }
 0x1b9   : > { %v2799_v51 = vld [vmem:[%s3718_s5 + $0xf0] sm:$0xf]  ;;  %v2736_v52 = vor.u32 %v2904_v50, %v2735_v49  ;;  %v2920_v53 = vld [vmem:[%s3718_s5 + $0xf4] sm:$0xf0]  ;;  %v2737_v55 = vld [vmem:[%s3718_s5 + $0x78] sm:$0xf0] }
 0x1ba   : > { %v2800_v56 = vor.u32 %v2920_v53, %v2799_v51  ;;  %v2740_v57 = vor.u32 %v2903_v54, %v2737_v55  ;;  %v2919_v58 = vld [vmem:[%s3718_s5 + $0xf4] sm:$0xf]  ;;  %v2801_v59 = vld [vmem:[%s3718_s5 + $0xf8] sm:$0xf0]  ;;  %v2727_v60 = vld [vmem:[%s3718_s5 + $0x60] sm:$0xf] }
 0x1bb   : > { %1743 = vmatpush.bf16.msra.mxu0 %v2736_v52  ;;  %v2804_v61 = vor.u32 %v2919_v58, %v2801_v59  ;;  %v2902_v62 = vld [vmem:[%s3718_s5 + $0x64] sm:$0xf0]  ;;  %v2791_v63 = vld [vmem:[%s3718_s5 + $0xe0] sm:$0xf]  ;;  %v2901_v3 = vld [vmem:[%s3718_s5 + $0x64] sm:$0xf] }
 0x1bc   : > { %v2918_v0 = vld [vmem:[%s3718_s5 + $0xe4] sm:$0xf0]  ;;  %1832 = vmatpush.bf16.msra.mxu1 %v2800_v56  ;;  %1921 = vmatpush.bf16.msra.mxu2 %v2740_v57  ;;  %v2728_v1 = vor.u32 %v2902_v62, %v2727_v60  ;;  %v2729_v4 = vld [vmem:[%s3718_s5 + $0x68] sm:$0xf0]  ;;  %v2917_v5 = vld [vmem:[%s3718_s5 + $0xe4] sm:$0xf] }
 0x1bd   : > { %v2792_v2 = vor.u32 %v2918_v0, %v2791_v63  ;;  %2010 = vmatpush.bf16.msra.mxu3 %v2804_v61  ;;  %v2732_v6 = vor.u32 %v2901_v3, %v2729_v4  ;;  %v2793_v7 = vld [vmem:[%s3718_s5 + $0xe8] sm:$0xf0]  ;;  %v2719_v8 = vld [vmem:[%s3718_s5 + $0x50] sm:$0xf]  ;;  %v2900_v9 = vld [vmem:[%s3718_s5 + $0x54] sm:$0xf0] }
 0x1be   : > { %v2796_v10 = vor.u32 %v2917_v5, %v2793_v7  ;;  %v2783_v11 = vld [vmem:[%s3718_s5 + $0xd0] sm:$0xf]  ;;  %v2916_v12 = vld [vmem:[%s3718_s5 + $0xd4] sm:$0xf0]  ;;  %v2899_v13 = vld [vmem:[%s3718_s5 + $0x54] sm:$0xf]  ;;  %v2720_v14 = vor.u32 %v2900_v9, %v2719_v8 }
 0x1bf   : > { %1744 = vmatpush.bf16.msra.mxu0 %v2728_v1  ;;  %v2721_v15 = vld [vmem:[%s3718_s5 + $0x58] sm:$0xf0]  ;;  %v2915_v16 = vld [vmem:[%s3718_s5 + $0xd4] sm:$0xf]  ;;  %v2784_v18 = vor.u32 %v2916_v12, %v2783_v11  ;;  %v2711_v20 = vld [vmem:[%s3718_s5 + $0x40] sm:$0xf] }
 0x1c0   : > { %v2785_v17 = vld [vmem:[%s3718_s5 + $0xd8] sm:$0xf0]  ;;  %1833 = vmatpush.bf16.msra.mxu1 %v2792_v2  ;;  %1922 = vmatpush.bf16.msra.mxu2 %v2732_v6  ;;  %v2724_v19 = vor.u32 %v2899_v13, %v2721_v15  ;;  %v2898_v21 = vld [vmem:[%s3718_s5 + $0x44] sm:$0xf0]  ;;  %v2775_v22 = vld [vmem:[%s3718_s5 + $0xc0] sm:$0xf] }
 0x1c1   : > { %2011 = vmatpush.bf16.msra.mxu3 %v2796_v10  ;;  %v2788_v23 = vor.u32 %v2915_v16, %v2785_v17  ;;  %v2914_v24 = vld [vmem:[%s3718_s5 + $0xc4] sm:$0xf0]  ;;  %v2897_v25 = vld [vmem:[%s3718_s5 + $0x44] sm:$0xf]  ;;  %v2713_v26 = vld [vmem:[%s3718_s5 + $0x48] sm:$0xf0]  ;;  %v2712_v29 = vor.u32 %v2898_v21, %v2711_v20 }
 0x1c2   : > { %v2913_v27 = vld [vmem:[%s3718_s5 + $0xc4] sm:$0xf]  ;;  %v2777_v28 = vld [vmem:[%s3718_s5 + $0xc8] sm:$0xf0]  ;;  %v2776_v30 = vor.u32 %v2914_v24, %v2775_v22  ;;  %v2716_v31 = vor.u32 %v2897_v25, %v2713_v26  ;;  %v2703_v32 = vld [vmem:[%s3718_s5 + $0x30] sm:$0xf] }
 0x1c3   : > { %1745 = vmatpush.bf16.msra.mxu0 %v2720_v14  ;;  %v2896_v33 = vld [vmem:[%s3718_s5 + $0x34] sm:$0xf0]  ;;  %v2767_v34 = vld [vmem:[%s3718_s5 + $0xb0] sm:$0xf]  ;;  %v2780_v35 = vor.u32 %v2913_v27, %v2777_v28  ;;  %v2895_v37 = vld [vmem:[%s3718_s5 + $0x34] sm:$0xf] }
 0x1c4   : > { %1834 = vmatpush.bf16.msra.mxu1 %v2784_v18  ;;  %1923 = vmatpush.bf16.msra.mxu2 %v2724_v19  ;;  %v2912_v36 = vld [vmem:[%s3718_s5 + $0xb4] sm:$0xf0]  ;;  %v2705_v38 = vld [vmem:[%s3718_s5 + $0x38] sm:$0xf0]  ;;  %v2911_v39 = vld [vmem:[%s3718_s5 + $0xb4] sm:$0xf]  ;;  %v2704_v41 = vor.u32 %v2896_v33, %v2703_v32 }
 0x1c5   : > { %2012 = vmatpush.bf16.msra.mxu3 %v2788_v23  ;;  %v2769_v40 = vld [vmem:[%s3718_s5 + $0xb8] sm:$0xf0]  ;;  %v2768_v42 = vor.u32 %v2912_v36, %v2767_v34  ;;  %v2708_v43 = vor.u32 %v2895_v37, %v2705_v38  ;;  %v2695_v44 = vld [vmem:[%s3718_s5 + $0x20] sm:$0xf]  ;;  %v2894_v45 = vld [vmem:[%s3718_s5 + $0x24] sm:$0xf0] }
 0x1c6   : > { %v2759_v46 = vld [vmem:[%s3718_s5 + $0xa0] sm:$0xf]  ;;  %v2772_v47 = vor.u32 %v2911_v39, %v2769_v40  ;;  %v2910_v48 = vld [vmem:[%s3718_s5 + $0xa4] sm:$0xf0]  ;;  %v2893_v49 = vld [vmem:[%s3718_s5 + $0x24] sm:$0xf]  ;;  %v2696_v54 = vor.u32 %v2894_v45, %v2695_v44 }
 0x1c7   : > { %1746 = vmatpush.bf16.msra.mxu0 %v2712_v29  ;;  %v2697_v50 = vld [vmem:[%s3718_s5 + $0x28] sm:$0xf0]  ;;  %v2909_v51 = vld [vmem:[%s3718_s5 + $0xa4] sm:$0xf]  ;;  %v2687_v53 = vld [vmem:[%s3718_s5 + $0x10] sm:$0xf]  ;;  %v2760_v58 = vor.u32 %v2910_v48, %v2759_v46 }
 0x1c8   : > { %1835 = vmatpush.bf16.msra.mxu1 %v2776_v30  ;;  %1924 = vmatpush.bf16.msra.mxu2 %v2716_v31  ;;  %v2761_v52 = vld [vmem:[%s3718_s5 + $0xa8] sm:$0xf0]  ;;  %v2892_v55 = vld [vmem:[%s3718_s5 + $0x14] sm:$0xf0]  ;;  %v2751_v56 = vld [vmem:[%s3718_s5 + $0x90] sm:$0xf]  ;;  %v2700_v59 = vor.u32 %v2893_v49, %v2697_v50 }
 0x1c9   : > { %2013 = vmatpush.bf16.msra.mxu3 %v2780_v35  ;;  %v2908_v57 = vld [vmem:[%s3718_s5 + $0x94] sm:$0xf0]  ;;  %v2891_v60 = vld [vmem:[%s3718_s5 + $0x14] sm:$0xf]  ;;  %v2689_v61 = vld [vmem:[%s3718_s5 + $0x18] sm:$0xf0]  ;;  %v2764_v63 = vor.u32 %v2909_v51, %v2761_v52  ;;  %v2688_v8 = vor.u32 %v2892_v55, %v2687_v53 }
 0x1ca   : > { %v2907_v62 = vld [vmem:[%s3718_s5 + $0x94] sm:$0xf]  ;;  %v2753_v0 = vld [vmem:[%s3718_s5 + $0x98] sm:$0xf0]  ;;  %v1193_v1 = vld [vmem:[%s3268_s27] sm:$0xf]  ;;  %v2752_v16 = vor.u32 %v2908_v57, %v2751_v56  ;;  %v2692_v17 = vor.u32 %v2891_v60, %v2689_v61 }
 0x1cb   : > { %1747 = vmatpush.bf16.msra.mxu0 %v2704_v41  ;;  %v1194_v2 = vld [vmem:[%s3268_s27 + $0x4] sm:$0xf]  ;;  %v2679_v3 = vld [vmem:[%s3718_s5] sm:$0xf]  ;;  %v2890_v4 = vld [vmem:[%s3718_s5 + $0x4] sm:$0xf0]  ;;  %v2756_v21 = vor.u32 %v2907_v62, %v2753_v0 }
 0x1cc   : > { %1836 = vmatpush.bf16.msra.mxu1 %v2768_v42  ;;  %1925 = vmatpush.bf16.msra.mxu2 %v2708_v43  ;;  %1225 = vst [vmem:[#allocation3] sm:$0xf] %v1193_v1  ;;  %v1257_v5 = vld [vmem:[#allocation2 + $0xb0] sm:$0xff]  ;;  %v1258_v6 = vld [vmem:[#allocation2] sm:$0xff]  ;;  %v1195_v7 = vld [vmem:[%s3268_s27 + $0x8] sm:$0xf]  ;;  %v2680_v27 = vor.u32 %v2890_v4, %v2679_v3 }
 0x1cd   : > { %2014 = vmatpush.bf16.msra.mxu3 %v2772_v47  ;;  %v2743_v9 = vld [vmem:[%s3718_s5 + $0x80] sm:$0xf]  ;;  %v2906_v10 = vld [vmem:[%s3718_s5 + $0x84] sm:$0xf0]  ;;  %v2889_v11 = vld [vmem:[%s3718_s5 + $0x4] sm:$0xf]  ;;  %v1289_v12 = vpack.c.bf16 %v1257_v5, %v1257_v5  ;;  %v1290_v13 = vpack.c.bf16 %v1258_v6, %v1258_v6 }
 0x1ce   : > { %1226 = vst [vmem:[#allocation3 + $0x8] sm:$0xf] %v1194_v2  ;;  %v1259_v14 = vld [vmem:[#allocation2 + $0xd8] sm:$0xff]  ;;  %v2681_v18 = vld [vmem:[%s3718_s5 + $0x8] sm:$0xf0]  ;;  %v1261_v24 = vld [vmem:[#allocation2 + $0x50] sm:$0xff]  ;;  %v2744_v29 = vor.u32 %v2906_v10, %v2743_v9 }
 0x1cf   : > { %1748 = vmatpush.bf16.msra.mxu0 %v2696_v54  ;;  %v1260_v15 = vld [vmem:[#allocation2 + $0x18] sm:$0xff]  ;;  %v1196_v19 = vld [vmem:[%s3268_s27 + $0xc] sm:$0xf]  ;;  %1227 = vst [vmem:[#allocation3 + $0x10] sm:$0xf] %v1195_v7  ;;  %v1291_v20 = vpack.c.bf16 %v1259_v14, %v1259_v14  ;;  %v2684_v30 = vor.u32 %v2889_v11, %v2681_v18  ;;  %v1293_v32 = vpack.c.bf16 %v1261_v24, %v1261_v24  ;;  %v1263_v43 = vld [vmem:[#allocation2 + $0x30] sm:$0xff] }
 0x1d0   : > { %1837 = vmatpush.bf16.msra.mxu1 %v2760_v58  ;;  %1926 = vmatpush.bf16.msra.mxu2 %v2700_v59  ;;  %v2905_v22 = vld [vmem:[%s3718_s5 + $0x84] sm:$0xf]  ;;  %1321 = vst [vmem:[#allocation3 + $0x4] sm:$0xf] %v1289_v12  ;;  %v1292_v23 = vpack.c.bf16 %v1260_v15, %v1260_v15  ;;  %v2745_v25 = vld [vmem:[%s3718_s5 + $0x88] sm:$0xf0]  ;;  %v1295_v45 = vpack.c.bf16 %v1263_v43, %v1263_v43 }
 0x1d1   : > { %2015 = vmatpush.bf16.msra.mxu3 %v2764_v63  ;;  %1322 = vst [vmem:[#allocation3 + $0xc] sm:$0xf] %v1290_v13  ;;  %v1262_v26 = vld [vmem:[#allocation2 + $0x68] sm:$0xff]  ;;  %v1197_v28 = vld [vmem:[%s3268_s27 + $0x10] sm:$0xf]  ;;  %v2748_v33 = vor.u32 %v2905_v22, %v2745_v25  ;;  %v1265_v55 = vld [vmem:[#allocation2 + $0x80] sm:$0xff] }
 0x1d2   : > { %1228 = vst [vmem:[#allocation3 + $0x18] sm:$0xf] %v1196_v19  ;;  %v1198_v31 = vld [vmem:[%s3268_s27 + $0x14] sm:$0xf]  ;;  %v1294_v35 = vpack.c.bf16 %v1262_v26, %v1262_v26  ;;  %v1199_v41 = vld [vmem:[%s3268_s27 + $0x18] sm:$0xf]  ;;  %v1297_v57 = vpack.c.bf16 %v1265_v55, %v1265_v55 }
 0x1d3   : > { %1749 = vmatpush.bf16.msra.mxu0 %v2688_v8  ;;  %1323 = vst [vmem:[#allocation3 + $0x14] sm:$0xf] %v1291_v20  ;;  %v2551_v34 = vld [vmem:[#allocation3] sm:$0xf]  ;;  %v1200_v42 = vld [vmem:[%s3268_s27 + $0x1c] sm:$0xf] }
 0x1d4   : > { %1838 = vmatpush.bf16.msra.mxu1 %v2752_v16  ;;  %1927 = vmatpush.bf16.msra.mxu2 %v2692_v17  ;;  %1324 = vst [vmem:[#allocation3 + $0x1c] sm:$0xf] %v1292_v23  ;;  %v1264_v44 = vld [vmem:[#allocation2 + $0x48] sm:$0xff]  ;;  %v1201_v53 = vld [vmem:[%s3268_s27 + $0x20] sm:$0xf]  ;;  %v1268_v4 = vld [vmem:[#allocation2 + $0xb8] sm:$0xff] }
 0x1d5   : > { %2016 = vmatpush.bf16.msra.mxu3 %v2756_v21  ;;  %v2858_v36 = vld [vmem:[#allocation3 + $0x4] sm:$0xf0]  ;;  %1229 = vst [vmem:[#allocation3 + $0x20] sm:$0xf] %v1197_v28  ;;  %v1296_v46 = vpack.c.bf16 %v1264_v44, %v1264_v44  ;;  %v1202_v54 = vld [vmem:[%s3268_s27 + $0x24] sm:$0xf]  ;;  %v1300_v6 = vpack.c.bf16 %v1268_v4, %v1268_v4 }
 0x1d6   : > { %v2552_v37 = vor.u32 %v2858_v36, %v2551_v34  ;;  %1230 = vst [vmem:[#allocation3 + $0x28] sm:$0xf] %v1198_v31  ;;  %v2559_v47 = vld [vmem:[#allocation3 + $0x10] sm:$0xf]  ;;  %v1266_v56 = vld [vmem:[#allocation2 + $0x88] sm:$0xff]  ;;  %v1269_v15 = vld [vmem:[#allocation2 + $0x60] sm:$0xff] }
 0x1d7   : > { %1750 = vmatpush.bf16.msra.mxu0 %v2680_v27  ;;  %v2857_v38 = vld [vmem:[#allocation3 + $0x4] sm:$0xf]  ;;  %1325 = vst [vmem:[#allocation3 + $0x24] sm:$0xf] %v1293_v32  ;;  %v1298_v58 = vpack.c.bf16 %v1266_v56, %v1266_v56  ;;  %v1203_v1 = vld [vmem:[%s3268_s27 + $0x28] sm:$0xf]  ;;  %v1301_v17 = vpack.c.bf16 %v1269_v15, %v1269_v15 }
 0x1d8   : > { %1839 = vmatpush.bf16.msra.mxu1 %v2744_v29  ;;  %1928 = vmatpush.bf16.msra.mxu2 %v2684_v30  ;;  %v2553_v39 = vld [vmem:[#allocation3 + $0x8] sm:$0xf0]  ;;  %1326 = vst [vmem:[#allocation3 + $0x2c] sm:$0xf] %v1294_v35  ;;  %v1205_v13 = vld [vmem:[%s3268_s27 + $0x30] sm:$0xf] }
 0x1d9   : > { %2017 = vmatpush.bf16.msra.mxu3 %v2748_v33  ;;  %v2556_v40 = vor.u32 %v2857_v38, %v2553_v39  ;;  %1231 = vst [vmem:[#allocation3 + $0x30] sm:$0xf] %v1199_v41  ;;  %v2860_v48 = vld [vmem:[#allocation3 + $0x14] sm:$0xf0]  ;;  %v1204_v2 = vld [vmem:[%s3268_s27 + $0x2c] sm:$0xf] }
 0x1da   : > { %1751 = vmatmul.bf16.vlgmr.msra.gmra.mxu0 %v2552_v37  ;;  %1232 = vst [vmem:[#allocation3 + $0x38] sm:$0xf] %v1200_v42  ;;  %v2859_v49 = vld [vmem:[#allocation3 + $0x14] sm:$0xf]  ;;  %v2560_v51 = vor.u32 %v2860_v48, %v2559_v47  ;;  %v1267_v3 = vld [vmem:[#allocation2 + $0xe8] sm:$0xff]  ;;  %v1272_v28 = vld [vmem:[#allocation2 + $0x78] sm:$0xff] }
 0x1db   : > { %1929 = vmatmul.bf16.vlgmr.msra.gmra.mxu2 %v2552_v37  ;;  %1840 = vmatmul.bf16.vlgmr.msra.gmra.mxu1 %v2556_v40  ;;  %1327 = vst [vmem:[#allocation3 + $0x34] sm:$0xf] %v1295_v45  ;;  %v2561_v50 = vld [vmem:[#allocation3 + $0x18] sm:$0xf0]  ;;  %v1299_v5 = vpack.c.bf16 %v1267_v3, %v1267_v3  ;;  %v1206_v14 = vld [vmem:[%s3268_s27 + $0x34] sm:$0xf]  ;;  %v1304_v30 = vpack.c.bf16 %v1272_v28, %v1272_v28 }
 0x1dc   : > { %2018 = vmatmul.bf16.vlgmr.msra.gmra.mxu3 %v2556_v40  ;;  %1328 = vst [vmem:[#allocation3 + $0x3c] sm:$0xf] %v1296_v46  ;;  %v2564_v52 = vor.u32 %v2859_v49, %v2561_v50  ;;  %v2567_v59 = vld [vmem:[#allocation3 + $0x20] sm:$0xf]  ;;  %v1270_v16 = vld [vmem:[#allocation2 + $0xf0] sm:$0xff]  ;;  %v1271_v27 = vld [vmem:[#allocation2 + $0x8] sm:$0xff] }
 0x1dd   : > { %1233 = vst [vmem:[#allocation3 + $0x40] sm:$0xf] %v1201_v53  ;;  %v2862_v60 = vld [vmem:[#allocation3 + $0x24] sm:$0xf0]  ;;  %v1302_v18 = vpack.c.bf16 %v1270_v16, %v1270_v16  ;;  %v1207_v25 = vld [vmem:[%s3268_s27 + $0x38] sm:$0xf]  ;;  %v1303_v29 = vpack.c.bf16 %v1271_v27, %v1271_v27 }
 0x1de   : > { %1234 = vst [vmem:[#allocation3 + $0x48] sm:$0xf] %v1202_v54  ;;  %v2861_v61 = vld [vmem:[#allocation3 + $0x24] sm:$0xf]  ;;  %v2568_v63 = vor.u32 %v2862_v60, %v2567_v59  ;;  %v1208_v26 = vld [vmem:[%s3268_s27 + $0x3c] sm:$0xf] }
 0x1df   : > { %1329 = vst [vmem:[#allocation3 + $0x44] sm:$0xf] %v1297_v57  ;;  %v2569_v62 = vld [vmem:[#allocation3 + $0x28] sm:$0xf0]  ;;  %v1273_v37 = vld [vmem:[#allocation2 + $0x38] sm:$0xff]  ;;  %v1275_v49 = vld [vmem:[#allocation2 + $0x40] sm:$0xff] }
 0x1e0   : > { %1330 = vst [vmem:[#allocation3 + $0x4c] sm:$0xf] %v1298_v58  ;;  %v2572_v0 = vor.u32 %v2861_v61, %v2569_v62  ;;  %v2575_v7 = vld [vmem:[#allocation3 + $0x30] sm:$0xf]  ;;  %v1274_v38 = vld [vmem:[#allocation2 + $0x58] sm:$0xff]  ;;  %v1305_v39 = vpack.c.bf16 %v1273_v37, %v1273_v37  ;;  %v1276_v50 = vld [vmem:[#allocation2 + $0xc8] sm:$0xff] }
 0x1e1   : > { %1235 = vst [vmem:[#allocation3 + $0x50] sm:$0xf] %v1203_v1  ;;  %v2864_v8 = vld [vmem:[#allocation3 + $0x34] sm:$0xf0]  ;;  %v1209_v40 = vld [vmem:[%s3268_s27 + $0x40] sm:$0xf]  ;;  %v1306_v42 = vpack.c.bf16 %v1274_v38, %v1274_v38  ;;  %v1308_v54 = vpack.c.bf16 %v1276_v50, %v1276_v50 }
 0x1e2   : > { %1236 = vst [vmem:[#allocation3 + $0x58] sm:$0xf] %v1204_v2  ;;  %v2863_v9 = vld [vmem:[#allocation3 + $0x34] sm:$0xf]  ;;  %v2576_v11 = vor.u32 %v2864_v8, %v2575_v7  ;;  %v1210_v41 = vld [vmem:[%s3268_s27 + $0x44] sm:$0xf] }
 0x1e3   : > { %1331 = vst [vmem:[#allocation3 + $0x54] sm:$0xf] %v1299_v5  ;;  %v2577_v10 = vld [vmem:[#allocation3 + $0x38] sm:$0xf0]  ;;  %v1212_v53 = vld [vmem:[%s3268_s27 + $0x4c] sm:$0xf] }
 0x1e4   : > { %1332 = vst [vmem:[#allocation3 + $0x5c] sm:$0xf] %v1300_v6  ;;  %v2580_v12 = vor.u32 %v2863_v9, %v2577_v10  ;;  %v2583_v19 = vld [vmem:[#allocation3 + $0x40] sm:$0xf]  ;;  %v1278_v62 = vld [vmem:[#allocation2 + $0x90] sm:$0xff] }
 0x1e5   : > { %1237 = vst [vmem:[#allocation3 + $0x60] sm:$0xf] %v1205_v13  ;;  %v2866_v20 = vld [vmem:[#allocation3 + $0x44] sm:$0xf0]  ;;  %v1277_v61 = vld [vmem:[#allocation2 + $0xe0] sm:$0xff]  ;;  %v1310_v3 = vpack.c.bf16 %v1278_v62, %v1278_v62 }
 0x1e6   : > { %1238 = vst [vmem:[#allocation3 + $0x68] sm:$0xf] %v1206_v14  ;;  %v2865_v21 = vld [vmem:[#allocation3 + $0x44] sm:$0xf]  ;;  %v2584_v23 = vor.u32 %v2866_v20, %v2583_v19  ;;  %v1213_v1 = vld [vmem:[%s3268_s27 + $0x50] sm:$0xf] }
 0x1e7   : > { %1333 = vst [vmem:[#allocation3 + $0x64] sm:$0xf] %v1301_v17  ;;  %v2585_v22 = vld [vmem:[#allocation3 + $0x48] sm:$0xf0]  ;;  %v1214_v2 = vld [vmem:[%s3268_s27 + $0x54] sm:$0xf] }
 0x1e8   : > { %1334 = vst [vmem:[#allocation3 + $0x6c] sm:$0xf] %v1302_v18  ;;  %v2588_v24 = vor.u32 %v2865_v21, %v2585_v22  ;;  %v2591_v31 = vld [vmem:[#allocation3 + $0x50] sm:$0xf]  ;;  %v1280_v21 = vld [vmem:[#allocation2 + $0xc0] sm:$0xff] }
 0x1e9   : > { %1239 = vst [vmem:[#allocation3 + $0x70] sm:$0xf] %v1207_v25  ;;  %v2868_v32 = vld [vmem:[#allocation3 + $0x54] sm:$0xf0]  ;;  %v1279_v20 = vld [vmem:[#allocation2 + $0x70] sm:$0xff]  ;;  %v1312_v28 = vpack.c.bf16 %v1280_v21, %v1280_v21 }
 0x1ea   : > { %1756 = vmatmul.bf16.gmra.mxu0 %v2560_v51  ;;  %1240 = vst [vmem:[#allocation3 + $0x78] sm:$0xf] %v1208_v26  ;;  %v2867_v33 = vld [vmem:[#allocation3 + $0x54] sm:$0xf]  ;;  %v2592_v35 = vor.u32 %v2868_v32, %v2591_v31  ;;  %v1311_v22 = vpack.c.bf16 %v1279_v20, %v1279_v20  ;;  %v1215_v26 = vld [vmem:[%s3268_s27 + $0x58] sm:$0xf] }
 0x1eb   : > { %1934 = vmatmul.bf16.gmra.mxu2 %v2560_v51  ;;  %1845 = vmatmul.bf16.gmra.mxu1 %v2564_v52  ;;  %1335 = vst [vmem:[#allocation3 + $0x74] sm:$0xf] %v1303_v29  ;;  %v2593_v34 = vld [vmem:[#allocation3 + $0x58] sm:$0xf0]  ;;  %v1307_v51 = vpack.c.bf16 %v1275_v49, %v1275_v49 }
 0x1ec   : > { %2023 = vmatmul.bf16.gmra.mxu3 %v2564_v52  ;;  %1336 = vst [vmem:[#allocation3 + $0x7c] sm:$0xf] %v1304_v30  ;;  %v2596_v36 = vor.u32 %v2867_v33, %v2593_v34  ;;  %v2599_v43 = vld [vmem:[#allocation3 + $0x60] sm:$0xf]  ;;  %v1211_v52 = vld [vmem:[%s3268_s27 + $0x48] sm:$0xf] }
 0x1ed   : > { %1241 = vst [vmem:[#allocation3 + $0x80] sm:$0xf] %v1209_v40  ;;  %v2870_v44 = vld [vmem:[#allocation3 + $0x64] sm:$0xf0]  ;;  %v1216_v27 = vld [vmem:[%s3268_s27 + $0x5c] sm:$0xf] }
 0x1ee   : > { %1242 = vst [vmem:[#allocation3 + $0x88] sm:$0xf] %v1210_v41  ;;  %v2869_v45 = vld [vmem:[#allocation3 + $0x64] sm:$0xf]  ;;  %v2600_v47 = vor.u32 %v2870_v44, %v2599_v43 }
 0x1ef   : > { %1337 = vst [vmem:[#allocation3 + $0x84] sm:$0xf] %v1305_v39  ;;  %v2601_v46 = vld [vmem:[#allocation3 + $0x68] sm:$0xf0] }
 0x1f0   : > { %1338 = vst [vmem:[#allocation3 + $0x8c] sm:$0xf] %v1306_v42  ;;  %v2604_v48 = vor.u32 %v2869_v45, %v2601_v46  ;;  %v2607_v55 = vld [vmem:[#allocation3 + $0x70] sm:$0xf] }
 0x1f1   : > { %1243 = vst [vmem:[#allocation3 + $0x90] sm:$0xf] %v1211_v52  ;;  %v2872_v56 = vld [vmem:[#allocation3 + $0x74] sm:$0xf0] }
 0x1f2   : > { %1244 = vst [vmem:[#allocation3 + $0x98] sm:$0xf] %v1212_v53  ;;  %v2871_v57 = vld [vmem:[#allocation3 + $0x74] sm:$0xf]  ;;  %v2608_v59 = vor.u32 %v2872_v56, %v2607_v55 }
 0x1f3   : > { %1339 = vst [vmem:[#allocation3 + $0x94] sm:$0xf] %v1307_v51  ;;  %v2609_v58 = vld [vmem:[#allocation3 + $0x78] sm:$0xf0]  ;;  %v1282_v55 = vld [vmem:[#allocation2 + $0xd0] sm:$0xff] }
 0x1f4   : > { %1340 = vst [vmem:[#allocation3 + $0x9c] sm:$0xf] %v1308_v54  ;;  %v2612_v60 = vor.u32 %v2871_v57, %v2609_v58  ;;  %v2615_v4 = vld [vmem:[#allocation3 + $0x80] sm:$0xf]  ;;  %v1281_v54 = vld [vmem:[#allocation2 + $0xa8] sm:$0xff]  ;;  %v1314_v62 = vpack.c.bf16 %v1282_v55, %v1282_v55 }
 0x1f5   : > { %1245 = vst [vmem:[#allocation3 + $0xa0] sm:$0xf] %v1213_v1  ;;  %v2874_v5 = vld [vmem:[#allocation3 + $0x84] sm:$0xf0]  ;;  %v1313_v56 = vpack.c.bf16 %v1281_v54, %v1281_v54 }
 0x1f6   : > { %1246 = vst [vmem:[#allocation3 + $0xa8] sm:$0xf] %v1214_v2  ;;  %v2873_v7 = vld [vmem:[#allocation3 + $0x84] sm:$0xf]  ;;  %v2616_v9 = vor.u32 %v2874_v5, %v2615_v4 }
 0x1f7   : > { %v2617_v8 = vld [vmem:[#allocation3 + $0x88] sm:$0xf0]  ;;  %1342 = vst [vmem:[#allocation3 + $0xac] sm:$0xf] %v1310_v3 }
 0x1f8   : > { %v2623_v29 = vld [vmem:[#allocation3 + $0x90] sm:$0xf]  ;;  %1247 = vst [vmem:[#allocation3 + $0xb0] sm:$0xf] %v1215_v26 }
 0x1f9   : > { %v2876_v32 = vld [vmem:[#allocation3 + $0x94] sm:$0xf0]  ;;  %1248 = vst [vmem:[#allocation3 + $0xb8] sm:$0xf] %v1216_v27  ;;  %v1283_v26 = vld [vmem:[#allocation2 + $0x10] sm:$0xff]  ;;  %v1284_v27 = vld [vmem:[#allocation2 + $0x28] sm:$0xff] }
 0x1fa   : > { %1761 = vmatmul.bf16.gmra.mxu0 %v2568_v63  ;;  %1343 = vst [vmem:[#allocation3 + $0xb4] sm:$0xf] %v1311_v22  ;;  %v2875_v34 = vld [vmem:[#allocation3 + $0x94] sm:$0xf]  ;;  %v2624_v37 = vor.u32 %v2876_v32, %v2623_v29  ;;  %v1219_v32 = vld [vmem:[%s3268_s27 + $0x68] sm:$0xf] }
 0x1fb   : > { %1939 = vmatmul.bf16.gmra.mxu2 %v2568_v63  ;;  %1850 = vmatmul.bf16.gmra.mxu1 %v2572_v0  ;;  %v1309_v63 = vpack.c.bf16 %v1277_v61, %v1277_v61  ;;  %1344 = vst [vmem:[#allocation3 + $0xbc] sm:$0xf] %v1312_v28  ;;  %v1218_v61 = vld [vmem:[%s3268_s27 + $0x64] sm:$0xf]  ;;  %v1315_v28 = vpack.c.bf16 %v1283_v26, %v1283_v26 }
 0x1fc   : > { %2028 = vmatmul.bf16.gmra.mxu3 %v2572_v0  ;;  %v1417_v0 = vld [vmem:[%s3719_s6] sm:$0x3]  ;;  %1250 = vst [vmem:[#allocation3 + $0xc8] sm:$0xf] %v1218_v61  ;;  %v1286_v61 = vld [vmem:[#allocation2 + $0xf8] sm:$0xff] }
 0x1fd   : > { %v3583_v6 = vperm.slane %v1417_v0, 0  ;;  %1341 = vst [vmem:[#allocation3 + $0xa4] sm:$0xf] %v1309_v63  ;;  %v3586_v14 = vperm.slane %v1417_v0, 1  ;;  %v2631_v63 = vld [vmem:[#allocation3 + $0xa0] sm:$0xf] }
 0x1fe   : > { %v2878_v2 = vld [vmem:[#allocation3 + $0xa4] sm:$0xf0]  ;;  %1345 = vst [vmem:[#allocation3 + $0xc4] sm:$0xf] %v1313_v56  ;;  %v2633_v5 = vld [vmem:[#allocation3 + $0xa8] sm:$0xf0] }
 0x1ff   : > { %1346 = vst [vmem:[#allocation3 + $0xcc] sm:$0xf] %v1314_v62 }
 0x200   : > { %1251 = vst [vmem:[#allocation3 + $0xd0] sm:$0xf] %v1219_v32  ;;  %v1287_v32 = vld [vmem:[#allocation2 + $0x20] sm:$0xff] }
 0x201   : > { %1347 = vst [vmem:[#allocation3 + $0xd4] sm:$0xf] %v1315_v28 }
 0x204   : > { %v2877_v4 = vld [vmem:[#allocation3 + $0xa4] sm:$0xf] }
 0x20a   : > { %1766 = vmatmul.bf16.gmra.mxu0 %v2576_v11 }
 0x20b   : > { %1944 = vmatmul.bf16.gmra.mxu2 %v2576_v11  ;;  %1855 = vmatmul.bf16.gmra.mxu1 %v2580_v12  ;;  %v2620_v11 = vor.u32 %v2873_v7, %v2617_v8  ;;  %v2632_v8 = vor.u32 %v2878_v2, %v2631_v63  ;;  %v1221_v2 = vld [vmem:[%s3268_s27 + $0x70] sm:$0xf] }
 0x20c   : > { %2033 = vmatmul.bf16.gmra.mxu3 %v2580_v12  ;;  %1253 = vst [vmem:[#allocation3 + $0xe0] sm:$0xf] %v1221_v2 }
 0x21a   : > { %1771 = vmatmul.bf16.gmra.mxu0 %v2584_v23 }
 0x21b   : > { %1949 = vmatmul.bf16.gmra.mxu2 %v2584_v23  ;;  %1860 = vmatmul.bf16.gmra.mxu1 %v2588_v24 }
 0x21c   : > { %2038 = vmatmul.bf16.gmra.mxu3 %v2588_v24 }
 0x22a   : > { %1776 = vmatmul.bf16.gmra.mxu0 %v2592_v35 }
 0x22b   : > { %1954 = vmatmul.bf16.gmra.mxu2 %v2592_v35  ;;  %1865 = vmatmul.bf16.gmra.mxu1 %v2596_v36  ;;  %v2625_v35 = vld [vmem:[#allocation3 + $0x98] sm:$0xf0] }
 0x22c   : > { %2043 = vmatmul.bf16.gmra.mxu3 %v2596_v36  ;;  %v2628_v42 = vor.u32 %v2875_v34, %v2625_v35  ;;  %v1316_v34 = vpack.c.bf16 %v1284_v27, %v1284_v27  ;;  %v2639_v35 = vld [vmem:[#allocation3 + $0xb0] sm:$0xf] }
 0x22e   : > { %1348 = vst [vmem:[#allocation3 + $0xdc] sm:$0xf] %v1316_v34  ;;  %v1319_v34 = vpack.c.bf16 %v1287_v32, %v1287_v32 }
 0x230   : > { %1351 = vst [vmem:[#allocation3 + $0xf4] sm:$0xf] %v1319_v34 }
 0x23a   : > { %1781 = vmatmul.bf16.gmra.mxu0 %v2600_v47 }
 0x23b   : > { %1959 = vmatmul.bf16.gmra.mxu2 %v2600_v47  ;;  %1870 = vmatmul.bf16.gmra.mxu1 %v2604_v48 }
 0x23c   : > { %2048 = vmatmul.bf16.gmra.mxu3 %v2604_v48 }
 0x24a   : > { %1786 = vmatmul.bf16.gmra.mxu0 %v2608_v59 }
 0x24b   : > { %1964 = vmatmul.bf16.gmra.mxu2 %v2608_v59  ;;  %1875 = vmatmul.bf16.gmra.mxu1 %v2612_v60 }
 0x24c   : > { %2053 = vmatmul.bf16.gmra.mxu3 %v2612_v60  ;;  %v1217_v60 = vld [vmem:[%s3268_s27 + $0x60] sm:$0xf] }
 0x24d   : > { %1249 = vst [vmem:[#allocation3 + $0xc0] sm:$0xf] %v1217_v60  ;;  %v1285_v60 = vld [vmem:[#allocation2 + $0xa0] sm:$0xff] }
 0x24e   : > { %v1317_v62 = vpack.c.bf16 %v1285_v60, %v1285_v60 }
 0x250   : > { %1349 = vst [vmem:[#allocation3 + $0xe4] sm:$0xf] %v1317_v62 }
 0x257   : > { %v1752_v10 = vpop.f32.mrf.mxu0 }
 0x258   : > { %v1753_v12 = vadd.f32 %v1752_v10, %v3583_v6  ;;  %v1841_v13 = vpop.f32.mrf.mxu1 }
 0x25a   : > { %1791 = vmatmul.bf16.gmra.mxu0 %v2616_v9  ;;  %v1842_v15 = vadd.f32 %v1841_v13, %v1753_v12  ;;  %v2636_v13 = vor.u32 %v2877_v4, %v2633_v5  ;;  %v1318_v4 = vpack.c.bf16 %v1286_v61, %v1286_v61  ;;  %v2647_v5 = vld [vmem:[#allocation3 + $0xc0] sm:$0xf] }
 0x25b   : > { %1969 = vmatmul.bf16.gmra.mxu2 %v2616_v9  ;;  %1880 = vmatmul.bf16.gmra.mxu1 %v2620_v11 }
 0x25c   : > { %2058 = vmatmul.bf16.gmra.mxu3 %v2620_v11  ;;  %v2099_v23 = vmax.f32 %v1842_v15, 0.0  ;;  %1350 = vst [vmem:[#allocation3 + $0xec] sm:$0xf] %v1318_v4 }
 0x25e   : > { %v1930_v16 = vpop.f32.mrf.mxu2 }
 0x25f   : > { %v1931_v17 = vadd.f32 %v1930_v16, %v3586_v14  ;;  %v2019_v18 = vpop.f32.mrf.mxu3  ;;  %v1754_v19 = vpop.f32.mrf.mxu0 }
 0x260   : > { %v1843_v25 = vpop.f32.mrf.mxu1  ;;  %v1755_v31 = vadd.f32 %v1754_v19, %v3583_v6 }
 0x261   : > { %v2020_v24 = vadd.f32 %v2019_v18, %v1931_v17 }
 0x262   : > { %v1844_v38 = vadd.f32 %v1843_v25, %v1755_v31 }
 0x263   : > { %v2100_v30 = vmax.f32 %v2020_v24, 0.0 }
 0x264   : > { %v2101_v46 = vmax.f32 %v1844_v38, 0.0  ;;  %v2880_v38 = vld [vmem:[#allocation3 + $0xb4] sm:$0xf0] }
 0x265   : > { %v2163_v33 = vpack.c.bf16 %v2100_v30, %v2099_v23 }
 0x266   : > { %v1932_v36 = vpop.f32.mrf.mxu2 }
 0x267   : > { %2195 = vst [vmem:[%s3273_s9] sm:$0xff] %v2163_v33  ;;  %v1933_v39 = vadd.f32 %v1932_v36, %v3586_v14  ;;  %v2021_v40 = vpop.f32.mrf.mxu3  ;;  %v1757_v41 = vpop.f32.mrf.mxu0  ;;  %v1220_v33 = vld [vmem:[%s3268_s27 + $0x6c] sm:$0xf] }
 0x268   : > { %v1758_v44 = vadd.f32 %v1757_v41, %v3583_v6  ;;  %v1846_v45 = vpop.f32.mrf.mxu1  ;;  %1252 = vst [vmem:[#allocation3 + $0xd8] sm:$0xf] %v1220_v33  ;;  %v2641_v41 = vld [vmem:[#allocation3 + $0xb8] sm:$0xf0] }
 0x269   : > { %v2022_v43 = vadd.f32 %v2021_v40, %v1933_v39  ;;  %v2879_v40 = vld [vmem:[#allocation3 + $0xb4] sm:$0xf]  ;;  %v1288_v33 = vld [vmem:[#allocation2 + $0x98] sm:$0xff] }
 0x26a   : > { %1796 = vmatmul.bf16.gmra.mxu0 %v2624_v37  ;;  %v1847_v49 = vadd.f32 %v1846_v45, %v1758_v44 }
 0x26b   : > { %v2102_v47 = vmax.f32 %v2022_v43, 0.0  ;;  %1974 = vmatmul.bf16.gmra.mxu2 %v2624_v37  ;;  %1885 = vmatmul.bf16.gmra.mxu1 %v2628_v42  ;;  %v2640_v43 = vor.u32 %v2880_v38, %v2639_v35  ;;  %v1223_v38 = vld [vmem:[%s3268_s27 + $0x78] sm:$0xf] }
 0x26c   : > { %2063 = vmatmul.bf16.gmra.mxu3 %v2628_v42  ;;  %v2103_v57 = vmax.f32 %v1847_v49, 0.0  ;;  %1255 = vst [vmem:[#allocation3 + $0xf0] sm:$0xf] %v1223_v38 }
 0x26d   : > { %v2164_v48 = vpack.c.bf16 %v2102_v47, %v2101_v46 }
 0x26e   : > { %v1935_v50 = vpop.f32.mrf.mxu2 }
 0x26f   : > { %2196 = vst [vmem:[%s3273_s9 + $0x8] sm:$0xff] %v2164_v48  ;;  %v1936_v51 = vadd.f32 %v1935_v50, %v3586_v14  ;;  %v2024_v52 = vpop.f32.mrf.mxu3  ;;  %v1759_v53 = vpop.f32.mrf.mxu0  ;;  %v2644_v48 = vor.u32 %v2879_v40, %v2641_v41  ;;  %v1320_v40 = vpack.c.bf16 %v1288_v33, %v1288_v33  ;;  %v2655_v41 = vld [vmem:[#allocation3 + $0xd0] sm:$0xf] }
 0x270   : > { %v1848_v59 = vpop.f32.mrf.mxu1  ;;  %v1760_v1 = vadd.f32 %v1759_v53, %v3583_v6 }
 0x271   : > { %v2025_v58 = vadd.f32 %v2024_v52, %v1936_v51  ;;  %1352 = vst [vmem:[#allocation3 + $0xfc] sm:$0xf] %v1320_v40  ;;  %v2887_v40 = vld [vmem:[#allocation3 + $0xf4] sm:$0xf] }
 0x272   : > { %v1849_v9 = vadd.f32 %v1848_v59, %v1760_v1 }
 0x273   : > { %v2104_v0 = vmax.f32 %v2025_v58, 0.0 }
 0x274   : > { %v2105_v18 = vmax.f32 %v1849_v9, 0.0  ;;  %v2882_v9 = vld [vmem:[#allocation3 + $0xc4] sm:$0xf0] }
 0x275   : > { %v2165_v3 = vpack.c.bf16 %v2104_v0, %v2103_v57 }
 0x276   : > { %v1937_v7 = vpop.f32.mrf.mxu2 }
 0x277   : > { %2197 = vst [vmem:[%s3273_s9 + $0x10] sm:$0xff] %v2165_v3  ;;  %v1938_v10 = vadd.f32 %v1937_v7, %v3586_v14  ;;  %v2026_v11 = vpop.f32.mrf.mxu3  ;;  %v1762_v12 = vpop.f32.mrf.mxu0  ;;  %v1222_v3 = vld [vmem:[%s3268_s27 + $0x74] sm:$0xf] }
 0x278   : > { %v1763_v16 = vadd.f32 %v1762_v12, %v3583_v6  ;;  %v1851_v17 = vpop.f32.mrf.mxu1  ;;  %1254 = vst [vmem:[#allocation3 + $0xe8] sm:$0xf] %v1222_v3  ;;  %v2649_v12 = vld [vmem:[#allocation3 + $0xc8] sm:$0xf0] }
 0x279   : > { %v2027_v15 = vadd.f32 %v2026_v11, %v1938_v10  ;;  %v2881_v11 = vld [vmem:[#allocation3 + $0xc4] sm:$0xf] }
 0x27a   : > { %1801 = vmatmul.bf16.gmra.mxu0 %v2632_v8  ;;  %v1852_v21 = vadd.f32 %v1851_v17, %v1763_v16 }
 0x27b   : > { %v2106_v19 = vmax.f32 %v2027_v15, 0.0  ;;  %1979 = vmatmul.bf16.gmra.mxu2 %v2632_v8  ;;  %1890 = vmatmul.bf16.gmra.mxu1 %v2636_v13  ;;  %v2648_v15 = vor.u32 %v2882_v9, %v2647_v5 }
 0x27c   : > { %2068 = vmatmul.bf16.gmra.mxu3 %v2636_v13  ;;  %v2107_v29 = vmax.f32 %v1852_v21, 0.0 }
 0x27d   : > { %v2166_v20 = vpack.c.bf16 %v2106_v19, %v2105_v18 }
 0x27e   : > { %v1940_v22 = vpop.f32.mrf.mxu2 }
 0x27f   : > { %2198 = vst [vmem:[%s3273_s9 + $0x18] sm:$0xff] %v2166_v20  ;;  %v1941_v23 = vadd.f32 %v1940_v22, %v3586_v14  ;;  %v2029_v24 = vpop.f32.mrf.mxu3  ;;  %v1764_v25 = vpop.f32.mrf.mxu0  ;;  %v2652_v20 = vor.u32 %v2881_v11, %v2649_v12  ;;  %v2886_v9 = vld [vmem:[#allocation3 + $0xe4] sm:$0xf0]  ;;  %v2885_v11 = vld [vmem:[#allocation3 + $0xe4] sm:$0xf] }
 0x280   : > { %v1853_v31 = vpop.f32.mrf.mxu1  ;;  %v1765_v37 = vadd.f32 %v1764_v25, %v3583_v6  ;;  %v2665_v12 = vld [vmem:[#allocation3 + $0xe8] sm:$0xf0] }
 0x281   : > { %v2030_v30 = vadd.f32 %v2029_v24, %v1941_v23 }
 0x282   : > { %v1854_v44 = vadd.f32 %v1853_v31, %v1765_v37 }
 0x283   : > { %v2108_v36 = vmax.f32 %v2030_v30, 0.0 }
 0x284   : > { %v2109_v52 = vmax.f32 %v1854_v44, 0.0  ;;  %v2884_v44 = vld [vmem:[#allocation3 + $0xd4] sm:$0xf0] }
 0x285   : > { %v2167_v39 = vpack.c.bf16 %v2108_v36, %v2107_v29 }
 0x286   : > { %v1942_v42 = vpop.f32.mrf.mxu2 }
 0x287   : > { %2199 = vst [vmem:[%s3273_s9 + $0x20] sm:$0xff] %v2167_v39  ;;  %v1943_v45 = vadd.f32 %v1942_v42, %v3586_v14  ;;  %v2031_v46 = vpop.f32.mrf.mxu3  ;;  %v1767_v47 = vpop.f32.mrf.mxu0  ;;  %v1224_v39 = vld [vmem:[%s3268_s27 + $0x7c] sm:$0xf] }
 0x288   : > { %v1768_v50 = vadd.f32 %v1767_v47, %v3583_v6  ;;  %v1856_v51 = vpop.f32.mrf.mxu1  ;;  %1256 = vst [vmem:[#allocation3 + $0xf8] sm:$0xf] %v1224_v39  ;;  %v2657_v47 = vld [vmem:[#allocation3 + $0xd8] sm:$0xf0] }
 0x289   : > { %v2032_v49 = vadd.f32 %v2031_v46, %v1943_v45  ;;  %v2883_v46 = vld [vmem:[#allocation3 + $0xd4] sm:$0xf] }
 0x28a   : > { %1806 = vmatmul.bf16.gmra.mxu0 %v2640_v43  ;;  %v1857_v55 = vadd.f32 %v1856_v51, %v1768_v50 }
 0x28b   : > { %v2110_v53 = vmax.f32 %v2032_v49, 0.0  ;;  %1984 = vmatmul.bf16.gmra.mxu2 %v2640_v43  ;;  %1895 = vmatmul.bf16.gmra.mxu1 %v2644_v48  ;;  %v2656_v49 = vor.u32 %v2884_v44, %v2655_v41  ;;  %v2673_v41 = vld [vmem:[#allocation3 + $0xf8] sm:$0xf0] }
 0x28c   : > { %2073 = vmatmul.bf16.gmra.mxu3 %v2644_v48  ;;  %v2111_v63 = vmax.f32 %v1857_v55, 0.0 }
 0x28d   : > { %v2168_v54 = vpack.c.bf16 %v2110_v53, %v2109_v52 }
 0x28e   : > { %v1945_v56 = vpop.f32.mrf.mxu2 }
 0x28f   : > { %2200 = vst [vmem:[%s3273_s9 + $0x28] sm:$0xff] %v2168_v54  ;;  %v1946_v57 = vadd.f32 %v1945_v56, %v3586_v14  ;;  %v2034_v58 = vpop.f32.mrf.mxu3  ;;  %v1769_v59 = vpop.f32.mrf.mxu0  ;;  %v2660_v54 = vor.u32 %v2883_v46, %v2657_v47  ;;  %v2888_v38 = vld [vmem:[#allocation3 + $0xf4] sm:$0xf0] }
 0x290   : > { %v1858_v1 = vpop.f32.mrf.mxu1  ;;  %v1770_v8 = vadd.f32 %v1769_v59, %v3583_v6 }
 0x291   : > { %v2035_v0 = vadd.f32 %v2034_v58, %v1946_v57 }
 0x292   : > { %v1859_v16 = vadd.f32 %v1858_v1, %v1770_v8  ;;  %v2663_v8 = vld [vmem:[#allocation3 + $0xe0] sm:$0xf] }
 0x293   : > { %v2112_v7 = vmax.f32 %v2035_v0, 0.0 }
 0x294   : > { %v2113_v24 = vmax.f32 %v1859_v16, 0.0 }
 0x295   : > { %v2169_v10 = vpack.c.bf16 %v2112_v7, %v2111_v63 }
 0x296   : > { %v1947_v13 = vpop.f32.mrf.mxu2 }
 0x297   : > { %2201 = vst [vmem:[%s3273_s9 + $0x30] sm:$0xff] %v2169_v10  ;;  %v1948_v17 = vadd.f32 %v1947_v13, %v3586_v14  ;;  %v2036_v18 = vpop.f32.mrf.mxu3  ;;  %v1772_v19 = vpop.f32.mrf.mxu0 }
 0x298   : > { %v1773_v22 = vadd.f32 %v1772_v19, %v3583_v6  ;;  %v1861_v23 = vpop.f32.mrf.mxu1 }
 0x299   : > { %v2037_v21 = vadd.f32 %v2036_v18, %v1948_v17 }
 0x29a   : > { %1811 = vmatmul.bf16.gmra.mxu0 %v2648_v15  ;;  %v1862_v27 = vadd.f32 %v1861_v23, %v1773_v22 }
 0x29b   : > { %v2114_v25 = vmax.f32 %v2037_v21, 0.0  ;;  %1989 = vmatmul.bf16.gmra.mxu2 %v2648_v15  ;;  %1900 = vmatmul.bf16.gmra.mxu1 %v2652_v20  ;;  %v2664_v15 = vor.u32 %v2886_v9, %v2663_v8 }
 0x29c   : > { %2078 = vmatmul.bf16.gmra.mxu3 %v2652_v20  ;;  %v2115_v35 = vmax.f32 %v1862_v27, 0.0  ;;  %v2668_v20 = vor.u32 %v2885_v11, %v2665_v12 }
 0x29d   : > { %v2170_v26 = vpack.c.bf16 %v2114_v25, %v2113_v24 }
 0x29e   : > { %v1950_v28 = vpop.f32.mrf.mxu2 }
 0x29f   : > { %2202 = vst [vmem:[%s3273_s9 + $0x38] sm:$0xff] %v2170_v26  ;;  %v1951_v29 = vadd.f32 %v1950_v28, %v3586_v14  ;;  %v2039_v30 = vpop.f32.mrf.mxu3  ;;  %v1774_v31 = vpop.f32.mrf.mxu0 }
 0x2a0   : > { %v1863_v37 = vpop.f32.mrf.mxu1  ;;  %v1775_v43 = vadd.f32 %v1774_v31, %v3583_v6 }
 0x2a1   : > { %v2040_v36 = vadd.f32 %v2039_v30, %v1951_v29 }
 0x2a2   : > { %v1864_v50 = vadd.f32 %v1863_v37, %v1775_v43  ;;  %v2671_v37 = vld [vmem:[#allocation3 + $0xf0] sm:$0xf] }
 0x2a3   : > { %v2116_v42 = vmax.f32 %v2040_v36, 0.0  ;;  %v2672_v43 = vor.u32 %v2888_v38, %v2671_v37 }
 0x2a4   : > { %v2117_v58 = vmax.f32 %v1864_v50, 0.0 }
 0x2a5   : > { %v2171_v45 = vpack.c.bf16 %v2116_v42, %v2115_v35 }
 0x2a6   : > { %v1952_v48 = vpop.f32.mrf.mxu2 }
 0x2a7   : > { %2203 = vst [vmem:[%s3273_s9 + $0x40] sm:$0xff] %v2171_v45  ;;  %v1953_v51 = vadd.f32 %v1952_v48, %v3586_v14  ;;  %v2041_v52 = vpop.f32.mrf.mxu3  ;;  %v1777_v53 = vpop.f32.mrf.mxu0  ;;  %v2676_v48 = vor.u32 %v2887_v40, %v2673_v41 }
 0x2a8   : > { %v1778_v56 = vadd.f32 %v1777_v53, %v3583_v6  ;;  %v1866_v57 = vpop.f32.mrf.mxu1 }
 0x2a9   : > { %v2042_v55 = vadd.f32 %v2041_v52, %v1953_v51 }
 0x2aa   : > { %1816 = vmatmul.bf16.gmra.mxu0 %v2656_v49  ;;  %v1867_v61 = vadd.f32 %v1866_v57, %v1778_v56 }
 0x2ab   : > { %v2118_v59 = vmax.f32 %v2042_v55, 0.0  ;;  %1994 = vmatmul.bf16.gmra.mxu2 %v2656_v49  ;;  %1905 = vmatmul.bf16.gmra.mxu1 %v2660_v54 }
 0x2ac   : > { %2083 = vmatmul.bf16.gmra.mxu3 %v2660_v54  ;;  %v2119_v2 = vmax.f32 %v1867_v61, 0.0 }
 0x2ad   : > { %v2172_v60 = vpack.c.bf16 %v2118_v59, %v2117_v58 }
 0x2ae   : > { %v1955_v62 = vpop.f32.mrf.mxu2 }
 0x2af   : > { %2204 = vst [vmem:[%s3273_s9 + $0x48] sm:$0xff] %v2172_v60  ;;  %v1956_v63 = vadd.f32 %v1955_v62, %v3586_v14  ;;  %v2044_v0 = vpop.f32.mrf.mxu3  ;;  %v1779_v1 = vpop.f32.mrf.mxu0 }
 0x2b0   : > { %v1868_v4 = vpop.f32.mrf.mxu1  ;;  %v1780_v7 = vadd.f32 %v1779_v1, %v3583_v6 }
 0x2b1   : > { %v2045_v3 = vadd.f32 %v2044_v0, %v1956_v63 }
 0x2b2   : > { %v1869_v16 = vadd.f32 %v1868_v4, %v1780_v7 }
 0x2b3   : > { %v2120_v5 = vmax.f32 %v2045_v3, 0.0 }
 0x2b4   : > { %v2121_v24 = vmax.f32 %v1869_v16, 0.0 }
 0x2b5   : > { %v2173_v10 = vpack.c.bf16 %v2120_v5, %v2119_v2 }
 0x2b6   : > { %v1957_v13 = vpop.f32.mrf.mxu2 }
 0x2b7   : > { %2205 = vst [vmem:[%s3273_s9 + $0x50] sm:$0xff] %v2173_v10  ;;  %v1958_v17 = vadd.f32 %v1957_v13, %v3586_v14  ;;  %v2046_v18 = vpop.f32.mrf.mxu3  ;;  %v1782_v19 = vpop.f32.mrf.mxu0 }
 0x2b8   : > { %v1783_v22 = vadd.f32 %v1782_v19, %v3583_v6  ;;  %v1871_v23 = vpop.f32.mrf.mxu1 }
 0x2b9   : > { %v2047_v21 = vadd.f32 %v2046_v18, %v1958_v17 }
 0x2ba   : > { %1821 = vmatmul.bf16.gmra.mxu0 %v2664_v15  ;;  %v1872_v27 = vadd.f32 %v1871_v23, %v1783_v22 }
 0x2bb   : > { %v2122_v25 = vmax.f32 %v2047_v21, 0.0  ;;  %1999 = vmatmul.bf16.gmra.mxu2 %v2664_v15  ;;  %1910 = vmatmul.bf16.gmra.mxu1 %v2668_v20 }
 0x2bc   : > { %2088 = vmatmul.bf16.gmra.mxu3 %v2668_v20  ;;  %v2123_v32 = vmax.f32 %v1872_v27, 0.0 }
 0x2bd   : > { %v2174_v26 = vpack.c.bf16 %v2122_v25, %v2121_v24 }
 0x2be   : > { %v1960_v28 = vpop.f32.mrf.mxu2 }
 0x2bf   : > { %2206 = vst [vmem:[%s3273_s9 + $0x58] sm:$0xff] %v2174_v26  ;;  %v1961_v29 = vadd.f32 %v1960_v28, %v3586_v14  ;;  %v2049_v30 = vpop.f32.mrf.mxu3  ;;  %v1784_v31 = vpop.f32.mrf.mxu0 }
 0x2c0   : > { %v1873_v34 = vpop.f32.mrf.mxu1  ;;  %v1785_v36 = vadd.f32 %v1784_v31, %v3583_v6 }
 0x2c1   : > { %v2050_v33 = vadd.f32 %v2049_v30, %v1961_v29 }
 0x2c2   : > { %v1874_v44 = vadd.f32 %v1873_v34, %v1785_v36 }
 0x2c3   : > { %v2124_v35 = vmax.f32 %v2050_v33, 0.0 }
 0x2c4   : > { %v2125_v52 = vmax.f32 %v1874_v44, 0.0 }
 0x2c5   : > { %v2175_v39 = vpack.c.bf16 %v2124_v35, %v2123_v32 }
 0x2c6   : > { %v1962_v42 = vpop.f32.mrf.mxu2 }
 0x2c7   : > { %2207 = vst [vmem:[%s3273_s9 + $0x60] sm:$0xff] %v2175_v39  ;;  %v1963_v45 = vadd.f32 %v1962_v42, %v3586_v14  ;;  %v2051_v46 = vpop.f32.mrf.mxu3  ;;  %v1787_v47 = vpop.f32.mrf.mxu0 }
 0x2c8   : > { %v1788_v50 = vadd.f32 %v1787_v47, %v3583_v6  ;;  %v1876_v51 = vpop.f32.mrf.mxu1 }
 0x2c9   : > { %v2052_v49 = vadd.f32 %v2051_v46, %v1963_v45 }
 0x2ca   : > { %1826 = vmatmul.bf16.gmra.mxu0 %v2672_v43  ;;  %v1877_v55 = vadd.f32 %v1876_v51, %v1788_v50 }
 0x2cb   : > { %v2126_v53 = vmax.f32 %v2052_v49, 0.0  ;;  %2004 = vmatmul.bf16.gmra.mxu2 %v2672_v43  ;;  %1915 = vmatmul.bf16.gmra.mxu1 %v2676_v48 }
 0x2cc   : > { %2093 = vmatmul.bf16.gmra.mxu3 %v2676_v48  ;;  %v2127_v60 = vmax.f32 %v1877_v55, 0.0 }
 0x2cd   : > { %v2176_v54 = vpack.c.bf16 %v2126_v53, %v2125_v52 }
 0x2ce   : > { %v1965_v56 = vpop.f32.mrf.mxu2 }
 0x2cf   : > { %2208 = vst [vmem:[%s3273_s9 + $0x68] sm:$0xff] %v2176_v54  ;;  %v1966_v57 = vadd.f32 %v1965_v56, %v3586_v14  ;;  %v2054_v58 = vpop.f32.mrf.mxu3  ;;  %v1789_v59 = vpop.f32.mrf.mxu0 }
 0x2d0   : > { %v1878_v62 = vpop.f32.mrf.mxu1  ;;  %v1790_v0 = vadd.f32 %v1789_v59, %v3583_v6 }
 0x2d1   : > { %v2055_v61 = vadd.f32 %v2054_v58, %v1966_v57 }
 0x2d2   : > { %v1879_v3 = vadd.f32 %v1878_v62, %v1790_v0 }
 0x2d3   : > { %v2128_v63 = vmax.f32 %v2055_v61, 0.0 }
 0x2d4   : > { %v2129_v11 = vmax.f32 %v1879_v3, 0.0 }
 0x2d5   : > { %v2177_v1 = vpack.c.bf16 %v2128_v63, %v2127_v60 }
 0x2d6   : > { %v1967_v2 = vpop.f32.mrf.mxu2 }
 0x2d7   : > { %2209 = vst [vmem:[%s3273_s9 + $0x70] sm:$0xff] %v2177_v1  ;;  %v1968_v4 = vadd.f32 %v1967_v2, %v3586_v14  ;;  %v2056_v5 = vpop.f32.mrf.mxu3  ;;  %v1792_v7 = vpop.f32.mrf.mxu0 }
 0x2d8   : > { %v1793_v9 = vadd.f32 %v1792_v7, %v3583_v6  ;;  %v1881_v10 = vpop.f32.mrf.mxu1 }
 0x2d9   : > { %v2057_v8 = vadd.f32 %v2056_v5, %v1968_v4 }
 0x2da   : > { %v1882_v15 = vadd.f32 %v1881_v10, %v1793_v9 }
 0x2db   : > { %v2130_v12 = vmax.f32 %v2057_v8, 0.0 }
 0x2dc   : > { %v2131_v20 = vmax.f32 %v1882_v15, 0.0 }
 0x2dd   : > { %v2178_v13 = vpack.c.bf16 %v2130_v12, %v2129_v11 }
 0x2de   : > { %v1970_v16 = vpop.f32.mrf.mxu2 }
 0x2df   : > { %2210 = vst [vmem:[%s3273_s9 + $0x78] sm:$0xff] %v2178_v13  ;;  %v1971_v17 = vadd.f32 %v1970_v16, %v3586_v14  ;;  %v2059_v18 = vpop.f32.mrf.mxu3  ;;  %v1794_v19 = vpop.f32.mrf.mxu0 }
 0x2e0   : > { %v1883_v22 = vpop.f32.mrf.mxu1  ;;  %v1795_v24 = vadd.f32 %v1794_v19, %v3583_v6 }
 0x2e1   : > { %v2060_v21 = vadd.f32 %v2059_v18, %v1971_v17 }
 0x2e2   : > { %v1884_v27 = vadd.f32 %v1883_v22, %v1795_v24 }
 0x2e3   : > { %v2132_v23 = vmax.f32 %v2060_v21, 0.0 }
 0x2e4   : > { %v2133_v34 = vmax.f32 %v1884_v27, 0.0 }
 0x2e5   : > { %v2179_v25 = vpack.c.bf16 %v2132_v23, %v2131_v20 }
 0x2e6   : > { %v1972_v26 = vpop.f32.mrf.mxu2 }
 0x2e7   : > { %2211 = vst [vmem:[%s3273_s9 + $0x80] sm:$0xff] %v2179_v25  ;;  %v1973_v28 = vadd.f32 %v1972_v26, %v3586_v14  ;;  %v2061_v29 = vpop.f32.mrf.mxu3  ;;  %v1797_v30 = vpop.f32.mrf.mxu0 }
 0x2e8   : > { %v1798_v32 = vadd.f32 %v1797_v30, %v3583_v6  ;;  %v1886_v33 = vpop.f32.mrf.mxu1 }
 0x2e9   : > { %v2062_v31 = vadd.f32 %v2061_v29, %v1973_v28 }
 0x2ea   : > { %v1887_v37 = vadd.f32 %v1886_v33, %v1798_v32 }
 0x2eb   : > { %v2134_v35 = vmax.f32 %v2062_v31, 0.0 }
 0x2ec   : > { %v2135_v42 = vmax.f32 %v1887_v37, 0.0 }
 0x2ed   : > { %v2180_v36 = vpack.c.bf16 %v2134_v35, %v2133_v34 }
 0x2ee   : > { %v1975_v38 = vpop.f32.mrf.mxu2 }
 0x2ef   : > { %2212 = vst [vmem:[%s3273_s9 + $0x88] sm:$0xff] %v2180_v36  ;;  %v1976_v39 = vadd.f32 %v1975_v38, %v3586_v14  ;;  %v2064_v40 = vpop.f32.mrf.mxu3  ;;  %v1799_v41 = vpop.f32.mrf.mxu0 }
 0x2f0   : > { %v1888_v44 = vpop.f32.mrf.mxu1  ;;  %v1800_v46 = vadd.f32 %v1799_v41, %v3583_v6 }
 0x2f1   : > { %v2065_v43 = vadd.f32 %v2064_v40, %v1976_v39 }
 0x2f2   : > { %v1889_v49 = vadd.f32 %v1888_v44, %v1800_v46 }
 0x2f3   : > { %v2136_v45 = vmax.f32 %v2065_v43, 0.0 }
 0x2f4   : > { %v2137_v56 = vmax.f32 %v1889_v49, 0.0 }
 0x2f5   : > { %v2181_v47 = vpack.c.bf16 %v2136_v45, %v2135_v42 }
 0x2f6   : > { %v1977_v48 = vpop.f32.mrf.mxu2 }
 0x2f7   : > { %2213 = vst [vmem:[%s3273_s9 + $0x90] sm:$0xff] %v2181_v47  ;;  %v1978_v50 = vadd.f32 %v1977_v48, %v3586_v14  ;;  %v2066_v51 = vpop.f32.mrf.mxu3  ;;  %v1802_v52 = vpop.f32.mrf.mxu0 }
 0x2f8   : > { %v1803_v54 = vadd.f32 %v1802_v52, %v3583_v6  ;;  %v1891_v55 = vpop.f32.mrf.mxu1 }
 0x2f9   : > { %v2067_v53 = vadd.f32 %v2066_v51, %v1978_v50 }
 0x2fa   : > { %v1892_v59 = vadd.f32 %v1891_v55, %v1803_v54 }
 0x2fb   : > { %v2138_v57 = vmax.f32 %v2067_v53, 0.0 }
 0x2fc   : > { %v2139_v0 = vmax.f32 %v1892_v59, 0.0 }
 0x2fd   : > { %v2182_v58 = vpack.c.bf16 %v2138_v57, %v2137_v56 }
 0x2fe   : > { %v1980_v60 = vpop.f32.mrf.mxu2 }
 0x2ff   : > { %2214 = vst [vmem:[%s3273_s9 + $0x98] sm:$0xff] %v2182_v58  ;;  %v1981_v61 = vadd.f32 %v1980_v60, %v3586_v14  ;;  %v2069_v62 = vpop.f32.mrf.mxu3  ;;  %v1804_v63 = vpop.f32.mrf.mxu0 }
 0x300   : > { %v1893_v2 = vpop.f32.mrf.mxu1  ;;  %v1805_v4 = vadd.f32 %v1804_v63, %v3583_v6 }
 0x301   : > { %v2070_v1 = vadd.f32 %v2069_v62, %v1981_v61 }
 0x302   : > { %v1894_v8 = vadd.f32 %v1893_v2, %v1805_v4 }
 0x303   : > { %v2140_v3 = vmax.f32 %v2070_v1, 0.0 }
 0x304   : > { %v2141_v16 = vmax.f32 %v1894_v8, 0.0 }
 0x305   : > { %v2183_v5 = vpack.c.bf16 %v2140_v3, %v2139_v0 }
 0x306   : > { %v1982_v7 = vpop.f32.mrf.mxu2 }
 0x307   : > { %2215 = vst [vmem:[%s3273_s9 + $0xa0] sm:$0xff] %v2183_v5  ;;  %v1983_v9 = vadd.f32 %v1982_v7, %v3586_v14  ;;  %v2071_v10 = vpop.f32.mrf.mxu3  ;;  %v1807_v11 = vpop.f32.mrf.mxu0 }
 0x308   : > { %v1808_v13 = vadd.f32 %v1807_v11, %v3583_v6  ;;  %v1896_v15 = vpop.f32.mrf.mxu1 }
 0x309   : > { %v2072_v12 = vadd.f32 %v2071_v10, %v1983_v9 }
 0x30a   : > { %v1897_v19 = vadd.f32 %v1896_v15, %v1808_v13 }
 0x30b   : > { %v2142_v17 = vmax.f32 %v2072_v12, 0.0 }
 0x30c   : > { %v2143_v24 = vmax.f32 %v1897_v19, 0.0 }
 0x30d   : > { %v2184_v18 = vpack.c.bf16 %v2142_v17, %v2141_v16 }
 0x30e   : > { %v1985_v20 = vpop.f32.mrf.mxu2 }
 0x30f   : > { %2216 = vst [vmem:[%s3273_s9 + $0xa8] sm:$0xff] %v2184_v18  ;;  %v1986_v21 = vadd.f32 %v1985_v20, %v3586_v14  ;;  %v2074_v22 = vpop.f32.mrf.mxu3  ;;  %v1809_v23 = vpop.f32.mrf.mxu0 }
 0x310   : > { %v1898_v26 = vpop.f32.mrf.mxu1  ;;  %v1810_v28 = vadd.f32 %v1809_v23, %v3583_v6 }
 0x311   : > { %v2075_v25 = vadd.f32 %v2074_v22, %v1986_v21 }
 0x312   : > { %v1899_v31 = vadd.f32 %v1898_v26, %v1810_v28 }
 0x313   : > { %v2144_v27 = vmax.f32 %v2075_v25, 0.0 }
 0x314   : > { %v2145_v38 = vmax.f32 %v1899_v31, 0.0 }
 0x315   : > { %v2185_v29 = vpack.c.bf16 %v2144_v27, %v2143_v24 }
 0x316   : > { %v1987_v30 = vpop.f32.mrf.mxu2 }
 0x317   : > { %2217 = vst [vmem:[%s3273_s9 + $0xb0] sm:$0xff] %v2185_v29  ;;  %v1988_v32 = vadd.f32 %v1987_v30, %v3586_v14  ;;  %v2076_v33 = vpop.f32.mrf.mxu3  ;;  %v1812_v34 = vpop.f32.mrf.mxu0 }
 0x318   : > { %v1813_v36 = vadd.f32 %v1812_v34, %v3583_v6  ;;  %v1901_v37 = vpop.f32.mrf.mxu1 }
 0x319   : > { %v2077_v35 = vadd.f32 %v2076_v33, %v1988_v32 }
 0x31a   : > { %v1902_v41 = vadd.f32 %v1901_v37, %v1813_v36 }
 0x31b   : > { %v2146_v39 = vmax.f32 %v2077_v35, 0.0 }
 0x31c   : > { %v2147_v46 = vmax.f32 %v1902_v41, 0.0 }
 0x31d   : > { %v2186_v40 = vpack.c.bf16 %v2146_v39, %v2145_v38 }
 0x31e   : > { %v1990_v42 = vpop.f32.mrf.mxu2 }
 0x31f   : > { %2218 = vst [vmem:[%s3273_s9 + $0xb8] sm:$0xff] %v2186_v40  ;;  %v1991_v43 = vadd.f32 %v1990_v42, %v3586_v14  ;;  %v2079_v44 = vpop.f32.mrf.mxu3  ;;  %v1814_v45 = vpop.f32.mrf.mxu0 }
 0x320   : > { %v1903_v48 = vpop.f32.mrf.mxu1  ;;  %v1815_v50 = vadd.f32 %v1814_v45, %v3583_v6 }
 0x321   : > { %v2080_v47 = vadd.f32 %v2079_v44, %v1991_v43 }
 0x322   : > { %v1904_v53 = vadd.f32 %v1903_v48, %v1815_v50 }
 0x323   : > { %v2148_v49 = vmax.f32 %v2080_v47, 0.0 }
 0x324   : > { %v2149_v60 = vmax.f32 %v1904_v53, 0.0 }
 0x325   : > { %v2187_v51 = vpack.c.bf16 %v2148_v49, %v2147_v46 }
 0x326   : > { %v1992_v52 = vpop.f32.mrf.mxu2 }
 0x327   : > { %2219 = vst [vmem:[%s3273_s9 + $0xc0] sm:$0xff] %v2187_v51  ;;  %v1993_v54 = vadd.f32 %v1992_v52, %v3586_v14  ;;  %v2081_v55 = vpop.f32.mrf.mxu3  ;;  %v1817_v56 = vpop.f32.mrf.mxu0 }
 0x328   : > { %v1818_v58 = vadd.f32 %v1817_v56, %v3583_v6  ;;  %v1906_v59 = vpop.f32.mrf.mxu1 }
 0x329   : > { %v2082_v57 = vadd.f32 %v2081_v55, %v1993_v54 }
 0x32a   : > { %v1907_v63 = vadd.f32 %v1906_v59, %v1818_v58 }
 0x32b   : > { %v2150_v61 = vmax.f32 %v2082_v57, 0.0 }
 0x32c   : > { %v2151_v4 = vmax.f32 %v1907_v63, 0.0 }
 0x32d   : > { %v2188_v62 = vpack.c.bf16 %v2150_v61, %v2149_v60 }
 0x32e   : > { %v1995_v0 = vpop.f32.mrf.mxu2 }
 0x32f   : > { %2220 = vst [vmem:[%s3273_s9 + $0xc8] sm:$0xff] %v2188_v62  ;;  %v1996_v1 = vadd.f32 %v1995_v0, %v3586_v14  ;;  %v2084_v2 = vpop.f32.mrf.mxu3  ;;  %v1819_v3 = vpop.f32.mrf.mxu0 }
 0x330   : > { %v1908_v7 = vpop.f32.mrf.mxu1  ;;  %v1820_v9 = vadd.f32 %v1819_v3, %v3583_v6 }
 0x331   : > { %v2085_v5 = vadd.f32 %v2084_v2, %v1996_v1 }
 0x332   : > { %v1909_v12 = vadd.f32 %v1908_v7, %v1820_v9 }
 0x333   : > { %v2152_v8 = vmax.f32 %v2085_v5, 0.0 }
 0x334   : > { %v2153_v20 = vmax.f32 %v1909_v12, 0.0 }
 0x335   : > { %v2189_v10 = vpack.c.bf16 %v2152_v8, %v2151_v4 }
 0x336   : > { %v1997_v11 = vpop.f32.mrf.mxu2 }
 0x337   : > { %2221 = vst [vmem:[%s3273_s9 + $0xd0] sm:$0xff] %v2189_v10  ;;  %v1998_v13 = vadd.f32 %v1997_v11, %v3586_v14  ;;  %v2086_v15 = vpop.f32.mrf.mxu3  ;;  %v1822_v16 = vpop.f32.mrf.mxu0 }
 0x338   : > { %v1823_v18 = vadd.f32 %v1822_v16, %v3583_v6  ;;  %v1911_v19 = vpop.f32.mrf.mxu1 }
 0x339   : > { %v2087_v17 = vadd.f32 %v2086_v15, %v1998_v13 }
 0x33a   : > { %v1912_v23 = vadd.f32 %v1911_v19, %v1823_v18 }
 0x33b   : > { %v2154_v21 = vmax.f32 %v2087_v17, 0.0 }
 0x33c   : > { %v2155_v28 = vmax.f32 %v1912_v23, 0.0 }
 0x33d   : > { %v2190_v22 = vpack.c.bf16 %v2154_v21, %v2153_v20 }
 0x33e   : > { %v2000_v24 = vpop.f32.mrf.mxu2 }
 0x33f   : > { %2222 = vst [vmem:[%s3273_s9 + $0xd8] sm:$0xff] %v2190_v22  ;;  %v2001_v25 = vadd.f32 %v2000_v24, %v3586_v14  ;;  %v2089_v26 = vpop.f32.mrf.mxu3  ;;  %v1824_v27 = vpop.f32.mrf.mxu0 }
 0x340   : > { %v1913_v30 = vpop.f32.mrf.mxu1  ;;  %v1825_v32 = vadd.f32 %v1824_v27, %v3583_v6 }
 0x341   : > { %v2090_v29 = vadd.f32 %v2089_v26, %v2001_v25 }
 0x342   : > { %v1914_v35 = vadd.f32 %v1913_v30, %v1825_v32 }
 0x343   : > { %v2156_v31 = vmax.f32 %v2090_v29, 0.0 }
 0x344   : > { %v2157_v41 = vmax.f32 %v1914_v35, 0.0 }
 0x345   : > { %v2191_v33 = vpack.c.bf16 %v2156_v31, %v2155_v28 }
 0x346   : > { %v2002_v34 = vpop.f32.mrf.mxu2 }
 0x347   : > { %2223 = vst [vmem:[%s3273_s9 + $0xe0] sm:$0xff] %v2191_v33  ;;  %v2003_v36 = vadd.f32 %v2002_v34, %v3586_v14  ;;  %v2091_v37 = vpop.f32.mrf.mxu3  ;;  %v1827_v38 = vpop.f32.mrf.mxu0 }
 0x348   : > { %v1828_v40 = vadd.f32 %v1827_v38, %v3583_v6  ;;  %v1916_v43 = vpop.f32.mrf.mxu1 }
 0x349   : > { %v2092_v39 = vadd.f32 %v2091_v37, %v2003_v36 }
 0x34a   : > { %v1917_v45 = vadd.f32 %v1916_v43, %v1828_v40 }
 0x34b   : > { %v2158_v42 = vmax.f32 %v2092_v39, 0.0 }
 0x34c   : > { %v2159_v50 = vmax.f32 %v1917_v45, 0.0 }
 0x34d   : > { %v2192_v44 = vpack.c.bf16 %v2158_v42, %v2157_v41 }
 0x34e   : > { %v2005_v46 = vpop.f32.mrf.mxu2 }
 0x34f   : > { %2224 = vst [vmem:[%s3273_s9 + $0xe8] sm:$0xff] %v2192_v44  ;;  %v2006_v47 = vadd.f32 %v2005_v46, %v3586_v14  ;;  %v2094_v48 = vpop.f32.mrf.mxu3  ;;  %v1829_v49 = vpop.f32.mrf.mxu0 }
 0x350   : > { %v1830_v53 = vadd.f32 %v1829_v49, %v3583_v6  ;;  %v1918_v55 = vpop.f32.mrf.mxu1 }
 0x351   : > { %v2095_v51 = vadd.f32 %v2094_v48, %v2006_v47 }
 0x352   : > { %v1919_v57 = vadd.f32 %v1918_v55, %v1830_v53 }
 0x353   : > { %v2160_v52 = vmax.f32 %v2095_v51, 0.0 }
 0x354   : > { %v2161_v61 = vmax.f32 %v1919_v57, 0.0 }
 0x355   : > { %v2193_v54 = vpack.c.bf16 %v2160_v52, %v2159_v50 }
 0x356   : > { %v2007_v56 = vpop.f32.mrf.mxu2 }
 0x357   : > { %2225 = vst [vmem:[%s3273_s9 + $0xf0] sm:$0xff] %v2193_v54  ;;  %v2008_v58 = vadd.f32 %v2007_v56, %v3586_v14  ;;  %v2096_v59 = vpop.f32.mrf.mxu3 }
 0x359   : > { %v2097_v60 = vadd.f32 %v2096_v59, %v2008_v58 }
 0x35b   : > { %v2162_v62 = vmax.f32 %v2097_v60, 0.0 }
 0x35d   : > { %v2194_v63 = vpack.c.bf16 %v2162_v62, %v2161_v61 }
 0x35f   : > { %2226 = vst [vmem:[%s3273_s9 + $0xf8] sm:$0xff] %v2194_v63 }
 0x360 PF: > { %s30_s13 = sadd.s32 1, %s3076_s13   ;;  %s3724_s9 = smov %s3056_s10 }
 0x361   : > { %p27_p1 = scmp.ge.s32.totalorder %s30_s13, 6   ;;  %s3725_s10 = smov %s3182_s16 }
 0x362   : > { %s3726_s11 = smov %s3068_s12  ;;  %s3727_s0 = smov %s3072_s1 }
 0x363   : > { %s3728_s12 = smov %s3731_s14  ;;  %s3729_s1 = smov %s3735_s15 }
 0x364   :  { %29 = sbr.rel (!%p27_p1) target bundleno = 12 (0xc), region = 131 }

// kernel: graphsage_forward.5
= control target key start
LH: loop header
LB: loop body
LE: loop exit
PB: predicated region body
PF: predicated region fallthrough
CT: control target
= control target key end

     0   :  { %s3978_s30 = smov [#allocation5]   ;;  %s3979_s8 = smov [#allocation6]   ;;  %s4669_s0 = inlined_call_operand.vmem [shape: s32[2,2], index: 0, kind: input, shape index: {}]   ;;  %s4670_s2 = inlined_call_operand.vmem [shape: bf16[512,512], index: 2, kind: input, shape index: {}]   ;;  %s4671_s3 = inlined_call_operand.vmem [shape: bf16[512,256], index: 3, kind: input, shape index: {}, may-alias: {3,4}]   ;;  %s4672_s4 = inlined_call_operand.vmem [shape: bf16[512,256], index: 4, kind: input, shape index: {}, may-alias: {3,4}]   ;;  %s4673_s5 = inlined_call_operand.vmem [shape: bf16[512,128], index: 5, kind: input, shape index: {}]   ;;  %s4674_s6 = inlined_call_operand.vmem [shape: f32[1,128], index: 6, kind: input, shape index: {}]   ;;  %s4675_s7 = inlined_call_operand.hbm [shape: f32[512,128], index: 7, kind: output, shape index: {}]   ;;  %s4676_s1 = inlined_call_operand.vmem [shape: s32[2], index: 1, kind: input, shape index: {}]  }
   0x1   :  { %4682 = sst [smem:[#allocation18_spill]] %s4670_s2  ;;  %s13_s26 = sshll.u32 %s4669_s0, 4  ;;  %s14_s26 = int_to_ptr.vmem [resolvable:$true] %s13_s26 }
   0x2   :  { %s18_s29 = sshll.u32 %s4676_s1, 4  ;;  %s19_s29 = int_to_ptr.vmem [resolvable:$true] %s18_s29 }
   0x3   :  { %16 = dma.vmem_to_smem %s14_s26, 32, %s3978_s30, [#allocation4] }
   0x4   :  { %21 = dma.vmem_to_smem %s19_s29, 16, %s3979_s8, [#allocation4] }
   0x5   :  { %3932 = dma.done.wait [#allocation4], 48 }
   0x6   :  { %3933 = vsyncadd [#allocation4], 4294967248 }
   0x7   :  { %24 = sfence }
   0x8   :  { %25 = vsyncpa [#allocation9], 0 }
   0x9   :  { %27 = vsyncpa [#allocation9 + $0x1], 0  ;;  %s4029_s9 = smov 0   ;;  %s4031_s10 = smov 0  }
   0xa   :  { %s4033_s0 = smov 0   ;;  %s4035_s11 = smov 0  }
   0xb   :  { %s4037_s1 = smov 0   ;;  %s4039_s12 = smov 0  }
   0xc   :  { %s4041_s13 = smov 0   ;;  %s4043_s14 = smov 0  }
   0xd   :  { %s4045_s15 = smov 0   ;;  %s4047_s16 = smov 0  }
   0xe LB: > { %4683 = sst [smem:[#allocation12_spill]] %s3968_s14  ;;  %s42_s18 = sadd.s32 1, %s3968_s14  ;;  %s3976_s16 = sphi %s4047_s16, %s33_s16   ;;  %s3972_s15 = sphi %s4045_s15, %s4706_s15   ;;  %s3968_s14 = sphi %s4043_s14, %s4699_s14   ;;  %s3964_s13 = sphi %s4041_s13, %s4698_s13   ;;  %s3960_s12 = sphi %s4039_s12, %s4697_s12   ;;  %s3956_s1 = sphi %s4037_s1, %s4705_s1   ;;  %s3952_s11 = sphi %s4035_s11, %s4704_s11   ;;  %s3948_s0 = sphi %s4033_s0, %s4703_s0   ;;  %s3944_s10 = sphi %s4031_s10, %s4702_s10   ;;  %s3940_s9 = sphi %s4029_s9, %s4701_s9  }
   0xf   : > { %4684 = sst [smem:[#allocation13_spill]] %s3972_s15  ;;  %s45_s19 = sadd.s32 1, %s3972_s15 }
  0x10   : > { %p43_p0 = scmp.ge.s32.totalorder %s42_s18, 2  ;;  %s49_s20 = sshra.s32 %s3968_s14, 7 }
  0x11   : > { %s51_s21 = sadd.s32 %s3972_s15, %s49_s20  ;;  %s54_s22 = sand.u32 127, %s3968_s14 }
  0x12   : > { %s4708_s18 = smov (%p43_p0, %s42_s18), 0  ;;  %s4710_s19 = smov (!%p43_p0, %s45_s19), %s3972_s15 }
  0x13   : > { %4685 = sst [smem:[#allocation14_spill]] %s4708_s18  ;;  %s2912_s23 = sadd.s32 4294967294, %s3976_s16  }
  0x14   : > { %s2913_s24 = sshll.u32 %s51_s21, 7  ;;  %p47_p1 = scmp.ge.s32.totalorder %s4710_s19, 2 }
  0x15   : > { %s55_s25 = sadd.s32 %s2913_s24, %s54_s22  ;;  %s57_s27 = sshra.s32 %s4708_s18, 7 }
  0x16   : > { %s56_s26 = sld [smem:[#allocation5 + %s55_s25]]  ;;  %s4712_s19 = smov (%p47_p1, %s4710_s19), 0 }
  0x17   : > { %4686 = sst [smem:[#allocation15_spill]] %s4712_s19  ;;  %s62_s28 = sand.u32 127, %s4708_s18 }
  0x18   : > { %p77_p2 = scmp.ne.s32.totalorder %s3956_s1, %s3952_s11  ;;  %s59_s29 = sadd.s32 %s57_s27, %s4712_s19 }
  0x19   : > { %s65_s30 = ssub.s32 %s3972_s15, %s4712_s19  ;;  %s2914_s8 = sshll.u32 %s59_s29, 7 }
  0x1a   : > { %p78_p3 = scmp.eq.s32.totalorder %s3976_s16, 0  ;;  %s63_s20 = sadd.s32 %s2914_s8, %s62_s28 }
  0x1b   : > { %p204_p4 = scmp.eq.s32.totalorder %s65_s30, 0  ;;  %s64_s21 = sld [smem:[#allocation5 + %s63_s20]] }
  0x1c   : > { %p4099_p5 = por %p78_p3, %p77_p2  ;;  %s206_s24 = sadd.s32 1, %s3948_s0 }
  0x1d   : > { %p216_p6 = scmp.ne.s32.totalorder %s3948_s0, %s3944_s10  ;;  %s4689_s14 = sadd.s32 4294967295, %s3976_s16  }
  0x1e   : > { %s4107_s17 = scalar_select %p204_p4, %s3948_s0, %s206_s24  }
  0x1f   : > { %p217_p7 = scmp.eq.s32.totalorder %s4689_s14, 3  ;;  %p222_p8 = scmp.ne.s32.totalorder %s3944_s10, %s3940_s9 }
  0x20   : > { %4688 = sst [smem:[#allocation16_spill]] %s4107_s17  ;;  %p223_p9 = scmp.eq.s32.totalorder %s2912_s23, 3 }
  0x21   : > { %p4113_p10 = por %p217_p7, %p216_p6  ;;  %s66_s28 = ssub.s32 %s56_s26, %s64_s21 }
  0x22   : > { %p4117_p11 = por %p223_p9, %p222_p8  ;;  %s67_s8 = sor.u32 %s66_s28, %s65_s30 }
  0x23   : > { %s70_s20 = sadd.s32 1, %s3956_s1  ;;  %p68_p12 = scmp.eq.s32.totalorder %s67_s8, 0 }
  0x24   : > { %p2918_p13 = scmp.ge.s32.totalorder %s3976_s16, 4 }
  0x25   : > { %s4123_s19 = scalar_select %p68_p12, %s3956_s1, %s70_s20  }
  0x26   : > { %245 = sbr.rel (%p2918_p13) target bundleno = 86 (0x56), region = 24 }
  0x27   : > { %4692 = sst [smem:[#allocation17_spill]] %s4123_s19 }
  0x2b   : > { %248 = sbr.rel (!%p4099_p5) target bundleno = 86 (0x56), region = 28  ;;  %s260_s14 = sld [smem:[#allocation5 + %s55_s25]] (%p4099_p5) }
  0x2c   : > { %s250_s23 = sand.u32 (%p4099_p5), 1, %s3956_s1   ;;  %s3583_s26 = sshll.u32 (%p4099_p5), %s3972_s15, 7 }
  0x2d   : > { %s2919_s21 = sshll.u32 (%p4099_p5), %s250_s23, 8  ;;  %s4693_s2 = sld [smem:[#allocation18_spill]] (%p4099_p5) }
  0x2e   : > { %s4138_s25 = scalar_lea.vmem (%p4099_p5), [#allocation7], %s2919_s21 }
  0x31   : > { %s2922_s24 = sshll.u32 %s260_s14, 1 }
  0x32   : > { %s264_s18 = sadd.s32 %s3583_s26, %s2922_s24 }
  0x33   : > { %s2924_s17 = sshll.u32 %s264_s18, 2 }
  0x34   : > { %s4133_s8 = scalar_lea.vmem %s4693_s2, %s2924_s17 }
  0x35   : > { %v357_v0 = vld [vmem:[%s4133_s8] sm:$0xff]  ;;  %v359_v1 = vld [vmem:[%s4133_s8 + $0x10] sm:$0xff] }
  0x36   : > { %v361_v2 = vld [vmem:[%s4133_s8 + $0x20] sm:$0xff]  ;;  %358 = vst [vmem:[%s4138_s25] sm:$0xff] %v357_v0  ;;  %v363_v3 = vld [vmem:[%s4133_s8 + $0x30] sm:$0xff] }
  0x37   : > { %360 = vst [vmem:[%s4138_s25 + $0x8] sm:$0xff] %v359_v1  ;;  %v365_v4 = vld [vmem:[%s4133_s8 + $0x40] sm:$0xff]  ;;  %v367_v5 = vld [vmem:[%s4133_s8 + $0x50] sm:$0xff] }
  0x38   : > { %362 = vst [vmem:[%s4138_s25 + $0x10] sm:$0xff] %v361_v2  ;;  %v369_v6 = vld [vmem:[%s4133_s8 + $0x60] sm:$0xff]  ;;  %v371_v7 = vld [vmem:[%s4133_s8 + $0x70] sm:$0xff] }
  0x39   : > { %364 = vst [vmem:[%s4138_s25 + $0x18] sm:$0xff] %v363_v3  ;;  %v373_v8 = vld [vmem:[%s4133_s8 + $0x80] sm:$0xff]  ;;  %v375_v9 = vld [vmem:[%s4133_s8 + $0x90] sm:$0xff] }
  0x3a   : > { %366 = vst [vmem:[%s4138_s25 + $0x20] sm:$0xff] %v365_v4  ;;  %v377_v10 = vld [vmem:[%s4133_s8 + $0xa0] sm:$0xff]  ;;  %v379_v11 = vld [vmem:[%s4133_s8 + $0xb0] sm:$0xff] }
  0x3b   : > { %368 = vst [vmem:[%s4138_s25 + $0x28] sm:$0xff] %v367_v5  ;;  %v381_v12 = vld [vmem:[%s4133_s8 + $0xc0] sm:$0xff]  ;;  %v383_v13 = vld [vmem:[%s4133_s8 + $0xd0] sm:$0xff] }
  0x3c   : > { %370 = vst [vmem:[%s4138_s25 + $0x30] sm:$0xff] %v369_v6  ;;  %v385_v14 = vld [vmem:[%s4133_s8 + $0xe0] sm:$0xff]  ;;  %v387_v15 = vld [vmem:[%s4133_s8 + $0xf0] sm:$0xff] }
  0x3d   : > { %372 = vst [vmem:[%s4138_s25 + $0x38] sm:$0xff] %v371_v7  ;;  %v389_v16 = vld [vmem:[%s4133_s8 + $0x100] sm:$0xff]  ;;  %v391_v17 = vld [vmem:[%s4133_s8 + $0x110] sm:$0xff] }
  0x3e   : > { %374 = vst [vmem:[%s4138_s25 + $0x40] sm:$0xff] %v373_v8  ;;  %v393_v18 = vld [vmem:[%s4133_s8 + $0x120] sm:$0xff]  ;;  %v395_v19 = vld [vmem:[%s4133_s8 + $0x130] sm:$0xff] }
  0x3f   : > { %376 = vst [vmem:[%s4138_s25 + $0x48] sm:$0xff] %v375_v9  ;;  %v397_v20 = vld [vmem:[%s4133_s8 + $0x140] sm:$0xff]  ;;  %v399_v21 = vld [vmem:[%s4133_s8 + $0x150] sm:$0xff] }
  0x40   : > { %378 = vst [vmem:[%s4138_s25 + $0x50] sm:$0xff] %v377_v10  ;;  %v401_v22 = vld [vmem:[%s4133_s8 + $0x160] sm:$0xff]  ;;  %v403_v23 = vld [vmem:[%s4133_s8 + $0x170] sm:$0xff] }
  0x41   : > { %380 = vst [vmem:[%s4138_s25 + $0x58] sm:$0xff] %v379_v11  ;;  %v405_v24 = vld [vmem:[%s4133_s8 + $0x180] sm:$0xff]  ;;  %v407_v25 = vld [vmem:[%s4133_s8 + $0x190] sm:$0xff] }
  0x42   : > { %382 = vst [vmem:[%s4138_s25 + $0x60] sm:$0xff] %v381_v12  ;;  %v409_v26 = vld [vmem:[%s4133_s8 + $0x1a0] sm:$0xff]  ;;  %v411_v27 = vld [vmem:[%s4133_s8 + $0x1b0] sm:$0xff] }
  0x43   : > { %384 = vst [vmem:[%s4138_s25 + $0x68] sm:$0xff] %v383_v13  ;;  %v413_v28 = vld [vmem:[%s4133_s8 + $0x1c0] sm:$0xff]  ;;  %v415_v29 = vld [vmem:[%s4133_s8 + $0x1d0] sm:$0xff] }
  0x44   : > { %386 = vst [vmem:[%s4138_s25 + $0x70] sm:$0xff] %v385_v14  ;;  %v417_v30 = vld [vmem:[%s4133_s8 + $0x1e0] sm:$0xff]  ;;  %v419_v31 = vld [vmem:[%s4133_s8 + $0x1f0] sm:$0xff] }
  0x45   : > { %388 = vst [vmem:[%s4138_s25 + $0x78] sm:$0xff] %v387_v15 }
  0x46   : > { %390 = vst [vmem:[%s4138_s25 + $0x80] sm:$0xff] %v389_v16 }
  0x47   : > { %392 = vst [vmem:[%s4138_s25 + $0x88] sm:$0xff] %v391_v17 }
  0x48   : > { %394 = vst [vmem:[%s4138_s25 + $0x90] sm:$0xff] %v393_v18 }
  0x49   : > { %396 = vst [vmem:[%s4138_s25 + $0x98] sm:$0xff] %v395_v19 }
  0x4a   : > { %398 = vst [vmem:[%s4138_s25 + $0xa0] sm:$0xff] %v397_v20 }
  0x4b   : > { %400 = vst [vmem:[%s4138_s25 + $0xa8] sm:$0xff] %v399_v21 }
  0x4c   : > { %402 = vst [vmem:[%s4138_s25 + $0xb0] sm:$0xff] %v401_v22 }
  0x4d   : > { %404 = vst [vmem:[%s4138_s25 + $0xb8] sm:$0xff] %v403_v23 }
  0x4e   : > { %406 = vst [vmem:[%s4138_s25 + $0xc0] sm:$0xff] %v405_v24 }
  0x4f   : > { %408 = vst [vmem:[%s4138_s25 + $0xc8] sm:$0xff] %v407_v25 }
  0x50   : > { %410 = vst [vmem:[%s4138_s25 + $0xd0] sm:$0xff] %v409_v26 }
  0x51   : > { %412 = vst [vmem:[%s4138_s25 + $0xd8] sm:$0xff] %v411_v27 }
  0x52   : > { %414 = vst [vmem:[%s4138_s25 + $0xe0] sm:$0xff] %v413_v28 }
  0x53   : > { %416 = vst [vmem:[%s4138_s25 + $0xe8] sm:$0xff] %v415_v29 }
  0x54   : > { %418 = vst [vmem:[%s4138_s25 + $0xf0] sm:$0xff] %v417_v30 }
  0x55   : > { %420 = vst [vmem:[%s4138_s25 + $0xf8] sm:$0xff] %v419_v31 }
  0x56 PF: > { %p2925_p0 = scmp.ge.s32.totalorder %s3976_s16, 1  ;;  %p461_p1 = scmp.lt.s32.totalorder %s3976_s16, 5 }
  0x58   : > { %p462_p2 = pnand %p2925_p0, %p461_p1 }
  0x59   : > { %s468_s17 = sand.u32 (!%p462_p2), 1, %s3952_s11   ;;  %s4681_s18 = sand.u32 (!%p462_p2), 1, %s3944_s10  }
  0x5a   : > { %465 = sbr.rel (%p462_p2) target bundleno = 1048 (0x418), region = 74  ;;  %s2926_s22 = sshll.u32 (!%p462_p2), %s468_s17, 8 }
  0x5b   : > { %s2927_s20 = sshll.u32 (!%p462_p2), %s4681_s18, 8  ;;  %s525_s14 = sshra.s32 (!%p462_p2), %s3960_s12, 7 }
  0x5c   : > { %s530_s23 = sand.u32 (!%p462_p2), 127, %s3960_s12  ;;  %s527_s26 = sadd.s32 (!%p462_p2), %s3964_s13, %s525_s14 }
  0x5d   : > { %s2932_s21 = sshll.u32 (!%p462_p2), %s3964_s13, 5  ;;  %s2928_s24 = sshll.u32 (!%p462_p2), %s527_s26, 7 }
  0x5e   : > { %p549_p3 = scmp.lt.s32.totalorder (!%p462_p2), %s2932_s21, 63  ;;  %s531_s30 = sadd.s32 (!%p462_p2), %s2928_s24, %s530_s23 }
  0x5f   : > { %s532_s28 = sld [smem:[#allocation5 + %s531_s30]]  ;;  %s4221_s26 = scalar_lea.vmem [#allocation7], %s2926_s22 }
  0x60   : > { %s4714_s21 = smov (!%p549_p3, %s2932_s21), 63  ;;  %s4223_s23 = scalar_lea.vmem [#allocation8], %s2927_s20 }
  0x61   : > { %s3585_s8 = sshll.u32 %s4714_s21, 3  ;;  %p2935_p5 = scmp.ne.s32.totalorder %s3960_s12, 0 }
  0x62   : > { %s4214_s15 = scalar_lea.vmem %s4672_s4, %s3585_s8 }
  0x65   : > { %s2929_s11 = sshll.u32 %s532_s28, 5 }
  0x66   : > { %p534_p4 = scmp.lt.s32.totalorder %s2929_s11, 63  ;;  %559 = sbr.rel (%p2935_p5) target bundleno = 172 (0xac), region = 82 }
  0x68   : > { %s4716_s11 = smov (!%p534_p4, %s2929_s11), 63 }
  0x69   : > { %s3584_s17 = sshll.u32 %s4716_s11, 3 }
  0x6a   : > { %s4219_s14 = scalar_lea.vmem %s4671_s3, %s3584_s17 }
  0x6b   : > { %v3980_v32 = vmov 0.0  }
  0x6c   : > { %560 = vst [vmem:[#allocation2 + $0xb0] sm:$0xff] %v3980_v32 }
  0x6d   : > { %561 = vst [vmem:[#allocation2 + $0x1b0] sm:$0xff] %v3980_v32 }
  0x6e   : > { %562 = vst [vmem:[#allocation2 + $0xd8] sm:$0xff] %v3980_v32 }
  0x6f   : > { %563 = vst [vmem:[#allocation2 + $0x18] sm:$0xff] %v3980_v32 }
  0x70   : > { %564 = vst [vmem:[#allocation2 + $0x50] sm:$0xff] %v3980_v32 }
  0x71   : > { %565 = vst [vmem:[#allocation2 + $0x168] sm:$0xff] %v3980_v32 }
  0x72   : > { %566 = vst [vmem:[#allocation2 + $0x130] sm:$0xff] %v3980_v32 }
  0x73   : > { %567 = vst [vmem:[#allocation2 + $0x48] sm:$0xff] %v3980_v32 }
  0x74   : > { %568 = vst [vmem:[#allocation2 + $0x180] sm:$0xff] %v3980_v32 }
  0x75   : > { %569 = vst [vmem:[#allocation2 + $0x110] sm:$0xff] %v3980_v32 }
  0x76   : > { %570 = vst [vmem:[#allocation2 + $0x118] sm:$0xff] %v3980_v32 }
  0x77   : > { %571 = vst [vmem:[#allocation2 + $0x98] sm:$0xff] %v3980_v32 }
  0x78   : > { %572 = vst [vmem:[#allocation2 + $0x120] sm:$0xff] %v3980_v32 }
  0x79   : > { %573 = vst [vmem:[#allocation2 + $0x150] sm:$0xff] %v3980_v32 }
  0x7a   : > { %574 = vst [vmem:[#allocation2 + $0x108] sm:$0xff] %v3980_v32 }
  0x7b   : > { %575 = vst [vmem:[#allocation2 + $0x60] sm:$0xff] %v3980_v32 }
  0x7c   : > { %576 = vst [vmem:[#allocation2 + $0xe0] sm:$0xff] %v3980_v32 }
  0x7d   : > { %577 = vst [vmem:[#allocation2 + $0x188] sm:$0xff] %v3980_v32 }
  0x7e   : > { %578 = vst [vmem:[#allocation2 + $0x138] sm:$0xff] %v3980_v32 }
  0x7f   : > { %579 = vst [vmem:[#allocation2 + $0x140] sm:$0xff] %v3980_v32 }
  0x80   : > { %580 = vst [vmem:[#allocation2 + $0x80] sm:$0xff] %v3980_v32 }
  0x81   : > { %581 = vst [vmem:[#allocation2 + $0x1a8] sm:$0xff] %v3980_v32 }
  0x82   : > { %582 = vst [vmem:[#allocation2 + $0x1b8] sm:$0xff] %v3980_v32 }
  0x83   : > { %583 = vst [vmem:[#allocation2 + $0x28] sm:$0xff] %v3980_v32 }
  0x84   : > { %584 = vst [vmem:[#allocation2 + $0x1e8] sm:$0xff] %v3980_v32 }
  0x85   : > { %585 = vst [vmem:[#allocation2 + $0xf8] sm:$0xff] %v3980_v32 }
  0x86   : > { %586 = vst [vmem:[#allocation2 + $0x160] sm:$0xff] %v3980_v32 }
  0x87   : > { %587 = vst [vmem:[#allocation2 + $0x30] sm:$0xff] %v3980_v32 }
  0x88   : > { %588 = vst [vmem:[#allocation2 + $0x1e0] sm:$0xff] %v3980_v32 }
  0x89   : > { %589 = vst [vmem:[#allocation2] sm:$0xff] %v3980_v32 }
  0x8a   : > { %590 = vst [vmem:[#allocation2 + $0xf0] sm:$0xff] %v3980_v32 }
  0x8b   : > { %591 = vst [vmem:[#allocation2 + $0x8] sm:$0xff] %v3980_v32 }
  0x8c   : > { %592 = vst [vmem:[#allocation2 + $0x148] sm:$0xff] %v3980_v32 }
  0x8d   : > { %593 = vst [vmem:[#allocation2 + $0x1d0] sm:$0xff] %v3980_v32 }
  0x8e   : > { %594 = vst [vmem:[#allocation2 + $0x100] sm:$0xff] %v3980_v32 }
  0x8f   : > { %595 = vst [vmem:[#allocation2 + $0xc8] sm:$0xff] %v3980_v32 }
  0x90   : > { %596 = vst [vmem:[#allocation2 + $0x40] sm:$0xff] %v3980_v32 }
  0x91   : > { %597 = vst [vmem:[#allocation2 + $0x1f8] sm:$0xff] %v3980_v32 }
  0x92   : > { %598 = vst [vmem:[#allocation2 + $0x20] sm:$0xff] %v3980_v32 }
  0x93   : > { %599 = vst [vmem:[#allocation2 + $0x128] sm:$0xff] %v3980_v32 }
  0x94   : > { %600 = vst [vmem:[#allocation2 + $0x1a0] sm:$0xff] %v3980_v32 }
  0x95   : > { %601 = vst [vmem:[#allocation2 + $0x1f0] sm:$0xff] %v3980_v32 }
  0x96   : > { %602 = vst [vmem:[#allocation2 + $0xe8] sm:$0xff] %v3980_v32 }
  0x97   : > { %603 = vst [vmem:[#allocation2 + $0x78] sm:$0xff] %v3980_v32 }
  0x98   : > { %604 = vst [vmem:[#allocation2 + $0x70] sm:$0xff] %v3980_v32 }
  0x99   : > { %605 = vst [vmem:[#allocation2 + $0x90] sm:$0xff] %v3980_v32 }
  0x9a   : > { %606 = vst [vmem:[#allocation2 + $0x1d8] sm:$0xff] %v3980_v32 }
  0x9b   : > { %607 = vst [vmem:[#allocation2 + $0xd0] sm:$0xff] %v3980_v32 }
  0x9c   : > { %608 = vst [vmem:[#allocation2 + $0xb8] sm:$0xff] %v3980_v32 }
  0x9d   : > { %609 = vst [vmem:[#allocation2 + $0x88] sm:$0xff] %v3980_v32 }
  0x9e   : > { %610 = vst [vmem:[#allocation2 + $0xa8] sm:$0xff] %v3980_v32 }
  0x9f   : > { %611 = vst [vmem:[#allocation2 + $0x1c8] sm:$0xff] %v3980_v32 }
  0xa0   : > { %612 = vst [vmem:[#allocation2 + $0x170] sm:$0xff] %v3980_v32 }
  0xa1   : > { %613 = vst [vmem:[#allocation2 + $0x178] sm:$0xff] %v3980_v32 }
  0xa2   : > { %614 = vst [vmem:[#allocation2 + $0x68] sm:$0xff] %v3980_v32 }
  0xa3   : > { %615 = vst [vmem:[#allocation2 + $0x190] sm:$0xff] %v3980_v32 }
  0xa4   : > { %616 = vst [vmem:[#allocation2 + $0x198] sm:$0xff] %v3980_v32 }
  0xa5   : > { %617 = vst [vmem:[#allocation2 + $0x38] sm:$0xff] %v3980_v32 }
  0xa6   : > { %618 = vst [vmem:[#allocation2 + $0xc0] sm:$0xff] %v3980_v32 }
  0xa7   : > { %619 = vst [vmem:[#allocation2 + $0x1c0] sm:$0xff] %v3980_v32 }
  0xa8   : > { %620 = vst [vmem:[#allocation2 + $0x158] sm:$0xff] %v3980_v32 }
  0xa9   : > { %621 = vst [vmem:[#allocation2 + $0x10] sm:$0xff] %v3980_v32 }
  0xaa   : > { %622 = vst [vmem:[#allocation2 + $0x58] sm:$0xff] %v3980_v32 }
  0xab   : > { %623 = vst [vmem:[#allocation2 + $0xa0] sm:$0xff] %v3980_v32 }
  0xac PF: > { %s624_s2 = sld [smem:[#allocation6 + %s3964_s13]] }
  0xb2   : > { %p2936_p6 = scmp.ge.s32.totalorder %s3960_s12, %s624_s2 }
  0xb4   : > { %628 = sbr.rel (%p2936_p6) target bundleno = 606 (0x25e), region = 86 }
  0xb9   : > { %v3123_v33 = vld [vmem:[%s4219_s14 + $0x70] sm:$0xf]  ;;  %v3633_v34 = vld [vmem:[%s4219_s14 + $0x74] sm:$0xf0]  ;;  %v3632_v38 = vld [vmem:[%s4219_s14 + $0x74] sm:$0xf] }
  0xba   : > { %v3187_v35 = vld [vmem:[%s4219_s14 + $0xf0] sm:$0xf]  ;;  %v3124_v36 = vor.u32 %v3633_v34, %v3123_v33  ;;  %v3649_v37 = vld [vmem:[%s4219_s14 + $0xf4] sm:$0xf0]  ;;  %v3125_v39 = vld [vmem:[%s4219_s14 + $0x78] sm:$0xf0] }
  0xbb   : > { %v3188_v40 = vor.u32 %v3649_v37, %v3187_v35  ;;  %v3128_v41 = vor.u32 %v3632_v38, %v3125_v39  ;;  %v3648_v42 = vld [vmem:[%s4219_s14 + $0xf4] sm:$0xf]  ;;  %v3189_v43 = vld [vmem:[%s4219_s14 + $0xf8] sm:$0xf0]  ;;  %v3115_v44 = vld [vmem:[%s4219_s14 + $0x60] sm:$0xf] }
  0xbc   : > { %1077 = vmatpush.bf16.msra.mxu0 %v3124_v36  ;;  %v3192_v45 = vor.u32 %v3648_v42, %v3189_v43  ;;  %v3631_v46 = vld [vmem:[%s4219_s14 + $0x64] sm:$0xf0]  ;;  %v3179_v47 = vld [vmem:[%s4219_s14 + $0xe0] sm:$0xf]  ;;  %v3630_v51 = vld [vmem:[%s4219_s14 + $0x64] sm:$0xf] }
  0xbd   : > { %v3647_v48 = vld [vmem:[%s4219_s14 + $0xe4] sm:$0xf0]  ;;  %1166 = vmatpush.bf16.msra.mxu1 %v3188_v40  ;;  %1255 = vmatpush.bf16.msra.mxu2 %v3128_v41  ;;  %v3116_v49 = vor.u32 %v3631_v46, %v3115_v44  ;;  %v3117_v52 = vld [vmem:[%s4219_s14 + $0x68] sm:$0xf0]  ;;  %v3646_v53 = vld [vmem:[%s4219_s14 + $0xe4] sm:$0xf] }
  0xbe   : > { %v3180_v50 = vor.u32 %v3647_v48, %v3179_v47  ;;  %1344 = vmatpush.bf16.msra.mxu3 %v3192_v45  ;;  %v3120_v54 = vor.u32 %v3630_v51, %v3117_v52  ;;  %v3181_v55 = vld [vmem:[%s4219_s14 + $0xe8] sm:$0xf0]  ;;  %v3107_v56 = vld [vmem:[%s4219_s14 + $0x50] sm:$0xf]  ;;  %v3629_v57 = vld [vmem:[%s4219_s14 + $0x54] sm:$0xf0] }
  0xbf   : > { %v3184_v58 = vor.u32 %v3646_v53, %v3181_v55  ;;  %v3171_v59 = vld [vmem:[%s4219_s14 + $0xd0] sm:$0xf]  ;;  %v3645_v60 = vld [vmem:[%s4219_s14 + $0xd4] sm:$0xf0]  ;;  %v3628_v61 = vld [vmem:[%s4219_s14 + $0x54] sm:$0xf]  ;;  %v3108_v62 = vor.u32 %v3629_v57, %v3107_v56 }
  0xc0   : > { %1078 = vmatpush.bf16.msra.mxu0 %v3116_v49  ;;  %v3109_v63 = vld [vmem:[%s4219_s14 + $0x58] sm:$0xf0]  ;;  %v3644_v0 = vld [vmem:[%s4219_s14 + $0xd4] sm:$0xf]  ;;  %v3172_v2 = vor.u32 %v3645_v60, %v3171_v59  ;;  %v3099_v4 = vld [vmem:[%s4219_s14 + $0x40] sm:$0xf] }
  0xc1   : > { %v3173_v1 = vld [vmem:[%s4219_s14 + $0xd8] sm:$0xf0]  ;;  %1167 = vmatpush.bf16.msra.mxu1 %v3180_v50  ;;  %1256 = vmatpush.bf16.msra.mxu2 %v3120_v54  ;;  %v3112_v3 = vor.u32 %v3628_v61, %v3109_v63  ;;  %v3627_v5 = vld [vmem:[%s4219_s14 + $0x44] sm:$0xf0]  ;;  %v3163_v6 = vld [vmem:[%s4219_s14 + $0xc0] sm:$0xf] }
  0xc2   : > { %1345 = vmatpush.bf16.msra.mxu3 %v3184_v58  ;;  %v3176_v7 = vor.u32 %v3644_v0, %v3173_v1  ;;  %v3643_v8 = vld [vmem:[%s4219_s14 + $0xc4] sm:$0xf0]  ;;  %v3626_v9 = vld [vmem:[%s4219_s14 + $0x44] sm:$0xf]  ;;  %v3101_v10 = vld [vmem:[%s4219_s14 + $0x48] sm:$0xf0]  ;;  %v3100_v13 = vor.u32 %v3627_v5, %v3099_v4 }
  0xc3   : > { %v3642_v11 = vld [vmem:[%s4219_s14 + $0xc4] sm:$0xf]  ;;  %v3165_v12 = vld [vmem:[%s4219_s14 + $0xc8] sm:$0xf0]  ;;  %v3164_v14 = vor.u32 %v3643_v8, %v3163_v6  ;;  %v3104_v15 = vor.u32 %v3626_v9, %v3101_v10  ;;  %v3091_v16 = vld [vmem:[%s4219_s14 + $0x30] sm:$0xf] }
  0xc4   : > { %1079 = vmatpush.bf16.msra.mxu0 %v3108_v62  ;;  %v3625_v17 = vld [vmem:[%s4219_s14 + $0x34] sm:$0xf0]  ;;  %v3155_v18 = vld [vmem:[%s4219_s14 + $0xb0] sm:$0xf]  ;;  %v3168_v19 = vor.u32 %v3642_v11, %v3165_v12  ;;  %v3624_v21 = vld [vmem:[%s4219_s14 + $0x34] sm:$0xf] }
  0xc5   : > { %1168 = vmatpush.bf16.msra.mxu1 %v3172_v2  ;;  %1257 = vmatpush.bf16.msra.mxu2 %v3112_v3  ;;  %v3641_v20 = vld [vmem:[%s4219_s14 + $0xb4] sm:$0xf0]  ;;  %v3093_v22 = vld [vmem:[%s4219_s14 + $0x38] sm:$0xf0]  ;;  %v3640_v23 = vld [vmem:[%s4219_s14 + $0xb4] sm:$0xf]  ;;  %v3092_v25 = vor.u32 %v3625_v17, %v3091_v16 }
  0xc6   : > { %1346 = vmatpush.bf16.msra.mxu3 %v3176_v7  ;;  %v3157_v24 = vld [vmem:[%s4219_s14 + $0xb8] sm:$0xf0]  ;;  %v3156_v26 = vor.u32 %v3641_v20, %v3155_v18  ;;  %v3096_v27 = vor.u32 %v3624_v21, %v3093_v22  ;;  %v3083_v28 = vld [vmem:[%s4219_s14 + $0x20] sm:$0xf]  ;;  %v3623_v29 = vld [vmem:[%s4219_s14 + $0x24] sm:$0xf0] }
  0xc7   : > { %v3147_v30 = vld [vmem:[%s4219_s14 + $0xa0] sm:$0xf]  ;;  %v3160_v31 = vor.u32 %v3640_v23, %v3157_v24  ;;  %v3639_v32 = vld [vmem:[%s4219_s14 + $0xa4] sm:$0xf0]  ;;  %v3622_v33 = vld [vmem:[%s4219_s14 + $0x24] sm:$0xf]  ;;  %v3084_v37 = vor.u32 %v3623_v29, %v3083_v28 }
  0xc8   : > { %1080 = vmatpush.bf16.msra.mxu0 %v3100_v13  ;;  %v3085_v34 = vld [vmem:[%s4219_s14 + $0x28] sm:$0xf0]  ;;  %v3638_v35 = vld [vmem:[%s4219_s14 + $0xa4] sm:$0xf]  ;;  %v3148_v38 = vor.u32 %v3639_v32, %v3147_v30  ;;  %v3075_v40 = vld [vmem:[%s4219_s14 + $0x10] sm:$0xf] }
  0xc9   : > { %1169 = vmatpush.bf16.msra.mxu1 %v3164_v14  ;;  %1258 = vmatpush.bf16.msra.mxu2 %v3104_v15  ;;  %v3149_v36 = vld [vmem:[%s4219_s14 + $0xa8] sm:$0xf0]  ;;  %v3088_v39 = vor.u32 %v3622_v33, %v3085_v34  ;;  %v3621_v41 = vld [vmem:[%s4219_s14 + $0x14] sm:$0xf0]  ;;  %v3139_v42 = vld [vmem:[%s4219_s14 + $0x90] sm:$0xf] }
  0xca   : > { %1347 = vmatpush.bf16.msra.mxu3 %v3168_v19  ;;  %v3152_v43 = vor.u32 %v3638_v35, %v3149_v36  ;;  %v3637_v44 = vld [vmem:[%s4219_s14 + $0x94] sm:$0xf0]  ;;  %v3620_v45 = vld [vmem:[%s4219_s14 + $0x14] sm:$0xf]  ;;  %v3077_v46 = vld [vmem:[%s4219_s14 + $0x18] sm:$0xf0]  ;;  %v3076_v49 = vor.u32 %v3621_v41, %v3075_v40 }
  0xcb   : > { %v3636_v47 = vld [vmem:[%s4219_s14 + $0x94] sm:$0xf]  ;;  %v3141_v48 = vld [vmem:[%s4219_s14 + $0x98] sm:$0xf0]  ;;  %v3140_v50 = vor.u32 %v3637_v44, %v3139_v42  ;;  %v3080_v51 = vor.u32 %v3620_v45, %v3077_v46  ;;  %v3067_v52 = vld [vmem:[%s4219_s14] sm:$0xf] }
  0xcc   : > { %1081 = vmatpush.bf16.msra.mxu0 %v3092_v25  ;;  %v3619_v53 = vld [vmem:[%s4219_s14 + $0x4] sm:$0xf0]  ;;  %v3131_v54 = vld [vmem:[%s4219_s14 + $0x80] sm:$0xf]  ;;  %v3144_v55 = vor.u32 %v3636_v47, %v3141_v48  ;;  %v3618_v57 = vld [vmem:[%s4219_s14 + $0x4] sm:$0xf] }
  0xcd   : > { %1170 = vmatpush.bf16.msra.mxu1 %v3156_v26  ;;  %1259 = vmatpush.bf16.msra.mxu2 %v3096_v27  ;;  %v3635_v56 = vld [vmem:[%s4219_s14 + $0x84] sm:$0xf0]  ;;  %v3069_v58 = vld [vmem:[%s4219_s14 + $0x8] sm:$0xf0]  ;;  %v3634_v59 = vld [vmem:[%s4219_s14 + $0x84] sm:$0xf]  ;;  %v3068_v61 = vor.u32 %v3619_v53, %v3067_v52 }
  0xce   : > { %1348 = vmatpush.bf16.msra.mxu3 %v3160_v31  ;;  %v3133_v60 = vld [vmem:[%s4219_s14 + $0x88] sm:$0xf0]  ;;  %v2939_v62 = vld [vmem:[%s4221_s26] sm:$0xf]  ;;  %v3587_v63 = vld [vmem:[%s4221_s26 + $0x4] sm:$0xf0]  ;;  %v3132_v0 = vor.u32 %v3635_v56, %v3131_v54  ;;  %v3072_v1 = vor.u32 %v3618_v57, %v3069_v58 }
  0xcf   : > { %v3586_v2 = vld [vmem:[%s4221_s26 + $0x4] sm:$0xf]  ;;  %v2941_v3 = vld [vmem:[%s4221_s26 + $0x8] sm:$0xf0]  ;;  %v3136_v4 = vor.u32 %v3634_v59, %v3133_v60  ;;  %v2940_v5 = vor.u32 %v3587_v63, %v2939_v62  ;;  %v2947_v7 = vld [vmem:[%s4221_s26 + $0x10] sm:$0xf] }
  0xd0   : > { %1082 = vmatpush.bf16.msra.mxu0 %v3084_v37  ;;  %v2944_v6 = vor.u32 %v3586_v2, %v2941_v3  ;;  %v3589_v8 = vld [vmem:[%s4221_s26 + $0x14] sm:$0xf0]  ;;  %v3588_v9 = vld [vmem:[%s4221_s26 + $0x14] sm:$0xf]  ;;  %v2949_v10 = vld [vmem:[%s4221_s26 + $0x18] sm:$0xf0] }
  0xd1   : > { %1171 = vmatpush.bf16.msra.mxu1 %v3148_v38  ;;  %1260 = vmatpush.bf16.msra.mxu2 %v3088_v39  ;;  %v2948_v11 = vor.u32 %v3589_v8, %v2947_v7  ;;  %v2952_v12 = vor.u32 %v3588_v9, %v2949_v10  ;;  %v2955_v13 = vld [vmem:[%s4221_s26 + $0x20] sm:$0xf]  ;;  %v3591_v14 = vld [vmem:[%s4221_s26 + $0x24] sm:$0xf0]  ;;  %v3590_v15 = vld [vmem:[%s4221_s26 + $0x24] sm:$0xf] }
  0xd2   : > { %1349 = vmatpush.bf16.msra.mxu3 %v3152_v43  ;;  %v2957_v16 = vld [vmem:[%s4221_s26 + $0x28] sm:$0xf0]  ;;  %v2956_v17 = vor.u32 %v3591_v14, %v2955_v13  ;;  %v2963_v19 = vld [vmem:[%s4221_s26 + $0x30] sm:$0xf]  ;;  %v3593_v20 = vld [vmem:[%s4221_s26 + $0x34] sm:$0xf0] }
  0xd3   : > { %v2960_v18 = vor.u32 %v3590_v15, %v2957_v16  ;;  %v3592_v21 = vld [vmem:[%s4221_s26 + $0x34] sm:$0xf]  ;;  %v2965_v22 = vld [vmem:[%s4221_s26 + $0x38] sm:$0xf0]  ;;  %v2964_v23 = vor.u32 %v3593_v20, %v2963_v19  ;;  %v2971_v25 = vld [vmem:[%s4221_s26 + $0x40] sm:$0xf] }
  0xd4   : > { %1083 = vmatpush.bf16.msra.mxu0 %v3076_v49  ;;  %v2968_v24 = vor.u32 %v3592_v21, %v2965_v22  ;;  %v3595_v26 = vld [vmem:[%s4221_s26 + $0x44] sm:$0xf0]  ;;  %v3594_v27 = vld [vmem:[%s4221_s26 + $0x44] sm:$0xf]  ;;  %v2973_v28 = vld [vmem:[%s4221_s26 + $0x48] sm:$0xf0] }
  0xd5   : > { %1172 = vmatpush.bf16.msra.mxu1 %v3140_v50  ;;  %1261 = vmatpush.bf16.msra.mxu2 %v3080_v51  ;;  %v2972_v29 = vor.u32 %v3595_v26, %v2971_v25  ;;  %v2976_v30 = vor.u32 %v3594_v27, %v2973_v28  ;;  %v2979_v31 = vld [vmem:[%s4221_s26 + $0x50] sm:$0xf]  ;;  %v3597_v32 = vld [vmem:[%s4221_s26 + $0x54] sm:$0xf0]  ;;  %v3596_v33 = vld [vmem:[%s4221_s26 + $0x54] sm:$0xf] }
  0xd6   : > { %1350 = vmatpush.bf16.msra.mxu3 %v3144_v55  ;;  %v2981_v34 = vld [vmem:[%s4221_s26 + $0x58] sm:$0xf0]  ;;  %v2980_v35 = vor.u32 %v3597_v32, %v2979_v31  ;;  %v2987_v37 = vld [vmem:[%s4221_s26 + $0x60] sm:$0xf]  ;;  %v3599_v38 = vld [vmem:[%s4221_s26 + $0x64] sm:$0xf0] }
  0xd7   : > { %v2984_v36 = vor.u32 %v3596_v33, %v2981_v34  ;;  %v3598_v39 = vld [vmem:[%s4221_s26 + $0x64] sm:$0xf]  ;;  %v2989_v40 = vld [vmem:[%s4221_s26 + $0x68] sm:$0xf0]  ;;  %v2988_v41 = vor.u32 %v3599_v38, %v2987_v37  ;;  %v2995_v43 = vld [vmem:[%s4221_s26 + $0x70] sm:$0xf] }
  0xd8   : > { %1084 = vmatpush.bf16.msra.mxu0 %v3068_v61  ;;  %v2992_v42 = vor.u32 %v3598_v39, %v2989_v40  ;;  %v3601_v44 = vld [vmem:[%s4221_s26 + $0x74] sm:$0xf0]  ;;  %v3600_v45 = vld [vmem:[%s4221_s26 + $0x74] sm:$0xf]  ;;  %v2997_v46 = vld [vmem:[%s4221_s26 + $0x78] sm:$0xf0] }
  0xd9   : > { %1173 = vmatpush.bf16.msra.mxu1 %v3132_v0  ;;  %1262 = vmatpush.bf16.msra.mxu2 %v3072_v1  ;;  %v2996_v47 = vor.u32 %v3601_v44, %v2995_v43  ;;  %v3000_v48 = vor.u32 %v3600_v45, %v2997_v46  ;;  %v3003_v49 = vld [vmem:[%s4221_s26 + $0x80] sm:$0xf]  ;;  %v3603_v50 = vld [vmem:[%s4221_s26 + $0x84] sm:$0xf0]  ;;  %v3602_v51 = vld [vmem:[%s4221_s26 + $0x84] sm:$0xf] }
  0xda   : > { %1351 = vmatpush.bf16.msra.mxu3 %v3136_v4  ;;  %v3005_v52 = vld [vmem:[%s4221_s26 + $0x88] sm:$0xf0]  ;;  %v3004_v53 = vor.u32 %v3603_v50, %v3003_v49  ;;  %v629_v56 = vld [vmem:[#allocation2 + $0xb0] sm:$0xff]  ;;  %v631_v1 = vld [vmem:[#allocation2 + $0xd8] sm:$0xff] }
  0xdb   : > { %1085 = vmatmul.bf16.vlgmr.msra.gmra.mxu0 %v2940_v5  ;;  %v3008_v55 = vor.u32 %v3602_v51, %v3005_v52  ;;  %v630_v61 = vld [vmem:[#allocation2 + $0x1b0] sm:$0xff]  ;;  %v3605_v7 = vld [vmem:[%s4221_s26 + $0x94] sm:$0xf0]  ;;  %v3013_v9 = vld [vmem:[%s4221_s26 + $0x98] sm:$0xf0] }
  0xdc   : > { %1174 = vmatmul.bf16.vlgmr.msra.gmra.mxu1 %v2944_v6  ;;  %1263 = vmatmul.bf16.vlgmr.msra.gmra.mxu2 %v2940_v5  ;;  %v3604_v8 = vld [vmem:[%s4221_s26 + $0x94] sm:$0xf]  ;;  %v3019_v32 = vld [vmem:[%s4221_s26 + $0xa0] sm:$0xf]  ;;  %v3607_v33 = vld [vmem:[%s4221_s26 + $0xa4] sm:$0xf0] }
  0xdd   : > { %1352 = vmatmul.bf16.vlgmr.msra.gmra.mxu3 %v2944_v6  ;;  %v3011_v6 = vld [vmem:[%s4221_s26 + $0x90] sm:$0xf]  ;;  %v3016_v15 = vor.u32 %v3604_v8, %v3013_v9  ;;  %v3606_v34 = vld [vmem:[%s4221_s26 + $0xa4] sm:$0xf]  ;;  %v3020_v37 = vor.u32 %v3607_v33, %v3019_v32  ;;  %v636_v38 = vld [vmem:[#allocation2 + $0x48] sm:$0xff] }
  0xde   : > { %v635_v27 = vld [vmem:[#allocation2 + $0x130] sm:$0xff]  ;;  %v637_v43 = vld [vmem:[#allocation2 + $0x180] sm:$0xff] }
  0xdf   : > { %v638_v49 = vld [vmem:[#allocation2 + $0x110] sm:$0xff] }
  0xeb   : > { %1090 = vmatmul.bf16.gmra.mxu0 %v2948_v11 }
  0xec   : > { %1179 = vmatmul.bf16.gmra.mxu1 %v2952_v12  ;;  %1268 = vmatmul.bf16.gmra.mxu2 %v2948_v11  ;;  %v3012_v11 = vor.u32 %v3605_v7, %v3011_v6 }
  0xed   : > { %1357 = vmatmul.bf16.gmra.mxu3 %v2952_v12  ;;  %v632_v12 = vld [vmem:[#allocation2 + $0x18] sm:$0xff] }
  0xfb   : > { %1095 = vmatmul.bf16.gmra.mxu0 %v2956_v17 }
  0xfc   : > { %1184 = vmatmul.bf16.gmra.mxu1 %v2960_v18  ;;  %1273 = vmatmul.bf16.gmra.mxu2 %v2956_v17  ;;  %v633_v17 = vld [vmem:[#allocation2 + $0x50] sm:$0xff] }
  0xfd   : > { %1362 = vmatmul.bf16.gmra.mxu3 %v2960_v18 }
 0x10b   : > { %1100 = vmatmul.bf16.gmra.mxu0 %v2964_v23 }
 0x10c   : > { %1189 = vmatmul.bf16.gmra.mxu1 %v2968_v24  ;;  %1278 = vmatmul.bf16.gmra.mxu2 %v2964_v23  ;;  %v634_v23 = vld [vmem:[#allocation2 + $0x168] sm:$0xff] }
 0x10d   : > { %1367 = vmatmul.bf16.gmra.mxu3 %v2968_v24 }
 0x11b   : > { %1105 = vmatmul.bf16.gmra.mxu0 %v2972_v29 }
 0x11c   : > { %1194 = vmatmul.bf16.gmra.mxu1 %v2976_v30  ;;  %1283 = vmatmul.bf16.gmra.mxu2 %v2972_v29 }
 0x11d   : > { %1372 = vmatmul.bf16.gmra.mxu3 %v2976_v30 }
 0x12b   : > { %1110 = vmatmul.bf16.gmra.mxu0 %v2980_v35 }
 0x12c   : > { %1199 = vmatmul.bf16.gmra.mxu1 %v2984_v36  ;;  %1288 = vmatmul.bf16.gmra.mxu2 %v2980_v35  ;;  %v3021_v35 = vld [vmem:[%s4221_s26 + $0xa8] sm:$0xf0] }
 0x12d   : > { %1377 = vmatmul.bf16.gmra.mxu3 %v2984_v36 }
 0x13b   : > { %1115 = vmatmul.bf16.gmra.mxu0 %v2988_v41 }
 0x13c   : > { %1204 = vmatmul.bf16.gmra.mxu1 %v2992_v42  ;;  %1293 = vmatmul.bf16.gmra.mxu2 %v2988_v41  ;;  %v3024_v41 = vor.u32 %v3606_v34, %v3021_v35 }
 0x13d   : > { %1382 = vmatmul.bf16.gmra.mxu3 %v2992_v42 }
 0x14b   : > { %1120 = vmatmul.bf16.gmra.mxu0 %v2996_v47 }
 0x14c   : > { %1209 = vmatmul.bf16.gmra.mxu1 %v3000_v48  ;;  %1298 = vmatmul.bf16.gmra.mxu2 %v2996_v47 }
 0x14d   : > { %1387 = vmatmul.bf16.gmra.mxu3 %v3000_v48 }
 0x158   : > { %v1086_v54 = vpop.f32.mrf.mxu0 }
 0x159   : > { %v1175_v57 = vpop.f32.mrf.mxu1 }
 0x15a   : > { %v1176_v58 = vadd.f32 %v1175_v57, %v1086_v54 }
 0x15b   : > { %1125 = vmatmul.bf16.gmra.mxu0 %v3004_v53 }
 0x15c   : > { %v1433_v59 = vadd.f32 %v1176_v58, %v629_v56  ;;  %1214 = vmatmul.bf16.gmra.mxu1 %v3008_v55  ;;  %1303 = vmatmul.bf16.gmra.mxu2 %v3004_v53  ;;  %v639_v53 = vld [vmem:[#allocation2 + $0x118] sm:$0xff]  ;;  %v3027_v58 = vld [vmem:[%s4221_s26 + $0xb0] sm:$0xf] }
 0x15d   : > { %1392 = vmatmul.bf16.gmra.mxu3 %v3008_v55 }
 0x15e   : > { %1497 = vst [vmem:[#allocation2 + $0xb0] sm:$0xff] %v1433_v59  ;;  %v3609_v59 = vld [vmem:[%s4221_s26 + $0xb4] sm:$0xf0] }
 0x15f   : > { %v1264_v60 = vpop.f32.mrf.mxu2 }
 0x160   : > { %v1353_v62 = vpop.f32.mrf.mxu3  ;;  %v1088_v63 = vpop.f32.mrf.mxu0 }
 0x161   : > { %v1354_v0 = vadd.f32 %v1353_v62, %v1264_v60  ;;  %v1177_v2 = vpop.f32.mrf.mxu1  ;;  %v3608_v60 = vld [vmem:[%s4221_s26 + $0xb4] sm:$0xf] }
 0x162   : > { %v1178_v3 = vadd.f32 %v1177_v2, %v1088_v63  ;;  %v3028_v63 = vor.u32 %v3609_v59, %v3027_v58 }
 0x163   : > { %v1434_v4 = vadd.f32 %v1354_v0, %v630_v61  ;;  %v3029_v61 = vld [vmem:[%s4221_s26 + $0xb8] sm:$0xf0] }
 0x164   : > { %v1435_v5 = vadd.f32 %v1178_v3, %v631_v1  ;;  %v640_v0 = vld [vmem:[#allocation2 + $0x98] sm:$0xff]  ;;  %v3032_v3 = vor.u32 %v3608_v60, %v3029_v61 }
 0x165   : > { %1498 = vst [vmem:[#allocation2 + $0x1b0] sm:$0xff] %v1434_v4 }
 0x166   : > { %1499 = vst [vmem:[#allocation2 + $0xd8] sm:$0xff] %v1435_v5  ;;  %v641_v5 = vld [vmem:[#allocation2 + $0x120] sm:$0xff] }
 0x167   : > { %v1266_v10 = vpop.f32.mrf.mxu2 }
 0x168   : > { %v1355_v13 = vpop.f32.mrf.mxu3  ;;  %v1091_v14 = vpop.f32.mrf.mxu0 }
 0x169   : > { %v1356_v16 = vadd.f32 %v1355_v13, %v1266_v10  ;;  %v1180_v18 = vpop.f32.mrf.mxu1 }
 0x16a   : > { %v1181_v19 = vadd.f32 %v1180_v18, %v1091_v14 }
 0x16b   : > { %v1436_v20 = vadd.f32 %v1356_v16, %v632_v12  ;;  %1130 = vmatmul.bf16.gmra.mxu0 %v3012_v11 }
 0x16c   : > { %v1437_v21 = vadd.f32 %v1181_v19, %v633_v17  ;;  %1219 = vmatmul.bf16.gmra.mxu1 %v3016_v15  ;;  %1308 = vmatmul.bf16.gmra.mxu2 %v3012_v11  ;;  %v642_v11 = vld [vmem:[#allocation2 + $0x150] sm:$0xff] }
 0x16d   : > { %1500 = vst [vmem:[#allocation2 + $0x18] sm:$0xff] %v1436_v20  ;;  %1397 = vmatmul.bf16.gmra.mxu3 %v3016_v15  ;;  %v643_v15 = vld [vmem:[#allocation2 + $0x108] sm:$0xff]  ;;  %v3035_v20 = vld [vmem:[%s4221_s26 + $0xc0] sm:$0xf] }
 0x16e   : > { %1501 = vst [vmem:[#allocation2 + $0x50] sm:$0xff] %v1437_v21  ;;  %v3611_v21 = vld [vmem:[%s4221_s26 + $0xc4] sm:$0xf0] }
 0x16f   : > { %v1269_v22 = vpop.f32.mrf.mxu2 }
 0x170   : > { %v1358_v24 = vpop.f32.mrf.mxu3  ;;  %v1093_v25 = vpop.f32.mrf.mxu0 }
 0x171   : > { %v1359_v26 = vadd.f32 %v1358_v24, %v1269_v22  ;;  %v1182_v28 = vpop.f32.mrf.mxu1  ;;  %v3610_v22 = vld [vmem:[%s4221_s26 + $0xc4] sm:$0xf] }
 0x172   : > { %v1183_v29 = vadd.f32 %v1182_v28, %v1093_v25  ;;  %v3036_v25 = vor.u32 %v3611_v21, %v3035_v20 }
 0x173   : > { %v1438_v30 = vadd.f32 %v1359_v26, %v634_v23  ;;  %v3037_v23 = vld [vmem:[%s4221_s26 + $0xc8] sm:$0xf0]  ;;  %v644_v26 = vld [vmem:[#allocation2 + $0x60] sm:$0xff] }
 0x174   : > { %v1439_v31 = vadd.f32 %v1183_v29, %v635_v27  ;;  %v3040_v29 = vor.u32 %v3610_v22, %v3037_v23 }
 0x175   : > { %1502 = vst [vmem:[#allocation2 + $0x168] sm:$0xff] %v1438_v30 }
 0x176   : > { %1503 = vst [vmem:[#allocation2 + $0x130] sm:$0xff] %v1439_v31  ;;  %v645_v31 = vld [vmem:[#allocation2 + $0xe0] sm:$0xff] }
 0x177   : > { %v1271_v36 = vpop.f32.mrf.mxu2 }
 0x178   : > { %v1360_v39 = vpop.f32.mrf.mxu3  ;;  %v1096_v40 = vpop.f32.mrf.mxu0 }
 0x179   : > { %v1361_v42 = vadd.f32 %v1360_v39, %v1271_v36  ;;  %v1185_v44 = vpop.f32.mrf.mxu1 }
 0x17a   : > { %v1186_v45 = vadd.f32 %v1185_v44, %v1096_v40 }
 0x17b   : > { %v1440_v46 = vadd.f32 %v1361_v42, %v636_v38  ;;  %1135 = vmatmul.bf16.gmra.mxu0 %v3020_v37 }
 0x17c   : > { %v1441_v47 = vadd.f32 %v1186_v45, %v637_v43  ;;  %1224 = vmatmul.bf16.gmra.mxu1 %v3024_v41  ;;  %1313 = vmatmul.bf16.gmra.mxu2 %v3020_v37  ;;  %v646_v37 = vld [vmem:[#allocation2 + $0x188] sm:$0xff] }
 0x17d   : > { %1504 = vst [vmem:[#allocation2 + $0x48] sm:$0xff] %v1440_v46  ;;  %1402 = vmatmul.bf16.gmra.mxu3 %v3024_v41  ;;  %v647_v41 = vld [vmem:[#allocation2 + $0x138] sm:$0xff]  ;;  %v3043_v46 = vld [vmem:[%s4221_s26 + $0xd0] sm:$0xf] }
 0x17e   : > { %1505 = vst [vmem:[#allocation2 + $0x180] sm:$0xff] %v1441_v47  ;;  %v3613_v47 = vld [vmem:[%s4221_s26 + $0xd4] sm:$0xf0] }
 0x17f   : > { %v1274_v48 = vpop.f32.mrf.mxu2 }
 0x180   : > { %v1363_v50 = vpop.f32.mrf.mxu3  ;;  %v1098_v51 = vpop.f32.mrf.mxu0 }
 0x181   : > { %v1364_v52 = vadd.f32 %v1363_v50, %v1274_v48  ;;  %v1187_v54 = vpop.f32.mrf.mxu1  ;;  %v3612_v48 = vld [vmem:[%s4221_s26 + $0xd4] sm:$0xf] }
 0x182   : > { %v1188_v55 = vadd.f32 %v1187_v54, %v1098_v51  ;;  %v3044_v51 = vor.u32 %v3613_v47, %v3043_v46 }
 0x183   : > { %v1442_v56 = vadd.f32 %v1364_v52, %v638_v49  ;;  %v3045_v49 = vld [vmem:[%s4221_s26 + $0xd8] sm:$0xf0]  ;;  %v648_v52 = vld [vmem:[#allocation2 + $0x140] sm:$0xff] }
 0x184   : > { %v1443_v57 = vadd.f32 %v1188_v55, %v639_v53  ;;  %v3048_v55 = vor.u32 %v3612_v48, %v3045_v49 }
 0x185   : > { %1506 = vst [vmem:[#allocation2 + $0x110] sm:$0xff] %v1442_v56 }
 0x186   : > { %1507 = vst [vmem:[#allocation2 + $0x118] sm:$0xff] %v1443_v57  ;;  %v649_v57 = vld [vmem:[#allocation2 + $0x80] sm:$0xff] }
 0x187   : > { %v1276_v62 = vpop.f32.mrf.mxu2 }
 0x188   : > { %v1365_v1 = vpop.f32.mrf.mxu3  ;;  %v1101_v2 = vpop.f32.mrf.mxu0 }
 0x189   : > { %v1366_v4 = vadd.f32 %v1365_v1, %v1276_v62  ;;  %v1190_v6 = vpop.f32.mrf.mxu1 }
 0x18a   : > { %v1191_v7 = vadd.f32 %v1190_v6, %v1101_v2 }
 0x18b   : > { %v1444_v8 = vadd.f32 %v1366_v4, %v640_v0  ;;  %1140 = vmatmul.bf16.gmra.mxu0 %v3028_v63 }
 0x18c   : > { %v1445_v9 = vadd.f32 %v1191_v7, %v641_v5  ;;  %1229 = vmatmul.bf16.gmra.mxu1 %v3032_v3  ;;  %1318 = vmatmul.bf16.gmra.mxu2 %v3028_v63  ;;  %v650_v63 = vld [vmem:[#allocation2 + $0x1a8] sm:$0xff] }
 0x18d   : > { %1508 = vst [vmem:[#allocation2 + $0x98] sm:$0xff] %v1444_v8  ;;  %1407 = vmatmul.bf16.gmra.mxu3 %v3032_v3  ;;  %v651_v3 = vld [vmem:[#allocation2 + $0x1b8] sm:$0xff]  ;;  %v3051_v8 = vld [vmem:[%s4221_s26 + $0xe0] sm:$0xf] }
 0x18e   : > { %1509 = vst [vmem:[#allocation2 + $0x120] sm:$0xff] %v1445_v9  ;;  %v3615_v9 = vld [vmem:[%s4221_s26 + $0xe4] sm:$0xf0] }
 0x18f   : > { %v1279_v10 = vpop.f32.mrf.mxu2 }
 0x190   : > { %v1368_v12 = vpop.f32.mrf.mxu3  ;;  %v1103_v13 = vpop.f32.mrf.mxu0 }
 0x191   : > { %v1369_v14 = vadd.f32 %v1368_v12, %v1279_v10  ;;  %v1192_v16 = vpop.f32.mrf.mxu1  ;;  %v3614_v10 = vld [vmem:[%s4221_s26 + $0xe4] sm:$0xf] }
 0x192   : > { %v1193_v17 = vadd.f32 %v1192_v16, %v1103_v13  ;;  %v3052_v13 = vor.u32 %v3615_v9, %v3051_v8 }
 0x193   : > { %v1446_v18 = vadd.f32 %v1369_v14, %v642_v11  ;;  %v3053_v11 = vld [vmem:[%s4221_s26 + $0xe8] sm:$0xf0] }
 0x194   : > { %v1447_v19 = vadd.f32 %v1193_v17, %v643_v15  ;;  %v652_v14 = vld [vmem:[#allocation2 + $0x28] sm:$0xff]  ;;  %v3056_v17 = vor.u32 %v3614_v10, %v3053_v11  ;;  %v663_v11 = vld [vmem:[#allocation2 + $0x100] sm:$0xff] }
 0x195   : > { %1510 = vst [vmem:[#allocation2 + $0x150] sm:$0xff] %v1446_v18 }
 0x196   : > { %1511 = vst [vmem:[#allocation2 + $0x108] sm:$0xff] %v1447_v19  ;;  %v653_v19 = vld [vmem:[#allocation2 + $0x1e8] sm:$0xff] }
 0x197   : > { %v1281_v24 = vpop.f32.mrf.mxu2 }
 0x198   : > { %v1370_v27 = vpop.f32.mrf.mxu3  ;;  %v1106_v28 = vpop.f32.mrf.mxu0 }
 0x199   : > { %v1371_v30 = vadd.f32 %v1370_v27, %v1281_v24  ;;  %v1195_v32 = vpop.f32.mrf.mxu1 }
 0x19a   : > { %v1196_v33 = vadd.f32 %v1195_v32, %v1106_v28 }
 0x19b   : > { %v1448_v34 = vadd.f32 %v1371_v30, %v644_v26  ;;  %1145 = vmatmul.bf16.gmra.mxu0 %v3036_v25 }
 0x19c   : > { %v1449_v35 = vadd.f32 %v1196_v33, %v645_v31  ;;  %1234 = vmatmul.bf16.gmra.mxu1 %v3040_v29  ;;  %1323 = vmatmul.bf16.gmra.mxu2 %v3036_v25  ;;  %v654_v25 = vld [vmem:[#allocation2 + $0xf8] sm:$0xff] }
 0x19d   : > { %1512 = vst [vmem:[#allocation2 + $0x60] sm:$0xff] %v1448_v34  ;;  %1412 = vmatmul.bf16.gmra.mxu3 %v3040_v29  ;;  %v655_v29 = vld [vmem:[#allocation2 + $0x160] sm:$0xff]  ;;  %v3059_v34 = vld [vmem:[%s4221_s26 + $0xf0] sm:$0xf] }
 0x19e   : > { %1513 = vst [vmem:[#allocation2 + $0xe0] sm:$0xff] %v1449_v35  ;;  %v3617_v35 = vld [vmem:[%s4221_s26 + $0xf4] sm:$0xf0] }
 0x19f   : > { %v1284_v36 = vpop.f32.mrf.mxu2 }
 0x1a0   : > { %v1373_v38 = vpop.f32.mrf.mxu3  ;;  %v1108_v39 = vpop.f32.mrf.mxu0 }
 0x1a1   : > { %v1374_v40 = vadd.f32 %v1373_v38, %v1284_v36  ;;  %v1197_v42 = vpop.f32.mrf.mxu1  ;;  %v3616_v36 = vld [vmem:[%s4221_s26 + $0xf4] sm:$0xf] }
 0x1a2   : > { %v1198_v43 = vadd.f32 %v1197_v42, %v1108_v39  ;;  %v3060_v39 = vor.u32 %v3617_v35, %v3059_v34 }
 0x1a3   : > { %v1450_v44 = vadd.f32 %v1374_v40, %v646_v37  ;;  %v3061_v37 = vld [vmem:[%s4221_s26 + $0xf8] sm:$0xf0]  ;;  %v656_v40 = vld [vmem:[#allocation2 + $0x30] sm:$0xff] }
 0x1a4   : > { %v1451_v45 = vadd.f32 %v1198_v43, %v647_v41  ;;  %v3064_v43 = vor.u32 %v3616_v36, %v3061_v37  ;;  %v668_v37 = vld [vmem:[#allocation2 + $0x128] sm:$0xff] }
 0x1a5   : > { %1514 = vst [vmem:[#allocation2 + $0x188] sm:$0xff] %v1450_v44 }
 0x1a6   : > { %1515 = vst [vmem:[#allocation2 + $0x138] sm:$0xff] %v1451_v45  ;;  %v657_v45 = vld [vmem:[#allocation2 + $0x1e0] sm:$0xff] }
 0x1a7   : > { %v1286_v50 = vpop.f32.mrf.mxu2 }
 0x1a8   : > { %v1375_v53 = vpop.f32.mrf.mxu3  ;;  %v1111_v54 = vpop.f32.mrf.mxu0 }
 0x1a9   : > { %v1376_v56 = vadd.f32 %v1375_v53, %v1286_v50  ;;  %v1200_v58 = vpop.f32.mrf.mxu1 }
 0x1aa   : > { %v1201_v59 = vadd.f32 %v1200_v58, %v1111_v54 }
 0x1ab   : > { %v1452_v60 = vadd.f32 %v1376_v56, %v648_v52  ;;  %1150 = vmatmul.bf16.gmra.mxu0 %v3044_v51 }
 0x1ac   : > { %v1453_v61 = vadd.f32 %v1201_v59, %v649_v57  ;;  %1239 = vmatmul.bf16.gmra.mxu1 %v3048_v55  ;;  %1328 = vmatmul.bf16.gmra.mxu2 %v3044_v51  ;;  %v658_v51 = vld [vmem:[#allocation2] sm:$0xff] }
 0x1ad   : > { %1516 = vst [vmem:[#allocation2 + $0x140] sm:$0xff] %v1452_v60  ;;  %1417 = vmatmul.bf16.gmra.mxu3 %v3048_v55  ;;  %v659_v55 = vld [vmem:[#allocation2 + $0xf0] sm:$0xff] }
 0x1ae   : > { %1517 = vst [vmem:[#allocation2 + $0x80] sm:$0xff] %v1453_v61  ;;  %v660_v61 = vld [vmem:[#allocation2 + $0x8] sm:$0xff] }
 0x1af   : > { %v1289_v62 = vpop.f32.mrf.mxu2 }
 0x1b0   : > { %v1378_v0 = vpop.f32.mrf.mxu3  ;;  %v1113_v1 = vpop.f32.mrf.mxu0 }
 0x1b1   : > { %v1379_v2 = vadd.f32 %v1378_v0, %v1289_v62  ;;  %v1202_v4 = vpop.f32.mrf.mxu1 }
 0x1b2   : > { %v1203_v5 = vadd.f32 %v1202_v4, %v1113_v1  ;;  %v661_v1 = vld [vmem:[#allocation2 + $0x148] sm:$0xff] }
 0x1b3   : > { %v1454_v6 = vadd.f32 %v1379_v2, %v650_v63 }
 0x1b4   : > { %v1455_v7 = vadd.f32 %v1203_v5, %v651_v3 }
 0x1b5   : > { %1518 = vst [vmem:[#allocation2 + $0x1a8] sm:$0xff] %v1454_v6 }
 0x1b6   : > { %1519 = vst [vmem:[#allocation2 + $0x1b8] sm:$0xff] %v1455_v7  ;;  %v662_v7 = vld [vmem:[#allocation2 + $0x1d0] sm:$0xff] }
 0x1b7   : > { %v1291_v12 = vpop.f32.mrf.mxu2 }
 0x1b8   : > { %v1380_v15 = vpop.f32.mrf.mxu3  ;;  %v1116_v16 = vpop.f32.mrf.mxu0 }
 0x1b9   : > { %v1381_v18 = vadd.f32 %v1380_v15, %v1291_v12  ;;  %v1205_v20 = vpop.f32.mrf.mxu1 }
 0x1ba   : > { %v1206_v21 = vadd.f32 %v1205_v20, %v1116_v16 }
 0x1bb   : > { %v1456_v22 = vadd.f32 %v1381_v18, %v652_v14  ;;  %1155 = vmatmul.bf16.gmra.mxu0 %v3052_v13 }
 0x1bc   : > { %v1457_v23 = vadd.f32 %v1206_v21, %v653_v19  ;;  %1244 = vmatmul.bf16.gmra.mxu1 %v3056_v17  ;;  %1333 = vmatmul.bf16.gmra.mxu2 %v3052_v13  ;;  %v665_v21 = vld [vmem:[#allocation2 + $0x40] sm:$0xff] }
 0x1bd   : > { %1520 = vst [vmem:[#allocation2 + $0x28] sm:$0xff] %v1456_v22  ;;  %1422 = vmatmul.bf16.gmra.mxu3 %v3056_v17  ;;  %v664_v17 = vld [vmem:[#allocation2 + $0xc8] sm:$0xff] }
 0x1be   : > { %1521 = vst [vmem:[#allocation2 + $0x1e8] sm:$0xff] %v1457_v23 }
 0x1bf   : > { %v1294_v24 = vpop.f32.mrf.mxu2 }
 0x1c0   : > { %v1383_v26 = vpop.f32.mrf.mxu3  ;;  %v1118_v27 = vpop.f32.mrf.mxu0 }
 0x1c1   : > { %v1384_v28 = vadd.f32 %v1383_v26, %v1294_v24  ;;  %v1207_v30 = vpop.f32.mrf.mxu1 }
 0x1c2   : > { %v1208_v31 = vadd.f32 %v1207_v30, %v1118_v27  ;;  %v666_v27 = vld [vmem:[#allocation2 + $0x1f8] sm:$0xff] }
 0x1c3   : > { %v1458_v32 = vadd.f32 %v1384_v28, %v654_v25 }
 0x1c4   : > { %v1459_v33 = vadd.f32 %v1208_v31, %v655_v29  ;;  %v667_v31 = vld [vmem:[#allocation2 + $0x20] sm:$0xff] }
 0x1c5   : > { %1522 = vst [vmem:[#allocation2 + $0xf8] sm:$0xff] %v1458_v32 }
 0x1c6   : > { %1523 = vst [vmem:[#allocation2 + $0x160] sm:$0xff] %v1459_v33 }
 0x1c7   : > { %v1296_v38 = vpop.f32.mrf.mxu2 }
 0x1c8   : > { %v1385_v41 = vpop.f32.mrf.mxu3  ;;  %v1121_v42 = vpop.f32.mrf.mxu0 }
 0x1c9   : > { %v1386_v44 = vadd.f32 %v1385_v41, %v1296_v38  ;;  %v1210_v46 = vpop.f32.mrf.mxu1  ;;  %v669_v41 = vld [vmem:[#allocation2 + $0x1a0] sm:$0xff] }
 0x1ca   : > { %v1211_v47 = vadd.f32 %v1210_v46, %v1121_v42 }
 0x1cb   : > { %v1460_v48 = vadd.f32 %v1386_v44, %v656_v40  ;;  %1160 = vmatmul.bf16.gmra.mxu0 %v3060_v39 }
 0x1cc   : > { %v1461_v49 = vadd.f32 %v1211_v47, %v657_v45  ;;  %1249 = vmatmul.bf16.gmra.mxu1 %v3064_v43  ;;  %1338 = vmatmul.bf16.gmra.mxu2 %v3060_v39  ;;  %v670_v47 = vld [vmem:[#allocation2 + $0x1f0] sm:$0xff] }
 0x1cd   : > { %1524 = vst [vmem:[#allocation2 + $0x30] sm:$0xff] %v1460_v48  ;;  %1427 = vmatmul.bf16.gmra.mxu3 %v3064_v43 }
 0x1ce   : > { %1525 = vst [vmem:[#allocation2 + $0x1e0] sm:$0xff] %v1461_v49 }
 0x1cf   : > { %v1299_v50 = vpop.f32.mrf.mxu2 }
 0x1d0   : > { %v1388_v52 = vpop.f32.mrf.mxu3  ;;  %v1123_v53 = vpop.f32.mrf.mxu0 }
 0x1d1   : > { %v1389_v54 = vadd.f32 %v1388_v52, %v1299_v50  ;;  %v1212_v56 = vpop.f32.mrf.mxu1 }
 0x1d2   : > { %v1213_v57 = vadd.f32 %v1212_v56, %v1123_v53 }
 0x1d3   : > { %v1462_v58 = vadd.f32 %v1389_v54, %v658_v51  ;;  %v671_v51 = vld [vmem:[#allocation2 + $0xe8] sm:$0xff] }
 0x1d4   : > { %v1463_v59 = vadd.f32 %v1213_v57, %v659_v55  ;;  %v672_v57 = vld [vmem:[#allocation2 + $0x78] sm:$0xff] }
 0x1d5   : > { %1526 = vst [vmem:[#allocation2] sm:$0xff] %v1462_v58 }
 0x1d6   : > { %1527 = vst [vmem:[#allocation2 + $0xf0] sm:$0xff] %v1463_v59 }
 0x1d7   : > { %v1301_v60 = vpop.f32.mrf.mxu2 }
 0x1d8   : > { %v1390_v62 = vpop.f32.mrf.mxu3  ;;  %v1126_v63 = vpop.f32.mrf.mxu0 }
 0x1d9   : > { %v1391_v0 = vadd.f32 %v1390_v62, %v1301_v60  ;;  %v1215_v2 = vpop.f32.mrf.mxu1 }
 0x1da   : > { %v1216_v3 = vadd.f32 %v1215_v2, %v1126_v63 }
 0x1db   : > { %v1464_v4 = vadd.f32 %v1391_v0, %v660_v61  ;;  %v673_v61 = vld [vmem:[#allocation2 + $0x70] sm:$0xff] }
 0x1dc   : > { %v1465_v5 = vadd.f32 %v1216_v3, %v661_v1  ;;  %v674_v3 = vld [vmem:[#allocation2 + $0x90] sm:$0xff] }
 0x1dd   : > { %1528 = vst [vmem:[#allocation2 + $0x8] sm:$0xff] %v1464_v4 }
 0x1de   : > { %1529 = vst [vmem:[#allocation2 + $0x148] sm:$0xff] %v1465_v5 }
 0x1df   : > { %v1304_v6 = vpop.f32.mrf.mxu2 }
 0x1e0   : > { %v1393_v8 = vpop.f32.mrf.mxu3  ;;  %v1128_v9 = vpop.f32.mrf.mxu0 }
 0x1e1   : > { %v1394_v10 = vadd.f32 %v1393_v8, %v1304_v6  ;;  %v1217_v12 = vpop.f32.mrf.mxu1 }
 0x1e2   : > { %v1218_v13 = vadd.f32 %v1217_v12, %v1128_v9 }
 0x1e3   : > { %v1466_v14 = vadd.f32 %v1394_v10, %v662_v7  ;;  %v675_v7 = vld [vmem:[#allocation2 + $0x1d8] sm:$0xff] }
 0x1e4   : > { %v1467_v15 = vadd.f32 %v1218_v13, %v663_v11  ;;  %v676_v13 = vld [vmem:[#allocation2 + $0xd0] sm:$0xff] }
 0x1e5   : > { %1530 = vst [vmem:[#allocation2 + $0x1d0] sm:$0xff] %v1466_v14 }
 0x1e6   : > { %1531 = vst [vmem:[#allocation2 + $0x100] sm:$0xff] %v1467_v15 }
 0x1e7   : > { %v1306_v16 = vpop.f32.mrf.mxu2 }
 0x1e8   : > { %v1395_v18 = vpop.f32.mrf.mxu3  ;;  %v1131_v19 = vpop.f32.mrf.mxu0 }
 0x1e9   : > { %v1396_v20 = vadd.f32 %v1395_v18, %v1306_v16  ;;  %v1220_v22 = vpop.f32.mrf.mxu1 }
 0x1ea   : > { %v1221_v23 = vadd.f32 %v1220_v22, %v1131_v19 }
 0x1eb   : > { %v1468_v24 = vadd.f32 %v1396_v20, %v664_v17  ;;  %v677_v17 = vld [vmem:[#allocation2 + $0xb8] sm:$0xff] }
 0x1ec   : > { %v1469_v25 = vadd.f32 %v1221_v23, %v665_v21  ;;  %v678_v23 = vld [vmem:[#allocation2 + $0x88] sm:$0xff] }
 0x1ed   : > { %1532 = vst [vmem:[#allocation2 + $0xc8] sm:$0xff] %v1468_v24 }
 0x1ee   : > { %1533 = vst [vmem:[#allocation2 + $0x40] sm:$0xff] %v1469_v25 }
 0x1ef   : > { %v1309_v26 = vpop.f32.mrf.mxu2 }
 0x1f0   : > { %v1398_v28 = vpop.f32.mrf.mxu3  ;;  %v1133_v29 = vpop.f32.mrf.mxu0 }
 0x1f1   : > { %v1399_v30 = vadd.f32 %v1398_v28, %v1309_v26  ;;  %v1222_v32 = vpop.f32.mrf.mxu1 }
 0x1f2   : > { %v1223_v33 = vadd.f32 %v1222_v32, %v1133_v29 }
 0x1f3   : > { %v1470_v34 = vadd.f32 %v1399_v30, %v666_v27  ;;  %v679_v27 = vld [vmem:[#allocation2 + $0xa8] sm:$0xff] }
 0x1f4   : > { %v1471_v35 = vadd.f32 %v1223_v33, %v667_v31  ;;  %v680_v33 = vld [vmem:[#allocation2 + $0x1c8] sm:$0xff] }
 0x1f5   : > { %1534 = vst [vmem:[#allocation2 + $0x1f8] sm:$0xff] %v1470_v34 }
 0x1f6   : > { %1535 = vst [vmem:[#allocation2 + $0x20] sm:$0xff] %v1471_v35 }
 0x1f7   : > { %v1311_v36 = vpop.f32.mrf.mxu2 }
 0x1f8   : > { %v1400_v38 = vpop.f32.mrf.mxu3  ;;  %v1136_v39 = vpop.f32.mrf.mxu0 }
 0x1f9   : > { %v1401_v40 = vadd.f32 %v1400_v38, %v1311_v36  ;;  %v1225_v42 = vpop.f32.mrf.mxu1 }
 0x1fa   : > { %v1226_v43 = vadd.f32 %v1225_v42, %v1136_v39 }
 0x1fb   : > { %v1472_v44 = vadd.f32 %v1401_v40, %v668_v37  ;;  %v681_v37 = vld [vmem:[#allocation2 + $0x170] sm:$0xff] }
 0x1fc   : > { %v1473_v45 = vadd.f32 %v1226_v43, %v669_v41  ;;  %v682_v43 = vld [vmem:[#allocation2 + $0x178] sm:$0xff] }
 0x1fd   : > { %1536 = vst [vmem:[#allocation2 + $0x128] sm:$0xff] %v1472_v44 }
 0x1fe   : > { %1537 = vst [vmem:[#allocation2 + $0x1a0] sm:$0xff] %v1473_v45 }
 0x1ff   : > { %v1314_v46 = vpop.f32.mrf.mxu2 }
 0x200   : > { %v1403_v48 = vpop.f32.mrf.mxu3  ;;  %v1138_v49 = vpop.f32.mrf.mxu0 }
 0x201   : > { %v1404_v50 = vadd.f32 %v1403_v48, %v1314_v46  ;;  %v1227_v52 = vpop.f32.mrf.mxu1 }
 0x202   : > { %v1228_v53 = vadd.f32 %v1227_v52, %v1138_v49 }
 0x203   : > { %v1474_v54 = vadd.f32 %v1404_v50, %v670_v47  ;;  %v683_v47 = vld [vmem:[#allocation2 + $0x68] sm:$0xff] }
 0x204   : > { %v1475_v55 = vadd.f32 %v1228_v53, %v671_v51  ;;  %v684_v53 = vld [vmem:[#allocation2 + $0x190] sm:$0xff] }
 0x205   : > { %1538 = vst [vmem:[#allocation2 + $0x1f0] sm:$0xff] %v1474_v54 }
 0x206   : > { %1539 = vst [vmem:[#allocation2 + $0xe8] sm:$0xff] %v1475_v55 }
 0x207   : > { %v1316_v56 = vpop.f32.mrf.mxu2 }
 0x208   : > { %v1405_v58 = vpop.f32.mrf.mxu3  ;;  %v1141_v59 = vpop.f32.mrf.mxu0 }
 0x209   : > { %v1406_v60 = vadd.f32 %v1405_v58, %v1316_v56  ;;  %v1230_v62 = vpop.f32.mrf.mxu1 }
 0x20a   : > { %v1231_v63 = vadd.f32 %v1230_v62, %v1141_v59 }
 0x20b   : > { %v1476_v0 = vadd.f32 %v1406_v60, %v672_v57  ;;  %v685_v57 = vld [vmem:[#allocation2 + $0x198] sm:$0xff] }
 0x20c   : > { %v1477_v1 = vadd.f32 %v1231_v63, %v673_v61  ;;  %v686_v63 = vld [vmem:[#allocation2 + $0x38] sm:$0xff] }
 0x20d   : > { %1540 = vst [vmem:[#allocation2 + $0x78] sm:$0xff] %v1476_v0 }
 0x20e   : > { %1541 = vst [vmem:[#allocation2 + $0x70] sm:$0xff] %v1477_v1 }
 0x20f   : > { %v1319_v2 = vpop.f32.mrf.mxu2 }
 0x210   : > { %v1408_v4 = vpop.f32.mrf.mxu3  ;;  %v1143_v5 = vpop.f32.mrf.mxu0 }
 0x211   : > { %v1409_v6 = vadd.f32 %v1408_v4, %v1319_v2  ;;  %v1232_v8 = vpop.f32.mrf.mxu1 }
 0x212   : > { %v1233_v9 = vadd.f32 %v1232_v8, %v1143_v5 }
 0x213   : > { %v1478_v10 = vadd.f32 %v1409_v6, %v674_v3  ;;  %v687_v3 = vld [vmem:[#allocation2 + $0xc0] sm:$0xff] }
 0x214   : > { %v1479_v11 = vadd.f32 %v1233_v9, %v675_v7  ;;  %v688_v9 = vld [vmem:[#allocation2 + $0x1c0] sm:$0xff] }
 0x215   : > { %1542 = vst [vmem:[#allocation2 + $0x90] sm:$0xff] %v1478_v10 }
 0x216   : > { %1543 = vst [vmem:[#allocation2 + $0x1d8] sm:$0xff] %v1479_v11 }
 0x217   : > { %v1321_v12 = vpop.f32.mrf.mxu2 }
 0x218   : > { %v1410_v14 = vpop.f32.mrf.mxu3  ;;  %v1146_v15 = vpop.f32.mrf.mxu0 }
 0x219   : > { %v1411_v16 = vadd.f32 %v1410_v14, %v1321_v12  ;;  %v1235_v18 = vpop.f32.mrf.mxu1 }
 0x21a   : > { %v1236_v19 = vadd.f32 %v1235_v18, %v1146_v15 }
 0x21b   : > { %v1480_v20 = vadd.f32 %v1411_v16, %v676_v13  ;;  %v689_v13 = vld [vmem:[#allocation2 + $0x158] sm:$0xff] }
 0x21c   : > { %v1481_v21 = vadd.f32 %v1236_v19, %v677_v17  ;;  %v690_v19 = vld [vmem:[#allocation2 + $0x10] sm:$0xff] }
 0x21d   : > { %1544 = vst [vmem:[#allocation2 + $0xd0] sm:$0xff] %v1480_v20 }
 0x21e   : > { %1545 = vst [vmem:[#allocation2 + $0xb8] sm:$0xff] %v1481_v21 }
 0x21f   : > { %v1324_v22 = vpop.f32.mrf.mxu2 }
 0x220   : > { %v1413_v24 = vpop.f32.mrf.mxu3  ;;  %v1148_v25 = vpop.f32.mrf.mxu0 }
 0x221   : > { %v1414_v26 = vadd.f32 %v1413_v24, %v1324_v22  ;;  %v1237_v28 = vpop.f32.mrf.mxu1 }
 0x222   : > { %v1238_v29 = vadd.f32 %v1237_v28, %v1148_v25 }
 0x223   : > { %v1482_v30 = vadd.f32 %v1414_v26, %v678_v23  ;;  %v691_v23 = vld [vmem:[#allocation2 + $0x58] sm:$0xff] }
 0x224   : > { %v1483_v31 = vadd.f32 %v1238_v29, %v679_v27  ;;  %v692_v29 = vld [vmem:[#allocation2 + $0xa0] sm:$0xff] }
 0x225   : > { %1546 = vst [vmem:[#allocation2 + $0x88] sm:$0xff] %v1482_v30 }
 0x226   : > { %1547 = vst [vmem:[#allocation2 + $0xa8] sm:$0xff] %v1483_v31 }
 0x227   : > { %v1326_v32 = vpop.f32.mrf.mxu2 }
 0x228   : > { %v1415_v34 = vpop.f32.mrf.mxu3  ;;  %v1151_v35 = vpop.f32.mrf.mxu0 }
 0x229   : > { %v1416_v36 = vadd.f32 %v1415_v34, %v1326_v32  ;;  %v1240_v38 = vpop.f32.mrf.mxu1 }
 0x22a   : > { %v1241_v39 = vadd.f32 %v1240_v38, %v1151_v35 }
 0x22b   : > { %v1484_v40 = vadd.f32 %v1416_v36, %v680_v33 }
 0x22c   : > { %v1485_v41 = vadd.f32 %v1241_v39, %v681_v37 }
 0x22d   : > { %1548 = vst [vmem:[#allocation2 + $0x1c8] sm:$0xff] %v1484_v40 }
 0x22e   : > { %1549 = vst [vmem:[#allocation2 + $0x170] sm:$0xff] %v1485_v41 }
 0x22f   : > { %v1329_v42 = vpop.f32.mrf.mxu2 }
 0x230   : > { %v1418_v44 = vpop.f32.mrf.mxu3  ;;  %v1153_v45 = vpop.f32.mrf.mxu0 }
 0x231   : > { %v1419_v46 = vadd.f32 %v1418_v44, %v1329_v42  ;;  %v1242_v48 = vpop.f32.mrf.mxu1 }
 0x232   : > { %v1243_v49 = vadd.f32 %v1242_v48, %v1153_v45 }
 0x233   : > { %v1486_v50 = vadd.f32 %v1419_v46, %v682_v43 }
 0x234   : > { %v1487_v51 = vadd.f32 %v1243_v49, %v683_v47 }
 0x235   : > { %1550 = vst [vmem:[#allocation2 + $0x178] sm:$0xff] %v1486_v50 }
 0x236   : > { %1551 = vst [vmem:[#allocation2 + $0x68] sm:$0xff] %v1487_v51 }
 0x237   : > { %v1331_v52 = vpop.f32.mrf.mxu2 }
 0x238   : > { %v1420_v54 = vpop.f32.mrf.mxu3  ;;  %v1156_v55 = vpop.f32.mrf.mxu0 }
 0x239   : > { %v1421_v56 = vadd.f32 %v1420_v54, %v1331_v52  ;;  %v1245_v58 = vpop.f32.mrf.mxu1 }
 0x23a   : > { %v1246_v59 = vadd.f32 %v1245_v58, %v1156_v55 }
 0x23b   : > { %v1488_v60 = vadd.f32 %v1421_v56, %v684_v53 }
 0x23c   : > { %v1489_v61 = vadd.f32 %v1246_v59, %v685_v57 }
 0x23d   : > { %1552 = vst [vmem:[#allocation2 + $0x190] sm:$0xff] %v1488_v60 }
 0x23e   : > { %1553 = vst [vmem:[#allocation2 + $0x198] sm:$0xff] %v1489_v61 }
 0x23f   : > { %v1334_v62 = vpop.f32.mrf.mxu2 }
 0x240   : > { %v1423_v0 = vpop.f32.mrf.mxu3  ;;  %v1158_v1 = vpop.f32.mrf.mxu0 }
 0x241   : > { %v1424_v2 = vadd.f32 %v1423_v0, %v1334_v62  ;;  %v1247_v4 = vpop.f32.mrf.mxu1 }
 0x242   : > { %v1248_v5 = vadd.f32 %v1247_v4, %v1158_v1 }
 0x243   : > { %v1490_v6 = vadd.f32 %v1424_v2, %v686_v63 }
 0x244   : > { %v1491_v7 = vadd.f32 %v1248_v5, %v687_v3 }
 0x245   : > { %1554 = vst [vmem:[#allocation2 + $0x38] sm:$0xff] %v1490_v6 }
 0x246   : > { %1555 = vst [vmem:[#allocation2 + $0xc0] sm:$0xff] %v1491_v7 }
 0x247   : > { %v1336_v8 = vpop.f32.mrf.mxu2 }
 0x248   : > { %v1425_v10 = vpop.f32.mrf.mxu3  ;;  %v1161_v11 = vpop.f32.mrf.mxu0 }
 0x249   : > { %v1426_v12 = vadd.f32 %v1425_v10, %v1336_v8  ;;  %v1250_v14 = vpop.f32.mrf.mxu1 }
 0x24a   : > { %v1251_v15 = vadd.f32 %v1250_v14, %v1161_v11 }
 0x24b   : > { %v1492_v16 = vadd.f32 %v1426_v12, %v688_v9 }
 0x24c   : > { %v1493_v17 = vadd.f32 %v1251_v15, %v689_v13 }
 0x24d   : > { %1556 = vst [vmem:[#allocation2 + $0x1c0] sm:$0xff] %v1492_v16 }
 0x24e   : > { %1557 = vst [vmem:[#allocation2 + $0x158] sm:$0xff] %v1493_v17 }
 0x24f   : > { %v1339_v18 = vpop.f32.mrf.mxu2 }
 0x250   : > { %v1428_v20 = vpop.f32.mrf.mxu3  ;;  %v1163_v21 = vpop.f32.mrf.mxu0 }
 0x251   : > { %v1429_v22 = vadd.f32 %v1428_v20, %v1339_v18  ;;  %v1252_v24 = vpop.f32.mrf.mxu1 }
 0x252   : > { %v1253_v25 = vadd.f32 %v1252_v24, %v1163_v21 }
 0x253   : > { %v1494_v26 = vadd.f32 %v1429_v22, %v690_v19 }
 0x254   : > { %v1495_v27 = vadd.f32 %v1253_v25, %v691_v23 }
 0x255   : > { %1558 = vst [vmem:[#allocation2 + $0x10] sm:$0xff] %v1494_v26 }
 0x256   : > { %1559 = vst [vmem:[#allocation2 + $0x58] sm:$0xff] %v1495_v27 }
 0x257   : > { %v1341_v28 = vpop.f32.mrf.mxu2 }
 0x258   : > { %v1430_v30 = vpop.f32.mrf.mxu3 }
 0x259   : > { %v1431_v31 = vadd.f32 %v1430_v30, %v1341_v28 }
 0x25b   : > { %v1496_v32 = vadd.f32 %v1431_v31, %v692_v29 }
 0x25d   : > { %1560 = vst [vmem:[#allocation2 + $0xa0] sm:$0xff] %v1496_v32 }
 0x25e PF: > { %p3193_p7 = scmp.ne.s32.totalorder %s3960_s12, 1 }
 0x260   : > { %1564 = sbr.rel (%p3193_p7) target bundleno = 1032 (0x408), region = 90 }
 0x265   : > { %v3721_v33 = vld [vmem:[%s4673_s5 + $0x38] sm:$0xff]  ;;  %v3720_v37 = vld [vmem:[%s4673_s5 + $0x30] sm:$0xff]  ;;  %v3719_v41 = vld [vmem:[%s4673_s5 + $0x28] sm:$0xff] }
 0x266   : > { %v3729_v34 = vld [vmem:[%s4673_s5 + $0x78] sm:$0xff]  ;;  %2401 = vmatpush.bf16.msra.mxu0 %v3721_v33  ;;  %v3728_v38 = vld [vmem:[%s4673_s5 + $0x70] sm:$0xff]  ;;  %v3727_v42 = vld [vmem:[%s4673_s5 + $0x68] sm:$0xff] }
 0x267   : > { %v3737_v35 = vld [vmem:[%s4673_s5 + $0xb8] sm:$0xff]  ;;  %2490 = vmatpush.bf16.msra.mxu1 %v3729_v34  ;;  %v3736_v39 = vld [vmem:[%s4673_s5 + $0xb0] sm:$0xff]  ;;  %v3735_v43 = vld [vmem:[%s4673_s5 + $0xa8] sm:$0xff] }
 0x268   : > { %v3745_v36 = vld [vmem:[%s4673_s5 + $0xf8] sm:$0xff]  ;;  %2579 = vmatpush.bf16.msra.mxu2 %v3737_v35  ;;  %v3744_v40 = vld [vmem:[%s4673_s5 + $0xf0] sm:$0xff]  ;;  %v3743_v44 = vld [vmem:[%s4673_s5 + $0xe8] sm:$0xff] }
 0x269   : > { %2668 = vmatpush.bf16.msra.mxu3 %v3745_v36  ;;  %v3718_v45 = vld [vmem:[%s4673_s5 + $0x20] sm:$0xff]  ;;  %v1566_v50 = vld [vmem:[%s4214_s15 + $0x8] sm:$0xff]  ;;  %v1629_v51 = vld [vmem:[#allocation2 + $0xb0] sm:$0xff] }
 0x26a   : > { %2402 = vmatpush.bf16.msra.mxu0 %v3720_v37  ;;  %v3726_v46 = vld [vmem:[%s4673_s5 + $0x60] sm:$0xff]  ;;  %v1630_v52 = vld [vmem:[#allocation2 + $0x1b0] sm:$0xff]  ;;  %v3717_v53 = vld [vmem:[%s4673_s5 + $0x18] sm:$0xff]  ;;  %1598 = vst [vmem:[#allocation3 + $0x10] sm:$0xff] %v1566_v50 }
 0x26b   : > { %2491 = vmatpush.bf16.msra.mxu1 %v3728_v38  ;;  %v3734_v47 = vld [vmem:[%s4673_s5 + $0xa0] sm:$0xff]  ;;  %v3725_v54 = vld [vmem:[%s4673_s5 + $0x58] sm:$0xff]  ;;  %v1693_v57 = vpack.c.bf16 %v1630_v52, %v1629_v51  ;;  %v1567_v58 = vld [vmem:[%s4214_s15 + $0x10] sm:$0xff] }
 0x26c   : > { %2580 = vmatpush.bf16.msra.mxu2 %v3736_v39  ;;  %v3742_v48 = vld [vmem:[%s4673_s5 + $0xe0] sm:$0xff]  ;;  %v1631_v55 = vld [vmem:[#allocation2 + $0xd8] sm:$0xff]  ;;  %1599 = vst [vmem:[#allocation3 + $0x20] sm:$0xff] %v1567_v58  ;;  %v1633_v61 = vld [vmem:[#allocation2 + $0x50] sm:$0xff] }
 0x26d   : > { %2669 = vmatpush.bf16.msra.mxu3 %v3744_v40  ;;  %v1565_v49 = vld [vmem:[%s4214_s15] sm:$0xff]  ;;  %v1632_v56 = vld [vmem:[#allocation2 + $0x18] sm:$0xff]  ;;  %v1634_v62 = vld [vmem:[#allocation2 + $0x168] sm:$0xff]  ;;  %1725 = vst [vmem:[#allocation3 + $0x8] sm:$0xff] %v1693_v57 }
 0x26e   : > { %2403 = vmatpush.bf16.msra.mxu0 %v3719_v41  ;;  %1597 = vst [vmem:[#allocation3] sm:$0xff] %v1565_v49  ;;  %v1694_v59 = vpack.c.bf16 %v1632_v56, %v1631_v55  ;;  %v1568_v60 = vld [vmem:[%s4214_s15 + $0x18] sm:$0xff]  ;;  %v1635_v63 = vld [vmem:[#allocation2 + $0x130] sm:$0xff]  ;;  %v1636_v0 = vld [vmem:[#allocation2 + $0x48] sm:$0xff]  ;;  %v1695_v1 = vpack.c.bf16 %v1634_v62, %v1633_v61 }
 0x26f   : > { %2492 = vmatpush.bf16.msra.mxu1 %v3727_v42  ;;  %v3733_v2 = vld [vmem:[%s4673_s5 + $0x98] sm:$0xff]  ;;  %v1696_v4 = vpack.c.bf16 %v1636_v0, %v1635_v63  ;;  %1600 = vst [vmem:[#allocation3 + $0x30] sm:$0xff] %v1568_v60  ;;  %v3716_v5 = vld [vmem:[%s4673_s5 + $0x10] sm:$0xff]  ;;  %v1569_v7 = vld [vmem:[%s4214_s15 + $0x20] sm:$0xff] }
 0x270   : > { %2581 = vmatpush.bf16.msra.mxu2 %v3735_v43  ;;  %v3741_v3 = vld [vmem:[%s4673_s5 + $0xd8] sm:$0xff]  ;;  %1726 = vst [vmem:[#allocation3 + $0x18] sm:$0xff] %v1694_v59  ;;  %v3724_v6 = vld [vmem:[%s4673_s5 + $0x50] sm:$0xff]  ;;  %v1570_v10 = vld [vmem:[%s4214_s15 + $0x28] sm:$0xff] }
 0x271   : > { %2670 = vmatpush.bf16.msra.mxu3 %v3743_v44  ;;  %1727 = vst [vmem:[#allocation3 + $0x28] sm:$0xff] %v1695_v1  ;;  %v3732_v8 = vld [vmem:[%s4673_s5 + $0x90] sm:$0xff]  ;;  %v1637_v11 = vld [vmem:[#allocation2 + $0x180] sm:$0xff]  ;;  %v3715_v12 = vld [vmem:[%s4673_s5 + $0x8] sm:$0xff] }
 0x272   : > { %2404 = vmatpush.bf16.msra.mxu0 %v3718_v45  ;;  %1728 = vst [vmem:[#allocation3 + $0x38] sm:$0xff] %v1696_v4  ;;  %v3740_v9 = vld [vmem:[%s4673_s5 + $0xd0] sm:$0xff]  ;;  %v3723_v13 = vld [vmem:[%s4673_s5 + $0x48] sm:$0xff]  ;;  %v1639_v17 = vld [vmem:[#allocation2 + $0x118] sm:$0xff] }
 0x273   : > { %2493 = vmatpush.bf16.msra.mxu1 %v3726_v46  ;;  %1601 = vst [vmem:[#allocation3 + $0x40] sm:$0xff] %v1569_v7  ;;  %v1638_v14 = vld [vmem:[#allocation2 + $0x110] sm:$0xff]  ;;  %v3731_v15 = vld [vmem:[%s4673_s5 + $0x88] sm:$0xff]  ;;  %v3714_v19 = vld [vmem:[%s4673_s5] sm:$0xff] }
 0x274   : > { %2582 = vmatpush.bf16.msra.mxu2 %v3734_v47  ;;  %1602 = vst [vmem:[#allocation3 + $0x50] sm:$0xff] %v1570_v10  ;;  %v3739_v16 = vld [vmem:[%s4673_s5 + $0xc8] sm:$0xff]  ;;  %v1697_v18 = vpack.c.bf16 %v1638_v14, %v1637_v11  ;;  %v3722_v20 = vld [vmem:[%s4673_s5 + $0x40] sm:$0xff]  ;;  %v1640_v22 = vld [vmem:[#allocation2 + $0x98] sm:$0xff] }
 0x275   : > { %2671 = vmatpush.bf16.msra.mxu3 %v3742_v48  ;;  %v3196_v21 = vld [vmem:[#allocation3] sm:$0xf]  ;;  %v3652_v24 = vld [vmem:[#allocation3 + $0xc] sm:$0xf0]  ;;  %v3650_v25 = vld [vmem:[#allocation3 + $0x4] sm:$0xf]  ;;  %v1698_v26 = vpack.c.bf16 %v1640_v22, %v1639_v17 }
 0x276   : > { %2405 = vmatpush.bf16.msra.mxu0 %v3717_v53  ;;  %v3730_v23 = vld [vmem:[%s4673_s5 + $0x80] sm:$0xff]  ;;  %1729 = vst [vmem:[#allocation3 + $0x48] sm:$0xff] %v1697_v18  ;;  %v3198_v27 = vld [vmem:[#allocation3 + $0x10] sm:$0xf0]  ;;  %v3204_v28 = vld [vmem:[#allocation3 + $0x8] sm:$0xf]  ;;  %v3197_v33 = vor.u32 %v3652_v24, %v3196_v21 }
 0x277   : > { %2494 = vmatpush.bf16.msra.mxu1 %v3725_v54  ;;  %v3651_v29 = vld [vmem:[#allocation3 + $0xc] sm:$0xf]  ;;  %v3738_v30 = vld [vmem:[%s4673_s5 + $0xc0] sm:$0xff]  ;;  %v3653_v31 = vld [vmem:[#allocation3 + $0x14] sm:$0xf0]  ;;  %1730 = vst [vmem:[#allocation3 + $0x58] sm:$0xff] %v1698_v26  ;;  %v3201_v34 = vor.u32 %v3650_v25, %v3198_v27 }
 0x278   : > { %2583 = vmatpush.bf16.msra.mxu2 %v3733_v2  ;;  %v3206_v32 = vld [vmem:[#allocation3 + $0x18] sm:$0xf0]  ;;  %v3205_v35 = vor.u32 %v3653_v31, %v3204_v28  ;;  %v1571_v37 = vld [vmem:[%s4214_s15 + $0x30] sm:$0xff]  ;;  %v1641_v39 = vld [vmem:[#allocation2 + $0x120] sm:$0xff] }
 0x279   : > { %2672 = vmatpush.bf16.msra.mxu3 %v3741_v3  ;;  %v3209_v36 = vor.u32 %v3651_v29, %v3206_v32  ;;  %v1572_v38 = vld [vmem:[%s4214_s15 + $0x38] sm:$0xff]  ;;  %1603 = vst [vmem:[#allocation3 + $0x60] sm:$0xff] %v1571_v37  ;;  %v1642_v40 = vld [vmem:[#allocation2 + $0x150] sm:$0xff]  ;;  %v1643_v41 = vld [vmem:[#allocation2 + $0x108] sm:$0xff] }
 0x27a   : > { %2406 = vmatpush.bf16.msra.mxu0 %v3716_v5  ;;  %1604 = vst [vmem:[#allocation3 + $0x70] sm:$0xff] %v1572_v38  ;;  %v1644_v42 = vld [vmem:[#allocation2 + $0x60] sm:$0xff]  ;;  %v1699_v43 = vpack.c.bf16 %v1642_v40, %v1641_v39  ;;  %v3656_v47 = vld [vmem:[#allocation3 + $0x2c] sm:$0xf0]  ;;  %v3214_v48 = vld [vmem:[#allocation3 + $0x30] sm:$0xf0] }
 0x27b   : > { %2495 = vmatpush.bf16.msra.mxu1 %v3724_v6  ;;  %v1700_v44 = vpack.c.bf16 %v1644_v42, %v1643_v41  ;;  %v3212_v45 = vld [vmem:[#allocation3 + $0x20] sm:$0xf]  ;;  %v3654_v46 = vld [vmem:[#allocation3 + $0x24] sm:$0xf]  ;;  %v3220_v49 = vld [vmem:[#allocation3 + $0x28] sm:$0xf] }
 0x27c   : > { %2584 = vmatpush.bf16.msra.mxu2 %v3732_v8  ;;  %1731 = vst [vmem:[#allocation3 + $0x68] sm:$0xff] %v1699_v43  ;;  %v3657_v50 = vld [vmem:[#allocation3 + $0x34] sm:$0xf0]  ;;  %v3655_v51 = vld [vmem:[#allocation3 + $0x2c] sm:$0xf]  ;;  %v3213_v53 = vor.u32 %v3656_v47, %v3212_v45  ;;  %v3217_v54 = vor.u32 %v3654_v46, %v3214_v48  ;;  %v1573_v57 = vld [vmem:[%s4214_s15 + $0x40] sm:$0xff] }
 0x27d   : > { %2673 = vmatpush.bf16.msra.mxu3 %v3740_v9  ;;  %1732 = vst [vmem:[#allocation3 + $0x78] sm:$0xff] %v1700_v44  ;;  %v3222_v52 = vld [vmem:[#allocation3 + $0x38] sm:$0xf0]  ;;  %v3221_v55 = vor.u32 %v3657_v50, %v3220_v49  ;;  %v1574_v58 = vld [vmem:[%s4214_s15 + $0x48] sm:$0xff]  ;;  %v1645_v59 = vld [vmem:[#allocation2 + $0xe0] sm:$0xff] }
 0x27e   : > { %2407 = vmatpush.bf16.msra.mxu0 %v3715_v12  ;;  %v3225_v56 = vor.u32 %v3655_v51, %v3222_v52  ;;  %1605 = vst [vmem:[#allocation3 + $0x80] sm:$0xff] %v1573_v57  ;;  %v1646_v60 = vld [vmem:[#allocation2 + $0x188] sm:$0xff]  ;;  %v1647_v61 = vld [vmem:[#allocation2 + $0x138] sm:$0xff]  ;;  %v1648_v62 = vld [vmem:[#allocation2 + $0x140] sm:$0xff] }
 0x27f   : > { %2496 = vmatpush.bf16.msra.mxu1 %v3723_v13  ;;  %1606 = vst [vmem:[#allocation3 + $0x90] sm:$0xff] %v1574_v58  ;;  %v1701_v63 = vpack.c.bf16 %v1646_v60, %v1645_v59  ;;  %v1702_v0 = vpack.c.bf16 %v1648_v62, %v1647_v61  ;;  %v3228_v1 = vld [vmem:[#allocation3 + $0x40] sm:$0xf]  ;;  %v3660_v2 = vld [vmem:[#allocation3 + $0x4c] sm:$0xf0]  ;;  %v1576_v14 = vld [vmem:[%s4214_s15 + $0x58] sm:$0xff] }
 0x280   : > { %2585 = vmatpush.bf16.msra.mxu2 %v3731_v15  ;;  %v3658_v3 = vld [vmem:[#allocation3 + $0x44] sm:$0xf]  ;;  %v3230_v4 = vld [vmem:[#allocation3 + $0x50] sm:$0xf0]  ;;  %v3236_v5 = vld [vmem:[#allocation3 + $0x48] sm:$0xf]  ;;  %v3229_v9 = vor.u32 %v3660_v2, %v3228_v1 }
 0x281   : > { %2674 = vmatpush.bf16.msra.mxu3 %v3739_v16  ;;  %1733 = vst [vmem:[#allocation3 + $0x88] sm:$0xff] %v1701_v63  ;;  %v3661_v6 = vld [vmem:[#allocation3 + $0x54] sm:$0xf0]  ;;  %v3659_v7 = vld [vmem:[#allocation3 + $0x4c] sm:$0xf]  ;;  %v3233_v10 = vor.u32 %v3658_v3, %v3230_v4  ;;  %v1575_v13 = vld [vmem:[%s4214_s15 + $0x50] sm:$0xff] }
 0x282   : > { %2408 = vmatpush.bf16.msra.mxu0 %v3714_v19  ;;  %1734 = vst [vmem:[#allocation3 + $0x98] sm:$0xff] %v1702_v0  ;;  %v3238_v8 = vld [vmem:[#allocation3 + $0x58] sm:$0xf0]  ;;  %v3237_v11 = vor.u32 %v3661_v6, %v3236_v5  ;;  %v1649_v15 = vld [vmem:[#allocation2 + $0x80] sm:$0xff]  ;;  %v1650_v16 = vld [vmem:[#allocation2 + $0x1a8] sm:$0xff] }
 0x283   : > { %2497 = vmatpush.bf16.msra.mxu1 %v3722_v20  ;;  %v3241_v12 = vor.u32 %v3659_v7, %v3238_v8  ;;  %1607 = vst [vmem:[#allocation3 + $0xa0] sm:$0xff] %v1575_v13  ;;  %v1651_v17 = vld [vmem:[#allocation2 + $0x1b8] sm:$0xff]  ;;  %v1652_v18 = vld [vmem:[#allocation2 + $0x28] sm:$0xff]  ;;  %v1703_v19 = vpack.c.bf16 %v1650_v16, %v1649_v15  ;;  %v3244_v21 = vld [vmem:[#allocation3 + $0x60] sm:$0xf] }
 0x284   : > { %2586 = vmatpush.bf16.msra.mxu2 %v3730_v23  ;;  %1608 = vst [vmem:[#allocation3 + $0xb0] sm:$0xff] %v1576_v14  ;;  %v1704_v20 = vpack.c.bf16 %v1652_v18, %v1651_v17  ;;  %v3664_v22 = vld [vmem:[#allocation3 + $0x6c] sm:$0xf0]  ;;  %v3662_v23 = vld [vmem:[#allocation3 + $0x64] sm:$0xf]  ;;  %v1660_v58 = vld [vmem:[#allocation2 + $0x8] sm:$0xff] }
 0x285   : > { %2675 = vmatpush.bf16.msra.mxu3 %v3738_v30  ;;  %2409 = vmatmul.bf16.vlgmr.msra.gmra.mxu0 %v3197_v33  ;;  %1735 = vst [vmem:[#allocation3 + $0xa8] sm:$0xff] %v1703_v19  ;;  %v3246_v24 = vld [vmem:[#allocation3 + $0x70] sm:$0xf0]  ;;  %v3252_v25 = vld [vmem:[#allocation3 + $0x68] sm:$0xf]  ;;  %v3245_v29 = vor.u32 %v3664_v22, %v3244_v21  ;;  %v1577_v33 = vld [vmem:[%s4214_s15 + $0x60] sm:$0xff] }
 0x286   : > { %2498 = vmatmul.bf16.vlgmr.msra.gmra.mxu1 %v3201_v34  ;;  %1736 = vst [vmem:[#allocation3 + $0xb8] sm:$0xff] %v1704_v20  ;;  %v3665_v26 = vld [vmem:[#allocation3 + $0x74] sm:$0xf0]  ;;  %v3663_v27 = vld [vmem:[#allocation3 + $0x6c] sm:$0xf]  ;;  %v3249_v30 = vor.u32 %v3662_v23, %v3246_v24  ;;  %v1655_v37 = vld [vmem:[#allocation2 + $0x160] sm:$0xff] }
 0x287   : > { %2587 = vmatmul.bf16.vlgmr.msra.gmra.mxu2 %v3205_v35  ;;  %v3254_v28 = vld [vmem:[#allocation3 + $0x78] sm:$0xf0]  ;;  %v3253_v31 = vor.u32 %v3665_v26, %v3252_v25  ;;  %v1578_v34 = vld [vmem:[%s4214_s15 + $0x68] sm:$0xff]  ;;  %1609 = vst [vmem:[#allocation3 + $0xc0] sm:$0xff] %v1577_v33  ;;  %v1656_v38 = vld [vmem:[#allocation2 + $0x30] sm:$0xff] }
 0x288   : > { %2676 = vmatmul.bf16.vlgmr.msra.gmra.mxu3 %v3209_v36  ;;  %v3257_v32 = vor.u32 %v3663_v27, %v3254_v28  ;;  %1610 = vst [vmem:[#allocation3 + $0xd0] sm:$0xff] %v1578_v34  ;;  %v1653_v35 = vld [vmem:[#allocation2 + $0x1e8] sm:$0xff]  ;;  %v1654_v36 = vld [vmem:[#allocation2 + $0xf8] sm:$0xff]  ;;  %v1706_v40 = vpack.c.bf16 %v1656_v38, %v1655_v37  ;;  %v3260_v41 = vld [vmem:[#allocation3 + $0x80] sm:$0xf] }
 0x289   : > { %v1705_v39 = vpack.c.bf16 %v1654_v36, %v1653_v35  ;;  %v3668_v42 = vld [vmem:[#allocation3 + $0x8c] sm:$0xf0]  ;;  %v3666_v43 = vld [vmem:[#allocation3 + $0x84] sm:$0xf]  ;;  %v3262_v44 = vld [vmem:[#allocation3 + $0x90] sm:$0xf0] }
 0x28a   : > { %1738 = vst [vmem:[#allocation3 + $0xd8] sm:$0xff] %v1706_v40  ;;  %v3268_v45 = vld [vmem:[#allocation3 + $0x88] sm:$0xf]  ;;  %v3669_v46 = vld [vmem:[#allocation3 + $0x94] sm:$0xf0]  ;;  %v3261_v49 = vor.u32 %v3668_v42, %v3260_v41  ;;  %v3265_v50 = vor.u32 %v3666_v43, %v3262_v44  ;;  %v1659_v57 = vld [vmem:[#allocation2 + $0xf0] sm:$0xff] }
 0x28b   : > { %1737 = vst [vmem:[#allocation3 + $0xc8] sm:$0xff] %v1705_v39  ;;  %v3667_v47 = vld [vmem:[#allocation3 + $0x8c] sm:$0xf]  ;;  %v3270_v48 = vld [vmem:[#allocation3 + $0x98] sm:$0xf0]  ;;  %v3269_v51 = vor.u32 %v3669_v46, %v3268_v45  ;;  %v1708_v60 = vpack.c.bf16 %v1660_v58, %v1659_v57  ;;  %v1581_v14 = vld [vmem:[%s4214_s15 + $0x80] sm:$0xff] }
 0x28c   : > { %v3273_v52 = vor.u32 %v3667_v47, %v3270_v48  ;;  %v3276_v61 = vld [vmem:[#allocation3 + $0xa0] sm:$0xf]  ;;  %v3672_v62 = vld [vmem:[#allocation3 + $0xac] sm:$0xf0]  ;;  %v3670_v63 = vld [vmem:[#allocation3 + $0xa4] sm:$0xf] }
 0x28d   : > { %1740 = vst [vmem:[#allocation3 + $0xf8] sm:$0xff] %v1708_v60  ;;  %v3278_v0 = vld [vmem:[#allocation3 + $0xb0] sm:$0xf0]  ;;  %v3284_v1 = vld [vmem:[#allocation3 + $0xa8] sm:$0xf]  ;;  %v3277_v5 = vor.u32 %v3672_v62, %v3276_v61  ;;  %v1584_v35 = vld [vmem:[%s4214_s15 + $0x98] sm:$0xff] }
 0x28e   : > { %v3673_v2 = vld [vmem:[#allocation3 + $0xb4] sm:$0xf0]  ;;  %v3671_v3 = vld [vmem:[#allocation3 + $0xac] sm:$0xf]  ;;  %v3286_v4 = vld [vmem:[#allocation3 + $0xb8] sm:$0xf0]  ;;  %v3281_v6 = vor.u32 %v3670_v63, %v3278_v0 }
 0x28f   : > { %v3285_v7 = vor.u32 %v3673_v2, %v3284_v1  ;;  %v3289_v8 = vor.u32 %v3671_v3, %v3286_v4  ;;  %v1582_v15 = vld [vmem:[%s4214_s15 + $0x88] sm:$0xff]  ;;  %v3292_v17 = vld [vmem:[#allocation3 + $0xc0] sm:$0xf]  ;;  %v3676_v18 = vld [vmem:[#allocation3 + $0xcc] sm:$0xf0]  ;;  %1613 = vst [vmem:[#allocation3 + $0x100] sm:$0xff] %v1581_v14 }
 0x290   : > { %v3674_v19 = vld [vmem:[#allocation3 + $0xc4] sm:$0xf]  ;;  %v3294_v20 = vld [vmem:[#allocation3 + $0xd0] sm:$0xf0]  ;;  %1614 = vst [vmem:[#allocation3 + $0x110] sm:$0xff] %v1582_v15  ;;  %v3293_v25 = vor.u32 %v3676_v18, %v3292_v17  ;;  %v1675_v14 = vld [vmem:[#allocation2 + $0x1d8] sm:$0xff] }
 0x291   : > { %v3677_v22 = vld [vmem:[#allocation3 + $0xd4] sm:$0xf0]  ;;  %v3302_v24 = vld [vmem:[#allocation3 + $0xd8] sm:$0xf0]  ;;  %v3297_v26 = vor.u32 %v3674_v19, %v3294_v20  ;;  %v1583_v34 = vld [vmem:[%s4214_s15 + $0x90] sm:$0xff]  ;;  %1616 = vst [vmem:[#allocation3 + $0x130] sm:$0xff] %v1584_v35 }
 0x292   : > { %v3300_v21 = vld [vmem:[#allocation3 + $0xc8] sm:$0xf]  ;;  %v3675_v23 = vld [vmem:[#allocation3 + $0xcc] sm:$0xf]  ;;  %1615 = vst [vmem:[#allocation3 + $0x120] sm:$0xff] %v1583_v34  ;;  %v1676_v18 = vld [vmem:[#allocation2 + $0xd0] sm:$0xff] }
 0x293   : > { %v3301_v27 = vor.u32 %v3677_v22, %v3300_v21  ;;  %v3305_v28 = vor.u32 %v3675_v23, %v3302_v24  ;;  %v1587_v19 = vld [vmem:[%s4214_s15 + $0xb0] sm:$0xff]  ;;  %v1588_v20 = vld [vmem:[%s4214_s15 + $0xb8] sm:$0xff] }
 0x294   : > { %v3681_v42 = vld [vmem:[#allocation3 + $0xf4] sm:$0xf0]  ;;  %v3318_v44 = vld [vmem:[#allocation3 + $0xf8] sm:$0xf0]  ;;  %1619 = vst [vmem:[#allocation3 + $0x160] sm:$0xff] %v1587_v19 }
 0x295   : > { %2414 = vmatmul.bf16.gmra.mxu0 %v3213_v53  ;;  %v1579_v53 = vld [vmem:[%s4214_s15 + $0x70] sm:$0xff]  ;;  %1620 = vst [vmem:[#allocation3 + $0x170] sm:$0xff] %v1588_v20 }
 0x296   : > { %2503 = vmatmul.bf16.gmra.mxu1 %v3217_v54  ;;  %v1580_v54 = vld [vmem:[%s4214_s15 + $0x78] sm:$0xff]  ;;  %1611 = vst [vmem:[#allocation3 + $0xe0] sm:$0xff] %v1579_v53  ;;  %v3324_v57 = vld [vmem:[#allocation3 + $0x100] sm:$0xf]  ;;  %v3682_v58 = vld [vmem:[#allocation3 + $0x104] sm:$0xf] }
 0x297   : > { %2592 = vmatmul.bf16.gmra.mxu2 %v3221_v55  ;;  %1612 = vst [vmem:[#allocation3 + $0xf0] sm:$0xff] %v1580_v54  ;;  %v1657_v55 = vld [vmem:[#allocation2 + $0x1e0] sm:$0xff]  ;;  %v3684_v60 = vld [vmem:[#allocation3 + $0x10c] sm:$0xf0]  ;;  %v3326_v61 = vld [vmem:[#allocation3 + $0x110] sm:$0xf0] }
 0x298   : > { %2681 = vmatmul.bf16.gmra.mxu3 %v3225_v56  ;;  %v1658_v56 = vld [vmem:[#allocation2] sm:$0xff]  ;;  %v3325_v2 = vor.u32 %v3684_v60, %v3324_v57  ;;  %v3329_v3 = vor.u32 %v3682_v58, %v3326_v61 }
 0x299   : > { %v1707_v59 = vpack.c.bf16 %v1658_v56, %v1657_v55  ;;  %v1585_v54 = vld [vmem:[%s4214_s15 + $0xa0] sm:$0xff]  ;;  %v1586_v55 = vld [vmem:[%s4214_s15 + $0xa8] sm:$0xff] }
 0x29a   : > { %1617 = vst [vmem:[#allocation3 + $0x140] sm:$0xff] %v1585_v54  ;;  %v3340_v24 = vld [vmem:[#allocation3 + $0x120] sm:$0xf]  ;;  %v1680_v54 = vld [vmem:[#allocation2 + $0x1c8] sm:$0xff] }
 0x29b   : > { %1739 = vst [vmem:[#allocation3 + $0xe8] sm:$0xff] %v1707_v59  ;;  %v4542_v59 = vld [vmem:[%s4674_s6] ss:$0 sm:$0xff] }
 0x29c   : > { %1618 = vst [vmem:[#allocation3 + $0x150] sm:$0xff] %v1586_v55  ;;  %v1589_v55 = vld [vmem:[%s4214_s15 + $0xc0] sm:$0xff] }
 0x29d   : > { %v3308_v37 = vld [vmem:[#allocation3 + $0xe0] sm:$0xf]  ;;  %v3678_v39 = vld [vmem:[#allocation3 + $0xe4] sm:$0xf]  ;;  %1621 = vst [vmem:[#allocation3 + $0x180] sm:$0xff] %v1589_v55 }
 0x29e   : > { %v3680_v38 = vld [vmem:[#allocation3 + $0xec] sm:$0xf0]  ;;  %v3310_v40 = vld [vmem:[#allocation3 + $0xf0] sm:$0xf0] }
 0x29f   : > { %v3309_v45 = vor.u32 %v3680_v38, %v3308_v37  ;;  %v3313_v46 = vor.u32 %v3678_v39, %v3310_v40 }
 0x2a1   : > { %v3356_v61 = vld [vmem:[#allocation3 + $0x140] sm:$0xf] }
 0x2a2   : > { %v3316_v41 = vld [vmem:[#allocation3 + $0xe8] sm:$0xf]  ;;  %v3679_v43 = vld [vmem:[#allocation3 + $0xec] sm:$0xf] }
 0x2a3   : > { %v3317_v47 = vor.u32 %v3681_v42, %v3316_v41  ;;  %v3321_v48 = vor.u32 %v3679_v43, %v3318_v44 }
 0x2a5   : > { %2419 = vmatmul.bf16.gmra.mxu0 %v3229_v9  ;;  %v1661_v9 = vld [vmem:[#allocation2 + $0x148] sm:$0xff] }
 0x2a6   : > { %2508 = vmatmul.bf16.gmra.mxu1 %v3233_v10  ;;  %v1662_v10 = vld [vmem:[#allocation2 + $0x1d0] sm:$0xff] }
 0x2a7   : > { %2597 = vmatmul.bf16.gmra.mxu2 %v3237_v11  ;;  %v1663_v11 = vld [vmem:[#allocation2 + $0x100] sm:$0xff]  ;;  %v1709_v13 = vpack.c.bf16 %v1662_v10, %v1661_v9 }
 0x2a8   : > { %2686 = vmatmul.bf16.gmra.mxu3 %v3241_v12  ;;  %v1664_v12 = vld [vmem:[#allocation2 + $0xc8] sm:$0xff] }
 0x2a9   : > { %v1710_v16 = vpack.c.bf16 %v1664_v12, %v1663_v11  ;;  %1741 = vst [vmem:[#allocation3 + $0x108] sm:$0xff] %v1709_v13  ;;  %v1673_v12 = vld [vmem:[#allocation2 + $0x70] sm:$0xff] }
 0x2aa   : > { %v1674_v13 = vld [vmem:[#allocation2 + $0x90] sm:$0xff] }
 0x2ab   : > { %1742 = vst [vmem:[#allocation3 + $0x118] sm:$0xff] %v1710_v16  ;;  %v1715_v21 = vpack.c.bf16 %v1674_v13, %v1673_v12 }
 0x2ad   : > { %1747 = vst [vmem:[#allocation3 + $0x168] sm:$0xff] %v1715_v21  ;;  %v1681_v21 = vld [vmem:[#allocation2 + $0x170] sm:$0xff] }
 0x2b0   : > { %v3332_v62 = vld [vmem:[#allocation3 + $0x108] sm:$0xf]  ;;  %v3683_v63 = vld [vmem:[#allocation3 + $0x10c] sm:$0xf] }
 0x2b2   : > { %v3685_v0 = vld [vmem:[#allocation3 + $0x114] sm:$0xf0]  ;;  %v3334_v1 = vld [vmem:[#allocation3 + $0x118] sm:$0xf0] }
 0x2b5   : > { %2424 = vmatmul.bf16.gmra.mxu0 %v3245_v29  ;;  %v1665_v29 = vld [vmem:[#allocation2 + $0x40] sm:$0xff] }
 0x2b6   : > { %2513 = vmatmul.bf16.gmra.mxu1 %v3249_v30  ;;  %v1666_v30 = vld [vmem:[#allocation2 + $0x1f8] sm:$0xff] }
 0x2b7   : > { %2602 = vmatmul.bf16.gmra.mxu2 %v3253_v31  ;;  %v1667_v31 = vld [vmem:[#allocation2 + $0x20] sm:$0xff]  ;;  %v1711_v33 = vpack.c.bf16 %v1666_v30, %v1665_v29 }
 0x2b8   : > { %2691 = vmatmul.bf16.gmra.mxu3 %v3257_v32  ;;  %v1668_v32 = vld [vmem:[#allocation2 + $0x128] sm:$0xff] }
 0x2b9   : > { %v1712_v36 = vpack.c.bf16 %v1668_v32, %v1667_v31  ;;  %1743 = vst [vmem:[#allocation3 + $0x128] sm:$0xff] %v1711_v33 }
 0x2bb   : > { %1744 = vst [vmem:[#allocation3 + $0x138] sm:$0xff] %v1712_v36 }
 0x2c0   : > { %v3348_v29 = vld [vmem:[#allocation3 + $0x128] sm:$0xf]  ;;  %v3687_v30 = vld [vmem:[#allocation3 + $0x12c] sm:$0xf] }
 0x2c2   : > { %v3689_v31 = vld [vmem:[#allocation3 + $0x134] sm:$0xf0]  ;;  %v3350_v32 = vld [vmem:[#allocation3 + $0x138] sm:$0xf0] }
 0x2c3   : > { %v3349_v41 = vor.u32 %v3689_v31, %v3348_v29  ;;  %v3353_v42 = vor.u32 %v3687_v30, %v3350_v32  ;;  %v1592_v29 = vld [vmem:[%s4214_s15 + $0xd8] sm:$0xff] }
 0x2c4   : > { %1624 = vst [vmem:[#allocation3 + $0x1b0] sm:$0xff] %v1592_v29 }
 0x2c5   : > { %2429 = vmatmul.bf16.gmra.mxu0 %v3261_v49  ;;  %v1669_v49 = vld [vmem:[#allocation2 + $0x1a0] sm:$0xff] }
 0x2c6   : > { %2518 = vmatmul.bf16.gmra.mxu1 %v3265_v50  ;;  %v1670_v50 = vld [vmem:[#allocation2 + $0x1f0] sm:$0xff] }
 0x2c7   : > { %2607 = vmatmul.bf16.gmra.mxu2 %v3269_v51  ;;  %v1671_v51 = vld [vmem:[#allocation2 + $0xe8] sm:$0xff]  ;;  %v1713_v53 = vpack.c.bf16 %v1670_v50, %v1669_v49 }
 0x2c8   : > { %2696 = vmatmul.bf16.gmra.mxu3 %v3273_v52  ;;  %v1672_v52 = vld [vmem:[#allocation2 + $0x78] sm:$0xff]  ;;  %v1678_v49 = vld [vmem:[#allocation2 + $0x88] sm:$0xff] }
 0x2c9   : > { %v1714_v56 = vpack.c.bf16 %v1672_v52, %v1671_v51  ;;  %1745 = vst [vmem:[#allocation3 + $0x148] sm:$0xff] %v1713_v53  ;;  %v1679_v50 = vld [vmem:[#allocation2 + $0xa8] sm:$0xff] }
 0x2cb   : > { %1746 = vst [vmem:[#allocation3 + $0x158] sm:$0xff] %v1714_v56  ;;  %v1590_v56 = vld [vmem:[%s4214_s15 + $0xc8] sm:$0xff] }
 0x2cc   : > { %1622 = vst [vmem:[#allocation3 + $0x190] sm:$0xff] %v1590_v56 }
 0x2d5   : > { %2434 = vmatmul.bf16.gmra.mxu0 %v3277_v5 }
 0x2d6   : > { %2523 = vmatmul.bf16.gmra.mxu1 %v3281_v6  ;;  %v3333_v6 = vor.u32 %v3685_v0, %v3332_v62  ;;  %v3690_v62 = vld [vmem:[#allocation3 + $0x144] sm:$0xf]  ;;  %v3692_v0 = vld [vmem:[#allocation3 + $0x14c] sm:$0xf0] }
 0x2d7   : > { %2612 = vmatmul.bf16.gmra.mxu2 %v3285_v7  ;;  %v3337_v7 = vor.u32 %v3683_v63, %v3334_v1  ;;  %v1718_v63 = vpack.c.bf16 %v1680_v54, %v1679_v50  ;;  %v3358_v1 = vld [vmem:[#allocation3 + $0x150] sm:$0xf0] }
 0x2d8   : > { %2701 = vmatmul.bf16.gmra.mxu3 %v3289_v8 }
 0x2d9   : > { %1750 = vst [vmem:[#allocation3 + $0x198] sm:$0xff] %v1718_v63 }
 0x2e5   : > { %2439 = vmatmul.bf16.gmra.mxu0 %v3293_v25  ;;  %v1716_v25 = vpack.c.bf16 %v1676_v18, %v1675_v14 }
 0x2e6   : > { %2528 = vmatmul.bf16.gmra.mxu1 %v3297_v26  ;;  %v3688_v26 = vld [vmem:[#allocation3 + $0x12c] sm:$0xf0] }
 0x2e7   : > { %2617 = vmatmul.bf16.gmra.mxu2 %v3301_v27  ;;  %v3686_v27 = vld [vmem:[#allocation3 + $0x124] sm:$0xf]  ;;  %1748 = vst [vmem:[#allocation3 + $0x178] sm:$0xff] %v1716_v25  ;;  %v3341_v36 = vor.u32 %v3688_v26, %v3340_v24 }
 0x2e8   : > { %2706 = vmatmul.bf16.gmra.mxu3 %v3305_v28  ;;  %v3342_v28 = vld [vmem:[#allocation3 + $0x130] sm:$0xf0] }
 0x2e9   : > { %v3345_v37 = vor.u32 %v3686_v27, %v3342_v28  ;;  %v1684_v27 = vld [vmem:[#allocation2 + $0x190] sm:$0xff] }
 0x2ea   : > { %v1591_v28 = vld [vmem:[%s4214_s15 + $0xd0] sm:$0xff] }
 0x2eb   : > { %1623 = vst [vmem:[#allocation3 + $0x1a0] sm:$0xff] %v1591_v28 }
 0x2f5   : > { %2444 = vmatmul.bf16.gmra.mxu0 %v3309_v45 }
 0x2f6   : > { %2533 = vmatmul.bf16.gmra.mxu1 %v3313_v46 }
 0x2f7   : > { %2622 = vmatmul.bf16.gmra.mxu2 %v3317_v47 }
 0x2f8   : > { %2711 = vmatmul.bf16.gmra.mxu3 %v3321_v48  ;;  %v1677_v48 = vld [vmem:[#allocation2 + $0xb8] sm:$0xff] }
 0x2f9   : > { %v1717_v57 = vpack.c.bf16 %v1678_v49, %v1677_v48 }
 0x2fb   : > { %1749 = vst [vmem:[#allocation3 + $0x188] sm:$0xff] %v1717_v57  ;;  %v1685_v57 = vld [vmem:[#allocation2 + $0x198] sm:$0xff] }
 0x302   : > { %v2410_v4 = vpop.f32.mrf.mxu0 }
 0x303   : > { %v2499_v5 = vpop.f32.mrf.mxu1  ;;  %v2411_v8 = vadd.f32 %v4542_v59, %v2410_v4  ;;  %v3693_v4 = vld [vmem:[#allocation3 + $0x154] sm:$0xf0] }
 0x305   : > { %2449 = vmatmul.bf16.gmra.mxu0 %v3325_v2  ;;  %v2500_v9 = vadd.f32 %v2499_v5, %v2411_v8  ;;  %v3364_v2 = vld [vmem:[#allocation3 + $0x148] sm:$0xf]  ;;  %v3366_v5 = vld [vmem:[#allocation3 + $0x158] sm:$0xf0] }
 0x306   : > { %2538 = vmatmul.bf16.gmra.mxu1 %v3329_v3  ;;  %v3691_v3 = vld [vmem:[#allocation3 + $0x14c] sm:$0xf]  ;;  %v3365_v14 = vor.u32 %v3693_v4, %v3364_v2 }
 0x307   : > { %2627 = vmatmul.bf16.gmra.mxu2 %v3333_v6  ;;  %v1594_v2 = vld [vmem:[%s4214_s15 + $0xe8] sm:$0xff] }
 0x308   : > { %2716 = vmatmul.bf16.gmra.mxu3 %v3337_v7  ;;  %1626 = vst [vmem:[#allocation3 + $0x1d0] sm:$0xff] %v1594_v2 }
 0x30a   : > { %v2588_v10 = vpop.f32.mrf.mxu2  ;;  %v2412_v16 = vpop.f32.mrf.mxu0 }
 0x30b   : > { %v2677_v11 = vpop.f32.mrf.mxu3  ;;  %v2589_v15 = vadd.f32 %v2588_v10, %v2500_v9  ;;  %v2501_v17 = vpop.f32.mrf.mxu1  ;;  %v2413_v23 = vadd.f32 %v4542_v59, %v2412_v16  ;;  %v3357_v9 = vor.u32 %v3692_v0, %v3356_v61  ;;  %v3361_v10 = vor.u32 %v3690_v62, %v3358_v1  ;;  %v1688_v0 = vld [vmem:[#allocation2 + $0x1c0] sm:$0xff] }
 0x30c   : > { %v1593_v1 = vld [vmem:[%s4214_s15 + $0xe0] sm:$0xff] }
 0x30d   : > { %v2678_v22 = vadd.f32 %v2677_v11, %v2589_v15  ;;  %v2502_v33 = vadd.f32 %v2501_v17, %v2413_v23  ;;  %v3369_v15 = vor.u32 %v3691_v3, %v3366_v5  ;;  %v1683_v23 = vld [vmem:[#allocation2 + $0x68] sm:$0xff]  ;;  %1625 = vst [vmem:[#allocation3 + $0x1c0] sm:$0xff] %v1593_v1 }
 0x30f   : > { %2757 = vst [vmem:[%s4223_s23] sm:$0xff] %v2678_v22  ;;  %v1682_v22 = vld [vmem:[#allocation2 + $0x178] sm:$0xff] }
 0x310   : > { %v1719_v30 = vpack.c.bf16 %v1682_v22, %v1681_v21 }
 0x312   : > { %v2590_v34 = vpop.f32.mrf.mxu2  ;;  %v2415_v39 = vpop.f32.mrf.mxu0  ;;  %1751 = vst [vmem:[#allocation3 + $0x1a8] sm:$0xff] %v1719_v30  ;;  %v1689_v30 = vld [vmem:[#allocation2 + $0x158] sm:$0xff] }
 0x313   : > { %v2679_v35 = vpop.f32.mrf.mxu3  ;;  %v2591_v38 = vadd.f32 %v2590_v34, %v2502_v33  ;;  %v2504_v40 = vpop.f32.mrf.mxu1  ;;  %v2416_v43 = vadd.f32 %v4542_v59, %v2415_v39  ;;  %v3372_v33 = vld [vmem:[#allocation3 + $0x160] sm:$0xf]  ;;  %v3694_v34 = vld [vmem:[#allocation3 + $0x164] sm:$0xf]  ;;  %v3695_v39 = vld [vmem:[#allocation3 + $0x16c] sm:$0xf] }
 0x315   : > { %v2680_v44 = vadd.f32 %v2679_v35, %v2591_v38  ;;  %2454 = vmatmul.bf16.gmra.mxu0 %v3341_v36  ;;  %v2505_v45 = vadd.f32 %v2504_v40, %v2416_v43  ;;  %v1720_v35 = vpack.c.bf16 %v1684_v27, %v1683_v23  ;;  %v3696_v36 = vld [vmem:[#allocation3 + $0x16c] sm:$0xf0]  ;;  %v3380_v38 = vld [vmem:[#allocation3 + $0x168] sm:$0xf]  ;;  %v3697_v40 = vld [vmem:[#allocation3 + $0x174] sm:$0xf0] }
 0x316   : > { %2543 = vmatmul.bf16.gmra.mxu1 %v3345_v37  ;;  %v3374_v37 = vld [vmem:[#allocation3 + $0x170] sm:$0xf0]  ;;  %v3381_v50 = vor.u32 %v3697_v40, %v3380_v38  ;;  %v1596_v38 = vld [vmem:[%s4214_s15 + $0xf8] sm:$0xff] }
 0x317   : > { %2758 = vst [vmem:[%s4223_s23 + $0x8] sm:$0xff] %v2680_v44  ;;  %2632 = vmatmul.bf16.gmra.mxu2 %v3349_v41  ;;  %v3382_v41 = vld [vmem:[#allocation3 + $0x178] sm:$0xf0] }
 0x318   : > { %2721 = vmatmul.bf16.gmra.mxu3 %v3353_v42  ;;  %1752 = vst [vmem:[#allocation3 + $0x1b8] sm:$0xff] %v1720_v35 }
 0x319   : > { %1628 = vst [vmem:[#allocation3 + $0x1f0] sm:$0xff] %v1596_v38 }
 0x31a   : > { %v2593_v46 = vpop.f32.mrf.mxu2  ;;  %v2417_v52 = vpop.f32.mrf.mxu0 }
 0x31b   : > { %v2682_v47 = vpop.f32.mrf.mxu3  ;;  %v2594_v51 = vadd.f32 %v2593_v46, %v2505_v45  ;;  %v2506_v53 = vpop.f32.mrf.mxu1  ;;  %v2418_v60 = vadd.f32 %v4542_v59, %v2417_v52  ;;  %v3373_v45 = vor.u32 %v3696_v36, %v3372_v33  ;;  %v3377_v46 = vor.u32 %v3694_v34, %v3374_v37  ;;  %v1692_v36 = vld [vmem:[#allocation2 + $0xa0] sm:$0xff]  ;;  %v1595_v37 = vld [vmem:[%s4214_s15 + $0xf0] sm:$0xff] }
 0x31c   : > { %1627 = vst [vmem:[#allocation3 + $0x1e0] sm:$0xff] %v1595_v37 }
 0x31d   : > { %v2683_v58 = vadd.f32 %v2682_v47, %v2594_v51  ;;  %v2507_v6 = vadd.f32 %v2506_v53, %v2418_v60  ;;  %v3385_v51 = vor.u32 %v3695_v39, %v3382_v41  ;;  %v1687_v60 = vld [vmem:[#allocation2 + $0xc0] sm:$0xff] }
 0x31f   : > { %2759 = vst [vmem:[%s4223_s23 + $0x10] sm:$0xff] %v2683_v58  ;;  %v1686_v58 = vld [vmem:[#allocation2 + $0x38] sm:$0xff] }
 0x320   : > { %v1721_v3 = vpack.c.bf16 %v1686_v58, %v1685_v57  ;;  %v3712_v37 = vld [vmem:[#allocation3 + $0x1ec] sm:$0xf0] }
 0x322   : > { %v2595_v7 = vpop.f32.mrf.mxu2  ;;  %v2420_v12 = vpop.f32.mrf.mxu0  ;;  %1753 = vst [vmem:[#allocation3 + $0x1c8] sm:$0xff] %v1721_v3 }
 0x323   : > { %v2684_v8 = vpop.f32.mrf.mxu3  ;;  %v2596_v11 = vadd.f32 %v2595_v7, %v2507_v6  ;;  %v2509_v13 = vpop.f32.mrf.mxu1  ;;  %v2421_v16 = vadd.f32 %v4542_v59, %v2420_v12  ;;  %v3388_v6 = vld [vmem:[#allocation3 + $0x180] sm:$0xf]  ;;  %v3698_v7 = vld [vmem:[#allocation3 + $0x184] sm:$0xf]  ;;  %v3699_v12 = vld [vmem:[#allocation3 + $0x18c] sm:$0xf] }
 0x324   : > { %v3710_v38 = vld [vmem:[#allocation3 + $0x1e4] sm:$0xf] }
 0x325   : > { %v2685_v17 = vadd.f32 %v2684_v8, %v2596_v11  ;;  %2459 = vmatmul.bf16.gmra.mxu0 %v3357_v9  ;;  %v2510_v18 = vadd.f32 %v2509_v13, %v2421_v16  ;;  %v1722_v8 = vpack.c.bf16 %v1688_v0, %v1687_v60  ;;  %v3700_v9 = vld [vmem:[#allocation3 + $0x18c] sm:$0xf0]  ;;  %v3396_v11 = vld [vmem:[#allocation3 + $0x188] sm:$0xf]  ;;  %v3701_v13 = vld [vmem:[#allocation3 + $0x194] sm:$0xf0] }
 0x326   : > { %2548 = vmatmul.bf16.gmra.mxu1 %v3361_v10  ;;  %v3390_v10 = vld [vmem:[#allocation3 + $0x190] sm:$0xf0]  ;;  %v3397_v23 = vor.u32 %v3701_v13, %v3396_v11 }
 0x327   : > { %2760 = vst [vmem:[%s4223_s23 + $0x18] sm:$0xff] %v2685_v17  ;;  %2637 = vmatmul.bf16.gmra.mxu2 %v3365_v14  ;;  %v3398_v14 = vld [vmem:[#allocation3 + $0x198] sm:$0xf0]  ;;  %v3422_v11 = vld [vmem:[#allocation3 + $0x1d0] sm:$0xf0] }
 0x328   : > { %2726 = vmatmul.bf16.gmra.mxu3 %v3369_v15  ;;  %1754 = vst [vmem:[#allocation3 + $0x1d8] sm:$0xff] %v1722_v8  ;;  %v3420_v8 = vld [vmem:[#allocation3 + $0x1c0] sm:$0xf] }
 0x32a   : > { %v2598_v19 = vpop.f32.mrf.mxu2  ;;  %v2422_v25 = vpop.f32.mrf.mxu0 }
 0x32b   : > { %v2687_v20 = vpop.f32.mrf.mxu3  ;;  %v2599_v24 = vadd.f32 %v2598_v19, %v2510_v18  ;;  %v2511_v26 = vpop.f32.mrf.mxu1  ;;  %v2423_v32 = vadd.f32 %v4542_v59, %v2422_v25  ;;  %v3389_v18 = vor.u32 %v3700_v9, %v3388_v6  ;;  %v3393_v19 = vor.u32 %v3698_v7, %v3390_v10  ;;  %v3708_v9 = vld [vmem:[#allocation3 + $0x1cc] sm:$0xf0]  ;;  %v3706_v10 = vld [vmem:[#allocation3 + $0x1c4] sm:$0xf] }
 0x32d   : > { %v2688_v31 = vadd.f32 %v2687_v20, %v2599_v24  ;;  %v2512_v42 = vadd.f32 %v2511_v26, %v2423_v32  ;;  %v3401_v24 = vor.u32 %v3699_v12, %v3398_v14  ;;  %v1691_v32 = vld [vmem:[#allocation2 + $0x58] sm:$0xff]  ;;  %v3428_v12 = vld [vmem:[#allocation3 + $0x1c8] sm:$0xf]  ;;  %v3707_v14 = vld [vmem:[#allocation3 + $0x1cc] sm:$0xf] }
 0x32f   : > { %2761 = vst [vmem:[%s4223_s23 + $0x20] sm:$0xff] %v2688_v31  ;;  %v1690_v31 = vld [vmem:[#allocation2 + $0x10] sm:$0xff]  ;;  %v3709_v13 = vld [vmem:[#allocation3 + $0x1d4] sm:$0xf0] }
 0x330   : > { %v1723_v39 = vpack.c.bf16 %v1690_v31, %v1689_v30 }
 0x332   : > { %v2600_v43 = vpop.f32.mrf.mxu2  ;;  %v2425_v48 = vpop.f32.mrf.mxu0  ;;  %1755 = vst [vmem:[#allocation3 + $0x1e8] sm:$0xff] %v1723_v39  ;;  %v3438_v39 = vld [vmem:[#allocation3 + $0x1f0] sm:$0xf0] }
 0x333   : > { %v2689_v44 = vpop.f32.mrf.mxu3  ;;  %v2601_v47 = vadd.f32 %v2600_v43, %v2512_v42  ;;  %v2514_v49 = vpop.f32.mrf.mxu1  ;;  %v2426_v52 = vadd.f32 %v4542_v59, %v2425_v48  ;;  %v3404_v42 = vld [vmem:[#allocation3 + $0x1a0] sm:$0xf]  ;;  %v3702_v43 = vld [vmem:[#allocation3 + $0x1a4] sm:$0xf]  ;;  %v3703_v48 = vld [vmem:[#allocation3 + $0x1ac] sm:$0xf] }
 0x335   : > { %v2690_v53 = vadd.f32 %v2689_v44, %v2601_v47  ;;  %2464 = vmatmul.bf16.gmra.mxu0 %v3373_v45  ;;  %v2515_v54 = vadd.f32 %v2514_v49, %v2426_v52  ;;  %v1724_v44 = vpack.c.bf16 %v1692_v36, %v1691_v32  ;;  %v3704_v45 = vld [vmem:[#allocation3 + $0x1ac] sm:$0xf0]  ;;  %v3412_v47 = vld [vmem:[#allocation3 + $0x1a8] sm:$0xf]  ;;  %v3705_v49 = vld [vmem:[#allocation3 + $0x1b4] sm:$0xf0] }
 0x336   : > { %2553 = vmatmul.bf16.gmra.mxu1 %v3377_v46  ;;  %v3406_v46 = vld [vmem:[#allocation3 + $0x1b0] sm:$0xf0]  ;;  %v3413_v60 = vor.u32 %v3705_v49, %v3412_v47  ;;  %v3436_v36 = vld [vmem:[#allocation3 + $0x1e0] sm:$0xf] }
 0x337   : > { %2762 = vst [vmem:[%s4223_s23 + $0x28] sm:$0xff] %v2690_v53  ;;  %2642 = vmatmul.bf16.gmra.mxu2 %v3381_v50  ;;  %v3414_v50 = vld [vmem:[#allocation3 + $0x1b8] sm:$0xf0]  ;;  %v3437_v47 = vor.u32 %v3712_v37, %v3436_v36 }
 0x338   : > { %2731 = vmatmul.bf16.gmra.mxu3 %v3385_v51  ;;  %1756 = vst [vmem:[#allocation3 + $0x1f8] sm:$0xff] %v1724_v44 }
 0x33a   : > { %v2603_v55 = vpop.f32.mrf.mxu2  ;;  %v2427_v62 = vpop.f32.mrf.mxu0 }
 0x33b   : > { %v2692_v56 = vpop.f32.mrf.mxu3  ;;  %v2604_v61 = vadd.f32 %v2603_v55, %v2515_v54  ;;  %v2516_v63 = vpop.f32.mrf.mxu1  ;;  %v2428_v5 = vadd.f32 %v4542_v59, %v2427_v62  ;;  %v3405_v54 = vor.u32 %v3704_v45, %v3404_v42  ;;  %v3409_v55 = vor.u32 %v3702_v43, %v3406_v46  ;;  %v3711_v42 = vld [vmem:[#allocation3 + $0x1ec] sm:$0xf] }
 0x33d   : > { %v2693_v4 = vadd.f32 %v2692_v56, %v2604_v61  ;;  %v2517_v15 = vadd.f32 %v2516_v63, %v2428_v5  ;;  %v3417_v61 = vor.u32 %v3703_v48, %v3414_v50  ;;  %v3441_v48 = vor.u32 %v3710_v38, %v3438_v39 }
 0x33f   : > { %2763 = vst [vmem:[%s4223_s23 + $0x30] sm:$0xff] %v2693_v4  ;;  %v3446_v43 = vld [vmem:[#allocation3 + $0x1f8] sm:$0xf0] }
 0x342   : > { %v2605_v16 = vpop.f32.mrf.mxu2  ;;  %v2430_v21 = vpop.f32.mrf.mxu0 }
 0x343   : > { %v2694_v17 = vpop.f32.mrf.mxu3  ;;  %v2606_v20 = vadd.f32 %v2605_v16, %v2517_v15  ;;  %v2519_v22 = vpop.f32.mrf.mxu1  ;;  %v2431_v25 = vadd.f32 %v4542_v59, %v2430_v21  ;;  %v3430_v15 = vld [vmem:[#allocation3 + $0x1d8] sm:$0xf0] }
 0x345   : > { %v2695_v26 = vadd.f32 %v2694_v17, %v2606_v20  ;;  %2469 = vmatmul.bf16.gmra.mxu0 %v3389_v18  ;;  %v2520_v27 = vadd.f32 %v2519_v22, %v2431_v25  ;;  %v3425_v20 = vor.u32 %v3706_v10, %v3422_v11  ;;  %v3433_v25 = vor.u32 %v3707_v14, %v3430_v15 }
 0x346   : > { %2558 = vmatmul.bf16.gmra.mxu1 %v3393_v19  ;;  %v3421_v19 = vor.u32 %v3708_v9, %v3420_v8 }
 0x347   : > { %2764 = vst [vmem:[%s4223_s23 + $0x38] sm:$0xff] %v2695_v26  ;;  %2647 = vmatmul.bf16.gmra.mxu2 %v3397_v23 }
 0x348   : > { %2736 = vmatmul.bf16.gmra.mxu3 %v3401_v24  ;;  %v3429_v24 = vor.u32 %v3709_v13, %v3428_v12 }
 0x34a   : > { %v2608_v28 = vpop.f32.mrf.mxu2  ;;  %v2432_v34 = vpop.f32.mrf.mxu0 }
 0x34b   : > { %v2697_v29 = vpop.f32.mrf.mxu3  ;;  %v2609_v33 = vadd.f32 %v2608_v28, %v2520_v27  ;;  %v2521_v35 = vpop.f32.mrf.mxu1  ;;  %v2433_v41 = vadd.f32 %v4542_v59, %v2432_v34 }
 0x34d   : > { %v2698_v40 = vadd.f32 %v2697_v29, %v2609_v33  ;;  %v2522_v51 = vadd.f32 %v2521_v35, %v2433_v41  ;;  %v3713_v41 = vld [vmem:[#allocation3 + $0x1f4] sm:$0xf0] }
 0x34f   : > { %2765 = vst [vmem:[%s4223_s23 + $0x40] sm:$0xff] %v2698_v40  ;;  %v3444_v40 = vld [vmem:[#allocation3 + $0x1e8] sm:$0xf] }
 0x352   : > { %v2610_v52 = vpop.f32.mrf.mxu2  ;;  %v2435_v57 = vpop.f32.mrf.mxu0 }
 0x353   : > { %v2699_v53 = vpop.f32.mrf.mxu3  ;;  %v2611_v56 = vadd.f32 %v2610_v52, %v2522_v51  ;;  %v2524_v58 = vpop.f32.mrf.mxu1  ;;  %v2436_v62 = vadd.f32 %v4542_v59, %v2435_v57  ;;  %v3445_v52 = vor.u32 %v3713_v41, %v3444_v40 }
 0x355   : > { %v2700_v63 = vadd.f32 %v2699_v53, %v2611_v56  ;;  %2474 = vmatmul.bf16.gmra.mxu0 %v3405_v54  ;;  %v2525_v0 = vadd.f32 %v2524_v58, %v2436_v62  ;;  %v3449_v53 = vor.u32 %v3711_v42, %v3446_v43 }
 0x356   : > { %2563 = vmatmul.bf16.gmra.mxu1 %v3409_v55 }
 0x357   : > { %2766 = vst [vmem:[%s4223_s23 + $0x48] sm:$0xff] %v2700_v63  ;;  %2652 = vmatmul.bf16.gmra.mxu2 %v3413_v60 }
 0x358   : > { %2741 = vmatmul.bf16.gmra.mxu3 %v3417_v61 }
 0x35a   : > { %v2613_v1 = vpop.f32.mrf.mxu2  ;;  %v2437_v4 = vpop.f32.mrf.mxu0 }
 0x35b   : > { %v2702_v2 = vpop.f32.mrf.mxu3  ;;  %v2614_v3 = vadd.f32 %v2613_v1, %v2525_v0  ;;  %v2526_v5 = vpop.f32.mrf.mxu1  ;;  %v2438_v7 = vadd.f32 %v4542_v59, %v2437_v4 }
 0x35d   : > { %v2703_v6 = vadd.f32 %v2702_v2, %v2614_v3  ;;  %v2527_v16 = vadd.f32 %v2526_v5, %v2438_v7 }
 0x35f   : > { %2767 = vst [vmem:[%s4223_s23 + $0x50] sm:$0xff] %v2703_v6 }
 0x362   : > { %v2615_v17 = vpop.f32.mrf.mxu2  ;;  %v2440_v22 = vpop.f32.mrf.mxu0 }
 0x363   : > { %v2704_v18 = vpop.f32.mrf.mxu3  ;;  %v2616_v21 = vadd.f32 %v2615_v17, %v2527_v16  ;;  %v2529_v23 = vpop.f32.mrf.mxu1  ;;  %v2441_v26 = vadd.f32 %v4542_v59, %v2440_v22 }
 0x365   : > { %v2705_v27 = vadd.f32 %v2704_v18, %v2616_v21  ;;  %2479 = vmatmul.bf16.gmra.mxu0 %v3421_v19  ;;  %v2530_v28 = vadd.f32 %v2529_v23, %v2441_v26 }
 0x366   : > { %2568 = vmatmul.bf16.gmra.mxu1 %v3425_v20 }
 0x367   : > { %2768 = vst [vmem:[%s4223_s23 + $0x58] sm:$0xff] %v2705_v27  ;;  %2657 = vmatmul.bf16.gmra.mxu2 %v3429_v24 }
 0x368   : > { %2746 = vmatmul.bf16.gmra.mxu3 %v3433_v25 }
 0x36a   : > { %v2618_v29 = vpop.f32.mrf.mxu2  ;;  %v2442_v32 = vpop.f32.mrf.mxu0 }
 0x36b   : > { %v2707_v30 = vpop.f32.mrf.mxu3  ;;  %v2619_v31 = vadd.f32 %v2618_v29, %v2530_v28  ;;  %v2531_v33 = vpop.f32.mrf.mxu1  ;;  %v2443_v35 = vadd.f32 %v4542_v59, %v2442_v32 }
 0x36d   : > { %v2708_v34 = vadd.f32 %v2707_v30, %v2619_v31  ;;  %v2532_v44 = vadd.f32 %v2531_v33, %v2443_v35 }
 0x36f   : > { %2769 = vst [vmem:[%s4223_s23 + $0x60] sm:$0xff] %v2708_v34 }
 0x372   : > { %v2620_v45 = vpop.f32.mrf.mxu2  ;;  %v2445_v50 = vpop.f32.mrf.mxu0 }
 0x373   : > { %v2709_v46 = vpop.f32.mrf.mxu3  ;;  %v2621_v49 = vadd.f32 %v2620_v45, %v2532_v44  ;;  %v2534_v51 = vpop.f32.mrf.mxu1  ;;  %v2446_v54 = vadd.f32 %v4542_v59, %v2445_v50 }
 0x375   : > { %v2710_v55 = vadd.f32 %v2709_v46, %v2621_v49  ;;  %2484 = vmatmul.bf16.gmra.mxu0 %v3437_v47  ;;  %v2535_v56 = vadd.f32 %v2534_v51, %v2446_v54 }
 0x376   : > { %2573 = vmatmul.bf16.gmra.mxu1 %v3441_v48 }
 0x377   : > { %2770 = vst [vmem:[%s4223_s23 + $0x68] sm:$0xff] %v2710_v55  ;;  %2662 = vmatmul.bf16.gmra.mxu2 %v3445_v52 }
 0x378   : > { %2751 = vmatmul.bf16.gmra.mxu3 %v3449_v53 }
 0x37a   : > { %v2623_v57 = vpop.f32.mrf.mxu2  ;;  %v2447_v61 = vpop.f32.mrf.mxu0 }
 0x37b   : > { %v2712_v58 = vpop.f32.mrf.mxu3  ;;  %v2624_v60 = vadd.f32 %v2623_v57, %v2535_v56  ;;  %v2536_v62 = vpop.f32.mrf.mxu1  ;;  %v2448_v0 = vadd.f32 %v4542_v59, %v2447_v61 }
 0x37d   : > { %v2713_v63 = vadd.f32 %v2712_v58, %v2624_v60  ;;  %v2537_v1 = vadd.f32 %v2536_v62, %v2448_v0 }
 0x37f   : > { %2771 = vst [vmem:[%s4223_s23 + $0x70] sm:$0xff] %v2713_v63 }
 0x382   : > { %v2625_v2 = vpop.f32.mrf.mxu2  ;;  %v2450_v5 = vpop.f32.mrf.mxu0 }
 0x383   : > { %v2714_v3 = vpop.f32.mrf.mxu3  ;;  %v2626_v4 = vadd.f32 %v2625_v2, %v2537_v1  ;;  %v2539_v6 = vpop.f32.mrf.mxu1  ;;  %v2451_v7 = vadd.f32 %v4542_v59, %v2450_v5 }
 0x385   : > { %v2715_v8 = vadd.f32 %v2714_v3, %v2626_v4  ;;  %v2540_v9 = vadd.f32 %v2539_v6, %v2451_v7 }
 0x387   : > { %2772 = vst [vmem:[%s4223_s23 + $0x78] sm:$0xff] %v2715_v8 }
 0x38a   : > { %v2628_v10 = vpop.f32.mrf.mxu2  ;;  %v2452_v13 = vpop.f32.mrf.mxu0 }
 0x38b   : > { %v2717_v11 = vpop.f32.mrf.mxu3  ;;  %v2629_v12 = vadd.f32 %v2628_v10, %v2540_v9  ;;  %v2541_v14 = vpop.f32.mrf.mxu1  ;;  %v2453_v16 = vadd.f32 %v4542_v59, %v2452_v13 }
 0x38d   : > { %v2718_v15 = vadd.f32 %v2717_v11, %v2629_v12  ;;  %v2542_v17 = vadd.f32 %v2541_v14, %v2453_v16 }
 0x38f   : > { %2773 = vst [vmem:[%s4223_s23 + $0x80] sm:$0xff] %v2718_v15 }
 0x392   : > { %v2630_v18 = vpop.f32.mrf.mxu2  ;;  %v2455_v21 = vpop.f32.mrf.mxu0 }
 0x393   : > { %v2719_v19 = vpop.f32.mrf.mxu3  ;;  %v2631_v20 = vadd.f32 %v2630_v18, %v2542_v17  ;;  %v2544_v22 = vpop.f32.mrf.mxu1  ;;  %v2456_v23 = vadd.f32 %v4542_v59, %v2455_v21 }
 0x395   : > { %v2720_v24 = vadd.f32 %v2719_v19, %v2631_v20  ;;  %v2545_v25 = vadd.f32 %v2544_v22, %v2456_v23 }
 0x397   : > { %2774 = vst [vmem:[%s4223_s23 + $0x88] sm:$0xff] %v2720_v24 }
 0x39a   : > { %v2633_v26 = vpop.f32.mrf.mxu2  ;;  %v2457_v29 = vpop.f32.mrf.mxu0 }
 0x39b   : > { %v2722_v27 = vpop.f32.mrf.mxu3  ;;  %v2634_v28 = vadd.f32 %v2633_v26, %v2545_v25  ;;  %v2546_v30 = vpop.f32.mrf.mxu1  ;;  %v2458_v32 = vadd.f32 %v4542_v59, %v2457_v29 }
 0x39d   : > { %v2723_v31 = vadd.f32 %v2722_v27, %v2634_v28  ;;  %v2547_v33 = vadd.f32 %v2546_v30, %v2458_v32 }
 0x39f   : > { %2775 = vst [vmem:[%s4223_s23 + $0x90] sm:$0xff] %v2723_v31 }
 0x3a2   : > { %v2635_v34 = vpop.f32.mrf.mxu2  ;;  %v2460_v37 = vpop.f32.mrf.mxu0 }
 0x3a3   : > { %v2724_v35 = vpop.f32.mrf.mxu3  ;;  %v2636_v36 = vadd.f32 %v2635_v34, %v2547_v33  ;;  %v2549_v38 = vpop.f32.mrf.mxu1  ;;  %v2461_v39 = vadd.f32 %v4542_v59, %v2460_v37 }
 0x3a5   : > { %v2725_v40 = vadd.f32 %v2724_v35, %v2636_v36  ;;  %v2550_v41 = vadd.f32 %v2549_v38, %v2461_v39 }
 0x3a7   : > { %2776 = vst [vmem:[%s4223_s23 + $0x98] sm:$0xff] %v2725_v40 }
 0x3aa   : > { %v2638_v42 = vpop.f32.mrf.mxu2  ;;  %v2462_v45 = vpop.f32.mrf.mxu0 }
 0x3ab   : > { %v2727_v43 = vpop.f32.mrf.mxu3  ;;  %v2639_v44 = vadd.f32 %v2638_v42, %v2550_v41  ;;  %v2551_v46 = vpop.f32.mrf.mxu1  ;;  %v2463_v48 = vadd.f32 %v4542_v59, %v2462_v45 }
 0x3ad   : > { %v2728_v47 = vadd.f32 %v2727_v43, %v2639_v44  ;;  %v2552_v49 = vadd.f32 %v2551_v46, %v2463_v48 }
 0x3af   : > { %2777 = vst [vmem:[%s4223_s23 + $0xa0] sm:$0xff] %v2728_v47 }
 0x3b2   : > { %v2640_v50 = vpop.f32.mrf.mxu2  ;;  %v2465_v53 = vpop.f32.mrf.mxu0 }
 0x3b3   : > { %v2729_v51 = vpop.f32.mrf.mxu3  ;;  %v2641_v52 = vadd.f32 %v2640_v50, %v2552_v49  ;;  %v2554_v54 = vpop.f32.mrf.mxu1  ;;  %v2466_v55 = vadd.f32 %v4542_v59, %v2465_v53 }
 0x3b5   : > { %v2730_v56 = vadd.f32 %v2729_v51, %v2641_v52  ;;  %v2555_v57 = vadd.f32 %v2554_v54, %v2466_v55 }
 0x3b7   : > { %2778 = vst [vmem:[%s4223_s23 + $0xa8] sm:$0xff] %v2730_v56 }
 0x3ba   : > { %v2643_v58 = vpop.f32.mrf.mxu2  ;;  %v2467_v62 = vpop.f32.mrf.mxu0 }
 0x3bb   : > { %v2732_v60 = vpop.f32.mrf.mxu3  ;;  %v2644_v61 = vadd.f32 %v2643_v58, %v2555_v57  ;;  %v2556_v63 = vpop.f32.mrf.mxu1  ;;  %v2468_v1 = vadd.f32 %v4542_v59, %v2467_v62 }
 0x3bd   : > { %v2733_v0 = vadd.f32 %v2732_v60, %v2644_v61  ;;  %v2557_v2 = vadd.f32 %v2556_v63, %v2468_v1 }
 0x3bf   : > { %2779 = vst [vmem:[%s4223_s23 + $0xb0] sm:$0xff] %v2733_v0 }
 0x3c2   : > { %v2645_v3 = vpop.f32.mrf.mxu2  ;;  %v2470_v6 = vpop.f32.mrf.mxu0 }
 0x3c3   : > { %v2734_v4 = vpop.f32.mrf.mxu3  ;;  %v2646_v5 = vadd.f32 %v2645_v3, %v2557_v2  ;;  %v2559_v7 = vpop.f32.mrf.mxu1  ;;  %v2471_v8 = vadd.f32 %v4542_v59, %v2470_v6 }
 0x3c5   : > { %v2735_v9 = vadd.f32 %v2734_v4, %v2646_v5  ;;  %v2560_v10 = vadd.f32 %v2559_v7, %v2471_v8 }
 0x3c7   : > { %2780 = vst [vmem:[%s4223_s23 + $0xb8] sm:$0xff] %v2735_v9 }
 0x3ca   : > { %v2648_v11 = vpop.f32.mrf.mxu2  ;;  %v2472_v14 = vpop.f32.mrf.mxu0 }
 0x3cb   : > { %v2737_v12 = vpop.f32.mrf.mxu3  ;;  %v2649_v13 = vadd.f32 %v2648_v11, %v2560_v10  ;;  %v2561_v15 = vpop.f32.mrf.mxu1  ;;  %v2473_v17 = vadd.f32 %v4542_v59, %v2472_v14 }
 0x3cd   : > { %v2738_v16 = vadd.f32 %v2737_v12, %v2649_v13  ;;  %v2562_v18 = vadd.f32 %v2561_v15, %v2473_v17 }
 0x3cf   : > { %2781 = vst [vmem:[%s4223_s23 + $0xc0] sm:$0xff] %v2738_v16 }
 0x3d2   : > { %v2650_v19 = vpop.f32.mrf.mxu2  ;;  %v2475_v22 = vpop.f32.mrf.mxu0 }
 0x3d3   : > { %v2739_v20 = vpop.f32.mrf.mxu3  ;;  %v2651_v21 = vadd.f32 %v2650_v19, %v2562_v18  ;;  %v2564_v23 = vpop.f32.mrf.mxu1  ;;  %v2476_v24 = vadd.f32 %v4542_v59, %v2475_v22 }
 0x3d5   : > { %v2740_v25 = vadd.f32 %v2739_v20, %v2651_v21  ;;  %v2565_v26 = vadd.f32 %v2564_v23, %v2476_v24 }
 0x3d7   : > { %2782 = vst [vmem:[%s4223_s23 + $0xc8] sm:$0xff] %v2740_v25 }
 0x3da   : > { %v2653_v27 = vpop.f32.mrf.mxu2  ;;  %v2477_v30 = vpop.f32.mrf.mxu0 }
 0x3db   : > { %v2742_v28 = vpop.f32.mrf.mxu3  ;;  %v2654_v29 = vadd.f32 %v2653_v27, %v2565_v26  ;;  %v2566_v31 = vpop.f32.mrf.mxu1  ;;  %v2478_v33 = vadd.f32 %v4542_v59, %v2477_v30 }
 0x3dd   : > { %v2743_v32 = vadd.f32 %v2742_v28, %v2654_v29  ;;  %v2567_v34 = vadd.f32 %v2566_v31, %v2478_v33 }
 0x3df   : > { %2783 = vst [vmem:[%s4223_s23 + $0xd0] sm:$0xff] %v2743_v32 }
 0x3e2   : > { %v2655_v35 = vpop.f32.mrf.mxu2  ;;  %v2480_v38 = vpop.f32.mrf.mxu0 }
 0x3e3   : > { %v2744_v36 = vpop.f32.mrf.mxu3  ;;  %v2656_v37 = vadd.f32 %v2655_v35, %v2567_v34  ;;  %v2569_v39 = vpop.f32.mrf.mxu1  ;;  %v2481_v40 = vadd.f32 %v4542_v59, %v2480_v38 }
 0x3e5   : > { %v2745_v41 = vadd.f32 %v2744_v36, %v2656_v37  ;;  %v2570_v42 = vadd.f32 %v2569_v39, %v2481_v40 }
 0x3e7   : > { %2784 = vst [vmem:[%s4223_s23 + $0xd8] sm:$0xff] %v2745_v41 }
 0x3ea   : > { %v2658_v43 = vpop.f32.mrf.mxu2  ;;  %v2482_v46 = vpop.f32.mrf.mxu0 }
 0x3eb   : > { %v2747_v44 = vpop.f32.mrf.mxu3  ;;  %v2659_v45 = vadd.f32 %v2658_v43, %v2570_v42  ;;  %v2571_v47 = vpop.f32.mrf.mxu1  ;;  %v2483_v49 = vadd.f32 %v4542_v59, %v2482_v46 }
 0x3ed   : > { %v2748_v48 = vadd.f32 %v2747_v44, %v2659_v45  ;;  %v2572_v50 = vadd.f32 %v2571_v47, %v2483_v49 }
 0x3ef   : > { %2785 = vst [vmem:[%s4223_s23 + $0xe0] sm:$0xff] %v2748_v48 }
 0x3f2   : > { %v2660_v51 = vpop.f32.mrf.mxu2  ;;  %v2485_v54 = vpop.f32.mrf.mxu0 }
 0x3f3   : > { %v2749_v52 = vpop.f32.mrf.mxu3  ;;  %v2661_v53 = vadd.f32 %v2660_v51, %v2572_v50  ;;  %v2486_v55 = vadd.f32 %v4542_v59, %v2485_v54  ;;  %v2574_v57 = vpop.f32.mrf.mxu1 }
 0x3f5   : > { %v2750_v56 = vadd.f32 %v2749_v52, %v2661_v53  ;;  %v2575_v58 = vadd.f32 %v2574_v57, %v2486_v55 }
 0x3f7   : > { %2786 = vst [vmem:[%s4223_s23 + $0xe8] sm:$0xff] %v2750_v56 }
 0x3fa   : > { %v2663_v60 = vpop.f32.mrf.mxu2  ;;  %v2487_v63 = vpop.f32.mrf.mxu0 }
 0x3fb   : > { %v2752_v61 = vpop.f32.mrf.mxu3  ;;  %v2664_v62 = vadd.f32 %v2663_v60, %v2575_v58  ;;  %v2488_v1 = vadd.f32 %v4542_v59, %v2487_v63  ;;  %v2576_v2 = vpop.f32.mrf.mxu1 }
 0x3fd   : > { %v2753_v0 = vadd.f32 %v2752_v61, %v2664_v62  ;;  %v2577_v3 = vadd.f32 %v2576_v2, %v2488_v1 }
 0x3ff   : > { %2787 = vst [vmem:[%s4223_s23 + $0xf0] sm:$0xff] %v2753_v0 }
 0x402   : > { %v2665_v4 = vpop.f32.mrf.mxu2 }
 0x403   : > { %v2666_v5 = vadd.f32 %v2665_v4, %v2577_v3  ;;  %v2754_v6 = vpop.f32.mrf.mxu3 }
 0x405   : > { %v2755_v7 = vadd.f32 %v2754_v6, %v2666_v5 }
 0x407   : > { %2788 = vst [vmem:[%s4223_s23 + $0xf8] sm:$0xff] %v2755_v7 }
 0x408 PF: > { %s3746_s15 = sshll.u32 %s3964_s13, 8  ;;  %s2802_s24 = sshll.u32 %s4223_s23, 4  ;;  %s2803_s24 = int_to_ptr.vmem [resolvable:$true] %s2802_s24 }
 0x409   : > { %s2801_s21 = scalar_lea.hbm %s4675_s7, %s3746_s15  ;;  %s4694_s28 = sand.u32 1, %s3944_s10  }
 0x40a   : > { %s2804_s30 = sshll.u32 %s2801_s21, 4  ;;  %s2790_s12 = scalar_lea.sflag [#allocation9], %s4694_s28  ;;  %s2805_s30 = int_to_ptr.hbm [resolvable:$true] %s2804_s30 }
 0x40b   : > { %s3878_s8 = sshra.s32 %s2805_s30, 4  ;;  %s3884_s13 = scalar_lea.hbm %s4675_s7, 512  ;;  %s3879_s8 = int_to_ptr.hbm [resolvable:$true] %s3878_s8 }
 0x40c   : > { %s3880_s25 = scalar_lea.hbm %s3879_s8, 256  ;;  %p3885_p13 = scmp.lt.s32.totalorder %s3879_s8, %s4675_s7 }
 0x40d   : > { %p3881_p8 = scmp.ne.s32.totalorder %s3879_s8, %s3880_s25  ;;  %p3886_p0 = scmp.lt.s32.totalorder %s3884_s13, %s3880_s25 }
 0x40f   : > { %p3882_p9 = pnand %p3881_p8, %p4113_p10  ;;  %p3887_p1 = por %p3886_p0, %p3885_p13 }
 0x411   : > { %p3883_p12 = pneg %p3882_p9 }
 0x413   : > { %p3888_p2 = pnand %p3887_p1, %p3883_p12 }
 0x415   : > { %3891 = shalt.err (!%p3888_p2)
}
 0x416   : > { %s3981_s23 = smov 128   ;;  %s3982_s2 = smov 8  }
 0x417   : > { %3747 = dma.vmem_to_hbm [thread:$0]  (%p4113_p10), %s2803_s24, 4096, %s2805_s30, %s2790_s12, %s3981_s23, %s3981_s23, %s3982_s2  }
 0x418 PF: > { %p3753_p3 = scmp.ge.s32.totalorder %s3976_s16, 2  ;;  %s2819_s19 = sand.u32 1, %s3940_s9  }
 0x419   : > { %s2820_s18 = scalar_lea.sflag [#allocation9], %s2819_s19 }
 0x41a   : > { %p3750_p4 = pnand %p3753_p3, %p4117_p11 }
 0x41c   : > { %p3751_p5 = pneg %p3750_p4 }
 0x41e   : > { %3935 = dma.done.wait (%p3751_p5), %s2820_s18, 4096  }
 0x41f   : > { %3937 = vsyncadd (%p3751_p5), %s2820_s18, 4294963200  ;;  %s33_s16 = sadd.s32 1, %s3976_s16   ;;  %s4695_s15 = sld [smem:[#allocation16_spill]] }
 0x420   : > { %p30_p6 = scmp.ge.s32.totalorder %s33_s16, 6   ;;  %s4696_s27 = sld [smem:[#allocation17_spill]] }
 0x421   : > { %s4697_s12 = sld [smem:[#allocation12_spill]]  ;;  %s4701_s9 = smov %s3944_s10 }
 0x422   : > { %s4698_s13 = sld [smem:[#allocation13_spill]]  ;;  %s4702_s10 = smov %s3948_s0 }
 0x423   : > { %s4699_s14 = sld [smem:[#allocation14_spill]]  ;;  %s4704_s11 = smov %s3956_s1 }
 0x424   : > { %s4700_s22 = sld [smem:[#allocation15_spill]] }
 0x425   : > { %s4703_s0 = smov %s4695_s15 }
 0x426   : > { %s4705_s1 = smov %s4696_s27  ;;  %32 = sbr.rel (!%p30_p6) target bundleno = 14 (0xe), region = 136 }
 0x42a   : > { %s4706_s15 = smov %s4700_s22 }
 0x42b   :  { %2826 = vsyncpa [#allocation9], 1 }
 0x42c   :  { %2828 = vsyncpa [#allocation9 + $0x1], 1 }

// kernel: graphsage_forward.4
= control target key start
LH: loop header
LB: loop body
LE: loop exit
PB: predicated region body
PF: predicated region fallthrough
CT: control target
= control target key end

     0   :  { %s4615_s30 = smov [#allocation5]   ;;  %s4616_s8 = smov [#allocation6]   ;;  %s5925_s0 = inlined_call_operand.vmem [shape: s32[2,2], index: 0, kind: input, shape index: {}]   ;;  %s5926_s2 = inlined_call_operand.vmem [shape: bf16[512,512], index: 2, kind: input, shape index: {}]   ;;  %s5927_s3 = inlined_call_operand.vmem [shape: bf16[512,256], index: 3, kind: input, shape index: {}, may-alias: {3,4}]   ;;  %s5928_s4 = inlined_call_operand.vmem [shape: bf16[512,256], index: 4, kind: input, shape index: {}, may-alias: {3,4}]   ;;  %s5929_s5 = inlined_call_operand.vmem [shape: bf16[512,256], index: 5, kind: input, shape index: {}]   ;;  %s5930_s6 = inlined_call_operand.vmem [shape: f32[1,256], index: 6, kind: input, shape index: {}]   ;;  %s5931_s7 = inlined_call_operand.vmem [shape: bf16[512,256], index: 7, kind: output, shape index: {}]   ;;  %s5932_s1 = inlined_call_operand.vmem [shape: s32[2], index: 1, kind: input, shape index: {}]  }
   0x1   :  { %s13_s26 = sshll.u32 %s5925_s0, 4  ;;  %s18_s29 = sshll.u32 %s5932_s1, 4  ;;  %s14_s26 = int_to_ptr.vmem [resolvable:$true] %s13_s26  ;;  %s19_s29 = int_to_ptr.vmem [resolvable:$true] %s18_s29 }
   0x2   :  { %16 = dma.vmem_to_smem %s14_s26, 32, %s4615_s30, [#allocation4] }
   0x3   :  { %21 = dma.vmem_to_smem %s19_s29, 16, %s4616_s8, [#allocation4] }
   0x4   :  { %4585 = dma.done.wait [#allocation4], 48 }
   0x5   :  { %4586 = vsyncadd [#allocation4], 4294967248 }
   0x6   :  { %24 = sfence }
   0x7   :  { %s4664_s9 = smov 0   ;;  %s4666_s10 = smov 0  }
   0x8   :  { %s4668_s11 = smov 0   ;;  %s4670_s0 = smov 0  }
   0x9   :  { %s4672_s12 = smov 0   ;;  %s4674_s1 = smov 0  }
   0xa   :  { %s4676_s13 = smov 0  }
   0xb LB: > { %s39_s14 = sadd.s32 1, %s4605_s12  ;;  %s42_s15 = sadd.s32 1, %s4609_s1  ;;  %s4613_s13 = sphi %s4676_s13, %s30_s13   ;;  %s4609_s1 = sphi %s4674_s1, %s6023_s1   ;;  %s4605_s12 = sphi %s4672_s12, %s6022_s12   ;;  %s4601_s0 = sphi %s4670_s0, %s6021_s0   ;;  %s4597_s11 = sphi %s4668_s11, %s6020_s11   ;;  %s4593_s10 = sphi %s4666_s10, %s6019_s10   ;;  %s4589_s9 = sphi %s4664_s9, %s6018_s9  }
   0xc   : > { %p40_p0 = scmp.ge.s32.totalorder %s39_s14, 2  ;;  %s46_s16 = sshra.s32 %s4605_s12, 7 }
   0xd   : > { %s48_s17 = sadd.s32 %s4609_s1, %s46_s16  ;;  %s51_s18 = sand.u32 127, %s4605_s12 }
   0xe   : > { %s6025_s14 = smov (%p40_p0, %s39_s14), 0  ;;  %s6027_s15 = smov (!%p40_p0, %s42_s15), %s4609_s1 }
   0xf   : > { %s3480_s19 = sshll.u32 %s48_s17, 7  ;;  %p44_p1 = scmp.ge.s32.totalorder %s6027_s15, 2 }
  0x10   : > { %s52_s20 = sadd.s32 %s3480_s19, %s51_s18  ;;  %s54_s21 = sshra.s32 %s6025_s14, 7 }
  0x11   : > { %s6029_s15 = smov (%p44_p1, %s6027_s15), 0  ;;  %s59_s22 = sand.u32 127, %s6025_s14 }
  0x12   : > { %p74_p2 = scmp.ne.s32.totalorder %s4593_s10, %s4589_s9  ;;  %s53_s23 = sld [smem:[#allocation5 + %s52_s20]] }
  0x13   : > { %s56_s24 = sadd.s32 %s54_s21, %s6029_s15  ;;  %p75_p3 = scmp.eq.s32.totalorder %s4613_s13, 0 }
  0x14   : > { %s3481_s25 = sshll.u32 %s56_s24, 7  ;;  %s62_s28 = ssub.s32 %s4609_s1, %s6029_s15 }
  0x15   : > { %s60_s26 = sadd.s32 %s3481_s25, %s59_s22  ;;  %p76_p4 = por %p75_p3, %p74_p2 }
  0x16   : > { %s61_s27 = sld [smem:[#allocation5 + %s60_s26]]  ;;  %s67_s8 = sadd.s32 1, %s4593_s10 }
  0x17   : > { %p3485_p6 = scmp.ge.s32.totalorder %s4613_s13, 4 }
  0x1c   : > { %s63_s29 = ssub.s32 %s53_s23, %s61_s27  ;;  %242 = sbr.rel (%p3485_p6) target bundleno = 76 (0x4c), region = 24 }
  0x1d   : > { %s64_s30 = sor.u32 %s63_s29, %s62_s28 }
  0x1e   : > { %p65_p5 = scmp.eq.s32.totalorder %s64_s30, 0 }
  0x20   : > { %s4719_s16 = scalar_select %p65_p5, %s4593_s10, %s67_s8  }
  0x21   : > { %245 = sbr.rel (!%p76_p4) target bundleno = 76 (0x4c), region = 28  ;;  %s257_s17 = sld [smem:[#allocation5 + %s52_s20]] (%p76_p4) }
  0x22   : > { %s247_s18 = sand.u32 (%p76_p4), 1, %s4593_s10   ;;  %s4277_s19 = sshll.u32 (%p76_p4), %s4609_s1, 7 }
  0x23   : > { %s3486_s21 = sshll.u32 (%p76_p4), %s247_s18, 8 }
  0x24   : > { %s4732_s20 = scalar_lea.vmem (%p76_p4), [#allocation7], %s3486_s21 }
  0x27   : > { %s3489_s22 = sshll.u32 %s257_s17, 1 }
  0x28   : > { %s261_s24 = sadd.s32 %s4277_s19, %s3489_s22 }
  0x29   : > { %s3491_s25 = sshll.u32 %s261_s24, 2 }
  0x2a   : > { %s4727_s27 = scalar_lea.vmem %s5926_s2, %s3491_s25 }
  0x2b   : > { %v354_v0 = vld [vmem:[%s4727_s27] sm:$0xff]  ;;  %v356_v1 = vld [vmem:[%s4727_s27 + $0x10] sm:$0xff] }
  0x2c   : > { %v358_v2 = vld [vmem:[%s4727_s27 + $0x20] sm:$0xff]  ;;  %355 = vst [vmem:[%s4732_s20] sm:$0xff] %v354_v0  ;;  %v360_v3 = vld [vmem:[%s4727_s27 + $0x30] sm:$0xff] }
  0x2d   : > { %357 = vst [vmem:[%s4732_s20 + $0x8] sm:$0xff] %v356_v1  ;;  %v362_v4 = vld [vmem:[%s4727_s27 + $0x40] sm:$0xff]  ;;  %v364_v5 = vld [vmem:[%s4727_s27 + $0x50] sm:$0xff] }
  0x2e   : > { %359 = vst [vmem:[%s4732_s20 + $0x10] sm:$0xff] %v358_v2  ;;  %v366_v6 = vld [vmem:[%s4727_s27 + $0x60] sm:$0xff]  ;;  %v368_v7 = vld [vmem:[%s4727_s27 + $0x70] sm:$0xff] }
  0x2f   : > { %361 = vst [vmem:[%s4732_s20 + $0x18] sm:$0xff] %v360_v3  ;;  %v370_v8 = vld [vmem:[%s4727_s27 + $0x80] sm:$0xff]  ;;  %v372_v9 = vld [vmem:[%s4727_s27 + $0x90] sm:$0xff] }
  0x30   : > { %363 = vst [vmem:[%s4732_s20 + $0x20] sm:$0xff] %v362_v4  ;;  %v374_v10 = vld [vmem:[%s4727_s27 + $0xa0] sm:$0xff]  ;;  %v376_v11 = vld [vmem:[%s4727_s27 + $0xb0] sm:$0xff] }
  0x31   : > { %365 = vst [vmem:[%s4732_s20 + $0x28] sm:$0xff] %v364_v5  ;;  %v378_v12 = vld [vmem:[%s4727_s27 + $0xc0] sm:$0xff]  ;;  %v380_v13 = vld [vmem:[%s4727_s27 + $0xd0] sm:$0xff] }
  0x32   : > { %367 = vst [vmem:[%s4732_s20 + $0x30] sm:$0xff] %v366_v6  ;;  %v382_v14 = vld [vmem:[%s4727_s27 + $0xe0] sm:$0xff]  ;;  %v384_v15 = vld [vmem:[%s4727_s27 + $0xf0] sm:$0xff] }
  0x33   : > { %369 = vst [vmem:[%s4732_s20 + $0x38] sm:$0xff] %v368_v7  ;;  %v386_v16 = vld [vmem:[%s4727_s27 + $0x100] sm:$0xff]  ;;  %v388_v17 = vld [vmem:[%s4727_s27 + $0x110] sm:$0xff] }
  0x34   : > { %371 = vst [vmem:[%s4732_s20 + $0x40] sm:$0xff] %v370_v8  ;;  %v390_v18 = vld [vmem:[%s4727_s27 + $0x120] sm:$0xff]  ;;  %v392_v19 = vld [vmem:[%s4727_s27 + $0x130] sm:$0xff] }
  0x35   : > { %373 = vst [vmem:[%s4732_s20 + $0x48] sm:$0xff] %v372_v9  ;;  %v394_v20 = vld [vmem:[%s4727_s27 + $0x140] sm:$0xff]  ;;  %v396_v21 = vld [vmem:[%s4727_s27 + $0x150] sm:$0xff] }
  0x36   : > { %375 = vst [vmem:[%s4732_s20 + $0x50] sm:$0xff] %v374_v10  ;;  %v398_v22 = vld [vmem:[%s4727_s27 + $0x160] sm:$0xff]  ;;  %v400_v23 = vld [vmem:[%s4727_s27 + $0x170] sm:$0xff] }
  0x37   : > { %377 = vst [vmem:[%s4732_s20 + $0x58] sm:$0xff] %v376_v11  ;;  %v402_v24 = vld [vmem:[%s4727_s27 + $0x180] sm:$0xff]  ;;  %v404_v25 = vld [vmem:[%s4727_s27 + $0x190] sm:$0xff] }
  0x38   : > { %379 = vst [vmem:[%s4732_s20 + $0x60] sm:$0xff] %v378_v12  ;;  %v406_v26 = vld [vmem:[%s4727_s27 + $0x1a0] sm:$0xff]  ;;  %v408_v27 = vld [vmem:[%s4727_s27 + $0x1b0] sm:$0xff] }
  0x39   : > { %381 = vst [vmem:[%s4732_s20 + $0x68] sm:$0xff] %v380_v13  ;;  %v410_v28 = vld [vmem:[%s4727_s27 + $0x1c0] sm:$0xff]  ;;  %v412_v29 = vld [vmem:[%s4727_s27 + $0x1d0] sm:$0xff] }
  0x3a   : > { %383 = vst [vmem:[%s4732_s20 + $0x70] sm:$0xff] %v382_v14  ;;  %v414_v30 = vld [vmem:[%s4727_s27 + $0x1e0] sm:$0xff]  ;;  %v416_v31 = vld [vmem:[%s4727_s27 + $0x1f0] sm:$0xff] }
  0x3b   : > { %385 = vst [vmem:[%s4732_s20 + $0x78] sm:$0xff] %v384_v15 }
  0x3c   : > { %387 = vst [vmem:[%s4732_s20 + $0x80] sm:$0xff] %v386_v16 }
  0x3d   : > { %389 = vst [vmem:[%s4732_s20 + $0x88] sm:$0xff] %v388_v17 }
  0x3e   : > { %391 = vst [vmem:[%s4732_s20 + $0x90] sm:$0xff] %v390_v18 }
  0x3f   : > { %393 = vst [vmem:[%s4732_s20 + $0x98] sm:$0xff] %v392_v19 }
  0x40   : > { %395 = vst [vmem:[%s4732_s20 + $0xa0] sm:$0xff] %v394_v20 }
  0x41   : > { %397 = vst [vmem:[%s4732_s20 + $0xa8] sm:$0xff] %v396_v21 }
  0x42   : > { %399 = vst [vmem:[%s4732_s20 + $0xb0] sm:$0xff] %v398_v22 }
  0x43   : > { %401 = vst [vmem:[%s4732_s20 + $0xb8] sm:$0xff] %v400_v23 }
  0x44   : > { %403 = vst [vmem:[%s4732_s20 + $0xc0] sm:$0xff] %v402_v24 }
  0x45   : > { %405 = vst [vmem:[%s4732_s20 + $0xc8] sm:$0xff] %v404_v25 }
  0x46   : > { %407 = vst [vmem:[%s4732_s20 + $0xd0] sm:$0xff] %v406_v26 }
  0x47   : > { %409 = vst [vmem:[%s4732_s20 + $0xd8] sm:$0xff] %v408_v27 }
  0x48   : > { %411 = vst [vmem:[%s4732_s20 + $0xe0] sm:$0xff] %v410_v28 }
  0x49   : > { %413 = vst [vmem:[%s4732_s20 + $0xe8] sm:$0xff] %v412_v29 }
  0x4a   : > { %415 = vst [vmem:[%s4732_s20 + $0xf0] sm:$0xff] %v414_v30 }
  0x4b   : > { %417 = vst [vmem:[%s4732_s20 + $0xf8] sm:$0xff] %v416_v31 }
  0x4c PF: > { %p3492_p7 = scmp.ge.s32.totalorder %s4613_s13, 1  ;;  %p458_p8 = scmp.lt.s32.totalorder %s4613_s13, 5 }
  0x4e   : > { %p459_p9 = pnand %p3492_p7, %p458_p8 }
  0x4f   : > { %s465_s28 = sand.u32 (!%p459_p9), 1, %s4589_s9   ;;  %s523_s29 = sshra.s32 (!%p459_p9), %s4597_s11, 7 }
  0x50   : > { %462 = sbr.rel (%p459_p9) target bundleno = 1283 (0x503), region = 74  ;;  %s3493_s30 = sshll.u32 (!%p459_p9), %s465_s28, 8 }
  0x51   : > { %s525_s8 = sadd.s32 (!%p459_p9), %s4601_s0, %s523_s29  ;;  %s528_s18 = sand.u32 (!%p459_p9), 127, %s4597_s11 }
  0x52   : > { %s3494_s17 = sshll.u32 (!%p459_p9), %s525_s8, 7  ;;  %s3498_s19 = sshll.u32 (!%p459_p9), %s4601_s0, 5 }
  0x53   : > { %s529_s21 = sadd.s32 (!%p459_p9), %s3494_s17, %s528_s18  ;;  %p547_p10 = scmp.lt.s32.totalorder (!%p459_p9), %s3498_s19, 63 }
  0x54   : > { %s530_s22 = sld [smem:[#allocation5 + %s529_s21]] (!%p459_p9)  ;;  %p3504_p12 = scmp.ne.s32.totalorder (!%p459_p9), %s4597_s11, 0 }
  0x55   : > { %s6031_s19 = smov (!%p547_p10, %s3498_s19), 63 }
  0x56   : > { %s4279_s24 = sshll.u32 %s6031_s19, 3  ;;  %s4817_s19 = scalar_lea.vmem [#allocation7], %s3493_s30 }
  0x57   : > { %s4805_s23 = scalar_lea.vmem %s5928_s4, %s4279_s24  ;;  %s4810_s9 = scalar_lea.vmem %s5931_s7, %s4279_s24 }
  0x5a   : > { %s3495_s28 = sshll.u32 %s530_s22, 5 }
  0x5b   : > { %p532_p11 = scmp.lt.s32.totalorder %s3495_s28, 63  ;;  %563 = sbr.rel (%p3504_p12) target bundleno = 161 (0xa1), region = 82 }
  0x5d   : > { %s6033_s28 = smov (!%p532_p11, %s3495_s28), 63 }
  0x5e   : > { %s4278_s29 = sshll.u32 %s6033_s28, 3 }
  0x5f   : > { %s4815_s18 = scalar_lea.vmem %s5927_s3, %s4278_s29 }
  0x60   : > { %v4617_v32 = vmov 0.0  }
  0x61   : > { %564 = vst [vmem:[#allocation2 + $0xb0] sm:$0xff] %v4617_v32 }
  0x62   : > { %565 = vst [vmem:[#allocation2 + $0x1b0] sm:$0xff] %v4617_v32 }
  0x63   : > { %566 = vst [vmem:[#allocation2 + $0xd8] sm:$0xff] %v4617_v32 }
  0x64   : > { %567 = vst [vmem:[#allocation2 + $0x18] sm:$0xff] %v4617_v32 }
  0x65   : > { %568 = vst [vmem:[#allocation2 + $0x50] sm:$0xff] %v4617_v32 }
  0x66   : > { %569 = vst [vmem:[#allocation2 + $0x168] sm:$0xff] %v4617_v32 }
  0x67   : > { %570 = vst [vmem:[#allocation2 + $0x130] sm:$0xff] %v4617_v32 }
  0x68   : > { %571 = vst [vmem:[#allocation2 + $0x48] sm:$0xff] %v4617_v32 }
  0x69   : > { %572 = vst [vmem:[#allocation2 + $0x180] sm:$0xff] %v4617_v32 }
  0x6a   : > { %573 = vst [vmem:[#allocation2 + $0x110] sm:$0xff] %v4617_v32 }
  0x6b   : > { %574 = vst [vmem:[#allocation2 + $0x118] sm:$0xff] %v4617_v32 }
  0x6c   : > { %575 = vst [vmem:[#allocation2 + $0x98] sm:$0xff] %v4617_v32 }
  0x6d   : > { %576 = vst [vmem:[#allocation2 + $0x120] sm:$0xff] %v4617_v32 }
  0x6e   : > { %577 = vst [vmem:[#allocation2 + $0x150] sm:$0xff] %v4617_v32 }
  0x6f   : > { %578 = vst [vmem:[#allocation2 + $0x108] sm:$0xff] %v4617_v32 }
  0x70   : > { %579 = vst [vmem:[#allocation2 + $0x60] sm:$0xff] %v4617_v32 }
  0x71   : > { %580 = vst [vmem:[#allocation2 + $0xe0] sm:$0xff] %v4617_v32 }
  0x72   : > { %581 = vst [vmem:[#allocation2 + $0x188] sm:$0xff] %v4617_v32 }
  0x73   : > { %582 = vst [vmem:[#allocation2 + $0x138] sm:$0xff] %v4617_v32 }
  0x74   : > { %583 = vst [vmem:[#allocation2 + $0x140] sm:$0xff] %v4617_v32 }
  0x75   : > { %584 = vst [vmem:[#allocation2 + $0x80] sm:$0xff] %v4617_v32 }
  0x76   : > { %585 = vst [vmem:[#allocation2 + $0x1a8] sm:$0xff] %v4617_v32 }
  0x77   : > { %586 = vst [vmem:[#allocation2 + $0x1b8] sm:$0xff] %v4617_v32 }
  0x78   : > { %587 = vst [vmem:[#allocation2 + $0x28] sm:$0xff] %v4617_v32 }
  0x79   : > { %588 = vst [vmem:[#allocation2 + $0x1e8] sm:$0xff] %v4617_v32 }
  0x7a   : > { %589 = vst [vmem:[#allocation2 + $0xf8] sm:$0xff] %v4617_v32 }
  0x7b   : > { %590 = vst [vmem:[#allocation2 + $0x160] sm:$0xff] %v4617_v32 }
  0x7c   : > { %591 = vst [vmem:[#allocation2 + $0x30] sm:$0xff] %v4617_v32 }
  0x7d   : > { %592 = vst [vmem:[#allocation2 + $0x1e0] sm:$0xff] %v4617_v32 }
  0x7e   : > { %593 = vst [vmem:[#allocation2] sm:$0xff] %v4617_v32 }
  0x7f   : > { %594 = vst [vmem:[#allocation2 + $0xf0] sm:$0xff] %v4617_v32 }
  0x80   : > { %595 = vst [vmem:[#allocation2 + $0x8] sm:$0xff] %v4617_v32 }
  0x81   : > { %596 = vst [vmem:[#allocation2 + $0x148] sm:$0xff] %v4617_v32 }
  0x82   : > { %597 = vst [vmem:[#allocation2 + $0x1d0] sm:$0xff] %v4617_v32 }
  0x83   : > { %598 = vst [vmem:[#allocation2 + $0x100] sm:$0xff] %v4617_v32 }
  0x84   : > { %599 = vst [vmem:[#allocation2 + $0xc8] sm:$0xff] %v4617_v32 }
  0x85   : > { %600 = vst [vmem:[#allocation2 + $0x40] sm:$0xff] %v4617_v32 }
  0x86   : > { %601 = vst [vmem:[#allocation2 + $0x1f8] sm:$0xff] %v4617_v32 }
  0x87   : > { %602 = vst [vmem:[#allocation2 + $0x20] sm:$0xff] %v4617_v32 }
  0x88   : > { %603 = vst [vmem:[#allocation2 + $0x128] sm:$0xff] %v4617_v32 }
  0x89   : > { %604 = vst [vmem:[#allocation2 + $0x1a0] sm:$0xff] %v4617_v32 }
  0x8a   : > { %605 = vst [vmem:[#allocation2 + $0x1f0] sm:$0xff] %v4617_v32 }
  0x8b   : > { %606 = vst [vmem:[#allocation2 + $0xe8] sm:$0xff] %v4617_v32 }
  0x8c   : > { %607 = vst [vmem:[#allocation2 + $0x78] sm:$0xff] %v4617_v32 }
  0x8d   : > { %608 = vst [vmem:[#allocation2 + $0x70] sm:$0xff] %v4617_v32 }
  0x8e   : > { %609 = vst [vmem:[#allocation2 + $0x90] sm:$0xff] %v4617_v32 }
  0x8f   : > { %610 = vst [vmem:[#allocation2 + $0x1d8] sm:$0xff] %v4617_v32 }
  0x90   : > { %611 = vst [vmem:[#allocation2 + $0xd0] sm:$0xff] %v4617_v32 }
  0x91   : > { %612 = vst [vmem:[#allocation2 + $0xb8] sm:$0xff] %v4617_v32 }
  0x92   : > { %613 = vst [vmem:[#allocation2 + $0x88] sm:$0xff] %v4617_v32 }
  0x93   : > { %614 = vst [vmem:[#allocation2 + $0xa8] sm:$0xff] %v4617_v32 }
  0x94   : > { %615 = vst [vmem:[#allocation2 + $0x1c8] sm:$0xff] %v4617_v32 }
  0x95   : > { %616 = vst [vmem:[#allocation2 + $0x170] sm:$0xff] %v4617_v32 }
  0x96   : > { %617 = vst [vmem:[#allocation2 + $0x178] sm:$0xff] %v4617_v32 }
  0x97   : > { %618 = vst [vmem:[#allocation2 + $0x68] sm:$0xff] %v4617_v32 }
  0x98   : > { %619 = vst [vmem:[#allocation2 + $0x190] sm:$0xff] %v4617_v32 }
  0x99   : > { %620 = vst [vmem:[#allocation2 + $0x198] sm:$0xff] %v4617_v32 }
  0x9a   : > { %621 = vst [vmem:[#allocation2 + $0x38] sm:$0xff] %v4617_v32 }
  0x9b   : > { %622 = vst [vmem:[#allocation2 + $0xc0] sm:$0xff] %v4617_v32 }
  0x9c   : > { %623 = vst [vmem:[#allocation2 + $0x1c0] sm:$0xff] %v4617_v32 }
  0x9d   : > { %624 = vst [vmem:[#allocation2 + $0x158] sm:$0xff] %v4617_v32 }
  0x9e   : > { %625 = vst [vmem:[#allocation2 + $0x10] sm:$0xff] %v4617_v32 }
  0x9f   : > { %626 = vst [vmem:[#allocation2 + $0x58] sm:$0xff] %v4617_v32 }
  0xa0   : > { %627 = vst [vmem:[#allocation2 + $0xa0] sm:$0xff] %v4617_v32 }
  0xa1 PF: > { %s628_s30 = sld [smem:[#allocation6 + %s4601_s0]] }
  0xa7   : > { %p3505_p13 = scmp.ge.s32.totalorder %s4597_s11, %s628_s30 }
  0xa9   : > { %632 = sbr.rel (%p3505_p13) target bundleno = 595 (0x253), region = 86 }
  0xae   : > { %v3692_v33 = vld [vmem:[%s4815_s18 + $0x70] sm:$0xf]  ;;  %v4328_v34 = vld [vmem:[%s4815_s18 + $0x74] sm:$0xf0]  ;;  %v4327_v38 = vld [vmem:[%s4815_s18 + $0x74] sm:$0xf] }
  0xaf   : > { %v3756_v35 = vld [vmem:[%s4815_s18 + $0xf0] sm:$0xf]  ;;  %v3693_v36 = vor.u32 %v4328_v34, %v3692_v33  ;;  %v4344_v37 = vld [vmem:[%s4815_s18 + $0xf4] sm:$0xf0]  ;;  %v3694_v39 = vld [vmem:[%s4815_s18 + $0x78] sm:$0xf0] }
  0xb0   : > { %v3757_v40 = vor.u32 %v4344_v37, %v3756_v35  ;;  %v3697_v41 = vor.u32 %v4327_v38, %v3694_v39  ;;  %v4343_v42 = vld [vmem:[%s4815_s18 + $0xf4] sm:$0xf]  ;;  %v3758_v43 = vld [vmem:[%s4815_s18 + $0xf8] sm:$0xf0]  ;;  %v3684_v44 = vld [vmem:[%s4815_s18 + $0x60] sm:$0xf] }
  0xb1   : > { %1081 = vmatpush.bf16.msra.mxu0 %v3693_v36  ;;  %v3761_v45 = vor.u32 %v4343_v42, %v3758_v43  ;;  %v4326_v46 = vld [vmem:[%s4815_s18 + $0x64] sm:$0xf0]  ;;  %v3748_v47 = vld [vmem:[%s4815_s18 + $0xe0] sm:$0xf]  ;;  %v4325_v51 = vld [vmem:[%s4815_s18 + $0x64] sm:$0xf] }
  0xb2   : > { %v4342_v48 = vld [vmem:[%s4815_s18 + $0xe4] sm:$0xf0]  ;;  %1170 = vmatpush.bf16.msra.mxu1 %v3757_v40  ;;  %1259 = vmatpush.bf16.msra.mxu2 %v3697_v41  ;;  %v3685_v49 = vor.u32 %v4326_v46, %v3684_v44  ;;  %v3686_v52 = vld [vmem:[%s4815_s18 + $0x68] sm:$0xf0]  ;;  %v4341_v53 = vld [vmem:[%s4815_s18 + $0xe4] sm:$0xf] }
  0xb3   : > { %v3749_v50 = vor.u32 %v4342_v48, %v3748_v47  ;;  %1348 = vmatpush.bf16.msra.mxu3 %v3761_v45  ;;  %v3689_v54 = vor.u32 %v4325_v51, %v3686_v52  ;;  %v3750_v55 = vld [vmem:[%s4815_s18 + $0xe8] sm:$0xf0]  ;;  %v3676_v56 = vld [vmem:[%s4815_s18 + $0x50] sm:$0xf]  ;;  %v4324_v57 = vld [vmem:[%s4815_s18 + $0x54] sm:$0xf0] }
  0xb4   : > { %v3753_v58 = vor.u32 %v4341_v53, %v3750_v55  ;;  %v3740_v59 = vld [vmem:[%s4815_s18 + $0xd0] sm:$0xf]  ;;  %v4340_v60 = vld [vmem:[%s4815_s18 + $0xd4] sm:$0xf0]  ;;  %v4323_v61 = vld [vmem:[%s4815_s18 + $0x54] sm:$0xf]  ;;  %v3677_v62 = vor.u32 %v4324_v57, %v3676_v56 }
  0xb5   : > { %1082 = vmatpush.bf16.msra.mxu0 %v3685_v49  ;;  %v3678_v63 = vld [vmem:[%s4815_s18 + $0x58] sm:$0xf0]  ;;  %v4339_v0 = vld [vmem:[%s4815_s18 + $0xd4] sm:$0xf]  ;;  %v3741_v2 = vor.u32 %v4340_v60, %v3740_v59  ;;  %v3668_v4 = vld [vmem:[%s4815_s18 + $0x40] sm:$0xf] }
  0xb6   : > { %v3742_v1 = vld [vmem:[%s4815_s18 + $0xd8] sm:$0xf0]  ;;  %1171 = vmatpush.bf16.msra.mxu1 %v3749_v50  ;;  %1260 = vmatpush.bf16.msra.mxu2 %v3689_v54  ;;  %v3681_v3 = vor.u32 %v4323_v61, %v3678_v63  ;;  %v4322_v5 = vld [vmem:[%s4815_s18 + $0x44] sm:$0xf0]  ;;  %v3732_v6 = vld [vmem:[%s4815_s18 + $0xc0] sm:$0xf] }
  0xb7   : > { %1349 = vmatpush.bf16.msra.mxu3 %v3753_v58  ;;  %v3745_v7 = vor.u32 %v4339_v0, %v3742_v1  ;;  %v4338_v8 = vld [vmem:[%s4815_s18 + $0xc4] sm:$0xf0]  ;;  %v4321_v9 = vld [vmem:[%s4815_s18 + $0x44] sm:$0xf]  ;;  %v3670_v10 = vld [vmem:[%s4815_s18 + $0x48] sm:$0xf0]  ;;  %v3669_v13 = vor.u32 %v4322_v5, %v3668_v4 }
  0xb8   : > { %v4337_v11 = vld [vmem:[%s4815_s18 + $0xc4] sm:$0xf]  ;;  %v3734_v12 = vld [vmem:[%s4815_s18 + $0xc8] sm:$0xf0]  ;;  %v3733_v14 = vor.u32 %v4338_v8, %v3732_v6  ;;  %v3673_v15 = vor.u32 %v4321_v9, %v3670_v10  ;;  %v3660_v16 = vld [vmem:[%s4815_s18 + $0x30] sm:$0xf] }
  0xb9   : > { %1083 = vmatpush.bf16.msra.mxu0 %v3677_v62  ;;  %v4320_v17 = vld [vmem:[%s4815_s18 + $0x34] sm:$0xf0]  ;;  %v3724_v18 = vld [vmem:[%s4815_s18 + $0xb0] sm:$0xf]  ;;  %v3737_v19 = vor.u32 %v4337_v11, %v3734_v12  ;;  %v4319_v21 = vld [vmem:[%s4815_s18 + $0x34] sm:$0xf] }
  0xba   : > { %1172 = vmatpush.bf16.msra.mxu1 %v3741_v2  ;;  %1261 = vmatpush.bf16.msra.mxu2 %v3681_v3  ;;  %v4336_v20 = vld [vmem:[%s4815_s18 + $0xb4] sm:$0xf0]  ;;  %v3662_v22 = vld [vmem:[%s4815_s18 + $0x38] sm:$0xf0]  ;;  %v4335_v23 = vld [vmem:[%s4815_s18 + $0xb4] sm:$0xf]  ;;  %v3661_v25 = vor.u32 %v4320_v17, %v3660_v16 }
  0xbb   : > { %1350 = vmatpush.bf16.msra.mxu3 %v3745_v7  ;;  %v3726_v24 = vld [vmem:[%s4815_s18 + $0xb8] sm:$0xf0]  ;;  %v3725_v26 = vor.u32 %v4336_v20, %v3724_v18  ;;  %v3665_v27 = vor.u32 %v4319_v21, %v3662_v22  ;;  %v3652_v28 = vld [vmem:[%s4815_s18 + $0x20] sm:$0xf]  ;;  %v4318_v29 = vld [vmem:[%s4815_s18 + $0x24] sm:$0xf0] }
  0xbc   : > { %v3716_v30 = vld [vmem:[%s4815_s18 + $0xa0] sm:$0xf]  ;;  %v3729_v31 = vor.u32 %v4335_v23, %v3726_v24  ;;  %v4334_v32 = vld [vmem:[%s4815_s18 + $0xa4] sm:$0xf0]  ;;  %v4317_v33 = vld [vmem:[%s4815_s18 + $0x24] sm:$0xf]  ;;  %v3653_v37 = vor.u32 %v4318_v29, %v3652_v28 }
  0xbd   : > { %1084 = vmatpush.bf16.msra.mxu0 %v3669_v13  ;;  %v3654_v34 = vld [vmem:[%s4815_s18 + $0x28] sm:$0xf0]  ;;  %v4333_v35 = vld [vmem:[%s4815_s18 + $0xa4] sm:$0xf]  ;;  %v3717_v38 = vor.u32 %v4334_v32, %v3716_v30  ;;  %v3644_v40 = vld [vmem:[%s4815_s18 + $0x10] sm:$0xf] }
  0xbe   : > { %1173 = vmatpush.bf16.msra.mxu1 %v3733_v14  ;;  %1262 = vmatpush.bf16.msra.mxu2 %v3673_v15  ;;  %v3718_v36 = vld [vmem:[%s4815_s18 + $0xa8] sm:$0xf0]  ;;  %v3657_v39 = vor.u32 %v4317_v33, %v3654_v34  ;;  %v4316_v41 = vld [vmem:[%s4815_s18 + $0x14] sm:$0xf0]  ;;  %v3708_v42 = vld [vmem:[%s4815_s18 + $0x90] sm:$0xf] }
  0xbf   : > { %1351 = vmatpush.bf16.msra.mxu3 %v3737_v19  ;;  %v3721_v43 = vor.u32 %v4333_v35, %v3718_v36  ;;  %v4332_v44 = vld [vmem:[%s4815_s18 + $0x94] sm:$0xf0]  ;;  %v4315_v45 = vld [vmem:[%s4815_s18 + $0x14] sm:$0xf]  ;;  %v3646_v46 = vld [vmem:[%s4815_s18 + $0x18] sm:$0xf0]  ;;  %v3645_v49 = vor.u32 %v4316_v41, %v3644_v40 }
  0xc0   : > { %v4331_v47 = vld [vmem:[%s4815_s18 + $0x94] sm:$0xf]  ;;  %v3710_v48 = vld [vmem:[%s4815_s18 + $0x98] sm:$0xf0]  ;;  %v3709_v50 = vor.u32 %v4332_v44, %v3708_v42  ;;  %v3649_v51 = vor.u32 %v4315_v45, %v3646_v46  ;;  %v3636_v52 = vld [vmem:[%s4815_s18] sm:$0xf] }
  0xc1   : > { %1085 = vmatpush.bf16.msra.mxu0 %v3661_v25  ;;  %v4314_v53 = vld [vmem:[%s4815_s18 + $0x4] sm:$0xf0]  ;;  %v3700_v54 = vld [vmem:[%s4815_s18 + $0x80] sm:$0xf]  ;;  %v3713_v55 = vor.u32 %v4331_v47, %v3710_v48  ;;  %v4313_v57 = vld [vmem:[%s4815_s18 + $0x4] sm:$0xf] }
  0xc2   : > { %1174 = vmatpush.bf16.msra.mxu1 %v3725_v26  ;;  %1263 = vmatpush.bf16.msra.mxu2 %v3665_v27  ;;  %v4330_v56 = vld [vmem:[%s4815_s18 + $0x84] sm:$0xf0]  ;;  %v3638_v58 = vld [vmem:[%s4815_s18 + $0x8] sm:$0xf0]  ;;  %v4329_v59 = vld [vmem:[%s4815_s18 + $0x84] sm:$0xf]  ;;  %v3637_v61 = vor.u32 %v4314_v53, %v3636_v52 }
  0xc3   : > { %1352 = vmatpush.bf16.msra.mxu3 %v3729_v31  ;;  %v3702_v60 = vld [vmem:[%s4815_s18 + $0x88] sm:$0xf0]  ;;  %v3508_v62 = vld [vmem:[%s4817_s19] sm:$0xf]  ;;  %v4282_v63 = vld [vmem:[%s4817_s19 + $0x4] sm:$0xf0]  ;;  %v3701_v0 = vor.u32 %v4330_v56, %v3700_v54  ;;  %v3641_v1 = vor.u32 %v4313_v57, %v3638_v58 }
  0xc4   : > { %v4281_v2 = vld [vmem:[%s4817_s19 + $0x4] sm:$0xf]  ;;  %v3510_v3 = vld [vmem:[%s4817_s19 + $0x8] sm:$0xf0]  ;;  %v3705_v4 = vor.u32 %v4329_v59, %v3702_v60  ;;  %v3509_v5 = vor.u32 %v4282_v63, %v3508_v62  ;;  %v3516_v7 = vld [vmem:[%s4817_s19 + $0x10] sm:$0xf] }
  0xc5   : > { %1086 = vmatpush.bf16.msra.mxu0 %v3653_v37  ;;  %v3513_v6 = vor.u32 %v4281_v2, %v3510_v3  ;;  %v4284_v8 = vld [vmem:[%s4817_s19 + $0x14] sm:$0xf0]  ;;  %v4283_v9 = vld [vmem:[%s4817_s19 + $0x14] sm:$0xf]  ;;  %v3518_v10 = vld [vmem:[%s4817_s19 + $0x18] sm:$0xf0] }
  0xc6   : > { %1175 = vmatpush.bf16.msra.mxu1 %v3717_v38  ;;  %1264 = vmatpush.bf16.msra.mxu2 %v3657_v39  ;;  %v3517_v11 = vor.u32 %v4284_v8, %v3516_v7  ;;  %v3521_v12 = vor.u32 %v4283_v9, %v3518_v10  ;;  %v3524_v13 = vld [vmem:[%s4817_s19 + $0x20] sm:$0xf]  ;;  %v4286_v14 = vld [vmem:[%s4817_s19 + $0x24] sm:$0xf0]  ;;  %v4285_v15 = vld [vmem:[%s4817_s19 + $0x24] sm:$0xf] }
  0xc7   : > { %1353 = vmatpush.bf16.msra.mxu3 %v3721_v43  ;;  %v3526_v16 = vld [vmem:[%s4817_s19 + $0x28] sm:$0xf0]  ;;  %v3525_v17 = vor.u32 %v4286_v14, %v3524_v13  ;;  %v3532_v19 = vld [vmem:[%s4817_s19 + $0x30] sm:$0xf]  ;;  %v4288_v20 = vld [vmem:[%s4817_s19 + $0x34] sm:$0xf0] }
  0xc8   : > { %v3529_v18 = vor.u32 %v4285_v15, %v3526_v16  ;;  %v4287_v21 = vld [vmem:[%s4817_s19 + $0x34] sm:$0xf]  ;;  %v3534_v22 = vld [vmem:[%s4817_s19 + $0x38] sm:$0xf0]  ;;  %v3533_v23 = vor.u32 %v4288_v20, %v3532_v19  ;;  %v3540_v25 = vld [vmem:[%s4817_s19 + $0x40] sm:$0xf] }
  0xc9   : > { %1087 = vmatpush.bf16.msra.mxu0 %v3645_v49  ;;  %v3537_v24 = vor.u32 %v4287_v21, %v3534_v22  ;;  %v4290_v26 = vld [vmem:[%s4817_s19 + $0x44] sm:$0xf0]  ;;  %v4289_v27 = vld [vmem:[%s4817_s19 + $0x44] sm:$0xf]  ;;  %v3542_v28 = vld [vmem:[%s4817_s19 + $0x48] sm:$0xf0] }
  0xca   : > { %1176 = vmatpush.bf16.msra.mxu1 %v3709_v50  ;;  %1265 = vmatpush.bf16.msra.mxu2 %v3649_v51  ;;  %v3541_v29 = vor.u32 %v4290_v26, %v3540_v25  ;;  %v3545_v30 = vor.u32 %v4289_v27, %v3542_v28  ;;  %v3548_v31 = vld [vmem:[%s4817_s19 + $0x50] sm:$0xf]  ;;  %v4292_v32 = vld [vmem:[%s4817_s19 + $0x54] sm:$0xf0]  ;;  %v4291_v33 = vld [vmem:[%s4817_s19 + $0x54] sm:$0xf] }
  0xcb   : > { %1354 = vmatpush.bf16.msra.mxu3 %v3713_v55  ;;  %v3550_v34 = vld [vmem:[%s4817_s19 + $0x58] sm:$0xf0]  ;;  %v3549_v35 = vor.u32 %v4292_v32, %v3548_v31  ;;  %v3556_v37 = vld [vmem:[%s4817_s19 + $0x60] sm:$0xf]  ;;  %v4294_v38 = vld [vmem:[%s4817_s19 + $0x64] sm:$0xf0] }
  0xcc   : > { %v3553_v36 = vor.u32 %v4291_v33, %v3550_v34  ;;  %v4293_v39 = vld [vmem:[%s4817_s19 + $0x64] sm:$0xf]  ;;  %v3558_v40 = vld [vmem:[%s4817_s19 + $0x68] sm:$0xf0]  ;;  %v3557_v41 = vor.u32 %v4294_v38, %v3556_v37  ;;  %v3564_v43 = vld [vmem:[%s4817_s19 + $0x70] sm:$0xf] }
  0xcd   : > { %1088 = vmatpush.bf16.msra.mxu0 %v3637_v61  ;;  %v3561_v42 = vor.u32 %v4293_v39, %v3558_v40  ;;  %v4296_v44 = vld [vmem:[%s4817_s19 + $0x74] sm:$0xf0]  ;;  %v4295_v45 = vld [vmem:[%s4817_s19 + $0x74] sm:$0xf]  ;;  %v3566_v46 = vld [vmem:[%s4817_s19 + $0x78] sm:$0xf0] }
  0xce   : > { %1177 = vmatpush.bf16.msra.mxu1 %v3701_v0  ;;  %1266 = vmatpush.bf16.msra.mxu2 %v3641_v1  ;;  %v3565_v47 = vor.u32 %v4296_v44, %v3564_v43  ;;  %v3569_v48 = vor.u32 %v4295_v45, %v3566_v46  ;;  %v3572_v49 = vld [vmem:[%s4817_s19 + $0x80] sm:$0xf]  ;;  %v4298_v50 = vld [vmem:[%s4817_s19 + $0x84] sm:$0xf0]  ;;  %v4297_v51 = vld [vmem:[%s4817_s19 + $0x84] sm:$0xf] }
  0xcf   : > { %1355 = vmatpush.bf16.msra.mxu3 %v3705_v4  ;;  %v3574_v52 = vld [vmem:[%s4817_s19 + $0x88] sm:$0xf0]  ;;  %v3573_v53 = vor.u32 %v4298_v50, %v3572_v49  ;;  %v633_v56 = vld [vmem:[#allocation2 + $0xb0] sm:$0xff]  ;;  %v635_v1 = vld [vmem:[#allocation2 + $0xd8] sm:$0xff] }
  0xd0   : > { %1089 = vmatmul.bf16.vlgmr.msra.gmra.mxu0 %v3509_v5  ;;  %v3577_v55 = vor.u32 %v4297_v51, %v3574_v52  ;;  %v634_v61 = vld [vmem:[#allocation2 + $0x1b0] sm:$0xff]  ;;  %v4300_v7 = vld [vmem:[%s4817_s19 + $0x94] sm:$0xf0]  ;;  %v3582_v9 = vld [vmem:[%s4817_s19 + $0x98] sm:$0xf0] }
  0xd1   : > { %1178 = vmatmul.bf16.vlgmr.msra.gmra.mxu1 %v3513_v6  ;;  %1267 = vmatmul.bf16.vlgmr.msra.gmra.mxu2 %v3509_v5  ;;  %v4299_v8 = vld [vmem:[%s4817_s19 + $0x94] sm:$0xf]  ;;  %v3588_v32 = vld [vmem:[%s4817_s19 + $0xa0] sm:$0xf]  ;;  %v4302_v33 = vld [vmem:[%s4817_s19 + $0xa4] sm:$0xf0] }
  0xd2   : > { %1356 = vmatmul.bf16.vlgmr.msra.gmra.mxu3 %v3513_v6  ;;  %v3580_v6 = vld [vmem:[%s4817_s19 + $0x90] sm:$0xf]  ;;  %v3585_v15 = vor.u32 %v4299_v8, %v3582_v9  ;;  %v4301_v34 = vld [vmem:[%s4817_s19 + $0xa4] sm:$0xf]  ;;  %v3589_v37 = vor.u32 %v4302_v33, %v3588_v32  ;;  %v640_v38 = vld [vmem:[#allocation2 + $0x48] sm:$0xff] }
  0xd3   : > { %v639_v27 = vld [vmem:[#allocation2 + $0x130] sm:$0xff]  ;;  %v641_v43 = vld [vmem:[#allocation2 + $0x180] sm:$0xff] }
  0xd4   : > { %v642_v49 = vld [vmem:[#allocation2 + $0x110] sm:$0xff] }
  0xe0   : > { %1094 = vmatmul.bf16.gmra.mxu0 %v3517_v11 }
  0xe1   : > { %1183 = vmatmul.bf16.gmra.mxu1 %v3521_v12  ;;  %1272 = vmatmul.bf16.gmra.mxu2 %v3517_v11  ;;  %v3581_v11 = vor.u32 %v4300_v7, %v3580_v6 }
  0xe2   : > { %1361 = vmatmul.bf16.gmra.mxu3 %v3521_v12  ;;  %v636_v12 = vld [vmem:[#allocation2 + $0x18] sm:$0xff] }
  0xf0   : > { %1099 = vmatmul.bf16.gmra.mxu0 %v3525_v17 }
  0xf1   : > { %1188 = vmatmul.bf16.gmra.mxu1 %v3529_v18  ;;  %1277 = vmatmul.bf16.gmra.mxu2 %v3525_v17  ;;  %v637_v17 = vld [vmem:[#allocation2 + $0x50] sm:$0xff] }
  0xf2   : > { %1366 = vmatmul.bf16.gmra.mxu3 %v3529_v18 }
 0x100   : > { %1104 = vmatmul.bf16.gmra.mxu0 %v3533_v23 }
 0x101   : > { %1193 = vmatmul.bf16.gmra.mxu1 %v3537_v24  ;;  %1282 = vmatmul.bf16.gmra.mxu2 %v3533_v23  ;;  %v638_v23 = vld [vmem:[#allocation2 + $0x168] sm:$0xff] }
 0x102   : > { %1371 = vmatmul.bf16.gmra.mxu3 %v3537_v24 }
 0x110   : > { %1109 = vmatmul.bf16.gmra.mxu0 %v3541_v29 }
 0x111   : > { %1198 = vmatmul.bf16.gmra.mxu1 %v3545_v30  ;;  %1287 = vmatmul.bf16.gmra.mxu2 %v3541_v29 }
 0x112   : > { %1376 = vmatmul.bf16.gmra.mxu3 %v3545_v30 }
 0x120   : > { %1114 = vmatmul.bf16.gmra.mxu0 %v3549_v35 }
 0x121   : > { %1203 = vmatmul.bf16.gmra.mxu1 %v3553_v36  ;;  %1292 = vmatmul.bf16.gmra.mxu2 %v3549_v35  ;;  %v3590_v35 = vld [vmem:[%s4817_s19 + $0xa8] sm:$0xf0] }
 0x122   : > { %1381 = vmatmul.bf16.gmra.mxu3 %v3553_v36 }
 0x130   : > { %1119 = vmatmul.bf16.gmra.mxu0 %v3557_v41 }
 0x131   : > { %1208 = vmatmul.bf16.gmra.mxu1 %v3561_v42  ;;  %1297 = vmatmul.bf16.gmra.mxu2 %v3557_v41  ;;  %v3593_v41 = vor.u32 %v4301_v34, %v3590_v35 }
 0x132   : > { %1386 = vmatmul.bf16.gmra.mxu3 %v3561_v42 }
 0x140   : > { %1124 = vmatmul.bf16.gmra.mxu0 %v3565_v47 }
 0x141   : > { %1213 = vmatmul.bf16.gmra.mxu1 %v3569_v48  ;;  %1302 = vmatmul.bf16.gmra.mxu2 %v3565_v47 }
 0x142   : > { %1391 = vmatmul.bf16.gmra.mxu3 %v3569_v48 }
 0x14d   : > { %v1090_v54 = vpop.f32.mrf.mxu0 }
 0x14e   : > { %v1179_v57 = vpop.f32.mrf.mxu1 }
 0x14f   : > { %v1180_v58 = vadd.f32 %v1179_v57, %v1090_v54 }
 0x150   : > { %1129 = vmatmul.bf16.gmra.mxu0 %v3573_v53 }
 0x151   : > { %v1437_v59 = vadd.f32 %v1180_v58, %v633_v56  ;;  %1218 = vmatmul.bf16.gmra.mxu1 %v3577_v55  ;;  %1307 = vmatmul.bf16.gmra.mxu2 %v3573_v53  ;;  %v643_v53 = vld [vmem:[#allocation2 + $0x118] sm:$0xff]  ;;  %v3596_v58 = vld [vmem:[%s4817_s19 + $0xb0] sm:$0xf] }
 0x152   : > { %1396 = vmatmul.bf16.gmra.mxu3 %v3577_v55 }
 0x153   : > { %1501 = vst [vmem:[#allocation2 + $0xb0] sm:$0xff] %v1437_v59  ;;  %v4304_v59 = vld [vmem:[%s4817_s19 + $0xb4] sm:$0xf0] }
 0x154   : > { %v1268_v60 = vpop.f32.mrf.mxu2 }
 0x155   : > { %v1357_v62 = vpop.f32.mrf.mxu3  ;;  %v1092_v63 = vpop.f32.mrf.mxu0 }
 0x156   : > { %v1358_v0 = vadd.f32 %v1357_v62, %v1268_v60  ;;  %v1181_v2 = vpop.f32.mrf.mxu1  ;;  %v4303_v60 = vld [vmem:[%s4817_s19 + $0xb4] sm:$0xf] }
 0x157   : > { %v1182_v3 = vadd.f32 %v1181_v2, %v1092_v63  ;;  %v3597_v63 = vor.u32 %v4304_v59, %v3596_v58 }
 0x158   : > { %v1438_v4 = vadd.f32 %v1358_v0, %v634_v61  ;;  %v3598_v61 = vld [vmem:[%s4817_s19 + $0xb8] sm:$0xf0] }
 0x159   : > { %v1439_v5 = vadd.f32 %v1182_v3, %v635_v1  ;;  %v644_v0 = vld [vmem:[#allocation2 + $0x98] sm:$0xff]  ;;  %v3601_v3 = vor.u32 %v4303_v60, %v3598_v61 }
 0x15a   : > { %1502 = vst [vmem:[#allocation2 + $0x1b0] sm:$0xff] %v1438_v4 }
 0x15b   : > { %1503 = vst [vmem:[#allocation2 + $0xd8] sm:$0xff] %v1439_v5  ;;  %v645_v5 = vld [vmem:[#allocation2 + $0x120] sm:$0xff] }
 0x15c   : > { %v1270_v10 = vpop.f32.mrf.mxu2 }
 0x15d   : > { %v1359_v13 = vpop.f32.mrf.mxu3  ;;  %v1095_v14 = vpop.f32.mrf.mxu0 }
 0x15e   : > { %v1360_v16 = vadd.f32 %v1359_v13, %v1270_v10  ;;  %v1184_v18 = vpop.f32.mrf.mxu1 }
 0x15f   : > { %v1185_v19 = vadd.f32 %v1184_v18, %v1095_v14 }
 0x160   : > { %v1440_v20 = vadd.f32 %v1360_v16, %v636_v12  ;;  %1134 = vmatmul.bf16.gmra.mxu0 %v3581_v11 }
 0x161   : > { %v1441_v21 = vadd.f32 %v1185_v19, %v637_v17  ;;  %1223 = vmatmul.bf16.gmra.mxu1 %v3585_v15  ;;  %1312 = vmatmul.bf16.gmra.mxu2 %v3581_v11  ;;  %v646_v11 = vld [vmem:[#allocation2 + $0x150] sm:$0xff] }
 0x162   : > { %1504 = vst [vmem:[#allocation2 + $0x18] sm:$0xff] %v1440_v20  ;;  %1401 = vmatmul.bf16.gmra.mxu3 %v3585_v15  ;;  %v647_v15 = vld [vmem:[#allocation2 + $0x108] sm:$0xff]  ;;  %v3604_v20 = vld [vmem:[%s4817_s19 + $0xc0] sm:$0xf] }
 0x163   : > { %1505 = vst [vmem:[#allocation2 + $0x50] sm:$0xff] %v1441_v21  ;;  %v4306_v21 = vld [vmem:[%s4817_s19 + $0xc4] sm:$0xf0] }
 0x164   : > { %v1273_v22 = vpop.f32.mrf.mxu2 }
 0x165   : > { %v1362_v24 = vpop.f32.mrf.mxu3  ;;  %v1097_v25 = vpop.f32.mrf.mxu0 }
 0x166   : > { %v1363_v26 = vadd.f32 %v1362_v24, %v1273_v22  ;;  %v1186_v28 = vpop.f32.mrf.mxu1  ;;  %v4305_v22 = vld [vmem:[%s4817_s19 + $0xc4] sm:$0xf] }
 0x167   : > { %v1187_v29 = vadd.f32 %v1186_v28, %v1097_v25  ;;  %v3605_v25 = vor.u32 %v4306_v21, %v3604_v20 }
 0x168   : > { %v1442_v30 = vadd.f32 %v1363_v26, %v638_v23  ;;  %v3606_v23 = vld [vmem:[%s4817_s19 + $0xc8] sm:$0xf0]  ;;  %v648_v26 = vld [vmem:[#allocation2 + $0x60] sm:$0xff] }
 0x169   : > { %v1443_v31 = vadd.f32 %v1187_v29, %v639_v27  ;;  %v3609_v29 = vor.u32 %v4305_v22, %v3606_v23 }
 0x16a   : > { %1506 = vst [vmem:[#allocation2 + $0x168] sm:$0xff] %v1442_v30 }
 0x16b   : > { %1507 = vst [vmem:[#allocation2 + $0x130] sm:$0xff] %v1443_v31  ;;  %v649_v31 = vld [vmem:[#allocation2 + $0xe0] sm:$0xff] }
 0x16c   : > { %v1275_v36 = vpop.f32.mrf.mxu2 }
 0x16d   : > { %v1364_v39 = vpop.f32.mrf.mxu3  ;;  %v1100_v40 = vpop.f32.mrf.mxu0 }
 0x16e   : > { %v1365_v42 = vadd.f32 %v1364_v39, %v1275_v36  ;;  %v1189_v44 = vpop.f32.mrf.mxu1 }
 0x16f   : > { %v1190_v45 = vadd.f32 %v1189_v44, %v1100_v40 }
 0x170   : > { %v1444_v46 = vadd.f32 %v1365_v42, %v640_v38  ;;  %1139 = vmatmul.bf16.gmra.mxu0 %v3589_v37 }
 0x171   : > { %v1445_v47 = vadd.f32 %v1190_v45, %v641_v43  ;;  %1228 = vmatmul.bf16.gmra.mxu1 %v3593_v41  ;;  %1317 = vmatmul.bf16.gmra.mxu2 %v3589_v37  ;;  %v650_v37 = vld [vmem:[#allocation2 + $0x188] sm:$0xff] }
 0x172   : > { %1508 = vst [vmem:[#allocation2 + $0x48] sm:$0xff] %v1444_v46  ;;  %1406 = vmatmul.bf16.gmra.mxu3 %v3593_v41  ;;  %v651_v41 = vld [vmem:[#allocation2 + $0x138] sm:$0xff]  ;;  %v3612_v46 = vld [vmem:[%s4817_s19 + $0xd0] sm:$0xf] }
 0x173   : > { %1509 = vst [vmem:[#allocation2 + $0x180] sm:$0xff] %v1445_v47  ;;  %v4308_v47 = vld [vmem:[%s4817_s19 + $0xd4] sm:$0xf0] }
 0x174   : > { %v1278_v48 = vpop.f32.mrf.mxu2 }
 0x175   : > { %v1367_v50 = vpop.f32.mrf.mxu3  ;;  %v1102_v51 = vpop.f32.mrf.mxu0 }
 0x176   : > { %v1368_v52 = vadd.f32 %v1367_v50, %v1278_v48  ;;  %v1191_v54 = vpop.f32.mrf.mxu1  ;;  %v4307_v48 = vld [vmem:[%s4817_s19 + $0xd4] sm:$0xf] }
 0x177   : > { %v1192_v55 = vadd.f32 %v1191_v54, %v1102_v51  ;;  %v3613_v51 = vor.u32 %v4308_v47, %v3612_v46 }
 0x178   : > { %v1446_v56 = vadd.f32 %v1368_v52, %v642_v49  ;;  %v3614_v49 = vld [vmem:[%s4817_s19 + $0xd8] sm:$0xf0]  ;;  %v652_v52 = vld [vmem:[#allocation2 + $0x140] sm:$0xff] }
 0x179   : > { %v1447_v57 = vadd.f32 %v1192_v55, %v643_v53  ;;  %v3617_v55 = vor.u32 %v4307_v48, %v3614_v49 }
 0x17a   : > { %1510 = vst [vmem:[#allocation2 + $0x110] sm:$0xff] %v1446_v56 }
 0x17b   : > { %1511 = vst [vmem:[#allocation2 + $0x118] sm:$0xff] %v1447_v57  ;;  %v653_v57 = vld [vmem:[#allocation2 + $0x80] sm:$0xff] }
 0x17c   : > { %v1280_v62 = vpop.f32.mrf.mxu2 }
 0x17d   : > { %v1369_v1 = vpop.f32.mrf.mxu3  ;;  %v1105_v2 = vpop.f32.mrf.mxu0 }
 0x17e   : > { %v1370_v4 = vadd.f32 %v1369_v1, %v1280_v62  ;;  %v1194_v6 = vpop.f32.mrf.mxu1 }
 0x17f   : > { %v1195_v7 = vadd.f32 %v1194_v6, %v1105_v2 }
 0x180   : > { %v1448_v8 = vadd.f32 %v1370_v4, %v644_v0  ;;  %1144 = vmatmul.bf16.gmra.mxu0 %v3597_v63 }
 0x181   : > { %v1449_v9 = vadd.f32 %v1195_v7, %v645_v5  ;;  %1233 = vmatmul.bf16.gmra.mxu1 %v3601_v3  ;;  %1322 = vmatmul.bf16.gmra.mxu2 %v3597_v63  ;;  %v654_v63 = vld [vmem:[#allocation2 + $0x1a8] sm:$0xff] }
 0x182   : > { %1512 = vst [vmem:[#allocation2 + $0x98] sm:$0xff] %v1448_v8  ;;  %1411 = vmatmul.bf16.gmra.mxu3 %v3601_v3  ;;  %v655_v3 = vld [vmem:[#allocation2 + $0x1b8] sm:$0xff]  ;;  %v3620_v8 = vld [vmem:[%s4817_s19 + $0xe0] sm:$0xf] }
 0x183   : > { %1513 = vst [vmem:[#allocation2 + $0x120] sm:$0xff] %v1449_v9  ;;  %v4310_v9 = vld [vmem:[%s4817_s19 + $0xe4] sm:$0xf0] }
 0x184   : > { %v1283_v10 = vpop.f32.mrf.mxu2 }
 0x185   : > { %v1372_v12 = vpop.f32.mrf.mxu3  ;;  %v1107_v13 = vpop.f32.mrf.mxu0 }
 0x186   : > { %v1373_v14 = vadd.f32 %v1372_v12, %v1283_v10  ;;  %v1196_v16 = vpop.f32.mrf.mxu1  ;;  %v4309_v10 = vld [vmem:[%s4817_s19 + $0xe4] sm:$0xf] }
 0x187   : > { %v1197_v17 = vadd.f32 %v1196_v16, %v1107_v13  ;;  %v3621_v13 = vor.u32 %v4310_v9, %v3620_v8 }
 0x188   : > { %v1450_v18 = vadd.f32 %v1373_v14, %v646_v11  ;;  %v3622_v11 = vld [vmem:[%s4817_s19 + $0xe8] sm:$0xf0] }
 0x189   : > { %v1451_v19 = vadd.f32 %v1197_v17, %v647_v15  ;;  %v656_v14 = vld [vmem:[#allocation2 + $0x28] sm:$0xff]  ;;  %v3625_v17 = vor.u32 %v4309_v10, %v3622_v11  ;;  %v667_v11 = vld [vmem:[#allocation2 + $0x100] sm:$0xff] }
 0x18a   : > { %1514 = vst [vmem:[#allocation2 + $0x150] sm:$0xff] %v1450_v18 }
 0x18b   : > { %1515 = vst [vmem:[#allocation2 + $0x108] sm:$0xff] %v1451_v19  ;;  %v657_v19 = vld [vmem:[#allocation2 + $0x1e8] sm:$0xff] }
 0x18c   : > { %v1285_v24 = vpop.f32.mrf.mxu2 }
 0x18d   : > { %v1374_v27 = vpop.f32.mrf.mxu3  ;;  %v1110_v28 = vpop.f32.mrf.mxu0 }
 0x18e   : > { %v1375_v30 = vadd.f32 %v1374_v27, %v1285_v24  ;;  %v1199_v32 = vpop.f32.mrf.mxu1 }
 0x18f   : > { %v1200_v33 = vadd.f32 %v1199_v32, %v1110_v28 }
 0x190   : > { %v1452_v34 = vadd.f32 %v1375_v30, %v648_v26  ;;  %1149 = vmatmul.bf16.gmra.mxu0 %v3605_v25 }
 0x191   : > { %v1453_v35 = vadd.f32 %v1200_v33, %v649_v31  ;;  %1238 = vmatmul.bf16.gmra.mxu1 %v3609_v29  ;;  %1327 = vmatmul.bf16.gmra.mxu2 %v3605_v25  ;;  %v658_v25 = vld [vmem:[#allocation2 + $0xf8] sm:$0xff] }
 0x192   : > { %1516 = vst [vmem:[#allocation2 + $0x60] sm:$0xff] %v1452_v34  ;;  %1416 = vmatmul.bf16.gmra.mxu3 %v3609_v29  ;;  %v659_v29 = vld [vmem:[#allocation2 + $0x160] sm:$0xff]  ;;  %v3628_v34 = vld [vmem:[%s4817_s19 + $0xf0] sm:$0xf] }
 0x193   : > { %1517 = vst [vmem:[#allocation2 + $0xe0] sm:$0xff] %v1453_v35  ;;  %v4312_v35 = vld [vmem:[%s4817_s19 + $0xf4] sm:$0xf0] }
 0x194   : > { %v1288_v36 = vpop.f32.mrf.mxu2 }
 0x195   : > { %v1377_v38 = vpop.f32.mrf.mxu3  ;;  %v1112_v39 = vpop.f32.mrf.mxu0 }
 0x196   : > { %v1378_v40 = vadd.f32 %v1377_v38, %v1288_v36  ;;  %v1201_v42 = vpop.f32.mrf.mxu1  ;;  %v4311_v36 = vld [vmem:[%s4817_s19 + $0xf4] sm:$0xf] }
 0x197   : > { %v1202_v43 = vadd.f32 %v1201_v42, %v1112_v39  ;;  %v3629_v39 = vor.u32 %v4312_v35, %v3628_v34 }
 0x198   : > { %v1454_v44 = vadd.f32 %v1378_v40, %v650_v37  ;;  %v3630_v37 = vld [vmem:[%s4817_s19 + $0xf8] sm:$0xf0]  ;;  %v660_v40 = vld [vmem:[#allocation2 + $0x30] sm:$0xff] }
 0x199   : > { %v1455_v45 = vadd.f32 %v1202_v43, %v651_v41  ;;  %v3633_v43 = vor.u32 %v4311_v36, %v3630_v37  ;;  %v672_v37 = vld [vmem:[#allocation2 + $0x128] sm:$0xff] }
 0x19a   : > { %1518 = vst [vmem:[#allocation2 + $0x188] sm:$0xff] %v1454_v44 }
 0x19b   : > { %1519 = vst [vmem:[#allocation2 + $0x138] sm:$0xff] %v1455_v45  ;;  %v661_v45 = vld [vmem:[#allocation2 + $0x1e0] sm:$0xff] }
 0x19c   : > { %v1290_v50 = vpop.f32.mrf.mxu2 }
 0x19d   : > { %v1379_v53 = vpop.f32.mrf.mxu3  ;;  %v1115_v54 = vpop.f32.mrf.mxu0 }
 0x19e   : > { %v1380_v56 = vadd.f32 %v1379_v53, %v1290_v50  ;;  %v1204_v58 = vpop.f32.mrf.mxu1 }
 0x19f   : > { %v1205_v59 = vadd.f32 %v1204_v58, %v1115_v54 }
 0x1a0   : > { %v1456_v60 = vadd.f32 %v1380_v56, %v652_v52  ;;  %1154 = vmatmul.bf16.gmra.mxu0 %v3613_v51 }
 0x1a1   : > { %v1457_v61 = vadd.f32 %v1205_v59, %v653_v57  ;;  %1243 = vmatmul.bf16.gmra.mxu1 %v3617_v55  ;;  %1332 = vmatmul.bf16.gmra.mxu2 %v3613_v51  ;;  %v662_v51 = vld [vmem:[#allocation2] sm:$0xff] }
 0x1a2   : > { %1520 = vst [vmem:[#allocation2 + $0x140] sm:$0xff] %v1456_v60  ;;  %1421 = vmatmul.bf16.gmra.mxu3 %v3617_v55  ;;  %v663_v55 = vld [vmem:[#allocation2 + $0xf0] sm:$0xff] }
 0x1a3   : > { %1521 = vst [vmem:[#allocation2 + $0x80] sm:$0xff] %v1457_v61  ;;  %v664_v61 = vld [vmem:[#allocation2 + $0x8] sm:$0xff] }
 0x1a4   : > { %v1293_v62 = vpop.f32.mrf.mxu2 }
 0x1a5   : > { %v1382_v0 = vpop.f32.mrf.mxu3  ;;  %v1117_v1 = vpop.f32.mrf.mxu0 }
 0x1a6   : > { %v1383_v2 = vadd.f32 %v1382_v0, %v1293_v62  ;;  %v1206_v4 = vpop.f32.mrf.mxu1 }
 0x1a7   : > { %v1207_v5 = vadd.f32 %v1206_v4, %v1117_v1  ;;  %v665_v1 = vld [vmem:[#allocation2 + $0x148] sm:$0xff] }
 0x1a8   : > { %v1458_v6 = vadd.f32 %v1383_v2, %v654_v63 }
 0x1a9   : > { %v1459_v7 = vadd.f32 %v1207_v5, %v655_v3 }
 0x1aa   : > { %1522 = vst [vmem:[#allocation2 + $0x1a8] sm:$0xff] %v1458_v6 }
 0x1ab   : > { %1523 = vst [vmem:[#allocation2 + $0x1b8] sm:$0xff] %v1459_v7  ;;  %v666_v7 = vld [vmem:[#allocation2 + $0x1d0] sm:$0xff] }
 0x1ac   : > { %v1295_v12 = vpop.f32.mrf.mxu2 }
 0x1ad   : > { %v1384_v15 = vpop.f32.mrf.mxu3  ;;  %v1120_v16 = vpop.f32.mrf.mxu0 }
 0x1ae   : > { %v1385_v18 = vadd.f32 %v1384_v15, %v1295_v12  ;;  %v1209_v20 = vpop.f32.mrf.mxu1 }
 0x1af   : > { %v1210_v21 = vadd.f32 %v1209_v20, %v1120_v16 }
 0x1b0   : > { %v1460_v22 = vadd.f32 %v1385_v18, %v656_v14  ;;  %1159 = vmatmul.bf16.gmra.mxu0 %v3621_v13 }
 0x1b1   : > { %v1461_v23 = vadd.f32 %v1210_v21, %v657_v19  ;;  %1248 = vmatmul.bf16.gmra.mxu1 %v3625_v17  ;;  %1337 = vmatmul.bf16.gmra.mxu2 %v3621_v13  ;;  %v669_v21 = vld [vmem:[#allocation2 + $0x40] sm:$0xff] }
 0x1b2   : > { %1524 = vst [vmem:[#allocation2 + $0x28] sm:$0xff] %v1460_v22  ;;  %1426 = vmatmul.bf16.gmra.mxu3 %v3625_v17  ;;  %v668_v17 = vld [vmem:[#allocation2 + $0xc8] sm:$0xff] }
 0x1b3   : > { %1525 = vst [vmem:[#allocation2 + $0x1e8] sm:$0xff] %v1461_v23 }
 0x1b4   : > { %v1298_v24 = vpop.f32.mrf.mxu2 }
 0x1b5   : > { %v1387_v26 = vpop.f32.mrf.mxu3  ;;  %v1122_v27 = vpop.f32.mrf.mxu0 }
 0x1b6   : > { %v1388_v28 = vadd.f32 %v1387_v26, %v1298_v24  ;;  %v1211_v30 = vpop.f32.mrf.mxu1 }
 0x1b7   : > { %v1212_v31 = vadd.f32 %v1211_v30, %v1122_v27  ;;  %v670_v27 = vld [vmem:[#allocation2 + $0x1f8] sm:$0xff] }
 0x1b8   : > { %v1462_v32 = vadd.f32 %v1388_v28, %v658_v25 }
 0x1b9   : > { %v1463_v33 = vadd.f32 %v1212_v31, %v659_v29  ;;  %v671_v31 = vld [vmem:[#allocation2 + $0x20] sm:$0xff] }
 0x1ba   : > { %1526 = vst [vmem:[#allocation2 + $0xf8] sm:$0xff] %v1462_v32 }
 0x1bb   : > { %1527 = vst [vmem:[#allocation2 + $0x160] sm:$0xff] %v1463_v33 }
 0x1bc   : > { %v1300_v38 = vpop.f32.mrf.mxu2 }
 0x1bd   : > { %v1389_v41 = vpop.f32.mrf.mxu3  ;;  %v1125_v42 = vpop.f32.mrf.mxu0 }
 0x1be   : > { %v1390_v44 = vadd.f32 %v1389_v41, %v1300_v38  ;;  %v1214_v46 = vpop.f32.mrf.mxu1  ;;  %v673_v41 = vld [vmem:[#allocation2 + $0x1a0] sm:$0xff] }
 0x1bf   : > { %v1215_v47 = vadd.f32 %v1214_v46, %v1125_v42 }
 0x1c0   : > { %v1464_v48 = vadd.f32 %v1390_v44, %v660_v40  ;;  %1164 = vmatmul.bf16.gmra.mxu0 %v3629_v39 }
 0x1c1   : > { %v1465_v49 = vadd.f32 %v1215_v47, %v661_v45  ;;  %1253 = vmatmul.bf16.gmra.mxu1 %v3633_v43  ;;  %1342 = vmatmul.bf16.gmra.mxu2 %v3629_v39  ;;  %v674_v47 = vld [vmem:[#allocation2 + $0x1f0] sm:$0xff] }
 0x1c2   : > { %1528 = vst [vmem:[#allocation2 + $0x30] sm:$0xff] %v1464_v48  ;;  %1431 = vmatmul.bf16.gmra.mxu3 %v3633_v43 }
 0x1c3   : > { %1529 = vst [vmem:[#allocation2 + $0x1e0] sm:$0xff] %v1465_v49 }
 0x1c4   : > { %v1303_v50 = vpop.f32.mrf.mxu2 }
 0x1c5   : > { %v1392_v52 = vpop.f32.mrf.mxu3  ;;  %v1127_v53 = vpop.f32.mrf.mxu0 }
 0x1c6   : > { %v1393_v54 = vadd.f32 %v1392_v52, %v1303_v50  ;;  %v1216_v56 = vpop.f32.mrf.mxu1 }
 0x1c7   : > { %v1217_v57 = vadd.f32 %v1216_v56, %v1127_v53 }
 0x1c8   : > { %v1466_v58 = vadd.f32 %v1393_v54, %v662_v51  ;;  %v675_v51 = vld [vmem:[#allocation2 + $0xe8] sm:$0xff] }
 0x1c9   : > { %v1467_v59 = vadd.f32 %v1217_v57, %v663_v55  ;;  %v676_v57 = vld [vmem:[#allocation2 + $0x78] sm:$0xff] }
 0x1ca   : > { %1530 = vst [vmem:[#allocation2] sm:$0xff] %v1466_v58 }
 0x1cb   : > { %1531 = vst [vmem:[#allocation2 + $0xf0] sm:$0xff] %v1467_v59 }
 0x1cc   : > { %v1305_v60 = vpop.f32.mrf.mxu2 }
 0x1cd   : > { %v1394_v62 = vpop.f32.mrf.mxu3  ;;  %v1130_v63 = vpop.f32.mrf.mxu0 }
 0x1ce   : > { %v1395_v0 = vadd.f32 %v1394_v62, %v1305_v60  ;;  %v1219_v2 = vpop.f32.mrf.mxu1 }
 0x1cf   : > { %v1220_v3 = vadd.f32 %v1219_v2, %v1130_v63 }
 0x1d0   : > { %v1468_v4 = vadd.f32 %v1395_v0, %v664_v61  ;;  %v677_v61 = vld [vmem:[#allocation2 + $0x70] sm:$0xff] }
 0x1d1   : > { %v1469_v5 = vadd.f32 %v1220_v3, %v665_v1  ;;  %v678_v3 = vld [vmem:[#allocation2 + $0x90] sm:$0xff] }
 0x1d2   : > { %1532 = vst [vmem:[#allocation2 + $0x8] sm:$0xff] %v1468_v4 }
 0x1d3   : > { %1533 = vst [vmem:[#allocation2 + $0x148] sm:$0xff] %v1469_v5 }
 0x1d4   : > { %v1308_v6 = vpop.f32.mrf.mxu2 }
 0x1d5   : > { %v1397_v8 = vpop.f32.mrf.mxu3  ;;  %v1132_v9 = vpop.f32.mrf.mxu0 }
 0x1d6   : > { %v1398_v10 = vadd.f32 %v1397_v8, %v1308_v6  ;;  %v1221_v12 = vpop.f32.mrf.mxu1 }
 0x1d7   : > { %v1222_v13 = vadd.f32 %v1221_v12, %v1132_v9 }
 0x1d8   : > { %v1470_v14 = vadd.f32 %v1398_v10, %v666_v7  ;;  %v679_v7 = vld [vmem:[#allocation2 + $0x1d8] sm:$0xff] }
 0x1d9   : > { %v1471_v15 = vadd.f32 %v1222_v13, %v667_v11  ;;  %v680_v13 = vld [vmem:[#allocation2 + $0xd0] sm:$0xff] }
 0x1da   : > { %1534 = vst [vmem:[#allocation2 + $0x1d0] sm:$0xff] %v1470_v14 }
 0x1db   : > { %1535 = vst [vmem:[#allocation2 + $0x100] sm:$0xff] %v1471_v15 }
 0x1dc   : > { %v1310_v16 = vpop.f32.mrf.mxu2 }
 0x1dd   : > { %v1399_v18 = vpop.f32.mrf.mxu3  ;;  %v1135_v19 = vpop.f32.mrf.mxu0 }
 0x1de   : > { %v1400_v20 = vadd.f32 %v1399_v18, %v1310_v16  ;;  %v1224_v22 = vpop.f32.mrf.mxu1 }
 0x1df   : > { %v1225_v23 = vadd.f32 %v1224_v22, %v1135_v19 }
 0x1e0   : > { %v1472_v24 = vadd.f32 %v1400_v20, %v668_v17  ;;  %v681_v17 = vld [vmem:[#allocation2 + $0xb8] sm:$0xff] }
 0x1e1   : > { %v1473_v25 = vadd.f32 %v1225_v23, %v669_v21  ;;  %v682_v23 = vld [vmem:[#allocation2 + $0x88] sm:$0xff] }
 0x1e2   : > { %1536 = vst [vmem:[#allocation2 + $0xc8] sm:$0xff] %v1472_v24 }
 0x1e3   : > { %1537 = vst [vmem:[#allocation2 + $0x40] sm:$0xff] %v1473_v25 }
 0x1e4   : > { %v1313_v26 = vpop.f32.mrf.mxu2 }
 0x1e5   : > { %v1402_v28 = vpop.f32.mrf.mxu3  ;;  %v1137_v29 = vpop.f32.mrf.mxu0 }
 0x1e6   : > { %v1403_v30 = vadd.f32 %v1402_v28, %v1313_v26  ;;  %v1226_v32 = vpop.f32.mrf.mxu1 }
 0x1e7   : > { %v1227_v33 = vadd.f32 %v1226_v32, %v1137_v29 }
 0x1e8   : > { %v1474_v34 = vadd.f32 %v1403_v30, %v670_v27  ;;  %v683_v27 = vld [vmem:[#allocation2 + $0xa8] sm:$0xff] }
 0x1e9   : > { %v1475_v35 = vadd.f32 %v1227_v33, %v671_v31  ;;  %v684_v33 = vld [vmem:[#allocation2 + $0x1c8] sm:$0xff] }
 0x1ea   : > { %1538 = vst [vmem:[#allocation2 + $0x1f8] sm:$0xff] %v1474_v34 }
 0x1eb   : > { %1539 = vst [vmem:[#allocation2 + $0x20] sm:$0xff] %v1475_v35 }
 0x1ec   : > { %v1315_v36 = vpop.f32.mrf.mxu2 }
 0x1ed   : > { %v1404_v38 = vpop.f32.mrf.mxu3  ;;  %v1140_v39 = vpop.f32.mrf.mxu0 }
 0x1ee   : > { %v1405_v40 = vadd.f32 %v1404_v38, %v1315_v36  ;;  %v1229_v42 = vpop.f32.mrf.mxu1 }
 0x1ef   : > { %v1230_v43 = vadd.f32 %v1229_v42, %v1140_v39 }
 0x1f0   : > { %v1476_v44 = vadd.f32 %v1405_v40, %v672_v37  ;;  %v685_v37 = vld [vmem:[#allocation2 + $0x170] sm:$0xff] }
 0x1f1   : > { %v1477_v45 = vadd.f32 %v1230_v43, %v673_v41  ;;  %v686_v43 = vld [vmem:[#allocation2 + $0x178] sm:$0xff] }
 0x1f2   : > { %1540 = vst [vmem:[#allocation2 + $0x128] sm:$0xff] %v1476_v44 }
 0x1f3   : > { %1541 = vst [vmem:[#allocation2 + $0x1a0] sm:$0xff] %v1477_v45 }
 0x1f4   : > { %v1318_v46 = vpop.f32.mrf.mxu2 }
 0x1f5   : > { %v1407_v48 = vpop.f32.mrf.mxu3  ;;  %v1142_v49 = vpop.f32.mrf.mxu0 }
 0x1f6   : > { %v1408_v50 = vadd.f32 %v1407_v48, %v1318_v46  ;;  %v1231_v52 = vpop.f32.mrf.mxu1 }
 0x1f7   : > { %v1232_v53 = vadd.f32 %v1231_v52, %v1142_v49 }
 0x1f8   : > { %v1478_v54 = vadd.f32 %v1408_v50, %v674_v47  ;;  %v687_v47 = vld [vmem:[#allocation2 + $0x68] sm:$0xff] }
 0x1f9   : > { %v1479_v55 = vadd.f32 %v1232_v53, %v675_v51  ;;  %v688_v53 = vld [vmem:[#allocation2 + $0x190] sm:$0xff] }
 0x1fa   : > { %1542 = vst [vmem:[#allocation2 + $0x1f0] sm:$0xff] %v1478_v54 }
 0x1fb   : > { %1543 = vst [vmem:[#allocation2 + $0xe8] sm:$0xff] %v1479_v55 }
 0x1fc   : > { %v1320_v56 = vpop.f32.mrf.mxu2 }
 0x1fd   : > { %v1409_v58 = vpop.f32.mrf.mxu3  ;;  %v1145_v59 = vpop.f32.mrf.mxu0 }
 0x1fe   : > { %v1410_v60 = vadd.f32 %v1409_v58, %v1320_v56  ;;  %v1234_v62 = vpop.f32.mrf.mxu1 }
 0x1ff   : > { %v1235_v63 = vadd.f32 %v1234_v62, %v1145_v59 }
 0x200   : > { %v1480_v0 = vadd.f32 %v1410_v60, %v676_v57  ;;  %v689_v57 = vld [vmem:[#allocation2 + $0x198] sm:$0xff] }
 0x201   : > { %v1481_v1 = vadd.f32 %v1235_v63, %v677_v61  ;;  %v690_v63 = vld [vmem:[#allocation2 + $0x38] sm:$0xff] }
 0x202   : > { %1544 = vst [vmem:[#allocation2 + $0x78] sm:$0xff] %v1480_v0 }
 0x203   : > { %1545 = vst [vmem:[#allocation2 + $0x70] sm:$0xff] %v1481_v1 }
 0x204   : > { %v1323_v2 = vpop.f32.mrf.mxu2 }
 0x205   : > { %v1412_v4 = vpop.f32.mrf.mxu3  ;;  %v1147_v5 = vpop.f32.mrf.mxu0 }
 0x206   : > { %v1413_v6 = vadd.f32 %v1412_v4, %v1323_v2  ;;  %v1236_v8 = vpop.f32.mrf.mxu1 }
 0x207   : > { %v1237_v9 = vadd.f32 %v1236_v8, %v1147_v5 }
 0x208   : > { %v1482_v10 = vadd.f32 %v1413_v6, %v678_v3  ;;  %v691_v3 = vld [vmem:[#allocation2 + $0xc0] sm:$0xff] }
 0x209   : > { %v1483_v11 = vadd.f32 %v1237_v9, %v679_v7  ;;  %v692_v9 = vld [vmem:[#allocation2 + $0x1c0] sm:$0xff] }
 0x20a   : > { %1546 = vst [vmem:[#allocation2 + $0x90] sm:$0xff] %v1482_v10 }
 0x20b   : > { %1547 = vst [vmem:[#allocation2 + $0x1d8] sm:$0xff] %v1483_v11 }
 0x20c   : > { %v1325_v12 = vpop.f32.mrf.mxu2 }
 0x20d   : > { %v1414_v14 = vpop.f32.mrf.mxu3  ;;  %v1150_v15 = vpop.f32.mrf.mxu0 }
 0x20e   : > { %v1415_v16 = vadd.f32 %v1414_v14, %v1325_v12  ;;  %v1239_v18 = vpop.f32.mrf.mxu1 }
 0x20f   : > { %v1240_v19 = vadd.f32 %v1239_v18, %v1150_v15 }
 0x210   : > { %v1484_v20 = vadd.f32 %v1415_v16, %v680_v13  ;;  %v693_v13 = vld [vmem:[#allocation2 + $0x158] sm:$0xff] }
 0x211   : > { %v1485_v21 = vadd.f32 %v1240_v19, %v681_v17  ;;  %v694_v19 = vld [vmem:[#allocation2 + $0x10] sm:$0xff] }
 0x212   : > { %1548 = vst [vmem:[#allocation2 + $0xd0] sm:$0xff] %v1484_v20 }
 0x213   : > { %1549 = vst [vmem:[#allocation2 + $0xb8] sm:$0xff] %v1485_v21 }
 0x214   : > { %v1328_v22 = vpop.f32.mrf.mxu2 }
 0x215   : > { %v1417_v24 = vpop.f32.mrf.mxu3  ;;  %v1152_v25 = vpop.f32.mrf.mxu0 }
 0x216   : > { %v1418_v26 = vadd.f32 %v1417_v24, %v1328_v22  ;;  %v1241_v28 = vpop.f32.mrf.mxu1 }
 0x217   : > { %v1242_v29 = vadd.f32 %v1241_v28, %v1152_v25 }
 0x218   : > { %v1486_v30 = vadd.f32 %v1418_v26, %v682_v23  ;;  %v695_v23 = vld [vmem:[#allocation2 + $0x58] sm:$0xff] }
 0x219   : > { %v1487_v31 = vadd.f32 %v1242_v29, %v683_v27  ;;  %v696_v29 = vld [vmem:[#allocation2 + $0xa0] sm:$0xff] }
 0x21a   : > { %1550 = vst [vmem:[#allocation2 + $0x88] sm:$0xff] %v1486_v30 }
 0x21b   : > { %1551 = vst [vmem:[#allocation2 + $0xa8] sm:$0xff] %v1487_v31 }
 0x21c   : > { %v1330_v32 = vpop.f32.mrf.mxu2 }
 0x21d   : > { %v1419_v34 = vpop.f32.mrf.mxu3  ;;  %v1155_v35 = vpop.f32.mrf.mxu0 }
 0x21e   : > { %v1420_v36 = vadd.f32 %v1419_v34, %v1330_v32  ;;  %v1244_v38 = vpop.f32.mrf.mxu1 }
 0x21f   : > { %v1245_v39 = vadd.f32 %v1244_v38, %v1155_v35 }
 0x220   : > { %v1488_v40 = vadd.f32 %v1420_v36, %v684_v33 }
 0x221   : > { %v1489_v41 = vadd.f32 %v1245_v39, %v685_v37 }
 0x222   : > { %1552 = vst [vmem:[#allocation2 + $0x1c8] sm:$0xff] %v1488_v40 }
 0x223   : > { %1553 = vst [vmem:[#allocation2 + $0x170] sm:$0xff] %v1489_v41 }
 0x224   : > { %v1333_v42 = vpop.f32.mrf.mxu2 }
 0x225   : > { %v1422_v44 = vpop.f32.mrf.mxu3  ;;  %v1157_v45 = vpop.f32.mrf.mxu0 }
 0x226   : > { %v1423_v46 = vadd.f32 %v1422_v44, %v1333_v42  ;;  %v1246_v48 = vpop.f32.mrf.mxu1 }
 0x227   : > { %v1247_v49 = vadd.f32 %v1246_v48, %v1157_v45 }
 0x228   : > { %v1490_v50 = vadd.f32 %v1423_v46, %v686_v43 }
 0x229   : > { %v1491_v51 = vadd.f32 %v1247_v49, %v687_v47 }
 0x22a   : > { %1554 = vst [vmem:[#allocation2 + $0x178] sm:$0xff] %v1490_v50 }
 0x22b   : > { %1555 = vst [vmem:[#allocation2 + $0x68] sm:$0xff] %v1491_v51 }
 0x22c   : > { %v1335_v52 = vpop.f32.mrf.mxu2 }
 0x22d   : > { %v1424_v54 = vpop.f32.mrf.mxu3  ;;  %v1160_v55 = vpop.f32.mrf.mxu0 }
 0x22e   : > { %v1425_v56 = vadd.f32 %v1424_v54, %v1335_v52  ;;  %v1249_v58 = vpop.f32.mrf.mxu1 }
 0x22f   : > { %v1250_v59 = vadd.f32 %v1249_v58, %v1160_v55 }
 0x230   : > { %v1492_v60 = vadd.f32 %v1425_v56, %v688_v53 }
 0x231   : > { %v1493_v61 = vadd.f32 %v1250_v59, %v689_v57 }
 0x232   : > { %1556 = vst [vmem:[#allocation2 + $0x190] sm:$0xff] %v1492_v60 }
 0x233   : > { %1557 = vst [vmem:[#allocation2 + $0x198] sm:$0xff] %v1493_v61 }
 0x234   : > { %v1338_v62 = vpop.f32.mrf.mxu2 }
 0x235   : > { %v1427_v0 = vpop.f32.mrf.mxu3  ;;  %v1162_v1 = vpop.f32.mrf.mxu0 }
 0x236   : > { %v1428_v2 = vadd.f32 %v1427_v0, %v1338_v62  ;;  %v1251_v4 = vpop.f32.mrf.mxu1 }
 0x237   : > { %v1252_v5 = vadd.f32 %v1251_v4, %v1162_v1 }
 0x238   : > { %v1494_v6 = vadd.f32 %v1428_v2, %v690_v63 }
 0x239   : > { %v1495_v7 = vadd.f32 %v1252_v5, %v691_v3 }
 0x23a   : > { %1558 = vst [vmem:[#allocation2 + $0x38] sm:$0xff] %v1494_v6 }
 0x23b   : > { %1559 = vst [vmem:[#allocation2 + $0xc0] sm:$0xff] %v1495_v7 }
 0x23c   : > { %v1340_v8 = vpop.f32.mrf.mxu2 }
 0x23d   : > { %v1429_v10 = vpop.f32.mrf.mxu3  ;;  %v1165_v11 = vpop.f32.mrf.mxu0 }
 0x23e   : > { %v1430_v12 = vadd.f32 %v1429_v10, %v1340_v8  ;;  %v1254_v14 = vpop.f32.mrf.mxu1 }
 0x23f   : > { %v1255_v15 = vadd.f32 %v1254_v14, %v1165_v11 }
 0x240   : > { %v1496_v16 = vadd.f32 %v1430_v12, %v692_v9 }
 0x241   : > { %v1497_v17 = vadd.f32 %v1255_v15, %v693_v13 }
 0x242   : > { %1560 = vst [vmem:[#allocation2 + $0x1c0] sm:$0xff] %v1496_v16 }
 0x243   : > { %1561 = vst [vmem:[#allocation2 + $0x158] sm:$0xff] %v1497_v17 }
 0x244   : > { %v1343_v18 = vpop.f32.mrf.mxu2 }
 0x245   : > { %v1432_v20 = vpop.f32.mrf.mxu3  ;;  %v1167_v21 = vpop.f32.mrf.mxu0 }
 0x246   : > { %v1433_v22 = vadd.f32 %v1432_v20, %v1343_v18  ;;  %v1256_v24 = vpop.f32.mrf.mxu1 }
 0x247   : > { %v1257_v25 = vadd.f32 %v1256_v24, %v1167_v21 }
 0x248   : > { %v1498_v26 = vadd.f32 %v1433_v22, %v694_v19 }
 0x249   : > { %v1499_v27 = vadd.f32 %v1257_v25, %v695_v23 }
 0x24a   : > { %1562 = vst [vmem:[#allocation2 + $0x10] sm:$0xff] %v1498_v26 }
 0x24b   : > { %1563 = vst [vmem:[#allocation2 + $0x58] sm:$0xff] %v1499_v27 }
 0x24c   : > { %v1345_v28 = vpop.f32.mrf.mxu2 }
 0x24d   : > { %v1434_v30 = vpop.f32.mrf.mxu3 }
 0x24e   : > { %v1435_v31 = vadd.f32 %v1434_v30, %v1345_v28 }
 0x250   : > { %v1500_v32 = vadd.f32 %v1435_v31, %v696_v29 }
 0x252   : > { %1564 = vst [vmem:[#allocation2 + $0xa0] sm:$0xff] %v1500_v32 }
 0x253 PF: > { %p3762_p0 = scmp.ne.s32.totalorder %s4597_s11, 1 }
 0x255   : > { %1568 = sbr.rel (%p3762_p0) target bundleno = 1283 (0x503), region = 90 }
 0x25a   : > { %v4077_v33 = vld [vmem:[%s5929_s5 + $0x70] sm:$0xf]  ;;  %v4424_v34 = vld [vmem:[%s5929_s5 + $0x74] sm:$0xf0]  ;;  %v4069_v44 = vld [vmem:[%s5929_s5 + $0x60] sm:$0xf] }
 0x25b   : > { %v4141_v35 = vld [vmem:[%s5929_s5 + $0xf0] sm:$0xf]  ;;  %v4078_v36 = vor.u32 %v4424_v34, %v4077_v33  ;;  %v4440_v37 = vld [vmem:[%s5929_s5 + $0xf4] sm:$0xf0]  ;;  %v4422_v46 = vld [vmem:[%s5929_s5 + $0x64] sm:$0xf0] }
 0x25c   : > { %v4205_v38 = vld [vmem:[%s5929_s5 + $0x170] sm:$0xf]  ;;  %v4456_v39 = vld [vmem:[%s5929_s5 + $0x174] sm:$0xf0]  ;;  %v4142_v40 = vor.u32 %v4440_v37, %v4141_v35  ;;  %v4133_v47 = vld [vmem:[%s5929_s5 + $0xe0] sm:$0xf]  ;;  %v4070_v49 = vor.u32 %v4422_v46, %v4069_v44 }
 0x25d   : > { %v4206_v41 = vor.u32 %v4456_v39, %v4205_v38  ;;  %v4269_v42 = vld [vmem:[%s5929_s5 + $0x1f0] sm:$0xf]  ;;  %v4472_v43 = vld [vmem:[%s5929_s5 + $0x1f4] sm:$0xf0]  ;;  %2535 = vmatpush.bf16.msra.mxu0 %v4078_v36  ;;  %v4438_v48 = vld [vmem:[%s5929_s5 + $0xe4] sm:$0xf0] }
 0x25e   : > { %v4270_v45 = vor.u32 %v4472_v43, %v4269_v42  ;;  %2624 = vmatpush.bf16.msra.mxu1 %v4142_v40  ;;  %v4134_v50 = vor.u32 %v4438_v48, %v4133_v47  ;;  %v4197_v51 = vld [vmem:[%s5929_s5 + $0x160] sm:$0xf]  ;;  %v4454_v52 = vld [vmem:[%s5929_s5 + $0x164] sm:$0xf0]  ;;  %v4061_v56 = vld [vmem:[%s5929_s5 + $0x50] sm:$0xf] }
 0x25f   : > { %2713 = vmatpush.bf16.msra.mxu2 %v4206_v41  ;;  %v4261_v53 = vld [vmem:[%s5929_s5 + $0x1e0] sm:$0xf]  ;;  %v4198_v54 = vor.u32 %v4454_v52, %v4197_v51  ;;  %v4470_v55 = vld [vmem:[%s5929_s5 + $0x1e4] sm:$0xf0]  ;;  %v4420_v57 = vld [vmem:[%s5929_s5 + $0x54] sm:$0xf0] }
 0x260   : > { %2802 = vmatpush.bf16.msra.mxu3 %v4270_v45  ;;  %v4262_v58 = vor.u32 %v4470_v55, %v4261_v53  ;;  %v4125_v59 = vld [vmem:[%s5929_s5 + $0xd0] sm:$0xf]  ;;  %v4436_v60 = vld [vmem:[%s5929_s5 + $0xd4] sm:$0xf0]  ;;  %v4062_v62 = vor.u32 %v4420_v57, %v4061_v56  ;;  %v4053_v4 = vld [vmem:[%s5929_s5 + $0x40] sm:$0xf] }
 0x261   : > { %v4189_v61 = vld [vmem:[%s5929_s5 + $0x150] sm:$0xf]  ;;  %2536 = vmatpush.bf16.msra.mxu0 %v4070_v49  ;;  %v4452_v63 = vld [vmem:[%s5929_s5 + $0x154] sm:$0xf0]  ;;  %v4126_v2 = vor.u32 %v4436_v60, %v4125_v59  ;;  %v4418_v5 = vld [vmem:[%s5929_s5 + $0x44] sm:$0xf0] }
 0x262   : > { %v4253_v0 = vld [vmem:[%s5929_s5 + $0x1d0] sm:$0xf]  ;;  %v4468_v1 = vld [vmem:[%s5929_s5 + $0x1d4] sm:$0xf0]  ;;  %2625 = vmatpush.bf16.msra.mxu1 %v4134_v50  ;;  %v4190_v3 = vor.u32 %v4452_v63, %v4189_v61  ;;  %v4117_v6 = vld [vmem:[%s5929_s5 + $0xc0] sm:$0xf]  ;;  %v4054_v13 = vor.u32 %v4418_v5, %v4053_v4 }
 0x263   : > { %2714 = vmatpush.bf16.msra.mxu2 %v4198_v54  ;;  %v4254_v7 = vor.u32 %v4468_v1, %v4253_v0  ;;  %v4434_v8 = vld [vmem:[%s5929_s5 + $0xc4] sm:$0xf0]  ;;  %v4181_v9 = vld [vmem:[%s5929_s5 + $0x140] sm:$0xf]  ;;  %v4045_v16 = vld [vmem:[%s5929_s5 + $0x30] sm:$0xf] }
 0x264   : > { %2803 = vmatpush.bf16.msra.mxu3 %v4262_v58  ;;  %v4450_v10 = vld [vmem:[%s5929_s5 + $0x144] sm:$0xf0]  ;;  %v4245_v11 = vld [vmem:[%s5929_s5 + $0x1c0] sm:$0xf]  ;;  %v4118_v14 = vor.u32 %v4434_v8, %v4117_v6  ;;  %v4416_v17 = vld [vmem:[%s5929_s5 + $0x34] sm:$0xf0] }
 0x265   : > { %v4466_v12 = vld [vmem:[%s5929_s5 + $0x1c4] sm:$0xf0]  ;;  %2537 = vmatpush.bf16.msra.mxu0 %v4062_v62  ;;  %v4182_v15 = vor.u32 %v4450_v10, %v4181_v9  ;;  %v4109_v18 = vld [vmem:[%s5929_s5 + $0xb0] sm:$0xf]  ;;  %v4432_v20 = vld [vmem:[%s5929_s5 + $0xb4] sm:$0xf0]  ;;  %v4046_v25 = vor.u32 %v4416_v17, %v4045_v16 }
 0x266   : > { %2626 = vmatpush.bf16.msra.mxu1 %v4126_v2  ;;  %v4246_v19 = vor.u32 %v4466_v12, %v4245_v11  ;;  %v4173_v21 = vld [vmem:[%s5929_s5 + $0x130] sm:$0xf]  ;;  %v4448_v22 = vld [vmem:[%s5929_s5 + $0x134] sm:$0xf0]  ;;  %v4110_v26 = vor.u32 %v4432_v20, %v4109_v18  ;;  %v4037_v28 = vld [vmem:[%s5929_s5 + $0x20] sm:$0xf] }
 0x267   : > { %2715 = vmatpush.bf16.msra.mxu2 %v4190_v3  ;;  %v4237_v23 = vld [vmem:[%s5929_s5 + $0x1b0] sm:$0xf]  ;;  %v4464_v24 = vld [vmem:[%s5929_s5 + $0x1b4] sm:$0xf0]  ;;  %v4174_v27 = vor.u32 %v4448_v22, %v4173_v21  ;;  %v4414_v29 = vld [vmem:[%s5929_s5 + $0x24] sm:$0xf0] }
 0x268   : > { %2804 = vmatpush.bf16.msra.mxu3 %v4254_v7  ;;  %v4101_v30 = vld [vmem:[%s5929_s5 + $0xa0] sm:$0xf]  ;;  %v4238_v31 = vor.u32 %v4464_v24, %v4237_v23  ;;  %v4430_v32 = vld [vmem:[%s5929_s5 + $0xa4] sm:$0xf0]  ;;  %v4029_v37 = vld [vmem:[%s5929_s5 + $0x10] sm:$0xf]  ;;  %v4038_v38 = vor.u32 %v4414_v29, %v4037_v28 }
 0x269   : > { %2538 = vmatpush.bf16.msra.mxu0 %v4054_v13  ;;  %v4165_v33 = vld [vmem:[%s5929_s5 + $0x120] sm:$0xf]  ;;  %v4446_v34 = vld [vmem:[%s5929_s5 + $0x124] sm:$0xf0]  ;;  %v4412_v39 = vld [vmem:[%s5929_s5 + $0x14] sm:$0xf0]  ;;  %v4102_v42 = vor.u32 %v4430_v32, %v4101_v30 }
 0x26a   : > { %2627 = vmatpush.bf16.msra.mxu1 %v4118_v14  ;;  %v4229_v35 = vld [vmem:[%s5929_s5 + $0x1a0] sm:$0xf]  ;;  %v4462_v36 = vld [vmem:[%s5929_s5 + $0x1a4] sm:$0xf0]  ;;  %v4093_v40 = vld [vmem:[%s5929_s5 + $0x90] sm:$0xf]  ;;  %v4166_v43 = vor.u32 %v4446_v34, %v4165_v33  ;;  %v4030_v58 = vor.u32 %v4412_v39, %v4029_v37 }
 0x26b   : > { %2716 = vmatpush.bf16.msra.mxu2 %v4182_v15  ;;  %v4428_v41 = vld [vmem:[%s5929_s5 + $0x94] sm:$0xf0]  ;;  %v4157_v44 = vld [vmem:[%s5929_s5 + $0x110] sm:$0xf]  ;;  %v4230_v47 = vor.u32 %v4462_v36, %v4229_v35  ;;  %v1569_v49 = vld [vmem:[%s4805_s23] sm:$0xff] }
 0x26c   : > { %2805 = vmatpush.bf16.msra.mxu3 %v4246_v19  ;;  %v4444_v45 = vld [vmem:[%s5929_s5 + $0x114] sm:$0xf0]  ;;  %v4221_v46 = vld [vmem:[%s5929_s5 + $0x190] sm:$0xf]  ;;  %v1570_v50 = vld [vmem:[%s4805_s23 + $0x8] sm:$0xff]  ;;  %1601 = vst [vmem:[#allocation3] sm:$0xff] %v1569_v49  ;;  %v4094_v63 = vor.u32 %v4428_v41, %v4093_v40 }
 0x26d   : > { %2539 = vmatpush.bf16.msra.mxu0 %v4046_v25  ;;  %v4460_v48 = vld [vmem:[%s5929_s5 + $0x194] sm:$0xf0]  ;;  %v5188_v51 = vld [vmem:[%s5929_s5] sm:$0xf]  ;;  %v5193_v52 = vld [vmem:[%s5929_s5 + $0x4] sm:$0xf0]  ;;  %v4158_v0 = vor.u32 %v4444_v45, %v4157_v44 }
 0x26e   : > { %2628 = vmatpush.bf16.msra.mxu1 %v4110_v26  ;;  %v5198_v53 = vld [vmem:[%s5929_s5 + $0x80] sm:$0xf]  ;;  %v5203_v54 = vld [vmem:[%s5929_s5 + $0x84] sm:$0xf0]  ;;  %v1633_v55 = vld [vmem:[#allocation2 + $0xb0] sm:$0xff]  ;;  %1602 = vst [vmem:[#allocation3 + $0x10] sm:$0xff] %v1570_v50  ;;  %v4222_v5 = vor.u32 %v4460_v48, %v4221_v46  ;;  %v4022_v14 = vor.u32 %v5193_v52, %v5188_v51 }
 0x26f   : > { %2717 = vmatpush.bf16.msra.mxu2 %v4174_v27  ;;  %v1634_v56 = vld [vmem:[#allocation2 + $0x1b0] sm:$0xff]  ;;  %v1635_v57 = vld [vmem:[#allocation2 + $0xd8] sm:$0xff]  ;;  %v5208_v59 = vld [vmem:[%s5929_s5 + $0x100] sm:$0xf]  ;;  %v4086_v15 = vor.u32 %v5203_v54, %v5198_v53 }
 0x270   : > { %2806 = vmatpush.bf16.msra.mxu3 %v4238_v31  ;;  %v4442_v60 = vld [vmem:[%s5929_s5 + $0x104] sm:$0xf0]  ;;  %v1636_v61 = vld [vmem:[#allocation2 + $0x18] sm:$0xff]  ;;  %v1697_v62 = vpack.c.bf16 %v1634_v56, %v1633_v55  ;;  %v4213_v1 = vld [vmem:[%s5929_s5 + $0x180] sm:$0xf] }
 0x271   : > { %2540 = vmatpush.bf16.msra.mxu0 %v4038_v38  ;;  %v4458_v2 = vld [vmem:[%s5929_s5 + $0x184] sm:$0xf0]  ;;  %v1698_v3 = vpack.c.bf16 %v1636_v61, %v1635_v57  ;;  %v4455_v4 = vld [vmem:[%s5929_s5 + $0x174] sm:$0xf]  ;;  %v4207_v6 = vld [vmem:[%s5929_s5 + $0x178] sm:$0xf0]  ;;  %v4150_v19 = vor.u32 %v4442_v60, %v5208_v59 }
 0x272   : > { %2629 = vmatpush.bf16.msra.mxu1 %v4102_v42  ;;  %1729 = vst [vmem:[#allocation3 + $0x8] sm:$0xff] %v1697_v62  ;;  %v4471_v7 = vld [vmem:[%s5929_s5 + $0x1f4] sm:$0xf]  ;;  %v4079_v10 = vld [vmem:[%s5929_s5 + $0x78] sm:$0xf0]  ;;  %v1638_v16 = vld [vmem:[#allocation2 + $0x168] sm:$0xff]  ;;  %v4214_v27 = vor.u32 %v4458_v2, %v4213_v1  ;;  %v4210_v30 = vor.u32 %v4455_v4, %v4207_v6 }
 0x273   : > { %2718 = vmatpush.bf16.msra.mxu2 %v4166_v43  ;;  %v1571_v8 = vld [vmem:[%s4805_s23 + $0x10] sm:$0xff]  ;;  %1730 = vst [vmem:[#allocation3 + $0x18] sm:$0xff] %v1698_v3  ;;  %v4271_v11 = vld [vmem:[%s5929_s5 + $0x1f8] sm:$0xf0]  ;;  %v1640_v18 = vld [vmem:[#allocation2 + $0x48] sm:$0xff] }
 0x274   : > { %2807 = vmatpush.bf16.msra.mxu3 %v4230_v47  ;;  %v4423_v9 = vld [vmem:[%s5929_s5 + $0x74] sm:$0xf]  ;;  %v1572_v12 = vld [vmem:[%s4805_s23 + $0x18] sm:$0xff]  ;;  %1603 = vst [vmem:[#allocation3 + $0x20] sm:$0xff] %v1571_v8  ;;  %v1573_v24 = vld [vmem:[%s4805_s23 + $0x20] sm:$0xff]  ;;  %v4274_v34 = vor.u32 %v4471_v7, %v4271_v11 }
 0x275   : > { %v1637_v13 = vld [vmem:[#allocation2 + $0x50] sm:$0xff]  ;;  %2541 = vmatpush.bf16.msra.mxu0 %v4030_v58  ;;  %v4143_v21 = vld [vmem:[%s5929_s5 + $0xf8] sm:$0xf0]  ;;  %1604 = vst [vmem:[#allocation3 + $0x30] sm:$0xff] %v1572_v12  ;;  %v1574_v25 = vld [vmem:[%s4805_s23 + $0x28] sm:$0xff]  ;;  %v4082_v39 = vor.u32 %v4423_v9, %v4079_v10 }
 0x276   : > { %v1639_v17 = vld [vmem:[#allocation2 + $0x130] sm:$0xff]  ;;  %2630 = vmatpush.bf16.msra.mxu1 %v4094_v63  ;;  %v1699_v22 = vpack.c.bf16 %v1638_v16, %v1637_v13  ;;  %v1641_v26 = vld [vmem:[#allocation2 + $0x180] sm:$0xff]  ;;  %1605 = vst [vmem:[#allocation3 + $0x40] sm:$0xff] %v1573_v24  ;;  %v1643_v35 = vld [vmem:[#allocation2 + $0x118] sm:$0xff] }
 0x277   : > { %2719 = vmatpush.bf16.msra.mxu2 %v4158_v0  ;;  %v4439_v20 = vld [vmem:[%s5929_s5 + $0xf4] sm:$0xf]  ;;  %v1700_v23 = vpack.c.bf16 %v1640_v18, %v1639_v17  ;;  %v3765_v28 = vld [vmem:[#allocation3] sm:$0xf]  ;;  %v4345_v29 = vld [vmem:[#allocation3 + $0x4] sm:$0xf] }
 0x278   : > { %2808 = vmatpush.bf16.msra.mxu3 %v4222_v5  ;;  %v1642_v31 = vld [vmem:[#allocation2 + $0x110] sm:$0xff]  ;;  %1731 = vst [vmem:[#allocation3 + $0x28] sm:$0xff] %v1699_v22  ;;  %v1644_v40 = vld [vmem:[#allocation2 + $0x98] sm:$0xff]  ;;  %v4146_v46 = vor.u32 %v4439_v20, %v4143_v21  ;;  %v4453_v49 = vld [vmem:[%s5929_s5 + $0x164] sm:$0xf] }
 0x279   : > { %v4347_v32 = vld [vmem:[#allocation3 + $0xc] sm:$0xf0]  ;;  %v3767_v33 = vld [vmem:[#allocation3 + $0x10] sm:$0xf0]  ;;  %v1701_v36 = vpack.c.bf16 %v1642_v31, %v1641_v26  ;;  %2542 = vmatpush.bf16.msra.mxu0 %v4022_v14  ;;  %1732 = vst [vmem:[#allocation3 + $0x38] sm:$0xff] %v1700_v23  ;;  %v1702_v43 = vpack.c.bf16 %v1644_v40, %v1643_v35  ;;  %v1576_v2 = vld [vmem:[%s4805_s23 + $0x38] sm:$0xff] }
 0x27a   : > { %v5252_v37 = vor.u32 %v4347_v32, %v3765_v28  ;;  %v5254_v38 = vor.u32 %v4345_v29, %v3767_v33  ;;  %2631 = vmatpush.bf16.msra.mxu1 %v4086_v15  ;;  %v3773_v41 = vld [vmem:[#allocation3 + $0x8] sm:$0xf]  ;;  %v4346_v42 = vld [vmem:[#allocation3 + $0xc] sm:$0xf]  ;;  %1606 = vst [vmem:[#allocation3 + $0x50] sm:$0xff] %v1574_v25  ;;  %v1575_v0 = vld [vmem:[%s4805_s23 + $0x30] sm:$0xff] }
 0x27b   : > { %2720 = vmatpush.bf16.msra.mxu2 %v4150_v19  ;;  %v4348_v44 = vld [vmem:[#allocation3 + $0x14] sm:$0xf0]  ;;  %v3775_v45 = vld [vmem:[#allocation3 + $0x18] sm:$0xf0]  ;;  %1733 = vst [vmem:[#allocation3 + $0x48] sm:$0xff] %v1701_v36  ;;  %v1645_v3 = vld [vmem:[#allocation2 + $0x120] sm:$0xff] }
 0x27c   : > { %2809 = vmatpush.bf16.msra.mxu3 %v4214_v27  ;;  %2543 = vmatmul.bf16.vlgmr.msra.gmra.mxu0 %v5252_v37  ;;  %v5257_v47 = vor.u32 %v4348_v44, %v3773_v41  ;;  %v5259_v48 = vor.u32 %v4346_v42, %v3775_v45  ;;  %1734 = vst [vmem:[#allocation3 + $0x58] sm:$0xff] %v1702_v43  ;;  %v4199_v50 = vld [vmem:[%s5929_s5 + $0x168] sm:$0xf0]  ;;  %v4421_v52 = vld [vmem:[%s5929_s5 + $0x64] sm:$0xf]  ;;  %v1646_v4 = vld [vmem:[#allocation2 + $0x150] sm:$0xff] }
 0x27d   : > { %2632 = vmatmul.bf16.vlgmr.msra.gmra.mxu1 %v5254_v38  ;;  %2891 = vmatpush.bf16.msrb.mxu0 %v4082_v39  ;;  %v4202_v51 = vor.u32 %v4453_v49, %v4199_v50  ;;  %v4071_v53 = vld [vmem:[%s5929_s5 + $0x68] sm:$0xf0]  ;;  %v4469_v55 = vld [vmem:[%s5929_s5 + $0x1e4] sm:$0xf]  ;;  %v3781_v56 = vld [vmem:[#allocation3 + $0x20] sm:$0xf]  ;;  %v1703_v8 = vpack.c.bf16 %v1646_v4, %v1645_v3 }
 0x27e   : > { %2721 = vmatmul.bf16.vlgmr.msra.gmra.mxu2 %v5257_v47  ;;  %2980 = vmatpush.bf16.msrb.mxu1 %v4146_v46  ;;  %v4074_v54 = vor.u32 %v4421_v52, %v4071_v53  ;;  %v4351_v57 = vld [vmem:[#allocation3 + $0x2c] sm:$0xf0]  ;;  %v4263_v58 = vld [vmem:[%s5929_s5 + $0x1e8] sm:$0xf0]  ;;  %v4349_v59 = vld [vmem:[#allocation3 + $0x24] sm:$0xf] }
 0x27f   : > { %3069 = vmatpush.bf16.msrb.mxu2 %v4210_v30  ;;  %2810 = vmatmul.bf16.vlgmr.msra.gmra.mxu3 %v5259_v48  ;;  %v3783_v60 = vld [vmem:[#allocation3 + $0x30] sm:$0xf0]  ;;  %v4266_v61 = vor.u32 %v4469_v55, %v4263_v58  ;;  %v4437_v62 = vld [vmem:[%s5929_s5 + $0xe4] sm:$0xf]  ;;  %v4135_v63 = vld [vmem:[%s5929_s5 + $0xe8] sm:$0xf0]  ;;  %v5290_v13 = vor.u32 %v4351_v57, %v3781_v56 }
 0x280   : > { %3158 = vmatpush.bf16.msrb.mxu3 %v4274_v34  ;;  %v4138_v1 = vor.u32 %v4437_v62, %v4135_v63  ;;  %1607 = vst [vmem:[#allocation3 + $0x60] sm:$0xff] %v1575_v0  ;;  %v3789_v5 = vld [vmem:[#allocation3 + $0x28] sm:$0xf]  ;;  %v1648_v7 = vld [vmem:[#allocation2 + $0x60] sm:$0xff]  ;;  %v4352_v9 = vld [vmem:[#allocation3 + $0x34] sm:$0xf0]  ;;  %v5292_v14 = vor.u32 %v4349_v59, %v3783_v60 }
 0x281   : > { %2892 = vmatpush.bf16.msrb.mxu0 %v4074_v54  ;;  %1608 = vst [vmem:[#allocation3 + $0x70] sm:$0xff] %v1576_v2  ;;  %v1647_v6 = vld [vmem:[#allocation2 + $0x108] sm:$0xff]  ;;  %v3791_v11 = vld [vmem:[#allocation3 + $0x38] sm:$0xf0]  ;;  %v5294_v15 = vor.u32 %v4352_v9, %v3789_v5  ;;  %v1577_v17 = vld [vmem:[%s4805_s23 + $0x40] sm:$0xff] }
 0x282   : > { %v4350_v10 = vld [vmem:[#allocation3 + $0x2c] sm:$0xf]  ;;  %2981 = vmatpush.bf16.msrb.mxu1 %v4138_v1  ;;  %v1704_v12 = vpack.c.bf16 %v1648_v7, %v1647_v6  ;;  %1735 = vst [vmem:[#allocation3 + $0x68] sm:$0xff] %v1703_v8  ;;  %v1649_v19 = vld [vmem:[#allocation2 + $0xe0] sm:$0xff]  ;;  %v1651_v21 = vld [vmem:[#allocation2 + $0x138] sm:$0xff] }
 0x283   : > { %3070 = vmatpush.bf16.msrb.mxu2 %v4202_v51  ;;  %v5296_v16 = vor.u32 %v4350_v10, %v3791_v11  ;;  %v1578_v18 = vld [vmem:[%s4805_s23 + $0x48] sm:$0xff]  ;;  %1609 = vst [vmem:[#allocation3 + $0x80] sm:$0xff] %v1577_v17  ;;  %v1652_v22 = vld [vmem:[#allocation2 + $0x140] sm:$0xff]  ;;  %v4355_v26 = vld [vmem:[#allocation3 + $0x4c] sm:$0xf0] }
 0x284   : > { %3159 = vmatpush.bf16.msrb.mxu3 %v4266_v61  ;;  %1736 = vst [vmem:[#allocation3 + $0x78] sm:$0xff] %v1704_v12  ;;  %v1650_v20 = vld [vmem:[#allocation2 + $0x188] sm:$0xff]  ;;  %v1706_v24 = vpack.c.bf16 %v1652_v22, %v1651_v21  ;;  %v3797_v25 = vld [vmem:[#allocation3 + $0x40] sm:$0xf]  ;;  %v4353_v27 = vld [vmem:[#allocation3 + $0x44] sm:$0xf] }
 0x285   : > { %1610 = vst [vmem:[#allocation3 + $0x90] sm:$0xff] %v1578_v18  ;;  %v1705_v23 = vpack.c.bf16 %v1650_v20, %v1649_v19  ;;  %v3799_v28 = vld [vmem:[#allocation3 + $0x50] sm:$0xf0]  ;;  %v3805_v29 = vld [vmem:[#allocation3 + $0x48] sm:$0xf]  ;;  %v5304_v33 = vor.u32 %v4355_v26, %v3797_v25  ;;  %v1580_v54 = vld [vmem:[%s4805_s23 + $0x58] sm:$0xff] }
 0x286   : > { %1738 = vst [vmem:[#allocation3 + $0x98] sm:$0xff] %v1706_v24  ;;  %v4356_v30 = vld [vmem:[#allocation3 + $0x54] sm:$0xf0]  ;;  %v4354_v31 = vld [vmem:[#allocation3 + $0x4c] sm:$0xf]  ;;  %v5306_v34 = vor.u32 %v4353_v27, %v3799_v28  ;;  %v1579_v52 = vld [vmem:[%s4805_s23 + $0x50] sm:$0xff] }
 0x287   : > { %1737 = vst [vmem:[#allocation3 + $0x88] sm:$0xff] %v1705_v23  ;;  %v3807_v32 = vld [vmem:[#allocation3 + $0x58] sm:$0xf0]  ;;  %v5308_v35 = vor.u32 %v4356_v30, %v3805_v29  ;;  %v4451_v39 = vld [vmem:[%s5929_s5 + $0x154] sm:$0xf]  ;;  %v1653_v55 = vld [vmem:[#allocation2 + $0x80] sm:$0xff] }
 0x288   : > { %v5310_v36 = vor.u32 %v4354_v31, %v3807_v32  ;;  %v4191_v40 = vld [vmem:[%s5929_s5 + $0x158] sm:$0xf0]  ;;  %v4419_v41 = vld [vmem:[%s5929_s5 + $0x54] sm:$0xf]  ;;  %1611 = vst [vmem:[#allocation3 + $0xa0] sm:$0xff] %v1579_v52  ;;  %v1654_v56 = vld [vmem:[#allocation2 + $0x1a8] sm:$0xff] }
 0x289   : > { %v4194_v42 = vor.u32 %v4451_v39, %v4191_v40  ;;  %v4063_v43 = vld [vmem:[%s5929_s5 + $0x58] sm:$0xf0]  ;;  %v4467_v44 = vld [vmem:[%s5929_s5 + $0x1d4] sm:$0xf]  ;;  %1612 = vst [vmem:[#allocation3 + $0xb0] sm:$0xff] %v1580_v54  ;;  %v1656_v58 = vld [vmem:[#allocation2 + $0x28] sm:$0xff]  ;;  %v1707_v59 = vpack.c.bf16 %v1654_v56, %v1653_v55 }
 0x28a   : > { %v4255_v45 = vld [vmem:[%s5929_s5 + $0x1d8] sm:$0xf0]  ;;  %v4066_v46 = vor.u32 %v4419_v41, %v4063_v43  ;;  %v4435_v50 = vld [vmem:[%s5929_s5 + $0xd4] sm:$0xf]  ;;  %v3813_v61 = vld [vmem:[#allocation3 + $0x60] sm:$0xf] }
 0x28b   : > { %v4258_v49 = vor.u32 %v4467_v44, %v4255_v45  ;;  %v4127_v51 = vld [vmem:[%s5929_s5 + $0xd8] sm:$0xf0]  ;;  %3071 = vmatpush.bf16.msrb.mxu2 %v4194_v42  ;;  %1739 = vst [vmem:[#allocation3 + $0xa8] sm:$0xff] %v1707_v59  ;;  %v4359_v62 = vld [vmem:[#allocation3 + $0x6c] sm:$0xf0]  ;;  %v1581_v9 = vld [vmem:[%s4805_s23 + $0x60] sm:$0xff] }
 0x28c   : > { %2548 = vmatmul.bf16.gmra.mxu0 %v5290_v13  ;;  %v4130_v53 = vor.u32 %v4435_v50, %v4127_v51  ;;  %v1655_v57 = vld [vmem:[#allocation2 + $0x1b8] sm:$0xff]  ;;  %v4357_v63 = vld [vmem:[#allocation3 + $0x64] sm:$0xf]  ;;  %v3815_v0 = vld [vmem:[#allocation3 + $0x70] sm:$0xf0]  ;;  %v5342_v5 = vor.u32 %v4359_v62, %v3813_v61  ;;  %1613 = vst [vmem:[#allocation3 + $0xc0] sm:$0xff] %v1581_v9 }
 0x28d   : > { %2637 = vmatmul.bf16.gmra.mxu1 %v5292_v14  ;;  %2893 = vmatpush.bf16.msrb.mxu0 %v4066_v46  ;;  %v1708_v60 = vpack.c.bf16 %v1656_v58, %v1655_v57  ;;  %v3821_v1 = vld [vmem:[#allocation3 + $0x68] sm:$0xf]  ;;  %v4360_v2 = vld [vmem:[#allocation3 + $0x74] sm:$0xf0]  ;;  %v4358_v3 = vld [vmem:[#allocation3 + $0x6c] sm:$0xf]  ;;  %v5344_v6 = vor.u32 %v4357_v63, %v3815_v0 }
 0x28e   : > { %2726 = vmatmul.bf16.gmra.mxu2 %v5294_v15  ;;  %3160 = vmatpush.bf16.msrb.mxu3 %v4258_v49  ;;  %v3823_v4 = vld [vmem:[#allocation3 + $0x78] sm:$0xf0]  ;;  %v5346_v7 = vor.u32 %v4360_v2, %v3821_v1  ;;  %v1582_v10 = vld [vmem:[%s4805_s23 + $0x68] sm:$0xff]  ;;  %v1659_v17 = vld [vmem:[#allocation2 + $0x160] sm:$0xff] }
 0x28f   : > { %2815 = vmatmul.bf16.gmra.mxu3 %v5296_v16  ;;  %2982 = vmatpush.bf16.msrb.mxu1 %v4130_v53  ;;  %1740 = vst [vmem:[#allocation3 + $0xb8] sm:$0xff] %v1708_v60  ;;  %v5348_v8 = vor.u32 %v4358_v3, %v3823_v4  ;;  %v1657_v11 = vld [vmem:[#allocation2 + $0x1e8] sm:$0xff]  ;;  %v1658_v12 = vld [vmem:[#allocation2 + $0xf8] sm:$0xff]  ;;  %v1660_v18 = vld [vmem:[#allocation2 + $0x30] sm:$0xff] }
 0x290   : > { %1614 = vst [vmem:[#allocation3 + $0xd0] sm:$0xff] %v1582_v10  ;;  %v1709_v19 = vpack.c.bf16 %v1658_v12, %v1657_v11  ;;  %v1710_v20 = vpack.c.bf16 %v1660_v18, %v1659_v17  ;;  %v3829_v21 = vld [vmem:[#allocation3 + $0x80] sm:$0xf]  ;;  %v4363_v22 = vld [vmem:[#allocation3 + $0x8c] sm:$0xf0]  ;;  %v1584_v54 = vld [vmem:[%s4805_s23 + $0x78] sm:$0xff] }
 0x291   : > { %v4361_v23 = vld [vmem:[#allocation3 + $0x84] sm:$0xf]  ;;  %v3831_v24 = vld [vmem:[#allocation3 + $0x90] sm:$0xf0]  ;;  %v3837_v25 = vld [vmem:[#allocation3 + $0x88] sm:$0xf]  ;;  %v5356_v29 = vor.u32 %v4363_v22, %v3829_v21 }
 0x292   : > { %1741 = vst [vmem:[#allocation3 + $0xc8] sm:$0xff] %v1709_v19  ;;  %v4364_v26 = vld [vmem:[#allocation3 + $0x94] sm:$0xf0]  ;;  %v4362_v27 = vld [vmem:[#allocation3 + $0x8c] sm:$0xf]  ;;  %v5358_v30 = vor.u32 %v4361_v23, %v3831_v24  ;;  %v1583_v52 = vld [vmem:[%s4805_s23 + $0x70] sm:$0xff] }
 0x293   : > { %1742 = vst [vmem:[#allocation3 + $0xd8] sm:$0xff] %v1710_v20  ;;  %v3839_v28 = vld [vmem:[#allocation3 + $0x98] sm:$0xf0]  ;;  %v5360_v31 = vor.u32 %v4364_v26, %v3837_v25  ;;  %v4449_v39 = vld [vmem:[%s5929_s5 + $0x144] sm:$0xf]  ;;  %v1663_v57 = vld [vmem:[#allocation2 + $0xf0] sm:$0xff] }
 0x294   : > { %v5362_v32 = vor.u32 %v4362_v27, %v3839_v28  ;;  %v4183_v40 = vld [vmem:[%s5929_s5 + $0x148] sm:$0xf0]  ;;  %v4417_v41 = vld [vmem:[%s5929_s5 + $0x44] sm:$0xf]  ;;  %1615 = vst [vmem:[#allocation3 + $0xe0] sm:$0xff] %v1583_v52  ;;  %v1666_v18 = vld [vmem:[#allocation2 + $0x1d0] sm:$0xff] }
 0x295   : > { %v4186_v42 = vor.u32 %v4449_v39, %v4183_v40  ;;  %v4055_v43 = vld [vmem:[%s5929_s5 + $0x48] sm:$0xf0]  ;;  %v4465_v44 = vld [vmem:[%s5929_s5 + $0x1c4] sm:$0xf]  ;;  %1616 = vst [vmem:[#allocation3 + $0xf0] sm:$0xff] %v1584_v54 }
 0x296   : > { %v4247_v45 = vld [vmem:[%s5929_s5 + $0x1c8] sm:$0xf0]  ;;  %v4058_v46 = vor.u32 %v4417_v41, %v4055_v43  ;;  %v4433_v50 = vld [vmem:[%s5929_s5 + $0xc4] sm:$0xf]  ;;  %v3845_v61 = vld [vmem:[#allocation3 + $0xa0] sm:$0xf] }
 0x297   : > { %v4250_v49 = vor.u32 %v4465_v44, %v4247_v45  ;;  %v4119_v51 = vld [vmem:[%s5929_s5 + $0xc8] sm:$0xf0]  ;;  %3072 = vmatpush.bf16.msrb.mxu2 %v4186_v42  ;;  %v1661_v55 = vld [vmem:[#allocation2 + $0x1e0] sm:$0xff]  ;;  %v4367_v62 = vld [vmem:[#allocation3 + $0xac] sm:$0xf0] }
 0x298   : > { %v4122_v53 = vor.u32 %v4433_v50, %v4119_v51  ;;  %v1662_v56 = vld [vmem:[#allocation2] sm:$0xff]  ;;  %2894 = vmatpush.bf16.msrb.mxu0 %v4058_v46  ;;  %v1664_v58 = vld [vmem:[#allocation2 + $0x8] sm:$0xff]  ;;  %v3847_v0 = vld [vmem:[#allocation3 + $0xb0] sm:$0xf0]  ;;  %v5394_v9 = vor.u32 %v4367_v62, %v3845_v61 }
 0x299   : > { %3161 = vmatpush.bf16.msrb.mxu3 %v4250_v49  ;;  %v1711_v59 = vpack.c.bf16 %v1662_v56, %v1661_v55  ;;  %v1712_v60 = vpack.c.bf16 %v1664_v58, %v1663_v57  ;;  %v4365_v63 = vld [vmem:[#allocation3 + $0xa4] sm:$0xf]  ;;  %v3853_v1 = vld [vmem:[#allocation3 + $0xa8] sm:$0xf]  ;;  %v4368_v2 = vld [vmem:[#allocation3 + $0xb4] sm:$0xf0] }
 0x29a   : > { %2983 = vmatpush.bf16.msrb.mxu1 %v4122_v53  ;;  %v4366_v3 = vld [vmem:[#allocation3 + $0xac] sm:$0xf]  ;;  %v3855_v4 = vld [vmem:[#allocation3 + $0xb8] sm:$0xf0]  ;;  %v5396_v10 = vor.u32 %v4365_v63, %v3847_v0  ;;  %v5398_v11 = vor.u32 %v4368_v2, %v3853_v1  ;;  %v1667_v19 = vld [vmem:[#allocation2 + $0x100] sm:$0xff] }
 0x29b   : > { %1743 = vst [vmem:[#allocation3 + $0xe8] sm:$0xff] %v1711_v59  ;;  %v5400_v12 = vor.u32 %v4366_v3, %v3855_v4  ;;  %v1665_v17 = vld [vmem:[#allocation2 + $0x148] sm:$0xff]  ;;  %v1585_v22 = vld [vmem:[%s4805_s23 + $0x80] sm:$0xff]  ;;  %v4371_v26 = vld [vmem:[#allocation3 + $0xcc] sm:$0xf0] }
 0x29c   : > { %2553 = vmatmul.bf16.gmra.mxu0 %v5304_v33  ;;  %1744 = vst [vmem:[#allocation3 + $0xf8] sm:$0xff] %v1712_v60  ;;  %v1668_v20 = vld [vmem:[#allocation2 + $0xc8] sm:$0xff]  ;;  %v1713_v21 = vpack.c.bf16 %v1666_v18, %v1665_v17  ;;  %v3861_v25 = vld [vmem:[#allocation3 + $0xc0] sm:$0xf]  ;;  %v4369_v27 = vld [vmem:[#allocation3 + $0xc4] sm:$0xf] }
 0x29d   : > { %2642 = vmatmul.bf16.gmra.mxu1 %v5306_v34  ;;  %v1586_v23 = vld [vmem:[%s4805_s23 + $0x88] sm:$0xff]  ;;  %v1714_v24 = vpack.c.bf16 %v1668_v20, %v1667_v19  ;;  %1617 = vst [vmem:[#allocation3 + $0x100] sm:$0xff] %v1585_v22  ;;  %v3863_v28 = vld [vmem:[#allocation3 + $0xd0] sm:$0xf0]  ;;  %v4372_v40 = vld [vmem:[#allocation3 + $0xd4] sm:$0xf0]  ;;  %v5408_v43 = vor.u32 %v4371_v26, %v3861_v25 }
 0x29e   : > { %2731 = vmatmul.bf16.gmra.mxu2 %v5308_v35  ;;  %1618 = vst [vmem:[#allocation3 + $0x110] sm:$0xff] %v1586_v23  ;;  %v3869_v39 = vld [vmem:[#allocation3 + $0xc8] sm:$0xf]  ;;  %v4370_v41 = vld [vmem:[#allocation3 + $0xcc] sm:$0xf]  ;;  %v5410_v44 = vor.u32 %v4369_v27, %v3863_v28  ;;  %v1669_v58 = vld [vmem:[#allocation2 + $0x40] sm:$0xff] }
 0x29f   : > { %2820 = vmatmul.bf16.gmra.mxu3 %v5310_v36  ;;  %1745 = vst [vmem:[#allocation3 + $0x108] sm:$0xff] %v1713_v21  ;;  %v3871_v42 = vld [vmem:[#allocation3 + $0xd8] sm:$0xf0]  ;;  %v5412_v45 = vor.u32 %v4372_v40, %v3869_v39  ;;  %v4447_v49 = vld [vmem:[%s5929_s5 + $0x134] sm:$0xf]  ;;  %v1671_v60 = vld [vmem:[#allocation2 + $0x20] sm:$0xff] }
 0x2a0   : > { %1746 = vst [vmem:[#allocation3 + $0x118] sm:$0xff] %v1714_v24  ;;  %v5414_v46 = vor.u32 %v4370_v41, %v3871_v42  ;;  %v4175_v50 = vld [vmem:[%s5929_s5 + $0x138] sm:$0xf0]  ;;  %v4415_v51 = vld [vmem:[%s5929_s5 + $0x34] sm:$0xf]  ;;  %v1672_v61 = vld [vmem:[#allocation2 + $0x128] sm:$0xff] }
 0x2a1   : > { %v4047_v52 = vld [vmem:[%s5929_s5 + $0x38] sm:$0xf0]  ;;  %v4178_v53 = vor.u32 %v4447_v49, %v4175_v50  ;;  %v4463_v55 = vld [vmem:[%s5929_s5 + $0x1b4] sm:$0xf]  ;;  %v3877_v63 = vld [vmem:[#allocation3 + $0xe0] sm:$0xf]  ;;  %v1716_v3 = vpack.c.bf16 %v1672_v61, %v1671_v60 }
 0x2a2   : > { %v4050_v54 = vor.u32 %v4415_v51, %v4047_v52  ;;  %v4239_v56 = vld [vmem:[%s5929_s5 + $0x1b8] sm:$0xf0]  ;;  %v4375_v0 = vld [vmem:[#allocation3 + $0xec] sm:$0xf0]  ;;  %v4373_v4 = vld [vmem:[#allocation3 + $0xe4] sm:$0xf] }
 0x2a3   : > { %v4242_v57 = vor.u32 %v4463_v55, %v4239_v56  ;;  %v1670_v59 = vld [vmem:[#allocation2 + $0x1f8] sm:$0xff]  ;;  %3073 = vmatpush.bf16.msrb.mxu2 %v4178_v53  ;;  %v1587_v1 = vld [vmem:[%s4805_s23 + $0x90] sm:$0xff]  ;;  %v3885_v18 = vld [vmem:[#allocation3 + $0xe8] sm:$0xf]  ;;  %1748 = vst [vmem:[#allocation3 + $0x138] sm:$0xff] %v1716_v3  ;;  %v5446_v25 = vor.u32 %v4375_v0, %v3877_v63 }
 0x2a4   : > { %2895 = vmatpush.bf16.msrb.mxu0 %v4050_v54  ;;  %v1715_v62 = vpack.c.bf16 %v1670_v59, %v1669_v58  ;;  %v1588_v2 = vld [vmem:[%s4805_s23 + $0x98] sm:$0xff]  ;;  %v3879_v17 = vld [vmem:[#allocation3 + $0xf0] sm:$0xf0]  ;;  %1619 = vst [vmem:[#allocation3 + $0x120] sm:$0xff] %v1587_v1  ;;  %v4374_v22 = vld [vmem:[#allocation3 + $0xec] sm:$0xf] }
 0x2a5   : > { %3162 = vmatpush.bf16.msrb.mxu3 %v4242_v57  ;;  %v4376_v19 = vld [vmem:[#allocation3 + $0xf4] sm:$0xf0]  ;;  %1620 = vst [vmem:[#allocation3 + $0x130] sm:$0xff] %v1588_v2  ;;  %v4431_v20 = vld [vmem:[%s5929_s5 + $0xb4] sm:$0xf]  ;;  %v5448_v26 = vor.u32 %v4373_v4, %v3879_v17  ;;  %v1673_v39 = vld [vmem:[#allocation2 + $0x1a0] sm:$0xff] }
 0x2a6   : > { %v4111_v21 = vld [vmem:[%s5929_s5 + $0xb8] sm:$0xf0]  ;;  %1747 = vst [vmem:[#allocation3 + $0x128] sm:$0xff] %v1715_v62  ;;  %v5450_v27 = vor.u32 %v4376_v19, %v3885_v18  ;;  %v1674_v40 = vld [vmem:[#allocation2 + $0x1f0] sm:$0xff]  ;;  %v1675_v41 = vld [vmem:[#allocation2 + $0xe8] sm:$0xff] }
 0x2a7   : > { %v3887_v23 = vld [vmem:[#allocation3 + $0xf8] sm:$0xf0]  ;;  %v4114_v24 = vor.u32 %v4431_v20, %v4111_v21  ;;  %v1717_v49 = vpack.c.bf16 %v1674_v40, %v1673_v39  ;;  %v1889_v50 = vld [vmem:[%s5930_s6] sm:$0x3]  ;;  %v1590_v52 = vld [vmem:[%s4805_s23 + $0xa8] sm:$0xff] }
 0x2a8   : > { %v5452_v28 = vor.u32 %v4374_v22, %v3887_v23  ;;  %v1676_v42 = vld [vmem:[#allocation2 + $0x78] sm:$0xff]  ;;  %v1589_v51 = vld [vmem:[%s4805_s23 + $0xa0] sm:$0xff]  ;;  %v4379_v56 = vld [vmem:[#allocation3 + $0x10c] sm:$0xf0]  ;;  %1622 = vst [vmem:[#allocation3 + $0x150] sm:$0xff] %v1590_v52  ;;  %v5463_v58 = vperm.slane %v1889_v50, 0 }
 0x2a9   : > { %2984 = vmatpush.bf16.msrb.mxu1 %v4114_v24  ;;  %v1718_v53 = vpack.c.bf16 %v1676_v42, %v1675_v41  ;;  %v3893_v54 = vld [vmem:[#allocation3 + $0x100] sm:$0xf]  ;;  %v4377_v55 = vld [vmem:[#allocation3 + $0x104] sm:$0xf]  ;;  %1621 = vst [vmem:[#allocation3 + $0x140] sm:$0xff] %v1589_v51  ;;  %v1677_v50 = vld [vmem:[#allocation2 + $0x70] sm:$0xff] }
 0x2aa   : > { %v3895_v57 = vld [vmem:[#allocation3 + $0x110] sm:$0xf0]  ;;  %v3901_v59 = vld [vmem:[#allocation3 + $0x108] sm:$0xf]  ;;  %v4378_v60 = vld [vmem:[#allocation3 + $0x10c] sm:$0xf]  ;;  %v5465_v63 = vor.u32 %v4379_v56, %v3893_v54 }
 0x2ab   : > { %1749 = vst [vmem:[#allocation3 + $0x148] sm:$0xff] %v1717_v49  ;;  %v4380_v61 = vld [vmem:[#allocation3 + $0x114] sm:$0xf0]  ;;  %v3903_v62 = vld [vmem:[#allocation3 + $0x118] sm:$0xf0]  ;;  %v5467_v1 = vor.u32 %v4377_v55, %v3895_v57  ;;  %v1678_v51 = vld [vmem:[#allocation2 + $0x90] sm:$0xff] }
 0x2ac   : > { %2558 = vmatmul.bf16.gmra.mxu0 %v5342_v5  ;;  %1750 = vst [vmem:[#allocation3 + $0x158] sm:$0xff] %v1718_v53  ;;  %v5470_v4 = vor.u32 %v4380_v61, %v3901_v59  ;;  %v5472_v17 = vor.u32 %v4378_v60, %v3903_v62  ;;  %v4445_v19 = vld [vmem:[%s5929_s5 + $0x124] sm:$0xf]  ;;  %v4167_v20 = vld [vmem:[%s5929_s5 + $0x128] sm:$0xf0]  ;;  %v1679_v52 = vld [vmem:[#allocation2 + $0x1d8] sm:$0xff]  ;;  %v1719_v57 = vpack.c.bf16 %v1678_v51, %v1677_v50 }
 0x2ad   : > { %2647 = vmatmul.bf16.gmra.mxu1 %v5344_v6  ;;  %v4413_v21 = vld [vmem:[%s5929_s5 + $0x24] sm:$0xf]  ;;  %v4039_v22 = vld [vmem:[%s5929_s5 + $0x28] sm:$0xf0]  ;;  %v4170_v23 = vor.u32 %v4445_v19, %v4167_v20  ;;  %v1680_v56 = vld [vmem:[#allocation2 + $0xd0] sm:$0xff] }
 0x2ae   : > { %2736 = vmatmul.bf16.gmra.mxu2 %v5346_v7  ;;  %v4042_v24 = vor.u32 %v4413_v21, %v4039_v22  ;;  %v4461_v39 = vld [vmem:[%s5929_s5 + $0x1a4] sm:$0xf]  ;;  %v4231_v40 = vld [vmem:[%s5929_s5 + $0x1a8] sm:$0xf0]  ;;  %v3909_v60 = vld [vmem:[#allocation3 + $0x120] sm:$0xf] }
 0x2af   : > { %2825 = vmatmul.bf16.gmra.mxu3 %v5348_v8  ;;  %v4234_v49 = vor.u32 %v4461_v39, %v4231_v40  ;;  %3074 = vmatpush.bf16.msrb.mxu2 %v4170_v23  ;;  %v1591_v61 = vld [vmem:[%s4805_s23 + $0xb0] sm:$0xff]  ;;  %v1592_v62 = vld [vmem:[%s4805_s23 + $0xb8] sm:$0xff]  ;;  %v4381_v19 = vld [vmem:[#allocation3 + $0x124] sm:$0xf]  ;;  %1751 = vst [vmem:[#allocation3 + $0x168] sm:$0xff] %v1719_v57 }
 0x2b0   : > { %2896 = vmatpush.bf16.msrb.mxu0 %v4042_v24  ;;  %v3911_v20 = vld [vmem:[#allocation3 + $0x130] sm:$0xf0]  ;;  %1623 = vst [vmem:[#allocation3 + $0x160] sm:$0xff] %v1591_v61  ;;  %v3917_v21 = vld [vmem:[#allocation3 + $0x128] sm:$0xf] }
 0x2b1   : > { %3163 = vmatpush.bf16.msrb.mxu3 %v4234_v49  ;;  %v4382_v22 = vld [vmem:[#allocation3 + $0x12c] sm:$0xf]  ;;  %1624 = vst [vmem:[#allocation3 + $0x170] sm:$0xff] %v1592_v62  ;;  %v4429_v23 = vld [vmem:[%s5929_s5 + $0xa4] sm:$0xf]  ;;  %v5509_v51 = vor.u32 %v4381_v19, %v3911_v20 }
 0x2b2   : > { %v4103_v24 = vld [vmem:[%s5929_s5 + $0xa8] sm:$0xf0]  ;;  %v4384_v39 = vld [vmem:[#allocation3 + $0x134] sm:$0xf0]  ;;  %v3919_v40 = vld [vmem:[#allocation3 + $0x138] sm:$0xf0] }
 0x2b3   : > { %v1683_v19 = vld [vmem:[#allocation2 + $0xa8] sm:$0xff] }
 0x2bc   : > { %2563 = vmatmul.bf16.gmra.mxu0 %v5356_v29 }
 0x2bd   : > { %2652 = vmatmul.bf16.gmra.mxu1 %v5358_v30 }
 0x2be   : > { %2741 = vmatmul.bf16.gmra.mxu2 %v5360_v31 }
 0x2bf   : > { %2830 = vmatmul.bf16.gmra.mxu3 %v5362_v32 }
 0x2cc   : > { %2568 = vmatmul.bf16.gmra.mxu0 %v5394_v9 }
 0x2cd   : > { %2657 = vmatmul.bf16.gmra.mxu1 %v5396_v10 }
 0x2ce   : > { %2746 = vmatmul.bf16.gmra.mxu2 %v5398_v11 }
 0x2cf   : > { %2835 = vmatmul.bf16.gmra.mxu3 %v5400_v12 }
 0x2dc   : > { %2573 = vmatmul.bf16.gmra.mxu0 %v5408_v43 }
 0x2dd   : > { %2662 = vmatmul.bf16.gmra.mxu1 %v5410_v44 }
 0x2de   : > { %2751 = vmatmul.bf16.gmra.mxu2 %v5412_v45 }
 0x2df   : > { %2840 = vmatmul.bf16.gmra.mxu3 %v5414_v46 }
 0x2ec   : > { %2578 = vmatmul.bf16.gmra.mxu0 %v5446_v25 }
 0x2ed   : > { %2667 = vmatmul.bf16.gmra.mxu1 %v5448_v26 }
 0x2ee   : > { %2756 = vmatmul.bf16.gmra.mxu2 %v5450_v27 }
 0x2ef   : > { %2845 = vmatmul.bf16.gmra.mxu3 %v5452_v28 }
 0x2f9   : > { %v2544_v0 = vpop.f32.mrf.mxu0 }
 0x2fa   : > { %v2545_v2 = vadd.f32 %v2544_v0, %v5463_v58  ;;  %v2633_v3 = vpop.f32.mrf.mxu1  ;;  %v1720_v0 = vpack.c.bf16 %v1680_v56, %v1679_v52  ;;  %v5513_v56 = vor.u32 %v4382_v22, %v3919_v40  ;;  %v1684_v22 = vld [vmem:[#allocation2 + $0x1c8] sm:$0xff] }
 0x2fb   : > { %v1594_v40 = vld [vmem:[%s4805_s23 + $0xc8] sm:$0xff] }
 0x2fc   : > { %v2634_v18 = vadd.f32 %v2633_v3, %v2545_v2  ;;  %2583 = vmatmul.bf16.gmra.mxu0 %v5465_v63  ;;  %v4383_v3 = vld [vmem:[#allocation3 + $0x12c] sm:$0xf0]  ;;  %1752 = vst [vmem:[#allocation3 + $0x178] sm:$0xff] %v1720_v0  ;;  %v1681_v0 = vld [vmem:[#allocation2 + $0xb8] sm:$0xff] }
 0x2fd   : > { %2672 = vmatmul.bf16.gmra.mxu1 %v5467_v1  ;;  %5955 = vst [vmem:[#allocation10_spill] sm:$0xff] %v5513_v56 }
 0x2fe   : > { %2761 = vmatmul.bf16.gmra.mxu2 %v5470_v4  ;;  %1626 = vst [vmem:[#allocation3 + $0x190] sm:$0xff] %v1594_v40 }
 0x2ff   : > { %2850 = vmatmul.bf16.gmra.mxu3 %v5472_v17 }
 0x301   : > { %v2722_v41 = vpop.f32.mrf.mxu2  ;;  %v2546_v54 = vpop.f32.mrf.mxu0 }
 0x302   : > { %v2811_v42 = vpop.f32.mrf.mxu3  ;;  %v2723_v53 = vadd.f32 %v2722_v41, %v2634_v18  ;;  %v2635_v55 = vpop.f32.mrf.mxu1  ;;  %v2547_v59 = vadd.f32 %v2546_v54, %v5463_v58  ;;  %v4106_v41 = vor.u32 %v4429_v23, %v4103_v24 }
 0x304   : > { %v5499_v2 = vadd.f32 %v2811_v42, %v2723_v53  ;;  %v2636_v18 = vadd.f32 %v2635_v55, %v2547_v59  ;;  %v5507_v42 = vor.u32 %v4383_v3, %v3909_v60  ;;  %2985 = vmatpush.bf16.msrb.mxu1 %v4106_v41  ;;  %v5511_v55 = vor.u32 %v4384_v39, %v3917_v21  ;;  %v1682_v3 = vld [vmem:[#allocation2 + $0x88] sm:$0xff]  ;;  %v1593_v39 = vld [vmem:[%s4805_s23 + $0xc0] sm:$0xff] }
 0x305   : > { %v1721_v23 = vpack.c.bf16 %v1682_v3, %v1681_v0  ;;  %v1722_v41 = vpack.c.bf16 %v1684_v22, %v1683_v19  ;;  %1625 = vst [vmem:[#allocation3 + $0x180] sm:$0xff] %v1593_v39 }
 0x306   : > { %5954 = vst [vmem:[#allocation9_spill] sm:$0xff] %v5511_v55 }
 0x307   : > { %1753 = vst [vmem:[#allocation3 + $0x188] sm:$0xff] %v1721_v23 }
 0x308   : > { %1754 = vst [vmem:[#allocation3 + $0x198] sm:$0xff] %v1722_v41  ;;  %v4411_v41 = vld [vmem:[%s5929_s5 + $0x14] sm:$0xf] }
 0x309   : > { %v2724_v49 = vpop.f32.mrf.mxu2  ;;  %v2549_v53 = vpop.f32.mrf.mxu0 }
 0x30a   : > { %v2813_v50 = vpop.f32.mrf.mxu3  ;;  %v2725_v52 = vadd.f32 %v2724_v49, %v2636_v18  ;;  %v2638_v54 = vpop.f32.mrf.mxu1  ;;  %v2550_v57 = vadd.f32 %v2549_v53, %v5463_v58 }
 0x30c   : > { %v5516_v59 = vadd.f32 %v2813_v50, %v2725_v52  ;;  %2588 = vmatmul.bf16.gmra.mxu0 %v5507_v42  ;;  %v2639_v60 = vadd.f32 %v2638_v54, %v2550_v57  ;;  %v3925_v50 = vld [vmem:[#allocation3 + $0x140] sm:$0xf]  ;;  %v4385_v52 = vld [vmem:[#allocation3 + $0x144] sm:$0xf]  ;;  %v4387_v54 = vld [vmem:[#allocation3 + $0x14c] sm:$0xf0] }
 0x30d   : > { %2677 = vmatmul.bf16.gmra.mxu1 %v5509_v51  ;;  %v3927_v57 = vld [vmem:[#allocation3 + $0x150] sm:$0xf0]  ;;  %v5527_v0 = vor.u32 %v4387_v54, %v3925_v50  ;;  %v4223_v54 = vld [vmem:[%s5929_s5 + $0x198] sm:$0xf0] }
 0x30e   : > { %5956 = vst [vmem:[#allocation11_spill] sm:$0xff] %v5516_v59  ;;  %2766 = vmatmul.bf16.gmra.mxu2 %v5511_v55  ;;  %v3935_v55 = vld [vmem:[#allocation3 + $0x158] sm:$0xf0]  ;;  %v5529_v19 = vor.u32 %v4385_v52, %v3927_v57  ;;  %v4390_v59 = vld [vmem:[#allocation3 + $0x16c] sm:$0xf] }
 0x30f   : > { %2855 = vmatmul.bf16.gmra.mxu3 %v5513_v56  ;;  %v3933_v56 = vld [vmem:[#allocation3 + $0x148] sm:$0xf]  ;;  %5958 = vst [vmem:[#allocation13_spill] sm:$0xff] %v5527_v0  ;;  %v4031_v52 = vld [vmem:[%s5929_s5 + $0x18] sm:$0xf0] }
 0x310   : > { %5959 = vst [vmem:[#allocation14_spill] sm:$0xff] %v5529_v19 }
 0x311   : > { %v2727_v61 = vpop.f32.mrf.mxu2  ;;  %v2551_v18 = vpop.f32.mrf.mxu0 }
 0x312   : > { %v2816_v62 = vpop.f32.mrf.mxu3  ;;  %v2728_v20 = vadd.f32 %v2727_v61, %v2639_v60  ;;  %v2640_v21 = vpop.f32.mrf.mxu1  ;;  %v2552_v24 = vadd.f32 %v2551_v18, %v5463_v58  ;;  %v4386_v60 = vld [vmem:[#allocation3 + $0x14c] sm:$0xf]  ;;  %v4388_v61 = vld [vmem:[#allocation3 + $0x154] sm:$0xf0] }
 0x313   : > { %v5531_v39 = vor.u32 %v4388_v61, %v3933_v56  ;;  %v4443_v56 = vld [vmem:[%s5929_s5 + $0x114] sm:$0xf]  ;;  %v4034_v61 = vor.u32 %v4411_v41, %v4031_v52  ;;  %v4391_v52 = vld [vmem:[#allocation3 + $0x16c] sm:$0xf0] }
 0x314   : > { %v5525_v49 = vadd.f32 %v2816_v62, %v2728_v20  ;;  %v2641_v53 = vadd.f32 %v2640_v21, %v2552_v24  ;;  %v5533_v21 = vor.u32 %v4386_v60, %v3935_v55  ;;  %v4159_v55 = vld [vmem:[%s5929_s5 + $0x118] sm:$0xf0] }
 0x315   : > { %5960 = vst [vmem:[#allocation15_spill] sm:$0xff] %v5531_v39  ;;  %v4162_v50 = vor.u32 %v4443_v56, %v4159_v55  ;;  %v1688_v55 = vld [vmem:[#allocation2 + $0x190] sm:$0xff]  ;;  %2897 = vmatpush.bf16.msrb.mxu0 %v4034_v61  ;;  %v4095_v61 = vld [vmem:[%s5929_s5 + $0x98] sm:$0xf0] }
 0x316   : > { %5957 = vst [vmem:[#allocation12_spill] sm:$0xff] %v5525_v49 }
 0x317   : > { %5961 = vst [vmem:[#allocation16_spill] sm:$0xff] %v5533_v21  ;;  %3075 = vmatpush.bf16.msrb.mxu2 %v4162_v50  ;;  %v4427_v50 = vld [vmem:[%s5929_s5 + $0x94] sm:$0xf] }
 0x319   : > { %v2729_v3 = vpop.f32.mrf.mxu2  ;;  %v2554_v20 = vpop.f32.mrf.mxu0 }
 0x31a   : > { %v2818_v18 = vpop.f32.mrf.mxu3  ;;  %v2730_v62 = vadd.f32 %v2729_v3, %v2641_v53  ;;  %v2643_v22 = vpop.f32.mrf.mxu1  ;;  %v2555_v24 = vadd.f32 %v2554_v20, %v5463_v58  ;;  %v4459_v53 = vld [vmem:[%s5929_s5 + $0x194] sm:$0xf]  ;;  %v1687_v20 = vld [vmem:[#allocation2 + $0x68] sm:$0xff] }
 0x31b   : > { %v4226_v3 = vor.u32 %v4459_v53, %v4223_v54  ;;  %v1724_v49 = vpack.c.bf16 %v1688_v55, %v1687_v20  ;;  %v4389_v53 = vld [vmem:[#allocation3 + $0x164] sm:$0xf]  ;;  %v3943_v54 = vld [vmem:[#allocation3 + $0x170] sm:$0xf0] }
 0x31c   : > { %v5536_v40 = vadd.f32 %v2818_v18, %v2730_v62  ;;  %2593 = vmatmul.bf16.gmra.mxu0 %v5527_v0  ;;  %v2644_v23 = vadd.f32 %v2643_v22, %v2555_v24  ;;  %v1685_v18 = vld [vmem:[#allocation2 + $0x170] sm:$0xff]  ;;  %v1686_v62 = vld [vmem:[#allocation2 + $0x178] sm:$0xff]  ;;  %v5573_v20 = vor.u32 %v4389_v53, %v3943_v54  ;;  %v1691_v54 = vld [vmem:[#allocation2 + $0xc0] sm:$0xff] }
 0x31d   : > { %2682 = vmatmul.bf16.gmra.mxu1 %v5529_v19  ;;  %3164 = vmatpush.bf16.msrb.mxu3 %v4226_v3  ;;  %v1595_v19 = vld [vmem:[%s4805_s23 + $0xd0] sm:$0xff]  ;;  %v1596_v0 = vld [vmem:[%s4805_s23 + $0xd8] sm:$0xff]  ;;  %1756 = vst [vmem:[#allocation3 + $0x1b8] sm:$0xff] %v1724_v49 }
 0x31e   : > { %5962 = vst [vmem:[#allocation17_spill] sm:$0xff] %v5536_v40  ;;  %2771 = vmatmul.bf16.gmra.mxu2 %v5531_v39  ;;  %v3941_v40 = vld [vmem:[#allocation3 + $0x160] sm:$0xf]  ;;  %v4392_v3 = vld [vmem:[#allocation3 + $0x174] sm:$0xf0] }
 0x31f   : > { %2860 = vmatmul.bf16.gmra.mxu3 %v5533_v21  ;;  %v1723_v21 = vpack.c.bf16 %v1686_v62, %v1685_v18  ;;  %1627 = vst [vmem:[#allocation3 + $0x1a0] sm:$0xff] %v1595_v19  ;;  %v4098_v18 = vor.u32 %v4427_v50, %v4095_v61  ;;  %v5571_v62 = vor.u32 %v4391_v52, %v3941_v40  ;;  %v1689_v53 = vld [vmem:[#allocation2 + $0x198] sm:$0xff]  ;;  %v1692_v61 = vld [vmem:[#allocation2 + $0x1c0] sm:$0xff] }
 0x320   : > { %1628 = vst [vmem:[#allocation3 + $0x1b0] sm:$0xff] %v1596_v0 }
 0x321   : > { %v2732_v57 = vpop.f32.mrf.mxu2  ;;  %v2556_v24 = vpop.f32.mrf.mxu0  ;;  %1755 = vst [vmem:[#allocation3 + $0x1a8] sm:$0xff] %v1723_v21  ;;  %2986 = vmatpush.bf16.msrb.mxu1 %v4098_v18  ;;  %v1597_v18 = vld [vmem:[%s4805_s23 + $0xe0] sm:$0xff] }
 0x322   : > { %v2821_v60 = vpop.f32.mrf.mxu3  ;;  %v2733_v22 = vadd.f32 %v2732_v57, %v2644_v23  ;;  %v2645_v56 = vpop.f32.mrf.mxu1  ;;  %v2557_v39 = vadd.f32 %v2556_v24, %v5463_v58  ;;  %v3949_v57 = vld [vmem:[#allocation3 + $0x168] sm:$0xf]  ;;  %5964 = vst [vmem:[#allocation19_spill] sm:$0xff] %v5571_v62 }
 0x323   : > { %5965 = vst [vmem:[#allocation20_spill] sm:$0xff] %v5573_v20 }
 0x324   : > { %v5563_v41 = vadd.f32 %v2821_v60, %v2733_v22  ;;  %v2646_v23 = vadd.f32 %v2645_v56, %v2557_v39  ;;  %v3951_v60 = vld [vmem:[#allocation3 + $0x178] sm:$0xf0]  ;;  %v5575_v56 = vor.u32 %v4392_v3, %v3949_v57  ;;  %1629 = vst [vmem:[#allocation3 + $0x1c0] sm:$0xff] %v1597_v18 }
 0x325   : > { %v5577_v55 = vor.u32 %v4390_v59, %v3951_v60  ;;  %v1690_v59 = vld [vmem:[#allocation2 + $0x38] sm:$0xff] }
 0x326   : > { %5963 = vst [vmem:[#allocation18_spill] sm:$0xff] %v5563_v41  ;;  %v1725_v3 = vpack.c.bf16 %v1690_v59, %v1689_v53 }
 0x327   : > { %5966 = vst [vmem:[#allocation21_spill] sm:$0xff] %v5575_v56 }
 0x328   : > { %5967 = vst [vmem:[#allocation22_spill] sm:$0xff] %v5577_v55 }
 0x329   : > { %v2734_v19 = vpop.f32.mrf.mxu2  ;;  %v2559_v22 = vpop.f32.mrf.mxu0  ;;  %1757 = vst [vmem:[#allocation3 + $0x1c8] sm:$0xff] %v1725_v3 }
 0x32a   : > { %v2823_v39 = vpop.f32.mrf.mxu3  ;;  %v2735_v0 = vadd.f32 %v2734_v19, %v2646_v23  ;;  %v2648_v24 = vpop.f32.mrf.mxu1  ;;  %v2560_v21 = vadd.f32 %v2559_v22, %v5463_v58  ;;  %v1598_v19 = vld [vmem:[%s4805_s23 + $0xe8] sm:$0xff]  ;;  %v3957_v22 = vld [vmem:[#allocation3 + $0x180] sm:$0xf] }
 0x32b   : > { %1630 = vst [vmem:[#allocation3 + $0x1d0] sm:$0xff] %v1598_v19 }
 0x32c   : > { %v5580_v41 = vadd.f32 %v2823_v39, %v2735_v0  ;;  %2598 = vmatmul.bf16.gmra.mxu0 %v5571_v62  ;;  %v2649_v49 = vadd.f32 %v2648_v24, %v2560_v21  ;;  %v1726_v39 = vpack.c.bf16 %v1692_v61, %v1691_v54  ;;  %v4393_v24 = vld [vmem:[#allocation3 + $0x184] sm:$0xf]  ;;  %v4398_v62 = vld [vmem:[#allocation3 + $0x1ac] sm:$0xf] }
 0x32d   : > { %2687 = vmatmul.bf16.gmra.mxu1 %v5573_v20  ;;  %v3967_v20 = vld [vmem:[#allocation3 + $0x198] sm:$0xf0] }
 0x32e   : > { %5968 = vst [vmem:[#allocation23_spill] sm:$0xff] %v5580_v41  ;;  %2776 = vmatmul.bf16.gmra.mxu2 %v5575_v56  ;;  %v3959_v56 = vld [vmem:[#allocation3 + $0x190] sm:$0xf0]  ;;  %v3965_v41 = vld [vmem:[#allocation3 + $0x188] sm:$0xf] }
 0x32f   : > { %2865 = vmatmul.bf16.gmra.mxu3 %v5577_v55  ;;  %v4395_v55 = vld [vmem:[#allocation3 + $0x18c] sm:$0xf0]  ;;  %1758 = vst [vmem:[#allocation3 + $0x1d8] sm:$0xff] %v1726_v39  ;;  %v5593_v54 = vor.u32 %v4393_v24, %v3959_v56  ;;  %v4409_v56 = vld [vmem:[%s5929_s5 + $0x4] sm:$0xf] }
 0x330   : > { %v5591_v53 = vor.u32 %v4395_v55, %v3957_v22  ;;  %v4023_v39 = vld [vmem:[%s5929_s5 + $0x8] sm:$0xf0]  ;;  %v4457_v22 = vld [vmem:[%s5929_s5 + $0x184] sm:$0xf] }
 0x331   : > { %v2737_v40 = vpop.f32.mrf.mxu2  ;;  %v2561_v57 = vpop.f32.mrf.mxu0  ;;  %5971 = vst [vmem:[#allocation26_spill] sm:$0xff] %v5593_v54  ;;  %v4215_v24 = vld [vmem:[%s5929_s5 + $0x188] sm:$0xf0] }
 0x332   : > { %v2826_v52 = vpop.f32.mrf.mxu3  ;;  %v2738_v23 = vadd.f32 %v2737_v40, %v2649_v49  ;;  %v2650_v50 = vpop.f32.mrf.mxu1  ;;  %v2562_v60 = vadd.f32 %v2561_v57, %v5463_v58  ;;  %v4394_v49 = vld [vmem:[#allocation3 + $0x18c] sm:$0xf]  ;;  %v4396_v40 = vld [vmem:[#allocation3 + $0x194] sm:$0xf0]  ;;  %5970 = vst [vmem:[#allocation25_spill] sm:$0xff] %v5591_v53 }
 0x333   : > { %v5595_v18 = vor.u32 %v4396_v40, %v3965_v41  ;;  %v4441_v41 = vld [vmem:[%s5929_s5 + $0x104] sm:$0xf]  ;;  %v4026_v40 = vor.u32 %v4409_v56, %v4023_v39  ;;  %v4399_v39 = vld [vmem:[#allocation3 + $0x1ac] sm:$0xf0] }
 0x334   : > { %v5589_v0 = vadd.f32 %v2826_v52, %v2738_v23  ;;  %v2651_v21 = vadd.f32 %v2650_v50, %v2562_v60  ;;  %v5597_v50 = vor.u32 %v4394_v49, %v3967_v20  ;;  %v4151_v20 = vld [vmem:[%s5929_s5 + $0x108] sm:$0xf0] }
 0x335   : > { %5972 = vst [vmem:[#allocation27_spill] sm:$0xff] %v5595_v18  ;;  %v4154_v55 = vor.u32 %v4441_v41, %v4151_v20  ;;  %v1696_v20 = vld [vmem:[#allocation2 + $0xa0] sm:$0xff]  ;;  %2898 = vmatpush.bf16.msrb.mxu0 %v4026_v40  ;;  %v4087_v40 = vld [vmem:[%s5929_s5 + $0x88] sm:$0xf0] }
 0x336   : > { %5969 = vst [vmem:[#allocation24_spill] sm:$0xff] %v5589_v0 }
 0x337   : > { %5973 = vst [vmem:[#allocation28_spill] sm:$0xff] %v5597_v50  ;;  %3076 = vmatpush.bf16.msrb.mxu2 %v4154_v55  ;;  %v4425_v55 = vld [vmem:[%s5929_s5 + $0x84] sm:$0xf] }
 0x339   : > { %v2739_v59 = vpop.f32.mrf.mxu2  ;;  %v2564_v23 = vpop.f32.mrf.mxu0 }
 0x33a   : > { %v2828_v57 = vpop.f32.mrf.mxu3  ;;  %v2740_v52 = vadd.f32 %v2739_v59, %v2651_v21  ;;  %v2653_v61 = vpop.f32.mrf.mxu1  ;;  %v2565_v60 = vadd.f32 %v2564_v23, %v5463_v58  ;;  %v4218_v59 = vor.u32 %v4457_v22, %v4215_v24  ;;  %v1695_v23 = vld [vmem:[#allocation2 + $0x58] sm:$0xff]  ;;  %v4397_v22 = vld [vmem:[#allocation3 + $0x1a4] sm:$0xf]  ;;  %v3975_v24 = vld [vmem:[#allocation3 + $0x1b0] sm:$0xf0] }
 0x33b   : > { %v1728_v0 = vpack.c.bf16 %v1696_v20, %v1695_v23  ;;  %v5637_v23 = vor.u32 %v4397_v22, %v3975_v24 }
 0x33c   : > { %v5600_v19 = vadd.f32 %v2828_v57, %v2740_v52  ;;  %2603 = vmatmul.bf16.gmra.mxu0 %v5591_v53  ;;  %v2654_v3 = vadd.f32 %v2653_v61, %v2565_v60  ;;  %v1693_v57 = vld [vmem:[#allocation2 + $0x158] sm:$0xff]  ;;  %v1694_v52 = vld [vmem:[#allocation2 + $0x10] sm:$0xff]  ;;  %3165 = vmatpush.bf16.msrb.mxu3 %v4218_v59 }
 0x33d   : > { %2692 = vmatmul.bf16.gmra.mxu1 %v5593_v54  ;;  %v1599_v54 = vld [vmem:[%s4805_s23 + $0xf0] sm:$0xff]  ;;  %v1600_v53 = vld [vmem:[%s4805_s23 + $0xf8] sm:$0xff]  ;;  %1760 = vst [vmem:[#allocation3 + $0x1f8] sm:$0xff] %v1728_v0 }
 0x33e   : > { %5974 = vst [vmem:[#allocation29_spill] sm:$0xff] %v5600_v19  ;;  %2781 = vmatmul.bf16.gmra.mxu2 %v5595_v18  ;;  %v3973_v19 = vld [vmem:[#allocation3 + $0x1a0] sm:$0xf]  ;;  %v4400_v59 = vld [vmem:[#allocation3 + $0x1b4] sm:$0xf0] }
 0x33f   : > { %2870 = vmatmul.bf16.gmra.mxu3 %v5597_v50  ;;  %v1727_v50 = vpack.c.bf16 %v1694_v52, %v1693_v57  ;;  %1631 = vst [vmem:[#allocation3 + $0x1e0] sm:$0xff] %v1599_v54  ;;  %v4090_v57 = vor.u32 %v4425_v55, %v4087_v40  ;;  %v5635_v52 = vor.u32 %v4399_v39, %v3973_v19  ;;  %v3989_v40 = vld [vmem:[#allocation3 + $0x1c0] sm:$0xf] }
 0x340   : > { %1632 = vst [vmem:[#allocation3 + $0x1f0] sm:$0xff] %v1600_v53 }
 0x341   : > { %v2742_v21 = vpop.f32.mrf.mxu2  ;;  %v2566_v60 = vpop.f32.mrf.mxu0  ;;  %1759 = vst [vmem:[#allocation3 + $0x1e8] sm:$0xff] %v1727_v50  ;;  %2987 = vmatpush.bf16.msrb.mxu1 %v4090_v57  ;;  %v3991_v57 = vld [vmem:[#allocation3 + $0x1d0] sm:$0xf0] }
 0x342   : > { %v2831_v49 = vpop.f32.mrf.mxu3  ;;  %v2743_v61 = vadd.f32 %v2742_v21, %v2654_v3  ;;  %v2655_v41 = vpop.f32.mrf.mxu1  ;;  %v2567_v18 = vadd.f32 %v2566_v60, %v5463_v58  ;;  %v3981_v21 = vld [vmem:[#allocation3 + $0x1a8] sm:$0xf] }
 0x344   : > { %v5627_v56 = vadd.f32 %v2831_v49, %v2743_v61  ;;  %v2656_v3 = vadd.f32 %v2655_v41, %v2567_v18  ;;  %v3983_v49 = vld [vmem:[#allocation3 + $0x1b8] sm:$0xf0]  ;;  %v5639_v41 = vor.u32 %v4400_v59, %v3981_v21  ;;  %v4403_v59 = vld [vmem:[#allocation3 + $0x1cc] sm:$0xf0] }
 0x345   : > { %v5641_v20 = vor.u32 %v4398_v62, %v3983_v49  ;;  %v4401_v49 = vld [vmem:[#allocation3 + $0x1c4] sm:$0xf] }
 0x346   : > { %5975 = vst [vmem:[#allocation30_spill] sm:$0xff] %v5627_v56 }
 0x347   : > { %5976 = vst [vmem:[#allocation31_spill] sm:$0xff] %v5639_v41 }
 0x348   : > { %5977 = vst [vmem:[#allocation32_spill] sm:$0xff] %v5641_v20 }
 0x349   : > { %v2744_v54 = vpop.f32.mrf.mxu2  ;;  %v2569_v61 = vpop.f32.mrf.mxu0 }
 0x34a   : > { %v2833_v18 = vpop.f32.mrf.mxu3  ;;  %v2745_v53 = vadd.f32 %v2744_v54, %v2656_v3  ;;  %v2658_v60 = vpop.f32.mrf.mxu1  ;;  %v2570_v50 = vadd.f32 %v2569_v61, %v5463_v58  ;;  %v3997_v54 = vld [vmem:[#allocation3 + $0x1c8] sm:$0xf]  ;;  %v3999_v61 = vld [vmem:[#allocation3 + $0x1d8] sm:$0xf0] }
 0x34c   : > { %v5644_v56 = vadd.f32 %v2833_v18, %v2745_v53  ;;  %2608 = vmatmul.bf16.gmra.mxu0 %v5635_v52  ;;  %v2659_v0 = vadd.f32 %v2658_v60, %v2570_v50  ;;  %v4404_v18 = vld [vmem:[#allocation3 + $0x1d4] sm:$0xf0]  ;;  %v4402_v53 = vld [vmem:[#allocation3 + $0x1cc] sm:$0xf]  ;;  %v5653_v60 = vor.u32 %v4403_v59, %v3989_v40 }
 0x34d   : > { %2697 = vmatmul.bf16.gmra.mxu1 %v5637_v23 }
 0x34e   : > { %2786 = vmatmul.bf16.gmra.mxu2 %v5639_v41  ;;  %5979 = vst [vmem:[#allocation34_spill] sm:$0xff] %v5653_v60 }
 0x34f   : > { %2875 = vmatmul.bf16.gmra.mxu3 %v5641_v20 }
 0x351   : > { %v2747_v19 = vpop.f32.mrf.mxu2  ;;  %v2571_v24 = vpop.f32.mrf.mxu0 }
 0x352   : > { %v2836_v39 = vpop.f32.mrf.mxu3  ;;  %v2748_v22 = vadd.f32 %v2747_v19, %v2659_v0  ;;  %v2660_v3 = vpop.f32.mrf.mxu1  ;;  %v2572_v62 = vadd.f32 %v2571_v24, %v5463_v58  ;;  %v5655_v0 = vor.u32 %v4401_v49, %v3991_v57 }
 0x354   : > { %v5651_v21 = vadd.f32 %v2836_v39, %v2748_v22  ;;  %v2661_v55 = vadd.f32 %v2660_v3, %v2572_v62  ;;  %5980 = vst [vmem:[#allocation35_spill] sm:$0xff] %v5655_v0  ;;  %v5657_v39 = vor.u32 %v4404_v18, %v3997_v54  ;;  %v5659_v22 = vor.u32 %v4402_v53, %v3999_v61  ;;  %v4407_v53 = vld [vmem:[#allocation3 + $0x1ec] sm:$0xf0]  ;;  %v4405_v61 = vld [vmem:[#allocation3 + $0x1e4] sm:$0xf] }
 0x356   : > { %5978 = vst [vmem:[#allocation33_spill] sm:$0xff] %v5651_v21 }
 0x357   : > { %5981 = vst [vmem:[#allocation36_spill] sm:$0xff] %v5657_v39 }
 0x358   : > { %5982 = vst [vmem:[#allocation37_spill] sm:$0xff] %v5659_v22 }
 0x359   : > { %v2749_v50 = vpop.f32.mrf.mxu2  ;;  %v2574_v41 = vpop.f32.mrf.mxu0 }
 0x35a   : > { %v2838_v20 = vpop.f32.mrf.mxu3  ;;  %v2750_v19 = vadd.f32 %v2749_v50, %v2661_v55  ;;  %v2663_v24 = vpop.f32.mrf.mxu1  ;;  %v2575_v3 = vadd.f32 %v2574_v41, %v5463_v58  ;;  %v4007_v50 = vld [vmem:[#allocation3 + $0x1f0] sm:$0xf0] }
 0x35c   : > { %v5662_v62 = vadd.f32 %v2838_v20, %v2750_v19  ;;  %2613 = vmatmul.bf16.gmra.mxu0 %v5653_v60  ;;  %v2664_v21 = vadd.f32 %v2663_v24, %v2575_v3  ;;  %v4005_v20 = vld [vmem:[#allocation3 + $0x1e0] sm:$0xf]  ;;  %v4013_v19 = vld [vmem:[#allocation3 + $0x1e8] sm:$0xf]  ;;  %v4408_v24 = vld [vmem:[#allocation3 + $0x1f4] sm:$0xf0] }
 0x35d   : > { %2702 = vmatmul.bf16.gmra.mxu1 %v5655_v0  ;;  %v4406_v3 = vld [vmem:[#allocation3 + $0x1ec] sm:$0xf] }
 0x35e   : > { %5983 = vst [vmem:[#allocation38_spill] sm:$0xff] %v5662_v62  ;;  %2791 = vmatmul.bf16.gmra.mxu2 %v5657_v39  ;;  %v4015_v39 = vld [vmem:[#allocation3 + $0x1f8] sm:$0xf0]  ;;  %v5671_v62 = vor.u32 %v4407_v53, %v4005_v20 }
 0x35f   : > { %2880 = vmatmul.bf16.gmra.mxu3 %v5659_v22 }
 0x361   : > { %v2752_v55 = vpop.f32.mrf.mxu2  ;;  %v2576_v49 = vpop.f32.mrf.mxu0 }
 0x362   : > { %v2841_v40 = vpop.f32.mrf.mxu3  ;;  %v2753_v59 = vadd.f32 %v2752_v55, %v2664_v21  ;;  %v2665_v57 = vpop.f32.mrf.mxu1  ;;  %v2577_v54 = vadd.f32 %v2576_v49, %v5463_v58  ;;  %v5673_v21 = vor.u32 %v4405_v61, %v4007_v50 }
 0x364   : > { %v5669_v18 = vadd.f32 %v2841_v40, %v2753_v59  ;;  %v2666_v41 = vadd.f32 %v2665_v57, %v2577_v54  ;;  %v5675_v40 = vor.u32 %v4408_v24, %v4013_v19  ;;  %v5677_v59 = vor.u32 %v4406_v3, %v4015_v39 }
 0x366   : > { %5984 = vst [vmem:[#allocation39_spill] sm:$0xff] %v5669_v18 }
 0x367   : > { %5985 = vst [vmem:[#allocation40_spill] sm:$0xff] %v5677_v59 }
 0x369   : > { %v2754_v22 = vpop.f32.mrf.mxu2  ;;  %v2579_v60 = vpop.f32.mrf.mxu0 }
 0x36a   : > { %v2843_v0 = vpop.f32.mrf.mxu3  ;;  %v2755_v55 = vadd.f32 %v2754_v22, %v2666_v41  ;;  %v2668_v49 = vpop.f32.mrf.mxu1  ;;  %v2580_v57 = vadd.f32 %v2579_v60, %v5463_v58 }
 0x36c   : > { %v5680_v54 = vadd.f32 %v2843_v0, %v2755_v55  ;;  %2618 = vmatmul.bf16.gmra.mxu0 %v5671_v62  ;;  %v2669_v18 = vadd.f32 %v2668_v49, %v2580_v57 }
 0x36d   : > { %2707 = vmatmul.bf16.gmra.mxu1 %v5673_v21 }
 0x36e   : > { %2796 = vmatmul.bf16.gmra.mxu2 %v5675_v40 }
 0x36f   : > { %2885 = vmatmul.bf16.gmra.mxu3 %v5677_v59 }
 0x371   : > { %v2757_v22 = vpop.f32.mrf.mxu2  ;;  %v2581_v53 = vpop.f32.mrf.mxu0 }
 0x372   : > { %v2846_v41 = vpop.f32.mrf.mxu3  ;;  %v2758_v20 = vadd.f32 %v2757_v22, %v2669_v18  ;;  %v2670_v61 = vpop.f32.mrf.mxu1  ;;  %v2582_v39 = vadd.f32 %v2581_v53, %v5463_v58 }
 0x374   : > { %v5687_v50 = vadd.f32 %v2846_v41, %v2758_v20  ;;  %v2671_v60 = vadd.f32 %v2670_v61, %v2582_v39 }
 0x379   : > { %v2759_v0 = vpop.f32.mrf.mxu2  ;;  %v2584_v3 = vpop.f32.mrf.mxu0 }
 0x37a   : > { %v2848_v19 = vpop.f32.mrf.mxu3  ;;  %v2760_v24 = vadd.f32 %v2759_v0, %v2671_v60  ;;  %v2673_v55 = vpop.f32.mrf.mxu1  ;;  %v2585_v49 = vadd.f32 %v2584_v3, %v5463_v58 }
 0x37c   : > { %v5690_v57 = vadd.f32 %v2848_v19, %v2760_v24  ;;  %2899 = vmatmul.bf16.vlgmr.msrb.gmra.mxu0 %v5252_v37  ;;  %v2674_v59 = vadd.f32 %v2673_v55, %v2585_v49 }
 0x37d   : > { %2988 = vmatmul.bf16.vlgmr.msrb.gmra.mxu1 %v5254_v38 }
 0x37e   : > { %3077 = vmatmul.bf16.vlgmr.msrb.gmra.mxu2 %v5257_v47 }
 0x37f   : > { %3166 = vmatmul.bf16.vlgmr.msrb.gmra.mxu3 %v5259_v48 }
 0x381   : > { %v2762_v18 = vpop.f32.mrf.mxu2  ;;  %v2586_v20 = vpop.f32.mrf.mxu0 }
 0x382   : > { %v2851_v22 = vpop.f32.mrf.mxu3  ;;  %v2763_v41 = vadd.f32 %v2762_v18, %v2674_v59  ;;  %v2675_v53 = vpop.f32.mrf.mxu1  ;;  %v2587_v61 = vadd.f32 %v2586_v20, %v5463_v58 }
 0x384   : > { %v5697_v39 = vadd.f32 %v2851_v22, %v2763_v41  ;;  %v2676_v60 = vadd.f32 %v2675_v53, %v2587_v61 }
 0x389   : > { %v2764_v0 = vpop.f32.mrf.mxu2  ;;  %v2589_v24 = vpop.f32.mrf.mxu0 }
 0x38a   : > { %v2853_v19 = vpop.f32.mrf.mxu3  ;;  %v2765_v37 = vadd.f32 %v2764_v0, %v2676_v60  ;;  %v2678_v3 = vpop.f32.mrf.mxu1  ;;  %v2590_v38 = vadd.f32 %v2589_v24, %v5463_v58 }
 0x38c   : > { %v5700_v47 = vadd.f32 %v2853_v19, %v2765_v37  ;;  %2904 = vmatmul.bf16.gmra.mxu0 %v5290_v13  ;;  %v2679_v48 = vadd.f32 %v2678_v3, %v2590_v38 }
 0x38d   : > { %2993 = vmatmul.bf16.gmra.mxu1 %v5292_v14 }
 0x38e   : > { %3082 = vmatmul.bf16.gmra.mxu2 %v5294_v15 }
 0x38f   : > { %3171 = vmatmul.bf16.gmra.mxu3 %v5296_v16 }
 0x391   : > { %v2767_v59 = vpop.f32.mrf.mxu2  ;;  %v2591_v18 = vpop.f32.mrf.mxu0 }
 0x392   : > { %v2856_v55 = vpop.f32.mrf.mxu3  ;;  %v2768_v49 = vadd.f32 %v2767_v59, %v2679_v48  ;;  %v2680_v22 = vpop.f32.mrf.mxu1  ;;  %v2592_v41 = vadd.f32 %v2591_v18, %v5463_v58 }
 0x394   : > { %v5707_v20 = vadd.f32 %v2856_v55, %v2768_v49  ;;  %v2681_v53 = vadd.f32 %v2680_v22, %v2592_v41 }
 0x399   : > { %v2769_v61 = vpop.f32.mrf.mxu2  ;;  %v2594_v0 = vpop.f32.mrf.mxu0 }
 0x39a   : > { %v2858_v60 = vpop.f32.mrf.mxu3  ;;  %v2770_v13 = vadd.f32 %v2769_v61, %v2681_v53  ;;  %v2683_v19 = vpop.f32.mrf.mxu1  ;;  %v2595_v14 = vadd.f32 %v2594_v0, %v5463_v58 }
 0x39c   : > { %v5710_v15 = vadd.f32 %v2858_v60, %v2770_v13  ;;  %2909 = vmatmul.bf16.gmra.mxu0 %v5304_v33  ;;  %v2684_v16 = vadd.f32 %v2683_v19, %v2595_v14 }
 0x39d   : > { %2998 = vmatmul.bf16.gmra.mxu1 %v5306_v34 }
 0x39e   : > { %3087 = vmatmul.bf16.gmra.mxu2 %v5308_v35 }
 0x39f   : > { %3176 = vmatmul.bf16.gmra.mxu3 %v5310_v36 }
 0x3a1   : > { %v2772_v37 = vpop.f32.mrf.mxu2  ;;  %v2596_v38 = vpop.f32.mrf.mxu0 }
 0x3a2   : > { %v2861_v24 = vpop.f32.mrf.mxu3  ;;  %v2773_v3 = vadd.f32 %v2772_v37, %v2684_v16  ;;  %v2685_v48 = vpop.f32.mrf.mxu1  ;;  %v2597_v59 = vadd.f32 %v2596_v38, %v5463_v58 }
 0x3a4   : > { %v5717_v55 = vadd.f32 %v2861_v24, %v2773_v3  ;;  %v2686_v49 = vadd.f32 %v2685_v48, %v2597_v59 }
 0x3a9   : > { %v2774_v18 = vpop.f32.mrf.mxu2  ;;  %v2599_v41 = vpop.f32.mrf.mxu0 }
 0x3aa   : > { %v2863_v22 = vpop.f32.mrf.mxu3  ;;  %v2775_v33 = vadd.f32 %v2774_v18, %v2686_v49  ;;  %v2688_v53 = vpop.f32.mrf.mxu1  ;;  %v2600_v34 = vadd.f32 %v2599_v41, %v5463_v58 }
 0x3ac   : > { %v5720_v35 = vadd.f32 %v2863_v22, %v2775_v33  ;;  %2914 = vmatmul.bf16.gmra.mxu0 %v5342_v5  ;;  %v2689_v36 = vadd.f32 %v2688_v53, %v2600_v34 }
 0x3ad   : > { %3003 = vmatmul.bf16.gmra.mxu1 %v5344_v6 }
 0x3ae   : > { %3092 = vmatmul.bf16.gmra.mxu2 %v5346_v7 }
 0x3af   : > { %3181 = vmatmul.bf16.gmra.mxu3 %v5348_v8 }
 0x3b1   : > { %v2777_v61 = vpop.f32.mrf.mxu2  ;;  %v2601_v0 = vpop.f32.mrf.mxu0 }
 0x3b2   : > { %v2866_v60 = vpop.f32.mrf.mxu3  ;;  %v2778_v13 = vadd.f32 %v2777_v61, %v2689_v36  ;;  %v2690_v19 = vpop.f32.mrf.mxu1  ;;  %v2602_v14 = vadd.f32 %v2601_v0, %v5463_v58 }
 0x3b4   : > { %v5727_v16 = vadd.f32 %v2866_v60, %v2778_v13  ;;  %v2691_v37 = vadd.f32 %v2690_v19, %v2602_v14 }
 0x3b9   : > { %v2779_v24 = vpop.f32.mrf.mxu2  ;;  %v2604_v38 = vpop.f32.mrf.mxu0 }
 0x3ba   : > { %v2868_v3 = vpop.f32.mrf.mxu3  ;;  %v2780_v5 = vadd.f32 %v2779_v24, %v2691_v37  ;;  %v2693_v48 = vpop.f32.mrf.mxu1  ;;  %v2605_v6 = vadd.f32 %v2604_v38, %v5463_v58 }
 0x3bc   : > { %v5730_v7 = vadd.f32 %v2868_v3, %v2780_v5  ;;  %2919 = vmatmul.bf16.gmra.mxu0 %v5356_v29  ;;  %v2694_v8 = vadd.f32 %v2693_v48, %v2605_v6 }
 0x3bd   : > { %3008 = vmatmul.bf16.gmra.mxu1 %v5358_v30 }
 0x3be   : > { %3097 = vmatmul.bf16.gmra.mxu2 %v5360_v31 }
 0x3bf   : > { %3186 = vmatmul.bf16.gmra.mxu3 %v5362_v32 }
 0x3c1   : > { %v2782_v59 = vpop.f32.mrf.mxu2  ;;  %v2606_v22 = vpop.f32.mrf.mxu0 }
 0x3c2   : > { %v2871_v49 = vpop.f32.mrf.mxu3  ;;  %v2783_v18 = vadd.f32 %v2782_v59, %v2694_v8  ;;  %v2695_v33 = vpop.f32.mrf.mxu1  ;;  %v2607_v41 = vadd.f32 %v2606_v22, %v5463_v58 }
 0x3c4   : > { %v5737_v53 = vadd.f32 %v2871_v49, %v2783_v18  ;;  %v2696_v34 = vadd.f32 %v2695_v33, %v2607_v41 }
 0x3c9   : > { %v2784_v36 = vpop.f32.mrf.mxu2  ;;  %v2609_v60 = vpop.f32.mrf.mxu0 }
 0x3ca   : > { %v2873_v61 = vpop.f32.mrf.mxu3  ;;  %v2785_v29 = vadd.f32 %v2784_v36, %v2696_v34  ;;  %v2698_v13 = vpop.f32.mrf.mxu1  ;;  %v2610_v30 = vadd.f32 %v2609_v60, %v5463_v58 }
 0x3cc   : > { %v5740_v31 = vadd.f32 %v2873_v61, %v2785_v29  ;;  %2924 = vmatmul.bf16.gmra.mxu0 %v5394_v9  ;;  %v2699_v32 = vadd.f32 %v2698_v13, %v2610_v30 }
 0x3cd   : > { %3013 = vmatmul.bf16.gmra.mxu1 %v5396_v10 }
 0x3ce   : > { %3102 = vmatmul.bf16.gmra.mxu2 %v5398_v11 }
 0x3cf   : > { %3191 = vmatmul.bf16.gmra.mxu3 %v5400_v12 }
 0x3d1   : > { %v2787_v0 = vpop.f32.mrf.mxu2  ;;  %v2611_v37 = vpop.f32.mrf.mxu0 }
 0x3d2   : > { %v2876_v19 = vpop.f32.mrf.mxu3  ;;  %v2788_v14 = vadd.f32 %v2787_v0, %v2699_v32  ;;  %v2700_v24 = vpop.f32.mrf.mxu1  ;;  %v2612_v3 = vadd.f32 %v2611_v37, %v5463_v58 }
 0x3d4   : > { %v5747_v5 = vadd.f32 %v2876_v19, %v2788_v14  ;;  %v2701_v38 = vadd.f32 %v2700_v24, %v2612_v3 }
 0x3d9   : > { %v2789_v48 = vpop.f32.mrf.mxu2  ;;  %v2614_v8 = vpop.f32.mrf.mxu0 }
 0x3da   : > { %v2878_v6 = vpop.f32.mrf.mxu3  ;;  %v2790_v9 = vadd.f32 %v2789_v48, %v2701_v38  ;;  %v2703_v59 = vpop.f32.mrf.mxu1  ;;  %v2615_v10 = vadd.f32 %v2614_v8, %v5463_v58 }
 0x3dc   : > { %v5750_v11 = vadd.f32 %v2878_v6, %v2790_v9  ;;  %2929 = vmatmul.bf16.gmra.mxu0 %v5408_v43  ;;  %v2704_v12 = vadd.f32 %v2703_v59, %v2615_v10 }
 0x3dd   : > { %3018 = vmatmul.bf16.gmra.mxu1 %v5410_v44 }
 0x3de   : > { %3107 = vmatmul.bf16.gmra.mxu2 %v5412_v45 }
 0x3df   : > { %3196 = vmatmul.bf16.gmra.mxu3 %v5414_v46 }
 0x3e1   : > { %v2792_v49 = vpop.f32.mrf.mxu2  ;;  %v2616_v33 = vpop.f32.mrf.mxu0 }
 0x3e2   : > { %v2881_v18 = vpop.f32.mrf.mxu3  ;;  %v2793_v22 = vadd.f32 %v2792_v49, %v2704_v12  ;;  %v2705_v41 = vpop.f32.mrf.mxu1  ;;  %v2617_v34 = vadd.f32 %v2616_v33, %v5463_v58 }
 0x3e4   : > { %v5757_v36 = vadd.f32 %v2881_v18, %v2793_v22  ;;  %v2706_v61 = vadd.f32 %v2705_v41, %v2617_v34  ;;  %v3247_v34 = vmax.f32 %v5499_v2, 0.0 }
 0x3e9   : > { %v2794_v29 = vpop.f32.mrf.mxu2  ;;  %v2619_v13 = vpop.f32.mrf.mxu0 }
 0x3ea   : > { %v2883_v60 = vpop.f32.mrf.mxu3  ;;  %v2795_v43 = vadd.f32 %v2794_v29, %v2706_v61  ;;  %v2708_v30 = vpop.f32.mrf.mxu1  ;;  %v2620_v44 = vadd.f32 %v2619_v13, %v5463_v58 }
 0x3ec   : > { %v5760_v45 = vadd.f32 %v2883_v60, %v2795_v43  ;;  %2934 = vmatmul.bf16.gmra.mxu0 %v5446_v25  ;;  %v2709_v46 = vadd.f32 %v2708_v30, %v2620_v44  ;;  %v4532_v25 = vld [vmem:[%s5930_s6] sm:$0x3]  ;;  %v5986_v44 = vld [vmem:[#allocation11_spill] sm:$0xff] }
 0x3ed   : > { %3023 = vmatmul.bf16.gmra.mxu1 %v5448_v26  ;;  %v5772_v48 = vperm.slane %v4532_v25, 1 }
 0x3ee   : > { %3112 = vmatmul.bf16.gmra.mxu2 %v5450_v27 }
 0x3ef   : > { %3201 = vmatmul.bf16.gmra.mxu3 %v5452_v28 }
 0x3f1   : > { %v2797_v32 = vpop.f32.mrf.mxu2  ;;  %v2621_v14 = vpop.f32.mrf.mxu0 }
 0x3f2   : > { %v2886_v0 = vpop.f32.mrf.mxu3  ;;  %v2798_v19 = vadd.f32 %v2797_v32, %v2709_v46  ;;  %v2710_v37 = vpop.f32.mrf.mxu1  ;;  %v2622_v24 = vadd.f32 %v2621_v14, %v5463_v58  ;;  %v3249_v46 = vmax.f32 %v5986_v44, 0.0 }
 0x3f4   : > { %v5767_v3 = vadd.f32 %v2886_v0, %v2798_v19  ;;  %v2711_v38 = vadd.f32 %v2710_v37, %v2622_v24  ;;  %v5987_v0 = vld [vmem:[#allocation9_spill] sm:$0xff]  ;;  %v5988_v19 = vld [vmem:[#allocation10_spill] sm:$0xff] }
 0x3f9   : > { %v2799_v26 = vpop.f32.mrf.mxu2  ;;  %v2900_v28 = vpop.f32.mrf.mxu0 }
 0x3fa   : > { %v2888_v27 = vpop.f32.mrf.mxu3  ;;  %v2800_v6 = vadd.f32 %v2799_v26, %v2711_v38  ;;  %v2989_v9 = vpop.f32.mrf.mxu1  ;;  %v2901_v8 = vadd.f32 %v2900_v28, %v5772_v48 }
 0x3fc   : > { %v5775_v59 = vadd.f32 %v2888_v27, %v2800_v6  ;;  %2939 = vmatmul.bf16.gmra.mxu0 %v5465_v63  ;;  %v2990_v58 = vadd.f32 %v2989_v9, %v2901_v8 }
 0x3fd   : > { %3028 = vmatmul.bf16.gmra.mxu1 %v5467_v1 }
 0x3fe   : > { %3117 = vmatmul.bf16.gmra.mxu2 %v5470_v4 }
 0x3ff   : > { %3206 = vmatmul.bf16.gmra.mxu3 %v5472_v17 }
 0x401   : > { %v3078_v10 = vpop.f32.mrf.mxu2  ;;  %v2902_v18 = vpop.f32.mrf.mxu0 }
 0x402   : > { %v3167_v12 = vpop.f32.mrf.mxu3  ;;  %v3079_v49 = vadd.f32 %v3078_v10, %v2990_v58  ;;  %v2991_v22 = vpop.f32.mrf.mxu1  ;;  %v2903_v41 = vadd.f32 %v2902_v18, %v5772_v48 }
 0x404   : > { %v3168_v33 = vadd.f32 %v3167_v12, %v3079_v49  ;;  %v2992_v29 = vadd.f32 %v2991_v22, %v2903_v41  ;;  %v5990_v41 = vld [vmem:[#allocation13_spill] sm:$0xff] }
 0x406   : > { %v3248_v61 = vmax.f32 %v3168_v33, 0.0 }
 0x408   : > { %v3311_v63 = vpack.c.bf16 %v3248_v61, %v3247_v34  ;;  %v5991_v34 = vld [vmem:[#allocation14_spill] sm:$0xff]  ;;  %v5992_v61 = vld [vmem:[#allocation17_spill] sm:$0xff] }
 0x409   : > { %v3080_v1 = vpop.f32.mrf.mxu2  ;;  %v2905_v43 = vpop.f32.mrf.mxu0 }
 0x40a   : > { %v3169_v60 = vpop.f32.mrf.mxu3  ;;  %3343 = vst [vmem:[%s4810_s9] sm:$0xff] %v3311_v63  ;;  %v3081_v4 = vadd.f32 %v3080_v1, %v2992_v29  ;;  %v2994_v17 = vpop.f32.mrf.mxu1  ;;  %v2906_v13 = vadd.f32 %v2905_v43, %v5772_v48  ;;  %v3253_v63 = vmax.f32 %v5992_v61, 0.0 }
 0x40c   : > { %v3170_v30 = vadd.f32 %v3169_v60, %v3081_v4  ;;  %2944 = vmatmul.bf16.gmra.mxu0 %v5507_v42  ;;  %v2995_v32 = vadd.f32 %v2994_v17, %v2906_v13  ;;  %v5993_v60 = vld [vmem:[#allocation15_spill] sm:$0xff]  ;;  %v5994_v4 = vld [vmem:[#allocation16_spill] sm:$0xff] }
 0x40d   : > { %3033 = vmatmul.bf16.gmra.mxu1 %v5509_v51  ;;  %v5989_v51 = vld [vmem:[#allocation12_spill] sm:$0xff] }
 0x40e   : > { %v3250_v2 = vmax.f32 %v3170_v30, 0.0  ;;  %3122 = vmatmul.bf16.gmra.mxu2 %v5987_v0  ;;  %v3251_v6 = vmax.f32 %v5989_v51, 0.0  ;;  %v5995_v0 = vld [vmem:[#allocation18_spill] sm:$0xff] }
 0x40f   : > { %3211 = vmatmul.bf16.gmra.mxu3 %v5988_v19  ;;  %v3255_v19 = vmax.f32 %v5995_v0, 0.0 }
 0x410   : > { %v3312_v14 = vpack.c.bf16 %v3250_v2, %v3249_v46 }
 0x411   : > { %v3083_v37 = vpop.f32.mrf.mxu2  ;;  %v2907_v25 = vpop.f32.mrf.mxu0 }
 0x412   : > { %v3172_v24 = vpop.f32.mrf.mxu3  ;;  %3344 = vst [vmem:[%s4810_s9 + $0x8] sm:$0xff] %v3312_v14  ;;  %v3084_v38 = vadd.f32 %v3083_v37, %v2995_v32  ;;  %v2996_v26 = vpop.f32.mrf.mxu1  ;;  %v2908_v42 = vadd.f32 %v2907_v25, %v5772_v48 }
 0x414   : > { %v3173_v27 = vadd.f32 %v3172_v24, %v3084_v38  ;;  %v2997_v8 = vadd.f32 %v2996_v26, %v2908_v42 }
 0x416   : > { %v3252_v28 = vmax.f32 %v3173_v27, 0.0 }
 0x418   : > { %v3313_v9 = vpack.c.bf16 %v3252_v28, %v3251_v6  ;;  %v5996_v28 = vld [vmem:[#allocation19_spill] sm:$0xff] }
 0x419   : > { %v3085_v58 = vpop.f32.mrf.mxu2  ;;  %v2910_v49 = vpop.f32.mrf.mxu0 }
 0x41a   : > { %v3174_v10 = vpop.f32.mrf.mxu3  ;;  %3345 = vst [vmem:[%s4810_s9 + $0x10] sm:$0xff] %v3313_v9  ;;  %v3086_v12 = vadd.f32 %v3085_v58, %v2997_v8  ;;  %v2999_v18 = vpop.f32.mrf.mxu1  ;;  %v2911_v22 = vadd.f32 %v2910_v49, %v5772_v48  ;;  %v5997_v9 = vld [vmem:[#allocation20_spill] sm:$0xff]  ;;  %v5998_v8 = vld [vmem:[#allocation23_spill] sm:$0xff]  ;;  %v5999_v49 = vld [vmem:[#allocation21_spill] sm:$0xff] }
 0x41b   : > { %v3257_v58 = vmax.f32 %v5998_v8, 0.0 }
 0x41c   : > { %v3175_v33 = vadd.f32 %v3174_v10, %v3086_v12  ;;  %2949 = vmatmul.bf16.gmra.mxu0 %v5990_v41  ;;  %v3000_v1 = vadd.f32 %v2999_v18, %v2911_v22  ;;  %v6000_v18 = vld [vmem:[#allocation22_spill] sm:$0xff] }
 0x41d   : > { %3038 = vmatmul.bf16.gmra.mxu1 %v5991_v34 }
 0x41e   : > { %v3254_v29 = vmax.f32 %v3175_v33, 0.0  ;;  %3127 = vmatmul.bf16.gmra.mxu2 %v5993_v60  ;;  %v6001_v60 = vld [vmem:[#allocation24_spill] sm:$0xff] }
 0x41f   : > { %3216 = vmatmul.bf16.gmra.mxu3 %v5994_v4  ;;  %v3259_v4 = vmax.f32 %v6001_v60, 0.0 }
 0x420   : > { %v3314_v43 = vpack.c.bf16 %v3254_v29, %v3253_v63 }
 0x421   : > { %v3088_v17 = vpop.f32.mrf.mxu2  ;;  %v2912_v44 = vpop.f32.mrf.mxu0 }
 0x422   : > { %v3177_v13 = vpop.f32.mrf.mxu3  ;;  %3346 = vst [vmem:[%s4810_s9 + $0x18] sm:$0xff] %v3314_v43  ;;  %v3089_v30 = vadd.f32 %v3088_v17, %v3000_v1  ;;  %v3001_v46 = vpop.f32.mrf.mxu1  ;;  %v2913_v32 = vadd.f32 %v2912_v44, %v5772_v48 }
 0x424   : > { %v3178_v2 = vadd.f32 %v3177_v13, %v3089_v30  ;;  %v3002_v24 = vadd.f32 %v3001_v46, %v2913_v32 }
 0x426   : > { %v3256_v14 = vmax.f32 %v3178_v2, 0.0 }
 0x428   : > { %v3315_v37 = vpack.c.bf16 %v3256_v14, %v3255_v19  ;;  %v6002_v14 = vld [vmem:[#allocation25_spill] sm:$0xff] }
 0x429   : > { %v3090_v38 = vpop.f32.mrf.mxu2  ;;  %v2915_v27 = vpop.f32.mrf.mxu0 }
 0x42a   : > { %v3179_v25 = vpop.f32.mrf.mxu3  ;;  %3347 = vst [vmem:[%s4810_s9 + $0x20] sm:$0xff] %v3315_v37  ;;  %v3091_v26 = vadd.f32 %v3090_v38, %v3002_v24  ;;  %v3004_v42 = vpop.f32.mrf.mxu1  ;;  %v2916_v51 = vadd.f32 %v2915_v27, %v5772_v48  ;;  %v6003_v37 = vld [vmem:[#allocation26_spill] sm:$0xff]  ;;  %v6004_v24 = vld [vmem:[#allocation29_spill] sm:$0xff]  ;;  %v6005_v27 = vld [vmem:[#allocation27_spill] sm:$0xff] }
 0x42b   : > { %v3261_v38 = vmax.f32 %v6004_v24, 0.0 }
 0x42c   : > { %v3180_v6 = vadd.f32 %v3179_v25, %v3091_v26  ;;  %2954 = vmatmul.bf16.gmra.mxu0 %v5996_v28  ;;  %v3005_v12 = vadd.f32 %v3004_v42, %v2916_v51  ;;  %v6006_v42 = vld [vmem:[#allocation28_spill] sm:$0xff] }
 0x42d   : > { %3043 = vmatmul.bf16.gmra.mxu1 %v5997_v9 }
 0x42e   : > { %v3258_v10 = vmax.f32 %v3180_v6, 0.0  ;;  %3132 = vmatmul.bf16.gmra.mxu2 %v5999_v49  ;;  %v6007_v49 = vld [vmem:[#allocation30_spill] sm:$0xff] }
 0x42f   : > { %3221 = vmatmul.bf16.gmra.mxu3 %v6000_v18  ;;  %v3263_v18 = vmax.f32 %v6007_v49, 0.0 }
 0x430   : > { %v3316_v22 = vpack.c.bf16 %v3258_v10, %v3257_v58 }
 0x431   : > { %v3093_v33 = vpop.f32.mrf.mxu2  ;;  %v2917_v61 = vpop.f32.mrf.mxu0 }
 0x432   : > { %v3182_v41 = vpop.f32.mrf.mxu3  ;;  %3348 = vst [vmem:[%s4810_s9 + $0x28] sm:$0xff] %v3316_v22  ;;  %v3094_v34 = vadd.f32 %v3093_v33, %v3005_v12  ;;  %v3006_v63 = vpop.f32.mrf.mxu1  ;;  %v2918_v1 = vadd.f32 %v2917_v61, %v5772_v48 }
 0x434   : > { %v3183_v29 = vadd.f32 %v3182_v41, %v3094_v34  ;;  %v3007_v13 = vadd.f32 %v3006_v63, %v2918_v1 }
 0x436   : > { %v3260_v43 = vmax.f32 %v3183_v29, 0.0 }
 0x438   : > { %v3317_v17 = vpack.c.bf16 %v3260_v43, %v3259_v4  ;;  %v3265_v43 = vmax.f32 %v5644_v56, 0.0 }
 0x439   : > { %v3095_v30 = vpop.f32.mrf.mxu2  ;;  %v2920_v2 = vpop.f32.mrf.mxu0 }
 0x43a   : > { %v3184_v44 = vpop.f32.mrf.mxu3  ;;  %3349 = vst [vmem:[%s4810_s9 + $0x30] sm:$0xff] %v3317_v17  ;;  %v3096_v46 = vadd.f32 %v3095_v30, %v3007_v13  ;;  %v3009_v32 = vpop.f32.mrf.mxu1  ;;  %v2921_v0 = vadd.f32 %v2920_v2, %v5772_v48  ;;  %v6008_v30 = vld [vmem:[#allocation31_spill] sm:$0xff] }
 0x43c   : > { %v3185_v19 = vadd.f32 %v3184_v44, %v3096_v46  ;;  %2959 = vmatmul.bf16.gmra.mxu0 %v6002_v14  ;;  %v3010_v26 = vadd.f32 %v3009_v32, %v2921_v0  ;;  %v6009_v44 = vld [vmem:[#allocation32_spill] sm:$0xff] }
 0x43d   : > { %3048 = vmatmul.bf16.gmra.mxu1 %v6003_v37 }
 0x43e   : > { %v3262_v25 = vmax.f32 %v3185_v19, 0.0  ;;  %3137 = vmatmul.bf16.gmra.mxu2 %v6005_v27 }
 0x43f   : > { %3226 = vmatmul.bf16.gmra.mxu3 %v6006_v42 }
 0x440   : > { %v3318_v51 = vpack.c.bf16 %v3262_v25, %v3261_v38 }
 0x441   : > { %v3098_v6 = vpop.f32.mrf.mxu2  ;;  %v2922_v8 = vpop.f32.mrf.mxu0 }
 0x442   : > { %v3187_v28 = vpop.f32.mrf.mxu3  ;;  %3350 = vst [vmem:[%s4810_s9 + $0x38] sm:$0xff] %v3318_v51  ;;  %v3099_v9 = vadd.f32 %v3098_v6, %v3010_v26  ;;  %v3011_v58 = vpop.f32.mrf.mxu1  ;;  %v2923_v12 = vadd.f32 %v2922_v8, %v5772_v48  ;;  %v6011_v8 = vld [vmem:[#allocation34_spill] sm:$0xff] }
 0x444   : > { %v3188_v10 = vadd.f32 %v3187_v28, %v3099_v9  ;;  %v3012_v41 = vadd.f32 %v3011_v58, %v2923_v12  ;;  %v6012_v58 = vld [vmem:[#allocation35_spill] sm:$0xff] }
 0x446   : > { %v3264_v22 = vmax.f32 %v3188_v10, 0.0  ;;  %v6013_v10 = vld [vmem:[#allocation38_spill] sm:$0xff] }
 0x447   : > { %v3269_v12 = vmax.f32 %v6013_v10, 0.0 }
 0x448   : > { %v3319_v33 = vpack.c.bf16 %v3264_v22, %v3263_v18  ;;  %v6014_v22 = vld [vmem:[#allocation36_spill] sm:$0xff] }
 0x449   : > { %v3100_v34 = vpop.f32.mrf.mxu2  ;;  %v2925_v29 = vpop.f32.mrf.mxu0 }
 0x44a   : > { %v3189_v61 = vpop.f32.mrf.mxu3  ;;  %3351 = vst [vmem:[%s4810_s9 + $0x40] sm:$0xff] %v3319_v33  ;;  %v3101_v63 = vadd.f32 %v3100_v34, %v3012_v41  ;;  %v3014_v1 = vpop.f32.mrf.mxu1  ;;  %v2926_v60 = vadd.f32 %v2925_v29, %v5772_v48  ;;  %v6015_v33 = vld [vmem:[#allocation37_spill] sm:$0xff] }
 0x44c   : > { %v3190_v4 = vadd.f32 %v3189_v61, %v3101_v63  ;;  %2964 = vmatmul.bf16.gmra.mxu0 %v5635_v52  ;;  %v3015_v13 = vadd.f32 %v3014_v1, %v2926_v60 }
 0x44d   : > { %3053 = vmatmul.bf16.gmra.mxu1 %v5637_v23  ;;  %v6010_v23 = vld [vmem:[#allocation33_spill] sm:$0xff] }
 0x44e   : > { %v3266_v17 = vmax.f32 %v3190_v4, 0.0  ;;  %3142 = vmatmul.bf16.gmra.mxu2 %v6008_v30  ;;  %v3267_v24 = vmax.f32 %v6010_v23, 0.0 }
 0x44f   : > { %3231 = vmatmul.bf16.gmra.mxu3 %v6009_v44 }
 0x450   : > { %v3320_v46 = vpack.c.bf16 %v3266_v17, %v3265_v43  ;;  %v6016_v43 = vld [vmem:[#allocation39_spill] sm:$0xff] }
 0x451   : > { %v3103_v2 = vpop.f32.mrf.mxu2  ;;  %v2927_v19 = vpop.f32.mrf.mxu0  ;;  %v3271_v17 = vmax.f32 %v6016_v43, 0.0  ;;  %v3279_v43 = vmax.f32 %v5697_v39, 0.0 }
 0x452   : > { %v3192_v32 = vpop.f32.mrf.mxu3  ;;  %3352 = vst [vmem:[%s4810_s9 + $0x48] sm:$0xff] %v3320_v46  ;;  %v3104_v0 = vadd.f32 %v3103_v2, %v3015_v13  ;;  %v3016_v14 = vpop.f32.mrf.mxu1  ;;  %v2928_v52 = vadd.f32 %v2927_v19, %v5772_v48 }
 0x454   : > { %v3193_v37 = vadd.f32 %v3192_v32, %v3104_v0  ;;  %v3017_v25 = vadd.f32 %v3016_v14, %v2928_v52  ;;  %v3273_v52 = vmax.f32 %v5680_v54, 0.0 }
 0x456   : > { %v3268_v56 = vmax.f32 %v3193_v37, 0.0 }
 0x458   : > { %v3321_v38 = vpack.c.bf16 %v3268_v56, %v3267_v24  ;;  %v6017_v56 = vld [vmem:[#allocation40_spill] sm:$0xff] }
 0x459   : > { %v3105_v26 = vpop.f32.mrf.mxu2  ;;  %v2930_v51 = vpop.f32.mrf.mxu0 }
 0x45a   : > { %v3194_v27 = vpop.f32.mrf.mxu3  ;;  %3353 = vst [vmem:[%s4810_s9 + $0x50] sm:$0xff] %v3321_v38  ;;  %v3106_v42 = vadd.f32 %v3105_v26, %v3017_v25  ;;  %v3019_v6 = vpop.f32.mrf.mxu1  ;;  %v2931_v28 = vadd.f32 %v2930_v51, %v5772_v48 }
 0x45c   : > { %v3195_v9 = vadd.f32 %v3194_v27, %v3106_v42  ;;  %2969 = vmatmul.bf16.gmra.mxu0 %v6011_v8  ;;  %v3020_v18 = vadd.f32 %v3019_v6, %v2931_v28 }
 0x45d   : > { %3058 = vmatmul.bf16.gmra.mxu1 %v6012_v58 }
 0x45e   : > { %v3270_v49 = vmax.f32 %v3195_v9, 0.0  ;;  %3147 = vmatmul.bf16.gmra.mxu2 %v6014_v22  ;;  %v3277_v22 = vmax.f32 %v5690_v57, 0.0 }
 0x45f   : > { %3236 = vmatmul.bf16.gmra.mxu3 %v6015_v33 }
 0x460   : > { %v3322_v41 = vpack.c.bf16 %v3270_v49, %v3269_v12 }
 0x461   : > { %v3108_v34 = vpop.f32.mrf.mxu2  ;;  %v2932_v29 = vpop.f32.mrf.mxu0 }
 0x462   : > { %v3197_v61 = vpop.f32.mrf.mxu3  ;;  %3354 = vst [vmem:[%s4810_s9 + $0x58] sm:$0xff] %v3322_v41  ;;  %v3109_v63 = vadd.f32 %v3108_v34, %v3020_v18  ;;  %v3021_v1 = vpop.f32.mrf.mxu1  ;;  %v2933_v4 = vadd.f32 %v2932_v29, %v5772_v48 }
 0x464   : > { %v3198_v60 = vadd.f32 %v3197_v61, %v3109_v63  ;;  %v3022_v44 = vadd.f32 %v3021_v1, %v2933_v4 }
 0x466   : > { %v3272_v13 = vmax.f32 %v3198_v60, 0.0 }
 0x468   : > { %v3323_v30 = vpack.c.bf16 %v3272_v13, %v3271_v17 }
 0x469   : > { %v3110_v46 = vpop.f32.mrf.mxu2  ;;  %v2935_v0 = vpop.f32.mrf.mxu0 }
 0x46a   : > { %v3199_v2 = vpop.f32.mrf.mxu3  ;;  %3355 = vst [vmem:[%s4810_s9 + $0x60] sm:$0xff] %v3323_v30  ;;  %v3111_v32 = vadd.f32 %v3110_v46, %v3022_v44  ;;  %v3024_v19 = vpop.f32.mrf.mxu1  ;;  %v2936_v14 = vadd.f32 %v2935_v0, %v5772_v48 }
 0x46c   : > { %v3200_v37 = vadd.f32 %v3199_v2, %v3111_v32  ;;  %2974 = vmatmul.bf16.gmra.mxu0 %v5671_v62  ;;  %v3025_v24 = vadd.f32 %v3024_v19, %v2936_v14  ;;  %v3281_v14 = vmax.f32 %v5700_v47, 0.0 }
 0x46d   : > { %3063 = vmatmul.bf16.gmra.mxu1 %v5673_v21  ;;  %v3275_v21 = vmax.f32 %v5687_v50, 0.0 }
 0x46e   : > { %v3274_v23 = vmax.f32 %v3200_v37, 0.0  ;;  %3152 = vmatmul.bf16.gmra.mxu2 %v5675_v40 }
 0x46f   : > { %3241 = vmatmul.bf16.gmra.mxu3 %v6017_v56 }
 0x470   : > { %v3324_v38 = vpack.c.bf16 %v3274_v23, %v3273_v52 }
 0x471   : > { %v3113_v25 = vpop.f32.mrf.mxu2  ;;  %v2937_v42 = vpop.f32.mrf.mxu0 }
 0x472   : > { %v3202_v26 = vpop.f32.mrf.mxu3  ;;  %3356 = vst [vmem:[%s4810_s9 + $0x68] sm:$0xff] %v3324_v38  ;;  %v3114_v27 = vadd.f32 %v3113_v25, %v3025_v24  ;;  %v3026_v51 = vpop.f32.mrf.mxu1  ;;  %v2938_v62 = vadd.f32 %v2937_v42, %v5772_v48  ;;  %v3283_v42 = vmax.f32 %v5707_v20, 0.0 }
 0x474   : > { %v3203_v6 = vadd.f32 %v3202_v26, %v3114_v27  ;;  %v3027_v9 = vadd.f32 %v3026_v51, %v2938_v62 }
 0x476   : > { %v3276_v54 = vmax.f32 %v3203_v6, 0.0 }
 0x478   : > { %v3325_v28 = vpack.c.bf16 %v3276_v54, %v3275_v21 }
 0x479   : > { %v3115_v40 = vpop.f32.mrf.mxu2  ;;  %v2940_v10 = vpop.f32.mrf.mxu0 }
 0x47a   : > { %v3204_v8 = vpop.f32.mrf.mxu3  ;;  %3357 = vst [vmem:[%s4810_s9 + $0x70] sm:$0xff] %v3325_v28  ;;  %v3116_v58 = vadd.f32 %v3115_v40, %v3027_v9  ;;  %v3029_v12 = vpop.f32.mrf.mxu1  ;;  %v2941_v49 = vadd.f32 %v2940_v10, %v5772_v48 }
 0x47c   : > { %v3205_v18 = vadd.f32 %v3204_v8, %v3116_v58  ;;  %v3030_v41 = vadd.f32 %v3029_v12, %v2941_v49  ;;  %v3285_v58 = vmax.f32 %v5710_v15, 0.0 }
 0x47e   : > { %v3278_v33 = vmax.f32 %v3205_v18, 0.0 }
 0x480   : > { %v3326_v34 = vpack.c.bf16 %v3278_v33, %v3277_v22 }
 0x481   : > { %v3118_v50 = vpop.f32.mrf.mxu2  ;;  %v2942_v29 = vpop.f32.mrf.mxu0 }
 0x482   : > { %v3207_v61 = vpop.f32.mrf.mxu3  ;;  %3358 = vst [vmem:[%s4810_s9 + $0x78] sm:$0xff] %v3326_v34  ;;  %v3119_v63 = vadd.f32 %v3118_v50, %v3030_v41  ;;  %v3031_v1 = vpop.f32.mrf.mxu1  ;;  %v2943_v4 = vadd.f32 %v2942_v29, %v5772_v48 }
 0x484   : > { %v3208_v60 = vadd.f32 %v3207_v61, %v3119_v63  ;;  %v3032_v30 = vadd.f32 %v3031_v1, %v2943_v4  ;;  %v3287_v61 = vmax.f32 %v5717_v55, 0.0 }
 0x486   : > { %v3280_v17 = vmax.f32 %v3208_v60, 0.0 }
 0x488   : > { %v3327_v13 = vpack.c.bf16 %v3280_v17, %v3279_v43 }
 0x489   : > { %v3120_v57 = vpop.f32.mrf.mxu2  ;;  %v2945_v2 = vpop.f32.mrf.mxu0 }
 0x48a   : > { %v3209_v44 = vpop.f32.mrf.mxu3  ;;  %3359 = vst [vmem:[%s4810_s9 + $0x80] sm:$0xff] %v3327_v13  ;;  %v3121_v46 = vadd.f32 %v3120_v57, %v3032_v30  ;;  %v3034_v32 = vpop.f32.mrf.mxu1  ;;  %v2946_v0 = vadd.f32 %v2945_v2, %v5772_v48  ;;  %v3289_v57 = vmax.f32 %v5720_v35, 0.0 }
 0x48c   : > { %v3210_v19 = vadd.f32 %v3209_v44, %v3121_v46  ;;  %v3035_v52 = vadd.f32 %v3034_v32, %v2946_v0 }
 0x48e   : > { %v3282_v37 = vmax.f32 %v3210_v19, 0.0 }
 0x490   : > { %v3328_v23 = vpack.c.bf16 %v3282_v37, %v3281_v14 }
 0x491   : > { %v3123_v39 = vpop.f32.mrf.mxu2  ;;  %v2947_v38 = vpop.f32.mrf.mxu0 }
 0x492   : > { %v3212_v24 = vpop.f32.mrf.mxu3  ;;  %3360 = vst [vmem:[%s4810_s9 + $0x88] sm:$0xff] %v3328_v23  ;;  %v3124_v56 = vadd.f32 %v3123_v39, %v3035_v52  ;;  %v3036_v25 = vpop.f32.mrf.mxu1  ;;  %v2948_v27 = vadd.f32 %v2947_v38, %v5772_v48  ;;  %v3291_v23 = vmax.f32 %v5727_v16, 0.0 }
 0x494   : > { %v3213_v26 = vadd.f32 %v3212_v24, %v3124_v56  ;;  %v3037_v62 = vadd.f32 %v3036_v25, %v2948_v27 }
 0x496   : > { %v3284_v51 = vmax.f32 %v3213_v26, 0.0 }
 0x498   : > { %v3329_v6 = vpack.c.bf16 %v3284_v51, %v3283_v42 }
 0x499   : > { %v3125_v47 = vpop.f32.mrf.mxu2  ;;  %v2950_v28 = vpop.f32.mrf.mxu0 }
 0x49a   : > { %v3214_v21 = vpop.f32.mrf.mxu3  ;;  %3361 = vst [vmem:[%s4810_s9 + $0x90] sm:$0xff] %v3329_v6  ;;  %v3126_v54 = vadd.f32 %v3125_v47, %v3037_v62  ;;  %v3039_v9 = vpop.f32.mrf.mxu1  ;;  %v2951_v40 = vadd.f32 %v2950_v28, %v5772_v48  ;;  %v3293_v6 = vmax.f32 %v5730_v7, 0.0 }
 0x49c   : > { %v3215_v8 = vadd.f32 %v3214_v21, %v3126_v54  ;;  %v3040_v12 = vadd.f32 %v3039_v9, %v2951_v40 }
 0x49e   : > { %v3286_v10 = vmax.f32 %v3215_v8, 0.0 }
 0x4a0   : > { %v3330_v49 = vpack.c.bf16 %v3286_v10, %v3285_v58  ;;  %v3295_v10 = vmax.f32 %v5737_v53, 0.0 }
 0x4a1   : > { %v3128_v20 = vpop.f32.mrf.mxu2  ;;  %v2952_v33 = vpop.f32.mrf.mxu0 }
 0x4a2   : > { %v3217_v18 = vpop.f32.mrf.mxu3  ;;  %3362 = vst [vmem:[%s4810_s9 + $0x98] sm:$0xff] %v3330_v49  ;;  %v3129_v22 = vadd.f32 %v3128_v20, %v3040_v12  ;;  %v3041_v41 = vpop.f32.mrf.mxu1  ;;  %v2953_v50 = vadd.f32 %v2952_v33, %v5772_v48 }
 0x4a4   : > { %v3218_v34 = vadd.f32 %v3217_v18, %v3129_v22  ;;  %v3042_v1 = vadd.f32 %v3041_v41, %v2953_v50 }
 0x4a6   : > { %v3288_v63 = vmax.f32 %v3218_v34, 0.0 }
 0x4a8   : > { %v3331_v29 = vpack.c.bf16 %v3288_v63, %v3287_v61  ;;  %v3297_v61 = vmax.f32 %v5740_v31, 0.0 }
 0x4a9   : > { %v3130_v15 = vpop.f32.mrf.mxu2  ;;  %v2955_v43 = vpop.f32.mrf.mxu0 }
 0x4aa   : > { %v3219_v60 = vpop.f32.mrf.mxu3  ;;  %3363 = vst [vmem:[%s4810_s9 + $0xa0] sm:$0xff] %v3331_v29  ;;  %v3131_v4 = vadd.f32 %v3130_v15, %v3042_v1  ;;  %v3044_v17 = vpop.f32.mrf.mxu1  ;;  %v2956_v13 = vadd.f32 %v2955_v43, %v5772_v48 }
 0x4ac   : > { %v3220_v30 = vadd.f32 %v3219_v60, %v3131_v4  ;;  %v3045_v46 = vadd.f32 %v3044_v17, %v2956_v13 }
 0x4ae   : > { %v3290_v44 = vmax.f32 %v3220_v30, 0.0  ;;  %v3299_v30 = vmax.f32 %v5747_v5, 0.0 }
 0x4b0   : > { %v3332_v2 = vpack.c.bf16 %v3290_v44, %v3289_v57 }
 0x4b1   : > { %v3133_v55 = vpop.f32.mrf.mxu2  ;;  %v2957_v19 = vpop.f32.mrf.mxu0 }
 0x4b2   : > { %v3222_v32 = vpop.f32.mrf.mxu3  ;;  %3364 = vst [vmem:[%s4810_s9 + $0xa8] sm:$0xff] %v3332_v2  ;;  %v3134_v0 = vadd.f32 %v3133_v55, %v3045_v46  ;;  %v3046_v14 = vpop.f32.mrf.mxu1  ;;  %v2958_v52 = vadd.f32 %v2957_v19, %v5772_v48 }
 0x4b4   : > { %v3223_v37 = vadd.f32 %v3222_v32, %v3134_v0  ;;  %v3047_v56 = vadd.f32 %v3046_v14, %v2958_v52 }
 0x4b6   : > { %v3292_v39 = vmax.f32 %v3223_v37, 0.0  ;;  %v3301_v37 = vmax.f32 %v5750_v11, 0.0 }
 0x4b8   : > { %v3333_v24 = vpack.c.bf16 %v3292_v39, %v3291_v23 }
 0x4b9   : > { %v3135_v35 = vpop.f32.mrf.mxu2  ;;  %v2960_v26 = vpop.f32.mrf.mxu0 }
 0x4ba   : > { %v3224_v38 = vpop.f32.mrf.mxu3  ;;  %3365 = vst [vmem:[%s4810_s9 + $0xb0] sm:$0xff] %v3333_v24  ;;  %v3136_v25 = vadd.f32 %v3135_v35, %v3047_v56  ;;  %v3049_v27 = vpop.f32.mrf.mxu1  ;;  %v2961_v42 = vadd.f32 %v2960_v26, %v5772_v48 }
 0x4bc   : > { %v3225_v51 = vadd.f32 %v3224_v38, %v3136_v25  ;;  %v3050_v47 = vadd.f32 %v3049_v27, %v2961_v42  ;;  %v3303_v27 = vmax.f32 %v5757_v36, 0.0 }
 0x4be   : > { %v3294_v62 = vmax.f32 %v3225_v51, 0.0 }
 0x4c0   : > { %v3334_v21 = vpack.c.bf16 %v3294_v62, %v3293_v6 }
 0x4c1   : > { %v3138_v16 = vpop.f32.mrf.mxu2  ;;  %v2962_v9 = vpop.f32.mrf.mxu0 }
 0x4c2   : > { %v3227_v54 = vpop.f32.mrf.mxu3  ;;  %3366 = vst [vmem:[%s4810_s9 + $0xb8] sm:$0xff] %v3334_v21  ;;  %v3139_v28 = vadd.f32 %v3138_v16, %v3050_v47  ;;  %v3051_v40 = vpop.f32.mrf.mxu1  ;;  %v2963_v58 = vadd.f32 %v2962_v9, %v5772_v48  ;;  %v3305_v9 = vmax.f32 %v5760_v45, 0.0 }
 0x4c4   : > { %v3228_v8 = vadd.f32 %v3227_v54, %v3139_v28  ;;  %v3052_v20 = vadd.f32 %v3051_v40, %v2963_v58 }
 0x4c6   : > { %v3296_v12 = vmax.f32 %v3228_v8, 0.0 }
 0x4c8   : > { %v3335_v49 = vpack.c.bf16 %v3296_v12, %v3295_v10 }
 0x4c9   : > { %v3140_v7 = vpop.f32.mrf.mxu2  ;;  %v2965_v33 = vpop.f32.mrf.mxu0 }
 0x4ca   : > { %v3229_v18 = vpop.f32.mrf.mxu3  ;;  %3367 = vst [vmem:[%s4810_s9 + $0xc0] sm:$0xff] %v3335_v49  ;;  %v3141_v22 = vadd.f32 %v3140_v7, %v3052_v20  ;;  %v3054_v41 = vpop.f32.mrf.mxu1  ;;  %v2966_v34 = vadd.f32 %v2965_v33, %v5772_v48 }
 0x4cc   : > { %v3230_v50 = vadd.f32 %v3229_v18, %v3141_v22  ;;  %v3055_v29 = vadd.f32 %v3054_v41, %v2966_v34  ;;  %v3307_v18 = vmax.f32 %v5767_v3, 0.0 }
 0x4ce   : > { %v3298_v63 = vmax.f32 %v3230_v50, 0.0 }
 0x4d0   : > { %v3336_v1 = vpack.c.bf16 %v3298_v63, %v3297_v61 }
 0x4d1   : > { %v3143_v53 = vpop.f32.mrf.mxu2  ;;  %v2967_v4 = vpop.f32.mrf.mxu0 }
 0x4d2   : > { %v3232_v15 = vpop.f32.mrf.mxu3  ;;  %3368 = vst [vmem:[%s4810_s9 + $0xc8] sm:$0xff] %v3336_v1  ;;  %v3144_v60 = vadd.f32 %v3143_v53, %v3055_v29  ;;  %v3056_v43 = vpop.f32.mrf.mxu1  ;;  %v2968_v13 = vadd.f32 %v2967_v4, %v5772_v48  ;;  %v3309_v29 = vmax.f32 %v5775_v59, 0.0 }
 0x4d4   : > { %v3233_v17 = vadd.f32 %v3232_v15, %v3144_v60  ;;  %v3057_v46 = vadd.f32 %v3056_v43, %v2968_v13 }
 0x4d6   : > { %v3300_v57 = vmax.f32 %v3233_v17, 0.0 }
 0x4d8   : > { %v3337_v44 = vpack.c.bf16 %v3300_v57, %v3299_v30 }
 0x4d9   : > { %v3145_v31 = vpop.f32.mrf.mxu2  ;;  %v2970_v32 = vpop.f32.mrf.mxu0 }
 0x4da   : > { %v3234_v2 = vpop.f32.mrf.mxu3  ;;  %3369 = vst [vmem:[%s4810_s9 + $0xd0] sm:$0xff] %v3337_v44  ;;  %v3146_v55 = vadd.f32 %v3145_v31, %v3057_v46  ;;  %v3059_v0 = vpop.f32.mrf.mxu1  ;;  %v2971_v19 = vadd.f32 %v2970_v32, %v5772_v48 }
 0x4dc   : > { %v3235_v14 = vadd.f32 %v3234_v2, %v3146_v55  ;;  %v3060_v23 = vadd.f32 %v3059_v0, %v2971_v19 }
 0x4de   : > { %v3302_v52 = vmax.f32 %v3235_v14, 0.0 }
 0x4e0   : > { %v3338_v39 = vpack.c.bf16 %v3302_v52, %v3301_v37 }
 0x4e1   : > { %v3148_v5 = vpop.f32.mrf.mxu2  ;;  %v2972_v35 = vpop.f32.mrf.mxu0 }
 0x4e2   : > { %v3237_v24 = vpop.f32.mrf.mxu3  ;;  %3370 = vst [vmem:[%s4810_s9 + $0xd8] sm:$0xff] %v3338_v39  ;;  %v3149_v56 = vadd.f32 %v3148_v5, %v3060_v23  ;;  %v3061_v38 = vpop.f32.mrf.mxu1  ;;  %v2973_v26 = vadd.f32 %v2972_v35, %v5772_v48 }
 0x4e4   : > { %v3238_v25 = vadd.f32 %v3237_v24, %v3149_v56  ;;  %v3062_v6 = vadd.f32 %v3061_v38, %v2973_v26 }
 0x4e6   : > { %v3304_v42 = vmax.f32 %v3238_v25, 0.0 }
 0x4e8   : > { %v3339_v51 = vpack.c.bf16 %v3304_v42, %v3303_v27 }
 0x4e9   : > { %v3150_v11 = vpop.f32.mrf.mxu2  ;;  %v2975_v21 = vpop.f32.mrf.mxu0 }
 0x4ea   : > { %v3239_v62 = vpop.f32.mrf.mxu3  ;;  %3371 = vst [vmem:[%s4810_s9 + $0xe0] sm:$0xff] %v3339_v51  ;;  %v3151_v47 = vadd.f32 %v3150_v11, %v3062_v6  ;;  %v2976_v16 = vadd.f32 %v2975_v21, %v5772_v48  ;;  %v3064_v28 = vpop.f32.mrf.mxu1 }
 0x4ec   : > { %v3240_v54 = vadd.f32 %v3239_v62, %v3151_v47  ;;  %v3065_v8 = vadd.f32 %v3064_v28, %v2976_v16 }
 0x4ee   : > { %v3306_v40 = vmax.f32 %v3240_v54, 0.0 }
 0x4f0   : > { %v3340_v58 = vpack.c.bf16 %v3306_v40, %v3305_v9 }
 0x4f1   : > { %v3153_v36 = vpop.f32.mrf.mxu2  ;;  %v2977_v49 = vpop.f32.mrf.mxu0 }
 0x4f2   : > { %v3242_v10 = vpop.f32.mrf.mxu3  ;;  %3372 = vst [vmem:[%s4810_s9 + $0xe8] sm:$0xff] %v3340_v58  ;;  %v3154_v12 = vadd.f32 %v3153_v36, %v3065_v8  ;;  %v2978_v7 = vadd.f32 %v2977_v49, %v5772_v48  ;;  %v3066_v33 = vpop.f32.mrf.mxu1 }
 0x4f4   : > { %v3243_v20 = vadd.f32 %v3242_v10, %v3154_v12  ;;  %v3067_v34 = vadd.f32 %v3066_v33, %v2978_v7 }
 0x4f6   : > { %v3308_v22 = vmax.f32 %v3243_v20, 0.0 }
 0x4f8   : > { %v3341_v41 = vpack.c.bf16 %v3308_v22, %v3307_v18 }
 0x4f9   : > { %v3155_v45 = vpop.f32.mrf.mxu2 }
 0x4fa   : > { %3373 = vst [vmem:[%s4810_s9 + $0xf0] sm:$0xff] %v3341_v41  ;;  %v3156_v50 = vadd.f32 %v3155_v45, %v3067_v34  ;;  %v3244_v61 = vpop.f32.mrf.mxu3 }
 0x4fc   : > { %v3245_v63 = vadd.f32 %v3244_v61, %v3156_v50 }
 0x4fe   : > { %v3310_v1 = vmax.f32 %v3245_v63, 0.0 }
 0x500   : > { %v3342_v53 = vpack.c.bf16 %v3310_v1, %v3309_v29 }
 0x502   : > { %3374 = vst [vmem:[%s4810_s9 + $0xf8] sm:$0xff] %v3342_v53 }
 0x503 PF: > { %s30_s13 = sadd.s32 1, %s4613_s13   ;;  %s6018_s9 = smov %s4593_s10 }
 0x504   : > { %p27_p1 = scmp.ge.s32.totalorder %s30_s13, 6   ;;  %s6019_s10 = smov %s4719_s16 }
 0x505   : > { %s6020_s11 = smov %s4605_s12  ;;  %s6021_s0 = smov %s4609_s1 }
 0x506   : > { %s6022_s12 = smov %s6025_s14  ;;  %s6023_s1 = smov %s6029_s15 }
 0x507   :  { %29 = sbr.rel (!%p27_p1) target bundleno = 11 (0xb), region = 131 }

</bundles_post_ra>
